<compile_context>
chip_gen: v6e
topology: v6e:2x2x1
jax: 0.10.0
libtpu: 0.0.40
codegen_flags: <defaults>
</compile_context>

<pallas_src>
import functools

import jax
import jax.numpy as jnp
from jax import lax
from jax.experimental import pallas as pl
from jax.experimental.pallas import tpu as pltpu

# ---------------- model hyper-parameters (small-scale stand-ins) ----------------
NUM_JOINTS = 24
NUM_FEATURES_SMPL = 64
SOFTMAX_TEMP = 1.0
C_STEM1, C_STEM2, C_BACKBONE = 32, 64, 128   # stand-in for resnet50 output channels


def _round_up(x, m):
    return ((x + m - 1) // m) * m


# ================================ Pallas kernels ================================

def _conv_kernel(x_ref, w_ref, b_ref, o_ref, acc_ref, *, k, Ho, Wo, relu):
    """Direct stride-1 conv for one batch element.

    x_ref : (1, Hp, Wp, Cin)  padded NHWC input (bf16)
    w_ref : (k*k, Cin, Cout)  per-tap weights (bf16)
    b_ref : (1, Cout)         bias (f32)
    o_ref : (1, Ho*Wo, Cout)  flat NHWC output (bf16)
    acc   : (Ho*Wo, Cout)     fp32 VMEM accumulator

    The k*k taps are folded into the matmul accumulation in-kernel, so no im2col
    patches ever touch HBM.
    """
    cin = x_ref.shape[-1]
    acc_ref[...] = jnp.zeros_like(acc_ref)
    for di in range(k):
        for dj in range(k):
            win = x_ref[0, di:di + Ho, dj:dj + Wo, :]          # (Ho, Wo, Cin)
            acc_ref[...] += jnp.dot(win.reshape(Ho * Wo, cin),
                                    w_ref[di * k + dj],
                                    preferred_element_type=jnp.float32)
    out = acc_ref[...] + b_ref[...]
    if relu:
        out = jnp.maximum(out, 0.0)
    o_ref[0] = out.astype(o_ref.dtype)


def conv_direct(x_pad, w_taps, b, *, k, Ho, Wo, relu=True):
    """x_pad: (N, Hp, Wp, Cin) -> (N, Ho*Wo, Cout).  One grid step per batch elem."""
    N, Hp, Wp, Cin = x_pad.shape
    Cout = w_taps.shape[-1]
    kern = functools.partial(_conv_kernel, k=k, Ho=Ho, Wo=Wo, relu=relu)
    return pl.pallas_call(
        kern,
        out_shape=jax.ShapeDtypeStruct((N, Ho * Wo, Cout), jnp.bfloat16),
        grid=(N,),
        in_specs=[
            pl.BlockSpec((1, Hp, Wp, Cin), lambda n: (n, 0, 0, 0)),
            pl.BlockSpec((k * k, Cin, Cout), lambda n: (0, 0, 0)),
            pl.BlockSpec((1, Cout), lambda n: (0, 0)),
        ],
        out_specs=pl.BlockSpec((1, Ho * Wo, Cout), lambda n: (n, 0, 0)),
        scratch_shapes=[pltpu.VMEM((Ho * Wo, Cout), jnp.float32)],
        compiler_params=pltpu.CompilerParams(dimension_semantics=("parallel",)),
    )(x_pad, w_taps, b)


def _head_kernel(feat_ref, wcat_ref, ball_ref, posew_ref, poseb_ref,
                 scw_ref, scb_ref, pose_ref, sc_ref,
                 *, num_joints, num_feat, hw_valid, temp):
    """Fully fused head for one batch element.

    feat : (1, HWp, C) backbone features (spatial on lanes after the first dot).
      hs      = [smpl_w; kp_w] @ feat^T + b          one MXU pass, (F+J, HWp)
      smpl    = relu(hs[:F]);  heat = hs[F:]
      attn    = softmax over HW (lane axis, padded lanes masked to -1e30)
      pooled  = attn @ smpl^T                        (J, F) part-attention pooling
      pose    = pooled @ pose_w + b                  (J, 128)  lane-dense
      sc      = vec(pooled) @ [shape_w | cam_w] + b  (1, 128)  lane-dense
    """
    feat = feat_ref[0]                                                   # (HWp, C)
    hs = lax.dot_general(wcat_ref[...], feat, (((1,), (1,)), ((), ())),
                         preferred_element_type=jnp.float32)             # (F+J, HWp)
    hs = hs + ball_ref[...]

    smpl = jnp.maximum(hs[:num_feat, :], 0.0)                            # (F, HWp)
    heat = hs[num_feat:num_feat + num_joints, :]                         # (J, HWp)

    if temp != 1.0:   # NOTE: matches previous version (heat * temp); no-op at 1.0
        heat = heat * temp

    hwp = heat.shape[-1]
    if hw_valid != hwp:   # mask lane-padding so it gets exactly zero attention
        col = lax.broadcasted_iota(jnp.int32, heat.shape, 1)
        heat = jnp.where(col < hw_valid, heat, -1e30)

    m = jnp.max(heat, axis=-1, keepdims=True)
    e = jnp.exp(heat - m)
    s = jnp.sum(e, axis=-1, keepdims=True)
    attn = e * pl.reciprocal(s, approx=False)                            # exact

    pooled = lax.dot_general(attn, smpl, (((1,), (1,)), ((), ())),
                             preferred_element_type=jnp.float32)         # (J, F)

    pose = jnp.dot(pooled, posew_ref[...], preferred_element_type=jnp.float32)
    pose_ref[0] = (pose + poseb_ref[...]).astype(pose_ref.dtype)         # (J, 128)

    # shape/cam regressor: vec(pooled) @ W done as J accumulated row-matmuls to
    # avoid an in-kernel (J,F)->(1,J*F) relayout.
    sc = scb_ref[...]                                                    # (1, 128)
    for j in range(num_joints):
        sc = sc + jnp.dot(pooled[j:j + 1, :], scw_ref[j],
                          preferred_element_type=jnp.float32)
    sc_ref[0] = sc.astype(sc_ref.dtype)


def head_fused(feat, packed, hw_valid):
    """feat: (N, HWp, C) bf16 -> (pose (N,J,128), shape/cam (N,1,128)) fp32."""
    N, HWp, C = feat.shape
    J, F = NUM_JOINTS, NUM_FEATURES_SMPL
    kern = functools.partial(_head_kernel, num_joints=J, num_feat=F,
                             hw_valid=hw_valid, temp=SOFTMAX_TEMP)
    return pl.pallas_call(
        kern,
        out_shape=(jax.ShapeDtypeStruct((N, J, 128), jnp.float32),
                   jax.ShapeDtypeStruct((N, 1, 128), jnp.float32)),
        grid=(N,),
        in_specs=[
            pl.BlockSpec((1, HWp, C), lambda n: (n, 0, 0)),
            pl.BlockSpec((F + J, C), lambda n: (0, 0)),
            pl.BlockSpec((F + J, 1), lambda n: (0, 0)),
            pl.BlockSpec((F, 128), lambda n: (0, 0)),
            pl.BlockSpec((1, 128), lambda n: (0, 0)),
            pl.BlockSpec((J, F, 128), lambda n: (0, 0, 0)),
            pl.BlockSpec((1, 128), lambda n: (0, 0)),
        ],
        out_specs=(pl.BlockSpec((1, J, 128), lambda n: (n, 0, 0)),
                   pl.BlockSpec((1, 1, 128), lambda n: (n, 0, 0))),
        compiler_params=pltpu.CompilerParams(dimension_semantics=("parallel",)),
    )(feat, packed["wcat"], packed["ball"], packed["posew"], packed["poseb"],
      packed["scw"], packed["scb"])


# ============================ parameter construction ============================

def init_params(key):
    def lin(k, fan_in, shape):
        return jax.random.normal(k, shape, jnp.float32) * (1.0 / jnp.sqrt(fan_in))

    ks = jax.random.split(key, 8)
    J, F, C = NUM_JOINTS, NUM_FEATURES_SMPL, C_BACKBONE
    return {
        # backbone (stand-in for resnet50): three 3x3 convs, strides 2/2/1
        "conv1_w": lin(ks[0], 3 * 9, (3, 3, 3, C_STEM1)),
        "conv1_b": jnp.zeros((C_STEM1,), jnp.float32),
        "conv2_w": lin(ks[1], C_STEM1 * 9, (3, 3, C_STEM1, C_STEM2)),
        "conv2_b": jnp.zeros((C_STEM2,), jnp.float32),
        "conv3_w": lin(ks[2], C_STEM2 * 9, (3, 3, C_STEM2, C)),
        "conv3_b": jnp.zeros((C,), jnp.float32),
        # head: final_conv_kernel=1 -> 1x1 convs == channel matmuls
        "kp_w": lin(ks[3], C, (C, J)),
        "kp_b": jnp.zeros((J,), jnp.float32),
        "smpl_w": lin(ks[4], C, (C, F)),
        "smpl_b": jnp.zeros((F,), jnp.float32),
        # pose MLP (single shared per-joint linear -> 6D rotation)
        "pose_w": lin(ks[5], F, (F, 6)),
        "pose_b": jnp.zeros((6,), jnp.float32),
        # shape / cam MLPs over concatenated per-joint features
        "shape_w": lin(ks[6], J * F, (J * F, 10)),
        "shape_b": jnp.zeros((10,), jnp.float32),
        "cam_w": lin(ks[7], J * F, (J * F, 3)),
        "cam_b": jnp.zeros((3,), jnp.float32),
    }


def _fold_stride2(w3):
    """(3,3,Cin,Cout) stride-2 pad-1 conv -> (4, 4*Cin, Cout) stride-1 2x2 conv
    acting on the space-to-depth rearranged input (channel order pi*2*Cin+pj*Cin+ci,
    input padded by 1 at top/left only)."""
    cin, cout = w3.shape[2], w3.shape[3]
    w2 = jnp.zeros((2, 2, 2, 2, cin, cout), w3.dtype)   # (a, b, pi, pj, Cin, Cout)
    tap = {(0, 1): 0, (1, 0): 1, (1, 1): 2}             # (window offset, parity) -> di
    for (a, pi), di in tap.items():
        for (b, pj), dj in tap.items():
            w2 = w2.at[a, b, pi, pj].set(w3[di, dj])
    return w2.reshape(4, 4 * cin, cout)                 # tap index = a*2 + b


def pack_params(p):
    """One-time weight packing: stride-2 fold, bf16 cast, lane padding, concat."""
    J, F = NUM_JOINTS, NUM_FEATURES_SMPL
    scw = jnp.concatenate([p["shape_w"], p["cam_w"]], axis=1).reshape(J, F, 13)
    scb = jnp.concatenate([p["shape_b"], p["cam_b"]])
    return {
        "w1": _fold_stride2(p["conv1_w"]).astype(jnp.bfloat16),
        "b1": p["conv1_b"].reshape(1, -1).astype(jnp.float32),
        "w2": _fold_stride2(p["conv2_w"]).astype(jnp.bfloat16),
        "b2": p["conv2_b"].reshape(1, -1).astype(jnp.float32),
        "w3": p["conv3_w"].reshape(9, C_STEM2, C_BACKBONE).astype(jnp.bfloat16),
        "b3": p["conv3_b"].reshape(1, -1).astype(jnp.float32),
        # head: smpl rows first (0..F-1), kp rows after (F..F+J-1)
        "wcat": jnp.concatenate([p["smpl_w"].T, p["kp_w"].T], axis=0).astype(jnp.bfloat16),
        "ball": jnp.concatenate([p["smpl_b"], p["kp_b"]]).reshape(F + J, 1).astype(jnp.float32),
        "posew": jnp.zeros((F, 128), jnp.float32).at[:, :6].set(p["pose_w"]),
        "poseb": jnp.zeros((1, 128), jnp.float32).at[0, :6].set(p["pose_b"]),
        "scw": jnp.zeros((J, F, 128), jnp.float32).at[:, :, :13].set(scw),
        "scb": jnp.zeros((1, 128), jnp.float32).at[0, :13].set(scb),
    }


# ================================= forward pass =================================

def model_forward(packed, images):
    """Mirrors Model.forward(images) -> (pred_cam, pred_pose, pred_shape, None)."""
    if images.ndim == 5:                       # (B, S, C, H, W) video clips
        b, s = images.shape[:2]
        images = images.reshape(b * s, *images.shape[2:])
    N, Ci, H, W = images.shape
    assert H % 4 == 0 and W % 4 == 0, "stand-in backbone needs H, W divisible by 4"

    # conv1: 3x3 stride-2 pad-1, run as 2x2 stride-1 on the space-to-depth input.
    # NCHW->NHWC and the space-to-depth fold into one XLA transpose (no im2col).
    H1, W1 = H // 2, W // 2
    x = images.reshape(N, Ci, H1, 2, W1, 2).transpose(0, 2, 4, 3, 5, 1)
    x = x.reshape(N, H1, W1, 4 * Ci).astype(jnp.bfloat16)
    x = jnp.pad(x, ((0, 0), (1, 0), (1, 0), (0, 0)))          # pad top/left only
    x = conv_direct(x, packed["w1"], packed["b1"], k=2, Ho=H1, Wo=W1)   # (N,H1*W1,32)

    # conv2: 3x3 stride-2 pad-1, same recipe on conv1's output
    H2, W2 = H1 // 2, W1 // 2
    x = x.reshape(N, H2, 2, W2, 2, C_STEM1).transpose(0, 1, 3, 2, 4, 5)
    x = x.reshape(N, H2, W2, 4 * C_STEM1)
    x = jnp.pad(x, ((0, 0), (1, 0), (1, 0), (0, 0)))
    x = conv_direct(x, packed["w2"], packed["b2"], k=2, Ho=H2, Wo=W2)   # (N,H2*W2,64)

    # conv3: 3x3 stride-1 pad-1, direct
    x = x.reshape(N, H2, W2, C_STEM2)
    x = jnp.pad(x, ((0, 0), (1, 1), (1, 1), (0, 0)))
    feat = conv_direct(x, packed["w3"], packed["b3"], k=3, Ho=H2, Wo=W2)  # (N,HW,128)

    HW = H2 * W2
    HWp = _round_up(HW, 128)
    if HWp != HW:          # lane-pad the spatial axis; padded lanes masked in-kernel
        feat = jnp.pad(feat, ((0, 0), (0, HWp - HW), (0, 0)))

    # fused head: 1x1 convs + spatial softmax + attention pooling + regressors
    pose, sc = head_fused(feat, packed, hw_valid=HW)

    pred_pose = pose[:, :, :6]                 # (N, J, 6)  6D rotation form
    pred_shape = sc[:, 0, :10]                 # (N, 10)
    pred_cam = sc[:, 0, 10:13]                 # (N, 3)
    return pred_cam, pred_pose, pred_shape, None   # return_heat=False path


if __name__ == "__main__":
    key = jax.random.PRNGKey(0)
    pkey, xkey = jax.random.split(key)
    params = init_params(pkey)
    packed = pack_params(params)               # one-time weight packing (off hot path)

    # small input consistent with Model.forward: NCHW images, batch=2, 3 channels
    images = jax.random.normal(xkey, (2, 3, 32, 32), jnp.float32)

    fwd = jax.jit(model_forward)
    pred_cam, pred_pose, pred_shape, pred_heats = fwd(packed, images)
    jax.block_until_ready((pred_cam, pred_pose, pred_shape))

    assert pred_cam.shape == (2, 3)
    assert pred_pose.shape == (2, NUM_JOINTS, 6)
    assert pred_shape.shape == (2, 10)
    assert pred_heats is None
    assert jnp.all(jnp.isfinite(pred_cam)) and jnp.all(jnp.isfinite(pred_pose))
    assert jnp.all(jnp.isfinite(pred_shape))

    print("KERNEL_OK")
</pallas_src>

<mosaic_0001>
module attributes {stable_mosaic.version = 11 : i64} {
  func.func @_conv_kernel(%arg0: i32, %arg1: memref<1x17x17x12xbf16, #tpu.memory_space<vmem>>, %arg2: memref<4x12x32xbf16, #tpu.memory_space<vmem>>, %arg3: memref<1x32xf32, #tpu.memory_space<vmem>>, %arg4: memref<1x256x32xbf16, #tpu.memory_space<vmem>>, %arg5: memref<256x32xf32, #tpu.memory_space<vmem>>) attributes {dimension_semantics = [#tpu.dimension_semantics<parallel>], iteration_bounds = array<i64: 2>, scalar_prefetch = 0 : i64, scratch_operands = 1 : i64, tpu.core_type = #tpu.core_type<tc>, window_params = [{transform_indices = @transform_0, window_bounds = array<i64: 1, 17, 17, 12>}, {pipeline_mode = #tpu.pipeline_mode<synchronous>, transform_indices = @transform_1, window_bounds = array<i64: 4, 12, 32>}, {pipeline_mode = #tpu.pipeline_mode<synchronous>, transform_indices = @transform_2, window_bounds = array<i64: 1, 32>}, {transform_indices = @transform_3, window_bounds = array<i64: 1, 256, 32>}]} {
    %cst = arith.constant 0.000000e+00 : f32
    %0 = vector.broadcast %cst : f32 to vector<256x32xf32>
    %c0 = arith.constant 0 : index
    %c0_0 = arith.constant 0 : index
    %1 = vector.load %arg5[%c0, %c0_0] : memref<256x32xf32, #tpu.memory_space<vmem>>, vector<256x32xf32>
    tpu.vector_store %arg5[%c0, %c0_0], %0 {strides = array<i32>} : memref<256x32xf32, #tpu.memory_space<vmem>>, vector<256x32xf32>,
    %c0_1 = arith.constant 0 : index
    %c0_2 = arith.constant 0 : index
    %c0_3 = arith.constant 0 : index
    %c0_4 = arith.constant 0 : index
    %2 = vector.load %arg1[%c0_1, %c0_2, %c0_3, %c0_4] : memref<1x17x17x12xbf16, #tpu.memory_space<vmem>>, vector<1x16x16x12xbf16>
    %3 = vector.shape_cast %2 : vector<1x16x16x12xbf16> to vector<16x16x12xbf16>
    %c0_5 = arith.constant 0 : index
    %c0_6 = arith.constant 0 : index
    %4 = vector.load %arg5[%c0_5, %c0_6] : memref<256x32xf32, #tpu.memory_space<vmem>>, vector<256x32xf32>
    %5 = vector.shape_cast %3 : vector<16x16x12xbf16> to vector<256x12xbf16>
    %c0_7 = arith.constant 0 : index
    %c0_8 = arith.constant 0 : index
    %c0_9 = arith.constant 0 : index
    %6 = vector.load %arg2[%c0_7, %c0_8, %c0_9] : memref<4x12x32xbf16, #tpu.memory_space<vmem>>, vector<1x12x32xbf16>
    %7 = vector.shape_cast %6 : vector<1x12x32xbf16> to vector<12x32xbf16>
    %cst_10 = arith.constant dense<0.000000e+00> : vector<256x32xf32>
    %8 = tpu.matmul %5, %7, %cst_10 {dimension_numbers = #tpu.dot_dimension_numbers<[1], [0], [0], [1], [0, 0, 1, 1], [], []>} : vector<256x12xbf16>, vector<12x32xbf16>, vector<256x32xf32> -> vector<256x32xf32>
    %9 = arith.addf %4, %8 : vector<256x32xf32>
    %c0_11 = arith.constant 0 : index
    %c0_12 = arith.constant 0 : index
    %10 = vector.load %arg5[%c0_11, %c0_12] : memref<256x32xf32, #tpu.memory_space<vmem>>, vector<256x32xf32>
    tpu.vector_store %arg5[%c0_11, %c0_12], %9 {strides = array<i32>} : memref<256x32xf32, #tpu.memory_space<vmem>>, vector<256x32xf32>,
    %c0_13 = arith.constant 0 : index
    %c0_14 = arith.constant 0 : index
    %c1 = arith.constant 1 : index
    %c0_15 = arith.constant 0 : index
    %11 = vector.load %arg1[%c0_13, %c0_14, %c1, %c0_15] : memref<1x17x17x12xbf16, #tpu.memory_space<vmem>>, vector<1x16x16x12xbf16>
    %12 = vector.shape_cast %11 : vector<1x16x16x12xbf16> to vector<16x16x12xbf16>
    %c0_16 = arith.constant 0 : index
    %c0_17 = arith.constant 0 : index
    %13 = vector.load %arg5[%c0_16, %c0_17] : memref<256x32xf32, #tpu.memory_space<vmem>>, vector<256x32xf32>
    %14 = vector.shape_cast %12 : vector<16x16x12xbf16> to vector<256x12xbf16>
    %c1_18 = arith.constant 1 : index
    %c0_19 = arith.constant 0 : index
    %c0_20 = arith.constant 0 : index
    %15 = vector.load %arg2[%c1_18, %c0_19, %c0_20] : memref<4x12x32xbf16, #tpu.memory_space<vmem>>, vector<1x12x32xbf16>
    %16 = vector.shape_cast %15 : vector<1x12x32xbf16> to vector<12x32xbf16>
    %cst_21 = arith.constant dense<0.000000e+00> : vector<256x32xf32>
    %17 = tpu.matmul %14, %16, %cst_21 {dimension_numbers = #tpu.dot_dimension_numbers<[1], [0], [0], [1], [0, 0, 1, 1], [], []>} : vector<256x12xbf16>, vector<12x32xbf16>, vector<256x32xf32> -> vector<256x32xf32>
    %18 = arith.addf %13, %17 : vector<256x32xf32>
    %c0_22 = arith.constant 0 : index
    %c0_23 = arith.constant 0 : index
    %19 = vector.load %arg5[%c0_22, %c0_23] : memref<256x32xf32, #tpu.memory_space<vmem>>, vector<256x32xf32>
    tpu.vector_store %arg5[%c0_22, %c0_23], %18 {strides = array<i32>} : memref<256x32xf32, #tpu.memory_space<vmem>>, vector<256x32xf32>,
    %c0_24 = arith.constant 0 : index
    %c1_25 = arith.constant 1 : index
    %c0_26 = arith.constant 0 : index
    %c0_27 = arith.constant 0 : index
    %20 = vector.load %arg1[%c0_24, %c1_25, %c0_26, %c0_27] : memref<1x17x17x12xbf16, #tpu.memory_space<vmem>>, vector<1x16x16x12xbf16>
    %21 = vector.shape_cast %20 : vector<1x16x16x12xbf16> to vector<16x16x12xbf16>
    %c0_28 = arith.constant 0 : index
    %c0_29 = arith.constant 0 : index
    %22 = vector.load %arg5[%c0_28, %c0_29] : memref<256x32xf32, #tpu.memory_space<vmem>>, vector<256x32xf32>
    %23 = vector.shape_cast %21 : vector<16x16x12xbf16> to vector<256x12xbf16>
    %c2 = arith.constant 2 : index
    %c0_30 = arith.constant 0 : index
    %c0_31 = arith.constant 0 : index
    %24 = vector.load %arg2[%c2, %c0_30, %c0_31] : memref<4x12x32xbf16, #tpu.memory_space<vmem>>, vector<1x12x32xbf16>
    %25 = vector.shape_cast %24 : vector<1x12x32xbf16> to vector<12x32xbf16>
    %cst_32 = arith.constant dense<0.000000e+00> : vector<256x32xf32>
    %26 = tpu.matmul %23, %25, %cst_32 {dimension_numbers = #tpu.dot_dimension_numbers<[1], [0], [0], [1], [0, 0, 1, 1], [], []>} : vector<256x12xbf16>, vector<12x32xbf16>, vector<256x32xf32> -> vector<256x32xf32>
    %27 = arith.addf %22, %26 : vector<256x32xf32>
    %c0_33 = arith.constant 0 : index
    %c0_34 = arith.constant 0 : index
    %28 = vector.load %arg5[%c0_33, %c0_34] : memref<256x32xf32, #tpu.memory_space<vmem>>, vector<256x32xf32>
    tpu.vector_store %arg5[%c0_33, %c0_34], %27 {strides = array<i32>} : memref<256x32xf32, #tpu.memory_space<vmem>>, vector<256x32xf32>,
    %c0_35 = arith.constant 0 : index
    %c1_36 = arith.constant 1 : index
    %c1_37 = arith.constant 1 : index
    %c0_38 = arith.constant 0 : index
    %29 = vector.load %arg1[%c0_35, %c1_36, %c1_37, %c0_38] : memref<1x17x17x12xbf16, #tpu.memory_space<vmem>>, vector<1x16x16x12xbf16>
    %30 = vector.shape_cast %29 : vector<1x16x16x12xbf16> to vector<16x16x12xbf16>
    %c0_39 = arith.constant 0 : index
    %c0_40 = arith.constant 0 : index
    %31 = vector.load %arg5[%c0_39, %c0_40] : memref<256x32xf32, #tpu.memory_space<vmem>>, vector<256x32xf32>
    %32 = vector.shape_cast %30 : vector<16x16x12xbf16> to vector<256x12xbf16>
    %c3 = arith.constant 3 : index
    %c0_41 = arith.constant 0 : index
    %c0_42 = arith.constant 0 : index
    %33 = vector.load %arg2[%c3, %c0_41, %c0_42] : memref<4x12x32xbf16, #tpu.memory_space<vmem>>, vector<1x12x32xbf16>
    %34 = vector.shape_cast %33 : vector<1x12x32xbf16> to vector<12x32xbf16>
    %cst_43 = arith.constant dense<0.000000e+00> : vector<256x32xf32>
    %35 = tpu.matmul %32, %34, %cst_43 {dimension_numbers = #tpu.dot_dimension_numbers<[1], [0], [0], [1], [0, 0, 1, 1], [], []>} : vector<256x12xbf16>, vector<12x32xbf16>, vector<256x32xf32> -> vector<256x32xf32>
    %36 = arith.addf %31, %35 : vector<256x32xf32>
    %c0_44 = arith.constant 0 : index
    %c0_45 = arith.constant 0 : index
    %37 = vector.load %arg5[%c0_44, %c0_45] : memref<256x32xf32, #tpu.memory_space<vmem>>, vector<256x32xf32>
    tpu.vector_store %arg5[%c0_44, %c0_45], %36 {strides = array<i32>} : memref<256x32xf32, #tpu.memory_space<vmem>>, vector<256x32xf32>,
    %c0_46 = arith.constant 0 : index
    %c0_47 = arith.constant 0 : index
    %38 = vector.load %arg5[%c0_46, %c0_47] : memref<256x32xf32, #tpu.memory_space<vmem>>, vector<256x32xf32>
    %c0_48 = arith.constant 0 : index
    %c0_49 = arith.constant 0 : index
    %39 = vector.load %arg3[%c0_48, %c0_49] : memref<1x32xf32, #tpu.memory_space<vmem>>, vector<1x32xf32>
    %40 = vector.broadcast %39 : vector<1x32xf32> to vector<256x32xf32>
    %41 = arith.addf %38, %40 : vector<256x32xf32>
    %cst_50 = arith.constant 0.000000e+00 : f32
    %42 = vector.broadcast %cst_50 : f32 to vector<256x32xf32>
    %43 = arith.maximumf %41, %42 : vector<256x32xf32>
    %44 = arith.truncf %43 : vector<256x32xf32> to vector<256x32xbf16>
    %c0_51 = arith.constant 0 : index
    %c0_52 = arith.constant 0 : index
    %c0_53 = arith.constant 0 : index
    %45 = vector.load %arg4[%c0_51, %c0_52, %c0_53] : memref<1x256x32xbf16, #tpu.memory_space<vmem>>, vector<1x256x32xbf16>
    %46 = vector.shape_cast %45 : vector<1x256x32xbf16> to vector<256x32xbf16>
    %47 = vector.shape_cast %44 : vector<256x32xbf16> to vector<1x256x32xbf16>
    tpu.vector_store %arg4[%c0_51, %c0_52, %c0_53], %47 {strides = array<i32>} : memref<1x256x32xbf16, #tpu.memory_space<vmem>>, vector<1x256x32xbf16>,
    return
  }
  func.func @transform_0(%arg0: i32) -> (i32, i32, i32, i32) {
    %c0_i32 = arith.constant 0 : i32
    %c0_i32_0 = arith.constant 0 : i32
    %c0_i32_1 = arith.constant 0 : i32
    %c0_i32_2 = arith.constant 0 : i32
    return %arg0, %c0_i32, %c0_i32_0, %c0_i32_1 : i32, i32, i32, i32
  }
  func.func @transform_1(%arg0: i32) -> (i32, i32, i32) {
    %c0_i32 = arith.constant 0 : i32
    %c0_i32_0 = arith.constant 0 : i32
    %c0_i32_1 = arith.constant 0 : i32
    %c0_i32_2 = arith.constant 0 : i32
    return %c0_i32, %c0_i32_0, %c0_i32_1 : i32, i32, i32
  }
  func.func @transform_2(%arg0: i32) -> (i32, i32) {
    %c0_i32 = arith.constant 0 : i32
    %c0_i32_0 = arith.constant 0 : i32
    %c0_i32_1 = arith.constant 0 : i32
    return %c0_i32, %c0_i32_0 : i32, i32
  }
  func.func @transform_3(%arg0: i32) -> (i32, i32, i32) {
    %c0_i32 = arith.constant 0 : i32
    %c0_i32_0 = arith.constant 0 : i32
    %c0_i32_1 = arith.constant 0 : i32
    return %arg0, %c0_i32, %c0_i32_0 : i32, i32, i32
  }
}

module attributes {stable_mosaic.version = 11 : i64} {
  func.func @_conv_kernel(%arg0: i32, %arg1: memref<1x9x9x128xbf16, #tpu.memory_space<vmem>>, %arg2: memref<4x128x64xbf16, #tpu.memory_space<vmem>>, %arg3: memref<1x64xf32, #tpu.memory_space<vmem>>, %arg4: memref<1x64x64xbf16, #tpu.memory_space<vmem>>, %arg5: memref<64x64xf32, #tpu.memory_space<vmem>>) attributes {dimension_semantics = [#tpu.dimension_semantics<parallel>], iteration_bounds = array<i64: 2>, scalar_prefetch = 0 : i64, scratch_operands = 1 : i64, tpu.core_type = #tpu.core_type<tc>, window_params = [{transform_indices = @transform_0, window_bounds = array<i64: 1, 9, 9, 128>}, {pipeline_mode = #tpu.pipeline_mode<synchronous>, transform_indices = @transform_1, window_bounds = array<i64: 4, 128, 64>}, {pipeline_mode = #tpu.pipeline_mode<synchronous>, transform_indices = @transform_2, window_bounds = array<i64: 1, 64>}, {transform_indices = @transform_3, window_bounds = array<i64: 1, 64, 64>}]} {
    %cst = arith.constant 0.000000e+00 : f32
    %0 = vector.broadcast %cst : f32 to vector<64x64xf32>
    %c0 = arith.constant 0 : index
    %c0_0 = arith.constant 0 : index
    %1 = vector.load %arg5[%c0, %c0_0] : memref<64x64xf32, #tpu.memory_space<vmem>>, vector<64x64xf32>
    tpu.vector_store %arg5[%c0, %c0_0], %0 {strides = array<i32>} : memref<64x64xf32, #tpu.memory_space<vmem>>, vector<64x64xf32>,
    %c0_1 = arith.constant 0 : index
    %c0_2 = arith.constant 0 : index
    %c0_3 = arith.constant 0 : index
    %c0_4 = arith.constant 0 : index
    %2 = vector.load %arg1[%c0_1, %c0_2, %c0_3, %c0_4] : memref<1x9x9x128xbf16, #tpu.memory_space<vmem>>, vector<1x8x8x128xbf16>
    %3 = vector.shape_cast %2 : vector<1x8x8x128xbf16> to vector<8x8x128xbf16>
    %c0_5 = arith.constant 0 : index
    %c0_6 = arith.constant 0 : index
    %4 = vector.load %arg5[%c0_5, %c0_6] : memref<64x64xf32, #tpu.memory_space<vmem>>, vector<64x64xf32>
    %5 = vector.shape_cast %3 : vector<8x8x128xbf16> to vector<64x128xbf16>
    %c0_7 = arith.constant 0 : index
    %c0_8 = arith.constant 0 : index
    %c0_9 = arith.constant 0 : index
    %6 = vector.load %arg2[%c0_7, %c0_8, %c0_9] : memref<4x128x64xbf16, #tpu.memory_space<vmem>>, vector<1x128x64xbf16>
    %7 = vector.shape_cast %6 : vector<1x128x64xbf16> to vector<128x64xbf16>
    %cst_10 = arith.constant dense<0.000000e+00> : vector<64x64xf32>
    %8 = tpu.matmul %5, %7, %cst_10 {dimension_numbers = #tpu.dot_dimension_numbers<[1], [0], [0], [1], [0, 0, 1, 1], [], []>} : vector<64x128xbf16>, vector<128x64xbf16>, vector<64x64xf32> -> vector<64x64xf32>
    %9 = arith.addf %4, %8 : vector<64x64xf32>
    %c0_11 = arith.constant 0 : index
    %c0_12 = arith.constant 0 : index
    %10 = vector.load %arg5[%c0_11, %c0_12] : memref<64x64xf32, #tpu.memory_space<vmem>>, vector<64x64xf32>
    tpu.vector_store %arg5[%c0_11, %c0_12], %9 {strides = array<i32>} : memref<64x64xf32, #tpu.memory_space<vmem>>, vector<64x64xf32>,
    %c0_13 = arith.constant 0 : index
    %c0_14 = arith.constant 0 : index
    %c1 = arith.constant 1 : index
    %c0_15 = arith.constant 0 : index
    %11 = vector.load %arg1[%c0_13, %c0_14, %c1, %c0_15] : memref<1x9x9x128xbf16, #tpu.memory_space<vmem>>, vector<1x8x8x128xbf16>
    %12 = vector.shape_cast %11 : vector<1x8x8x128xbf16> to vector<8x8x128xbf16>
    %c0_16 = arith.constant 0 : index
    %c0_17 = arith.constant 0 : index
    %13 = vector.load %arg5[%c0_16, %c0_17] : memref<64x64xf32, #tpu.memory_space<vmem>>, vector<64x64xf32>
    %14 = vector.shape_cast %12 : vector<8x8x128xbf16> to vector<64x128xbf16>
    %c1_18 = arith.constant 1 : index
    %c0_19 = arith.constant 0 : index
    %c0_20 = arith.constant 0 : index
    %15 = vector.load %arg2[%c1_18, %c0_19, %c0_20] : memref<4x128x64xbf16, #tpu.memory_space<vmem>>, vector<1x128x64xbf16>
    %16 = vector.shape_cast %15 : vector<1x128x64xbf16> to vector<128x64xbf16>
    %cst_21 = arith.constant dense<0.000000e+00> : vector<64x64xf32>
    %17 = tpu.matmul %14, %16, %cst_21 {dimension_numbers = #tpu.dot_dimension_numbers<[1], [0], [0], [1], [0, 0, 1, 1], [], []>} : vector<64x128xbf16>, vector<128x64xbf16>, vector<64x64xf32> -> vector<64x64xf32>
    %18 = arith.addf %13, %17 : vector<64x64xf32>
    %c0_22 = arith.constant 0 : index
    %c0_23 = arith.constant 0 : index
    %19 = vector.load %arg5[%c0_22, %c0_23] : memref<64x64xf32, #tpu.memory_space<vmem>>, vector<64x64xf32>
    tpu.vector_store %arg5[%c0_22, %c0_23], %18 {strides = array<i32>} : memref<64x64xf32, #tpu.memory_space<vmem>>, vector<64x64xf32>,
    %c0_24 = arith.constant 0 : index
    %c1_25 = arith.constant 1 : index
    %c0_26 = arith.constant 0 : index
    %c0_27 = arith.constant 0 : index
    %20 = vector.load %arg1[%c0_24, %c1_25, %c0_26, %c0_27] : memref<1x9x9x128xbf16, #tpu.memory_space<vmem>>, vector<1x8x8x128xbf16>
    %21 = vector.shape_cast %20 : vector<1x8x8x128xbf16> to vector<8x8x128xbf16>
    %c0_28 = arith.constant 0 : index
    %c0_29 = arith.constant 0 : index
    %22 = vector.load %arg5[%c0_28, %c0_29] : memref<64x64xf32, #tpu.memory_space<vmem>>, vector<64x64xf32>
    %23 = vector.shape_cast %21 : vector<8x8x128xbf16> to vector<64x128xbf16>
    %c2 = arith.constant 2 : index
    %c0_30 = arith.constant 0 : index
    %c0_31 = arith.constant 0 : index
    %24 = vector.load %arg2[%c2, %c0_30, %c0_31] : memref<4x128x64xbf16, #tpu.memory_space<vmem>>, vector<1x128x64xbf16>
    %25 = vector.shape_cast %24 : vector<1x128x64xbf16> to vector<128x64xbf16>
    %cst_32 = arith.constant dense<0.000000e+00> : vector<64x64xf32>
    %26 = tpu.matmul %23, %25, %cst_32 {dimension_numbers = #tpu.dot_dimension_numbers<[1], [0], [0], [1], [0, 0, 1, 1], [], []>} : vector<64x128xbf16>, vector<128x64xbf16>, vector<64x64xf32> -> vector<64x64xf32>
    %27 = arith.addf %22, %26 : vector<64x64xf32>
    %c0_33 = arith.constant 0 : index
    %c0_34 = arith.constant 0 : index
    %28 = vector.load %arg5[%c0_33, %c0_34] : memref<64x64xf32, #tpu.memory_space<vmem>>, vector<64x64xf32>
    tpu.vector_store %arg5[%c0_33, %c0_34], %27 {strides = array<i32>} : memref<64x64xf32, #tpu.memory_space<vmem>>, vector<64x64xf32>,
    %c0_35 = arith.constant 0 : index
    %c1_36 = arith.constant 1 : index
    %c1_37 = arith.constant 1 : index
    %c0_38 = arith.constant 0 : index
    %29 = vector.load %arg1[%c0_35, %c1_36, %c1_37, %c0_38] : memref<1x9x9x128xbf16, #tpu.memory_space<vmem>>, vector<1x8x8x128xbf16>
    %30 = vector.shape_cast %29 : vector<1x8x8x128xbf16> to vector<8x8x128xbf16>
    %c0_39 = arith.constant 0 : index
    %c0_40 = arith.constant 0 : index
    %31 = vector.load %arg5[%c0_39, %c0_40] : memref<64x64xf32, #tpu.memory_space<vmem>>, vector<64x64xf32>
    %32 = vector.shape_cast %30 : vector<8x8x128xbf16> to vector<64x128xbf16>
    %c3 = arith.constant 3 : index
    %c0_41 = arith.constant 0 : index
    %c0_42 = arith.constant 0 : index
    %33 = vector.load %arg2[%c3, %c0_41, %c0_42] : memref<4x128x64xbf16, #tpu.memory_space<vmem>>, vector<1x128x64xbf16>
    %34 = vector.shape_cast %33 : vector<1x128x64xbf16> to vector<128x64xbf16>
    %cst_43 = arith.constant dense<0.000000e+00> : vector<64x64xf32>
    %35 = tpu.matmul %32, %34, %cst_43 {dimension_numbers = #tpu.dot_dimension_numbers<[1], [0], [0], [1], [0, 0, 1, 1], [], []>} : vector<64x128xbf16>, vector<128x64xbf16>, vector<64x64xf32> -> vector<64x64xf32>
    %36 = arith.addf %31, %35 : vector<64x64xf32>
    %c0_44 = arith.constant 0 : index
    %c0_45 = arith.constant 0 : index
    %37 = vector.load %arg5[%c0_44, %c0_45] : memref<64x64xf32, #tpu.memory_space<vmem>>, vector<64x64xf32>
    tpu.vector_store %arg5[%c0_44, %c0_45], %36 {strides = array<i32>} : memref<64x64xf32, #tpu.memory_space<vmem>>, vector<64x64xf32>,
    %c0_46 = arith.constant 0 : index
    %c0_47 = arith.constant 0 : index
    %38 = vector.load %arg5[%c0_46, %c0_47] : memref<64x64xf32, #tpu.memory_space<vmem>>, vector<64x64xf32>
    %c0_48 = arith.constant 0 : index
    %c0_49 = arith.constant 0 : index
    %39 = vector.load %arg3[%c0_48, %c0_49] : memref<1x64xf32, #tpu.memory_space<vmem>>, vector<1x64xf32>
    %40 = vector.broadcast %39 : vector<1x64xf32> to vector<64x64xf32>
    %41 = arith.addf %38, %40 : vector<64x64xf32>
    %cst_50 = arith.constant 0.000000e+00 : f32
    %42 = vector.broadcast %cst_50 : f32 to vector<64x64xf32>
    %43 = arith.maximumf %41, %42 : vector<64x64xf32>
    %44 = arith.truncf %43 : vector<64x64xf32> to vector<64x64xbf16>
    %c0_51 = arith.constant 0 : index
    %c0_52 = arith.constant 0 : index
    %c0_53 = arith.constant 0 : index
    %45 = vector.load %arg4[%c0_51, %c0_52, %c0_53] : memref<1x64x64xbf16, #tpu.memory_space<vmem>>, vector<1x64x64xbf16>
    %46 = vector.shape_cast %45 : vector<1x64x64xbf16> to vector<64x64xbf16>
    %47 = vector.shape_cast %44 : vector<64x64xbf16> to vector<1x64x64xbf16>
    tpu.vector_store %arg4[%c0_51, %c0_52, %c0_53], %47 {strides = array<i32>} : memref<1x64x64xbf16, #tpu.memory_space<vmem>>, vector<1x64x64xbf16>,
    return
  }
  func.func @transform_0(%arg0: i32) -> (i32, i32, i32, i32) {
    %c0_i32 = arith.constant 0 : i32
    %c0_i32_0 = arith.constant 0 : i32
    %c0_i32_1 = arith.constant 0 : i32
    %c0_i32_2 = arith.constant 0 : i32
    return %arg0, %c0_i32, %c0_i32_0, %c0_i32_1 : i32, i32, i32, i32
  }
  func.func @transform_1(%arg0: i32) -> (i32, i32, i32) {
    %c0_i32 = arith.constant 0 : i32
    %c0_i32_0 = arith.constant 0 : i32
    %c0_i32_1 = arith.constant 0 : i32
    %c0_i32_2 = arith.constant 0 : i32
    return %c0_i32, %c0_i32_0, %c0_i32_1 : i32, i32, i32
  }
  func.func @transform_2(%arg0: i32) -> (i32, i32) {
    %c0_i32 = arith.constant 0 : i32
    %c0_i32_0 = arith.constant 0 : i32
    %c0_i32_1 = arith.constant 0 : i32
    return %c0_i32, %c0_i32_0 : i32, i32
  }
  func.func @transform_3(%arg0: i32) -> (i32, i32, i32) {
    %c0_i32 = arith.constant 0 : i32
    %c0_i32_0 = arith.constant 0 : i32
    %c0_i32_1 = arith.constant 0 : i32
    return %arg0, %c0_i32, %c0_i32_0 : i32, i32, i32
  }
}

module attributes {stable_mosaic.version = 11 : i64} {
  func.func @_conv_kernel(%arg0: i32, %arg1: memref<1x10x10x64xbf16, #tpu.memory_space<vmem>>, %arg2: memref<9x64x128xbf16, #tpu.memory_space<vmem>>, %arg3: memref<1x128xf32, #tpu.memory_space<vmem>>, %arg4: memref<1x64x128xbf16, #tpu.memory_space<vmem>>, %arg5: memref<64x128xf32, #tpu.memory_space<vmem>>) attributes {dimension_semantics = [#tpu.dimension_semantics<parallel>], iteration_bounds = array<i64: 2>, scalar_prefetch = 0 : i64, scratch_operands = 1 : i64, tpu.core_type = #tpu.core_type<tc>, window_params = [{transform_indices = @transform_0, window_bounds = array<i64: 1, 10, 10, 64>}, {pipeline_mode = #tpu.pipeline_mode<synchronous>, transform_indices = @transform_1, window_bounds = array<i64: 9, 64, 128>}, {pipeline_mode = #tpu.pipeline_mode<synchronous>, transform_indices = @transform_2, window_bounds = array<i64: 1, 128>}, {transform_indices = @transform_3, window_bounds = array<i64: 1, 64, 128>}]} {
    %cst = arith.constant 0.000000e+00 : f32
    %0 = vector.broadcast %cst : f32 to vector<64x128xf32>
    %c0 = arith.constant 0 : index
    %c0_0 = arith.constant 0 : index
    %1 = vector.load %arg5[%c0, %c0_0] : memref<64x128xf32, #tpu.memory_space<vmem>>, vector<64x128xf32>
    tpu.vector_store %arg5[%c0, %c0_0], %0 {strides = array<i32>} : memref<64x128xf32, #tpu.memory_space<vmem>>, vector<64x128xf32>,
    %c0_1 = arith.constant 0 : index
    %c0_2 = arith.constant 0 : index
    %c0_3 = arith.constant 0 : index
    %c0_4 = arith.constant 0 : index
    %2 = vector.load %arg1[%c0_1, %c0_2, %c0_3, %c0_4] : memref<1x10x10x64xbf16, #tpu.memory_space<vmem>>, vector<1x8x8x64xbf16>
    %3 = vector.shape_cast %2 : vector<1x8x8x64xbf16> to vector<8x8x64xbf16>
    %c0_5 = arith.constant 0 : index
    %c0_6 = arith.constant 0 : index
    %4 = vector.load %arg5[%c0_5, %c0_6] : memref<64x128xf32, #tpu.memory_space<vmem>>, vector<64x128xf32>
    %5 = vector.shape_cast %3 : vector<8x8x64xbf16> to vector<64x64xbf16>
    %c0_7 = arith.constant 0 : index
    %c0_8 = arith.constant 0 : index
    %c0_9 = arith.constant 0 : index
    %6 = vector.load %arg2[%c0_7, %c0_8, %c0_9] : memref<9x64x128xbf16, #tpu.memory_space<vmem>>, vector<1x64x128xbf16>
    %7 = vector.shape_cast %6 : vector<1x64x128xbf16> to vector<64x128xbf16>
    %cst_10 = arith.constant dense<0.000000e+00> : vector<64x128xf32>
    %8 = tpu.matmul %5, %7, %cst_10 {dimension_numbers = #tpu.dot_dimension_numbers<[1], [0], [0], [1], [0, 0, 1, 1], [], []>} : vector<64x64xbf16>, vector<64x128xbf16>, vector<64x128xf32> -> vector<64x128xf32>
    %9 = arith.addf %4, %8 : vector<64x128xf32>
    %c0_11 = arith.constant 0 : index
    %c0_12 = arith.constant 0 : index
    %10 = vector.load %arg5[%c0_11, %c0_12] : memref<64x128xf32, #tpu.memory_space<vmem>>, vector<64x128xf32>
    tpu.vector_store %arg5[%c0_11, %c0_12], %9 {strides = array<i32>} : memref<64x128xf32, #tpu.memory_space<vmem>>, vector<64x128xf32>,
    %c0_13 = arith.constant 0 : index
    %c0_14 = arith.constant 0 : index
    %c1 = arith.constant 1 : index
    %c0_15 = arith.constant 0 : index
    %11 = vector.load %arg1[%c0_13, %c0_14, %c1, %c0_15] : memref<1x10x10x64xbf16, #tpu.memory_space<vmem>>, vector<1x8x8x64xbf16>
    %12 = vector.shape_cast %11 : vector<1x8x8x64xbf16> to vector<8x8x64xbf16>
    %c0_16 = arith.constant 0 : index
    %c0_17 = arith.constant 0 : index
    %13 = vector.load %arg5[%c0_16, %c0_17] : memref<64x128xf32, #tpu.memory_space<vmem>>, vector<64x128xf32>
    %14 = vector.shape_cast %12 : vector<8x8x64xbf16> to vector<64x64xbf16>
    %c1_18 = arith.constant 1 : index
    %c0_19 = arith.constant 0 : index
    %c0_20 = arith.constant 0 : index
    %15 = vector.load %arg2[%c1_18, %c0_19, %c0_20] : memref<9x64x128xbf16, #tpu.memory_space<vmem>>, vector<1x64x128xbf16>
    %16 = vector.shape_cast %15 : vector<1x64x128xbf16> to vector<64x128xbf16>
    %cst_21 = arith.constant dense<0.000000e+00> : vector<64x128xf32>
    %17 = tpu.matmul %14, %16, %cst_21 {dimension_numbers = #tpu.dot_dimension_numbers<[1], [0], [0], [1], [0, 0, 1, 1], [], []>} : vector<64x64xbf16>, vector<64x128xbf16>, vector<64x128xf32> -> vector<64x128xf32>
    %18 = arith.addf %13, %17 : vector<64x128xf32>
    %c0_22 = arith.constant 0 : index
    %c0_23 = arith.constant 0 : index
    %19 = vector.load %arg5[%c0_22, %c0_23] : memref<64x128xf32, #tpu.memory_space<vmem>>, vector<64x128xf32>
    tpu.vector_store %arg5[%c0_22, %c0_23], %18 {strides = array<i32>} : memref<64x128xf32, #tpu.memory_space<vmem>>, vector<64x128xf32>,
    %c0_24 = arith.constant 0 : index
    %c0_25 = arith.constant 0 : index
    %c2 = arith.constant 2 : index
    %c0_26 = arith.constant 0 : index
    %20 = vector.load %arg1[%c0_24, %c0_25, %c2, %c0_26] : memref<1x10x10x64xbf16, #tpu.memory_space<vmem>>, vector<1x8x8x64xbf16>
    %21 = vector.shape_cast %20 : vector<1x8x8x64xbf16> to vector<8x8x64xbf16>
    %c0_27 = arith.constant 0 : index
    %c0_28 = arith.constant 0 : index
    %22 = vector.load %arg5[%c0_27, %c0_28] : memref<64x128xf32, #tpu.memory_space<vmem>>, vector<64x128xf32>
    %23 = vector.shape_cast %21 : vector<8x8x64xbf16> to vector<64x64xbf16>
    %c2_29 = arith.constant 2 : index
    %c0_30 = arith.constant 0 : index
    %c0_31 = arith.constant 0 : index
    %24 = vector.load %arg2[%c2_29, %c0_30, %c0_31] : memref<9x64x128xbf16, #tpu.memory_space<vmem>>, vector<1x64x128xbf16>
    %25 = vector.shape_cast %24 : vector<1x64x128xbf16> to vector<64x128xbf16>
    %cst_32 = arith.constant dense<0.000000e+00> : vector<64x128xf32>
    %26 = tpu.matmul %23, %25, %cst_32 {dimension_numbers = #tpu.dot_dimension_numbers<[1], [0], [0], [1], [0, 0, 1, 1], [], []>} : vector<64x64xbf16>, vector<64x128xbf16>, vector<64x128xf32> -> vector<64x128xf32>
    %27 = arith.addf %22, %26 : vector<64x128xf32>
    %c0_33 = arith.constant 0 : index
    %c0_34 = arith.constant 0 : index
    %28 = vector.load %arg5[%c0_33, %c0_34] : memref<64x128xf32, #tpu.memory_space<vmem>>, vector<64x128xf32>
    tpu.vector_store %arg5[%c0_33, %c0_34], %27 {strides = array<i32>} : memref<64x128xf32, #tpu.memory_space<vmem>>, vector<64x128xf32>,
    %c0_35 = arith.constant 0 : index
    %c1_36 = arith.constant 1 : index
    %c0_37 = arith.constant 0 : index
    %c0_38 = arith.constant 0 : index
    %29 = vector.load %arg1[%c0_35, %c1_36, %c0_37, %c0_38] : memref<1x10x10x64xbf16, #tpu.memory_space<vmem>>, vector<1x8x8x64xbf16>
    %30 = vector.shape_cast %29 : vector<1x8x8x64xbf16> to vector<8x8x64xbf16>
    %c0_39 = arith.constant 0 : index
    %c0_40 = arith.constant 0 : index
    %31 = vector.load %arg5[%c0_39, %c0_40] : memref<64x128xf32, #tpu.memory_space<vmem>>, vector<64x128xf32>
    %32 = vector.shape_cast %30 : vector<8x8x64xbf16> to vector<64x64xbf16>
    %c3 = arith.constant 3 : index
    %c0_41 = arith.constant 0 : index
    %c0_42 = arith.constant 0 : index
    %33 = vector.load %arg2[%c3, %c0_41, %c0_42] : memref<9x64x128xbf16, #tpu.memory_space<vmem>>, vector<1x64x128xbf16>
    %34 = vector.shape_cast %33 : vector<1x64x128xbf16> to vector<64x128xbf16>
    %cst_43 = arith.constant dense<0.000000e+00> : vector<64x128xf32>
    %35 = tpu.matmul %32, %34, %cst_43 {dimension_numbers = #tpu.dot_dimension_numbers<[1], [0], [0], [1], [0, 0, 1, 1], [], []>} : vector<64x64xbf16>, vector<64x128xbf16>, vector<64x128xf32> -> vector<64x128xf32>
    %36 = arith.addf %31, %35 : vector<64x128xf32>
    %c0_44 = arith.constant 0 : index
    %c0_45 = arith.constant 0 : index
    %37 = vector.load %arg5[%c0_44, %c0_45] : memref<64x128xf32, #tpu.memory_space<vmem>>, vector<64x128xf32>
    tpu.vector_store %arg5[%c0_44, %c0_45], %36 {strides = array<i32>} : memref<64x128xf32, #tpu.memory_space<vmem>>, vector<64x128xf32>,
    %c0_46 = arith.constant 0 : index
    %c1_47 = arith.constant 1 : index
    %c1_48 = arith.constant 1 : index
    %c0_49 = arith.constant 0 : index
    %38 = vector.load %arg1[%c0_46, %c1_47, %c1_48, %c0_49] : memref<1x10x10x64xbf16, #tpu.memory_space<vmem>>, vector<1x8x8x64xbf16>
    %39 = vector.shape_cast %38 : vector<1x8x8x64xbf16> to vector<8x8x64xbf16>
    %c0_50 = arith.constant 0 : index
    %c0_51 = arith.constant 0 : index
    %40 = vector.load %arg5[%c0_50, %c0_51] : memref<64x128xf32, #tpu.memory_space<vmem>>, vector<64x128xf32>
    %41 = vector.shape_cast %39 : vector<8x8x64xbf16> to vector<64x64xbf16>
    %c4 = arith.constant 4 : index
    %c0_52 = arith.constant 0 : index
    %c0_53 = arith.constant 0 : index
    %42 = vector.load %arg2[%c4, %c0_52, %c0_53] : memref<9x64x128xbf16, #tpu.memory_space<vmem>>, vector<1x64x128xbf16>
    %43 = vector.shape_cast %42 : vector<1x64x128xbf16> to vector<64x128xbf16>
    %cst_54 = arith.constant dense<0.000000e+00> : vector<64x128xf32>
    %44 = tpu.matmul %41, %43, %cst_54 {dimension_numbers = #tpu.dot_dimension_numbers<[1], [0], [0], [1], [0, 0, 1, 1], [], []>} : vector<64x64xbf16>, vector<64x128xbf16>, vector<64x128xf32> -> vector<64x128xf32>
    %45 = arith.addf %40, %44 : vector<64x128xf32>
    %c0_55 = arith.constant 0 : index
    %c0_56 = arith.constant 0 : index
    %46 = vector.load %arg5[%c0_55, %c0_56] : memref<64x128xf32, #tpu.memory_space<vmem>>, vector<64x128xf32>
    tpu.vector_store %arg5[%c0_55, %c0_56], %45 {strides = array<i32>} : memref<64x128xf32, #tpu.memory_space<vmem>>, vector<64x128xf32>,
    %c0_57 = arith.constant 0 : index
    %c1_58 = arith.constant 1 : index
    %c2_59 = arith.constant 2 : index
    %c0_60 = arith.constant 0 : index
    %47 = vector.load %arg1[%c0_57, %c1_58, %c2_59, %c0_60] : memref<1x10x10x64xbf16, #tpu.memory_space<vmem>>, vector<1x8x8x64xbf16>
    %48 = vector.shape_cast %47 : vector<1x8x8x64xbf16> to vector<8x8x64xbf16>
    %c0_61 = arith.constant 0 : index
    %c0_62 = arith.constant 0 : index
    %49 = vector.load %arg5[%c0_61, %c0_62] : memref<64x128xf32, #tpu.memory_space<vmem>>, vector<64x128xf32>
    %50 = vector.shape_cast %48 : vector<8x8x64xbf16> to vector<64x64xbf16>
    %c5 = arith.constant 5 : index
    %c0_63 = arith.constant 0 : index
    %c0_64 = arith.constant 0 : index
    %51 = vector.load %arg2[%c5, %c0_63, %c0_64] : memref<9x64x128xbf16, #tpu.memory_space<vmem>>, vector<1x64x128xbf16>
    %52 = vector.shape_cast %51 : vector<1x64x128xbf16> to vector<64x128xbf16>
    %cst_65 = arith.constant dense<0.000000e+00> : vector<64x128xf32>
    %53 = tpu.matmul %50, %52, %cst_65 {dimension_numbers = #tpu.dot_dimension_numbers<[1], [0], [0], [1], [0, 0, 1, 1], [], []>} : vector<64x64xbf16>, vector<64x128xbf16>, vector<64x128xf32> -> vector<64x128xf32>
    %54 = arith.addf %49, %53 : vector<64x128xf32>
    %c0_66 = arith.constant 0 : index
    %c0_67 = arith.constant 0 : index
    %55 = vector.load %arg5[%c0_66, %c0_67] : memref<64x128xf32, #tpu.memory_space<vmem>>, vector<64x128xf32>
    tpu.vector_store %arg5[%c0_66, %c0_67], %54 {strides = array<i32>} : memref<64x128xf32, #tpu.memory_space<vmem>>, vector<64x128xf32>,
    %c0_68 = arith.constant 0 : index
    %c2_69 = arith.constant 2 : index
    %c0_70 = arith.constant 0 : index
    %c0_71 = arith.constant 0 : index
    %56 = vector.load %arg1[%c0_68, %c2_69, %c0_70, %c0_71] : memref<1x10x10x64xbf16, #tpu.memory_space<vmem>>, vector<1x8x8x64xbf16>
    %57 = vector.shape_cast %56 : vector<1x8x8x64xbf16> to vector<8x8x64xbf16>
    %c0_72 = arith.constant 0 : index
    %c0_73 = arith.constant 0 : index
    %58 = vector.load %arg5[%c0_72, %c0_73] : memref<64x128xf32, #tpu.memory_space<vmem>>, vector<64x128xf32>
    %59 = vector.shape_cast %57 : vector<8x8x64xbf16> to vector<64x64xbf16>
    %c6 = arith.constant 6 : index
    %c0_74 = arith.constant 0 : index
    %c0_75 = arith.constant 0 : index
    %60 = vector.load %arg2[%c6, %c0_74, %c0_75] : memref<9x64x128xbf16, #tpu.memory_space<vmem>>, vector<1x64x128xbf16>
    %61 = vector.shape_cast %60 : vector<1x64x128xbf16> to vector<64x128xbf16>
    %cst_76 = arith.constant dense<0.000000e+00> : vector<64x128xf32>
    %62 = tpu.matmul %59, %61, %cst_76 {dimension_numbers = #tpu.dot_dimension_numbers<[1], [0], [0], [1], [0, 0, 1, 1], [], []>} : vector<64x64xbf16>, vector<64x128xbf16>, vector<64x128xf32> -> vector<64x128xf32>
    %63 = arith.addf %58, %62 : vector<64x128xf32>
    %c0_77 = arith.constant 0 : index
    %c0_78 = arith.constant 0 : index
    %64 = vector.load %arg5[%c0_77, %c0_78] : memref<64x128xf32, #tpu.memory_space<vmem>>, vector<64x128xf32>
    tpu.vector_store %arg5[%c0_77, %c0_78], %63 {strides = array<i32>} : memref<64x128xf32, #tpu.memory_space<vmem>>, vector<64x128xf32>,
    %c0_79 = arith.constant 0 : index
    %c2_80 = arith.constant 2 : index
    %c1_81 = arith.constant 1 : index
    %c0_82 = arith.constant 0 : index
    %65 = vector.load %arg1[%c0_79, %c2_80, %c1_81, %c0_82] : memref<1x10x10x64xbf16, #tpu.memory_space<vmem>>, vector<1x8x8x64xbf16>
    %66 = vector.shape_cast %65 : vector<1x8x8x64xbf16> to vector<8x8x64xbf16>
    %c0_83 = arith.constant 0 : index
    %c0_84 = arith.constant 0 : index
    %67 = vector.load %arg5[%c0_83, %c0_84] : memref<64x128xf32, #tpu.memory_space<vmem>>, vector<64x128xf32>
    %68 = vector.shape_cast %66 : vector<8x8x64xbf16> to vector<64x64xbf16>
    %c7 = arith.constant 7 : index
    %c0_85 = arith.constant 0 : index
    %c0_86 = arith.constant 0 : index
    %69 = vector.load %arg2[%c7, %c0_85, %c0_86] : memref<9x64x128xbf16, #tpu.memory_space<vmem>>, vector<1x64x128xbf16>
    %70 = vector.shape_cast %69 : vector<1x64x128xbf16> to vector<64x128xbf16>
    %cst_87 = arith.constant dense<0.000000e+00> : vector<64x128xf32>
    %71 = tpu.matmul %68, %70, %cst_87 {dimension_numbers = #tpu.dot_dimension_numbers<[1], [0], [0], [1], [0, 0, 1, 1], [], []>} : vector<64x64xbf16>, vector<64x128xbf16>, vector<64x128xf32> -> vector<64x128xf32>
    %72 = arith.addf %67, %71 : vector<64x128xf32>
    %c0_88 = arith.constant 0 : index
    %c0_89 = arith.constant 0 : index
    %73 = vector.load %arg5[%c0_88, %c0_89] : memref<64x128xf32, #tpu.memory_space<vmem>>, vector<64x128xf32>
    tpu.vector_store %arg5[%c0_88, %c0_89], %72 {strides = array<i32>} : memref<64x128xf32, #tpu.memory_space<vmem>>, vector<64x128xf32>,
    %c0_90 = arith.constant 0 : index
    %c2_91 = arith.constant 2 : index
    %c2_92 = arith.constant 2 : index
    %c0_93 = arith.constant 0 : index
    %74 = vector.load %arg1[%c0_90, %c2_91, %c2_92, %c0_93] : memref<1x10x10x64xbf16, #tpu.memory_space<vmem>>, vector<1x8x8x64xbf16>
    %75 = vector.shape_cast %74 : vector<1x8x8x64xbf16> to vector<8x8x64xbf16>
    %c0_94 = arith.constant 0 : index
    %c0_95 = arith.constant 0 : index
    %76 = vector.load %arg5[%c0_94, %c0_95] : memref<64x128xf32, #tpu.memory_space<vmem>>, vector<64x128xf32>
    %77 = vector.shape_cast %75 : vector<8x8x64xbf16> to vector<64x64xbf16>
    %c8 = arith.constant 8 : index
    %c0_96 = arith.constant 0 : index
    %c0_97 = arith.constant 0 : index
    %78 = vector.load %arg2[%c8, %c0_96, %c0_97] : memref<9x64x128xbf16, #tpu.memory_space<vmem>>, vector<1x64x128xbf16>
    %79 = vector.shape_cast %78 : vector<1x64x128xbf16> to vector<64x128xbf16>
    %cst_98 = arith.constant dense<0.000000e+00> : vector<64x128xf32>
    %80 = tpu.matmul %77, %79, %cst_98 {dimension_numbers = #tpu.dot_dimension_numbers<[1], [0], [0], [1], [0, 0, 1, 1], [], []>} : vector<64x64xbf16>, vector<64x128xbf16>, vector<64x128xf32> -> vector<64x128xf32>
    %81 = arith.addf %76, %80 : vector<64x128xf32>
    %c0_99 = arith.constant 0 : index
    %c0_100 = arith.constant 0 : index
    %82 = vector.load %arg5[%c0_99, %c0_100] : memref<64x128xf32, #tpu.memory_space<vmem>>, vector<64x128xf32>
    tpu.vector_store %arg5[%c0_99, %c0_100], %81 {strides = array<i32>} : memref<64x128xf32, #tpu.memory_space<vmem>>, vector<64x128xf32>,
    %c0_101 = arith.constant 0 : index
    %c0_102 = arith.constant 0 : index
    %83 = vector.load %arg5[%c0_101, %c0_102] : memref<64x128xf32, #tpu.memory_space<vmem>>, vector<64x128xf32>
    %c0_103 = arith.constant 0 : index
    %c0_104 = arith.constant 0 : index
    %84 = vector.load %arg3[%c0_103, %c0_104] : memref<1x128xf32, #tpu.memory_space<vmem>>, vector<1x128xf32>
    %85 = vector.broadcast %84 : vector<1x128xf32> to vector<64x128xf32>
    %86 = arith.addf %83, %85 : vector<64x128xf32>
    %cst_105 = arith.constant 0.000000e+00 : f32
    %87 = vector.broadcast %cst_105 : f32 to vector<64x128xf32>
    %88 = arith.maximumf %86, %87 : vector<64x128xf32>
    %89 = arith.truncf %88 : vector<64x128xf32> to vector<64x128xbf16>
    %c0_106 = arith.constant 0 : index
    %c0_107 = arith.constant 0 : index
    %c0_108 = arith.constant 0 : index
    %90 = vector.load %arg4[%c0_106, %c0_107, %c0_108] : memref<1x64x128xbf16, #tpu.memory_space<vmem>>, vector<1x64x128xbf16>
    %91 = vector.shape_cast %90 : vector<1x64x128xbf16> to vector<64x128xbf16>
    %92 = vector.shape_cast %89 : vector<64x128xbf16> to vector<1x64x128xbf16>
    tpu.vector_store %arg4[%c0_106, %c0_107, %c0_108], %92 {strides = array<i32>} : memref<1x64x128xbf16, #tpu.memory_space<vmem>>, vector<1x64x128xbf16>,
    return
  }
  func.func @transform_0(%arg0: i32) -> (i32, i32, i32, i32) {
    %c0_i32 = arith.constant 0 : i32
    %c0_i32_0 = arith.constant 0 : i32
    %c0_i32_1 = arith.constant 0 : i32
    %c0_i32_2 = arith.constant 0 : i32
    return %arg0, %c0_i32, %c0_i32_0, %c0_i32_1 : i32, i32, i32, i32
  }
  func.func @transform_1(%arg0: i32) -> (i32, i32, i32) {
    %c0_i32 = arith.constant 0 : i32
    %c0_i32_0 = arith.constant 0 : i32
    %c0_i32_1 = arith.constant 0 : i32
    %c0_i32_2 = arith.constant 0 : i32
    return %c0_i32, %c0_i32_0, %c0_i32_1 : i32, i32, i32
  }
  func.func @transform_2(%arg0: i32) -> (i32, i32) {
    %c0_i32 = arith.constant 0 : i32
    %c0_i32_0 = arith.constant 0 : i32
    %c0_i32_1 = arith.constant 0 : i32
    return %c0_i32, %c0_i32_0 : i32, i32
  }
  func.func @transform_3(%arg0: i32) -> (i32, i32, i32) {
    %c0_i32 = arith.constant 0 : i32
    %c0_i32_0 = arith.constant 0 : i32
    %c0_i32_1 = arith.constant 0 : i32
    return %arg0, %c0_i32, %c0_i32_0 : i32, i32, i32
  }
}

module attributes {stable_mosaic.version = 11 : i64} {
  func.func @_head_kernel(%arg0: i32, %arg1: memref<1x128x128xbf16, #tpu.memory_space<vmem>>, %arg2: memref<88x128xbf16, #tpu.memory_space<vmem>>, %arg3: memref<88x1xf32, #tpu.memory_space<vmem>>, %arg4: memref<64x128xf32, #tpu.memory_space<vmem>>, %arg5: memref<1x128xf32, #tpu.memory_space<vmem>>, %arg6: memref<24x64x128xf32, #tpu.memory_space<vmem>>, %arg7: memref<1x128xf32, #tpu.memory_space<vmem>>, %arg8: memref<1x24x128xf32, #tpu.memory_space<vmem>>, %arg9: memref<1x1x128xf32, #tpu.memory_space<vmem>>) attributes {dimension_semantics = [#tpu.dimension_semantics<parallel>], iteration_bounds = array<i64: 2>, scalar_prefetch = 0 : i64, scratch_operands = 0 : i64, tpu.core_type = #tpu.core_type<tc>, window_params = [{transform_indices = @transform_0, window_bounds = array<i64: 1, 128, 128>}, {pipeline_mode = #tpu.pipeline_mode<synchronous>, transform_indices = @transform_1, window_bounds = array<i64: 88, 128>}, {pipeline_mode = #tpu.pipeline_mode<synchronous>, transform_indices = @transform_2, window_bounds = array<i64: 88, 1>}, {pipeline_mode = #tpu.pipeline_mode<synchronous>, transform_indices = @transform_3, window_bounds = array<i64: 64, 128>}, {pipeline_mode = #tpu.pipeline_mode<synchronous>, transform_indices = @transform_4, window_bounds = array<i64: 1, 128>}, {pipeline_mode = #tpu.pipeline_mode<synchronous>, transform_indices = @transform_5, window_bounds = array<i64: 24, 64, 128>}, {pipeline_mode = #tpu.pipeline_mode<synchronous>, transform_indices = @transform_6, window_bounds = array<i64: 1, 128>}, {transform_indices = @transform_7, window_bounds = array<i64: 1, 24, 128>}, {transform_indices = @transform_8, window_bounds = array<i64: 1, 1, 128>}]} {
    %c0 = arith.constant 0 : index
    %c0_0 = arith.constant 0 : index
    %c0_1 = arith.constant 0 : index
    %0 = vector.load %arg1[%c0, %c0_0, %c0_1] : memref<1x128x128xbf16, #tpu.memory_space<vmem>>, vector<1x128x128xbf16>
    %1 = vector.shape_cast %0 : vector<1x128x128xbf16> to vector<128x128xbf16>
    %c0_2 = arith.constant 0 : index
    %c0_3 = arith.constant 0 : index
    %2 = vector.load %arg2[%c0_2, %c0_3] : memref<88x128xbf16, #tpu.memory_space<vmem>>, vector<88x128xbf16>
    %cst = arith.constant dense<0.000000e+00> : vector<88x128xf32>
    %3 = tpu.matmul %2, %1, %cst {dimension_numbers = #tpu.dot_dimension_numbers<[1], [1], [0], [0], [0, 0, 1, 0], [], []>} : vector<88x128xbf16>, vector<128x128xbf16>, vector<88x128xf32> -> vector<88x128xf32>
    %c0_4 = arith.constant 0 : index
    %c0_5 = arith.constant 0 : index
    %4 = vector.load %arg3[%c0_4, %c0_5] : memref<88x1xf32, #tpu.memory_space<vmem>>, vector<88x1xf32>
    %5 = vector.broadcast %4 : vector<88x1xf32> to vector<88x128xf32>
    %6 = arith.addf %3, %5 : vector<88x128xf32>
    %7 = vector.extract_strided_slice %6 {offsets = [0, 0], sizes = [64, 128], strides = [1, 1]} : vector<88x128xf32> to vector<64x128xf32>
    %cst_6 = arith.constant 0.000000e+00 : f32
    %8 = vector.broadcast %cst_6 : f32 to vector<64x128xf32>
    %9 = arith.maximumf %7, %8 : vector<64x128xf32>
    %10 = vector.extract_strided_slice %6 {offsets = [64, 0], sizes = [24, 128], strides = [1, 1]} : vector<88x128xf32> to vector<24x128xf32>
    %11 = tpu.iota {dimensions = array<i32: 1>} : vector<24x128xi32>
    %c64_i32 = arith.constant 64 : i32
    %12 = vector.broadcast %c64_i32 : i32 to vector<24x128xi32>
    %13 = arith.cmpi slt, %11, %12 : vector<24x128xi32>
    %cst_7 = arith.constant -1.000000e+30 : f32
    %14 = vector.broadcast %cst_7 : f32 to vector<24x128xf32>
    %15 = arith.select %13, %10, %14 : vector<24x128xi1>, vector<24x128xf32>
    %cst_8 = arith.constant dense<0xFF800000> : vector<24xf32>
    %16 = vector.multi_reduction <maximumf>, %15, %cst_8 [1] : vector<24x128xf32> to vector<24xf32>
    %17 = vector.shape_cast %16 : vector<24xf32> to vector<24x1xf32>
    %18 = vector.broadcast %17 : vector<24x1xf32> to vector<24x128xf32>
    %19 = arith.subf %15, %18 : vector<24x128xf32>
    %20 = math.exp %19 : vector<24x128xf32>
    %cst_9 = arith.constant dense<0.000000e+00> : vector<24xf32>
    %21 = vector.multi_reduction <add>, %20, %cst_9 [1] : vector<24x128xf32> to vector<24xf32>
    %22 = vector.shape_cast %21 : vector<24xf32> to vector<24x1xf32>
    %23 = tpu.reciprocal %22 : vector<24x1xf32> -> vector<24x1xf32>
    %24 = vector.broadcast %23 : vector<24x1xf32> to vector<24x128xf32>
    %25 = arith.mulf %20, %24 : vector<24x128xf32>
    %cst_10 = arith.constant dense<0.000000e+00> : vector<24x64xf32>
    %26 = tpu.matmul %25, %9, %cst_10 {dimension_numbers = #tpu.dot_dimension_numbers<[1], [1], [0], [0], [0, 0, 1, 0], [], []>} : vector<24x128xf32>, vector<64x128xf32>, vector<24x64xf32> -> vector<24x64xf32>
    %c0_11 = arith.constant 0 : index
    %c0_12 = arith.constant 0 : index
    %27 = vector.load %arg4[%c0_11, %c0_12] : memref<64x128xf32, #tpu.memory_space<vmem>>, vector<64x128xf32>
    %cst_13 = arith.constant dense<0.000000e+00> : vector<24x128xf32>
    %28 = tpu.matmul %26, %27, %cst_13 {dimension_numbers = #tpu.dot_dimension_numbers<[1], [0], [0], [1], [0, 0, 1, 1], [], []>} : vector<24x64xf32>, vector<64x128xf32>, vector<24x128xf32> -> vector<24x128xf32>
    %c0_14 = arith.constant 0 : index
    %c0_15 = arith.constant 0 : index
    %29 = vector.load %arg5[%c0_14, %c0_15] : memref<1x128xf32, #tpu.memory_space<vmem>>, vector<1x128xf32>
    %30 = vector.broadcast %29 : vector<1x128xf32> to vector<24x128xf32>
    %31 = arith.addf %28, %30 : vector<24x128xf32>
    %c0_16 = arith.constant 0 : index
    %c0_17 = arith.constant 0 : index
    %c0_18 = arith.constant 0 : index
    %32 = vector.load %arg8[%c0_16, %c0_17, %c0_18] : memref<1x24x128xf32, #tpu.memory_space<vmem>>, vector<1x24x128xf32>
    %33 = vector.shape_cast %32 : vector<1x24x128xf32> to vector<24x128xf32>
    %34 = vector.shape_cast %31 : vector<24x128xf32> to vector<1x24x128xf32>
    tpu.vector_store %arg8[%c0_16, %c0_17, %c0_18], %34 {strides = array<i32>} : memref<1x24x128xf32, #tpu.memory_space<vmem>>, vector<1x24x128xf32>,
    %c0_19 = arith.constant 0 : index
    %c0_20 = arith.constant 0 : index
    %35 = vector.load %arg7[%c0_19, %c0_20] : memref<1x128xf32, #tpu.memory_space<vmem>>, vector<1x128xf32>
    %36 = vector.extract_strided_slice %26 {offsets = [0, 0], sizes = [1, 64], strides = [1, 1]} : vector<24x64xf32> to vector<1x64xf32>
    %c0_21 = arith.constant 0 : index
    %c0_22 = arith.constant 0 : index
    %c0_23 = arith.constant 0 : index
    %37 = vector.load %arg6[%c0_21, %c0_22, %c0_23] : memref<24x64x128xf32, #tpu.memory_space<vmem>>, vector<1x64x128xf32>
    %38 = vector.shape_cast %37 : vector<1x64x128xf32> to vector<64x128xf32>
    %cst_24 = arith.constant dense<0.000000e+00> : vector<1x128xf32>
    %39 = tpu.matmul %36, %38, %cst_24 {dimension_numbers = #tpu.dot_dimension_numbers<[1], [0], [0], [1], [0, 0, 1, 1], [], []>} : vector<1x64xf32>, vector<64x128xf32>, vector<1x128xf32> -> vector<1x128xf32>
    %40 = arith.addf %35, %39 : vector<1x128xf32>
    %41 = vector.extract_strided_slice %26 {offsets = [1, 0], sizes = [1, 64], strides = [1, 1]} : vector<24x64xf32> to vector<1x64xf32>
    %c1 = arith.constant 1 : index
    %c0_25 = arith.constant 0 : index
    %c0_26 = arith.constant 0 : index
    %42 = vector.load %arg6[%c1, %c0_25, %c0_26] : memref<24x64x128xf32, #tpu.memory_space<vmem>>, vector<1x64x128xf32>
    %43 = vector.shape_cast %42 : vector<1x64x128xf32> to vector<64x128xf32>
    %cst_27 = arith.constant dense<0.000000e+00> : vector<1x128xf32>
    %44 = tpu.matmul %41, %43, %cst_27 {dimension_numbers = #tpu.dot_dimension_numbers<[1], [0], [0], [1], [0, 0, 1, 1], [], []>} : vector<1x64xf32>, vector<64x128xf32>, vector<1x128xf32> -> vector<1x128xf32>
    %45 = arith.addf %40, %44 : vector<1x128xf32>
    %46 = vector.extract_strided_slice %26 {offsets = [2, 0], sizes = [1, 64], strides = [1, 1]} : vector<24x64xf32> to vector<1x64xf32>
    %c2 = arith.constant 2 : index
    %c0_28 = arith.constant 0 : index
    %c0_29 = arith.constant 0 : index
    %47 = vector.load %arg6[%c2, %c0_28, %c0_29] : memref<24x64x128xf32, #tpu.memory_space<vmem>>, vector<1x64x128xf32>
    %48 = vector.shape_cast %47 : vector<1x64x128xf32> to vector<64x128xf32>
    %cst_30 = arith.constant dense<0.000000e+00> : vector<1x128xf32>
    %49 = tpu.matmul %46, %48, %cst_30 {dimension_numbers = #tpu.dot_dimension_numbers<[1], [0], [0], [1], [0, 0, 1, 1], [], []>} : vector<1x64xf32>, vector<64x128xf32>, vector<1x128xf32> -> vector<1x128xf32>
    %50 = arith.addf %45, %49 : vector<1x128xf32>
    %51 = vector.extract_strided_slice %26 {offsets = [3, 0], sizes = [1, 64], strides = [1, 1]} : vector<24x64xf32> to vector<1x64xf32>
    %c3 = arith.constant 3 : index
    %c0_31 = arith.constant 0 : index
    %c0_32 = arith.constant 0 : index
    %52 = vector.load %arg6[%c3, %c0_31, %c0_32] : memref<24x64x128xf32, #tpu.memory_space<vmem>>, vector<1x64x128xf32>
    %53 = vector.shape_cast %52 : vector<1x64x128xf32> to vector<64x128xf32>
    %cst_33 = arith.constant dense<0.000000e+00> : vector<1x128xf32>
    %54 = tpu.matmul %51, %53, %cst_33 {dimension_numbers = #tpu.dot_dimension_numbers<[1], [0], [0], [1], [0, 0, 1, 1], [], []>} : vector<1x64xf32>, vector<64x128xf32>, vector<1x128xf32> -> vector<1x128xf32>
    %55 = arith.addf %50, %54 : vector<1x128xf32>
    %56 = vector.extract_strided_slice %26 {offsets = [4, 0], sizes = [1, 64], strides = [1, 1]} : vector<24x64xf32> to vector<1x64xf32>
    %c4 = arith.constant 4 : index
    %c0_34 = arith.constant 0 : index
    %c0_35 = arith.constant 0 : index
    %57 = vector.load %arg6[%c4, %c0_34, %c0_35] : memref<24x64x128xf32, #tpu.memory_space<vmem>>, vector<1x64x128xf32>
    %58 = vector.shape_cast %57 : vector<1x64x128xf32> to vector<64x128xf32>
    %cst_36 = arith.constant dense<0.000000e+00> : vector<1x128xf32>
    %59 = tpu.matmul %56, %58, %cst_36 {dimension_numbers = #tpu.dot_dimension_numbers<[1], [0], [0], [1], [0, 0, 1, 1], [], []>} : vector<1x64xf32>, vector<64x128xf32>, vector<1x128xf32> -> vector<1x128xf32>
    %60 = arith.addf %55, %59 : vector<1x128xf32>
    %61 = vector.extract_strided_slice %26 {offsets = [5, 0], sizes = [1, 64], strides = [1, 1]} : vector<24x64xf32> to vector<1x64xf32>
    %c5 = arith.constant 5 : index
    %c0_37 = arith.constant 0 : index
    %c0_38 = arith.constant 0 : index
    %62 = vector.load %arg6[%c5, %c0_37, %c0_38] : memref<24x64x128xf32, #tpu.memory_space<vmem>>, vector<1x64x128xf32>
    %63 = vector.shape_cast %62 : vector<1x64x128xf32> to vector<64x128xf32>
    %cst_39 = arith.constant dense<0.000000e+00> : vector<1x128xf32>
    %64 = tpu.matmul %61, %63, %cst_39 {dimension_numbers = #tpu.dot_dimension_numbers<[1], [0], [0], [1], [0, 0, 1, 1], [], []>} : vector<1x64xf32>, vector<64x128xf32>, vector<1x128xf32> -> vector<1x128xf32>
    %65 = arith.addf %60, %64 : vector<1x128xf32>
    %66 = vector.extract_strided_slice %26 {offsets = [6, 0], sizes = [1, 64], strides = [1, 1]} : vector<24x64xf32> to vector<1x64xf32>
    %c6 = arith.constant 6 : index
    %c0_40 = arith.constant 0 : index
    %c0_41 = arith.constant 0 : index
    %67 = vector.load %arg6[%c6, %c0_40, %c0_41] : memref<24x64x128xf32, #tpu.memory_space<vmem>>, vector<1x64x128xf32>
    %68 = vector.shape_cast %67 : vector<1x64x128xf32> to vector<64x128xf32>
    %cst_42 = arith.constant dense<0.000000e+00> : vector<1x128xf32>
    %69 = tpu.matmul %66, %68, %cst_42 {dimension_numbers = #tpu.dot_dimension_numbers<[1], [0], [0], [1], [0, 0, 1, 1], [], []>} : vector<1x64xf32>, vector<64x128xf32>, vector<1x128xf32> -> vector<1x128xf32>
    %70 = arith.addf %65, %69 : vector<1x128xf32>
    %71 = vector.extract_strided_slice %26 {offsets = [7, 0], sizes = [1, 64], strides = [1, 1]} : vector<24x64xf32> to vector<1x64xf32>
    %c7 = arith.constant 7 : index
    %c0_43 = arith.constant 0 : index
    %c0_44 = arith.constant 0 : index
    %72 = vector.load %arg6[%c7, %c0_43, %c0_44] : memref<24x64x128xf32, #tpu.memory_space<vmem>>, vector<1x64x128xf32>
    %73 = vector.shape_cast %72 : vector<1x64x128xf32> to vector<64x128xf32>
    %cst_45 = arith.constant dense<0.000000e+00> : vector<1x128xf32>
    %74 = tpu.matmul %71, %73, %cst_45 {dimension_numbers = #tpu.dot_dimension_numbers<[1], [0], [0], [1], [0, 0, 1, 1], [], []>} : vector<1x64xf32>, vector<64x128xf32>, vector<1x128xf32> -> vector<1x128xf32>
    %75 = arith.addf %70, %74 : vector<1x128xf32>
    %76 = vector.extract_strided_slice %26 {offsets = [8, 0], sizes = [1, 64], strides = [1, 1]} : vector<24x64xf32> to vector<1x64xf32>
    %c8 = arith.constant 8 : index
    %c0_46 = arith.constant 0 : index
    %c0_47 = arith.constant 0 : index
    %77 = vector.load %arg6[%c8, %c0_46, %c0_47] : memref<24x64x128xf32, #tpu.memory_space<vmem>>, vector<1x64x128xf32>
    %78 = vector.shape_cast %77 : vector<1x64x128xf32> to vector<64x128xf32>
    %cst_48 = arith.constant dense<0.000000e+00> : vector<1x128xf32>
    %79 = tpu.matmul %76, %78, %cst_48 {dimension_numbers = #tpu.dot_dimension_numbers<[1], [0], [0], [1], [0, 0, 1, 1], [], []>} : vector<1x64xf32>, vector<64x128xf32>, vector<1x128xf32> -> vector<1x128xf32>
    %80 = arith.addf %75, %79 : vector<1x128xf32>
    %81 = vector.extract_strided_slice %26 {offsets = [9, 0], sizes = [1, 64], strides = [1, 1]} : vector<24x64xf32> to vector<1x64xf32>
    %c9 = arith.constant 9 : index
    %c0_49 = arith.constant 0 : index
    %c0_50 = arith.constant 0 : index
    %82 = vector.load %arg6[%c9, %c0_49, %c0_50] : memref<24x64x128xf32, #tpu.memory_space<vmem>>, vector<1x64x128xf32>
    %83 = vector.shape_cast %82 : vector<1x64x128xf32> to vector<64x128xf32>
    %cst_51 = arith.constant dense<0.000000e+00> : vector<1x128xf32>
    %84 = tpu.matmul %81, %83, %cst_51 {dimension_numbers = #tpu.dot_dimension_numbers<[1], [0], [0], [1], [0, 0, 1, 1], [], []>} : vector<1x64xf32>, vector<64x128xf32>, vector<1x128xf32> -> vector<1x128xf32>
    %85 = arith.addf %80, %84 : vector<1x128xf32>
    %86 = vector.extract_strided_slice %26 {offsets = [10, 0], sizes = [1, 64], strides = [1, 1]} : vector<24x64xf32> to vector<1x64xf32>
    %c10 = arith.constant 10 : index
    %c0_52 = arith.constant 0 : index
    %c0_53 = arith.constant 0 : index
    %87 = vector.load %arg6[%c10, %c0_52, %c0_53] : memref<24x64x128xf32, #tpu.memory_space<vmem>>, vector<1x64x128xf32>
    %88 = vector.shape_cast %87 : vector<1x64x128xf32> to vector<64x128xf32>
    %cst_54 = arith.constant dense<0.000000e+00> : vector<1x128xf32>
    %89 = tpu.matmul %86, %88, %cst_54 {dimension_numbers = #tpu.dot_dimension_numbers<[1], [0], [0], [1], [0, 0, 1, 1], [], []>} : vector<1x64xf32>, vector<64x128xf32>, vector<1x128xf32> -> vector<1x128xf32>
    %90 = arith.addf %85, %89 : vector<1x128xf32>
    %91 = vector.extract_strided_slice %26 {offsets = [11, 0], sizes = [1, 64], strides = [1, 1]} : vector<24x64xf32> to vector<1x64xf32>
    %c11 = arith.constant 11 : index
    %c0_55 = arith.constant 0 : index
    %c0_56 = arith.constant 0 : index
    %92 = vector.load %arg6[%c11, %c0_55, %c0_56] : memref<24x64x128xf32, #tpu.memory_space<vmem>>, vector<1x64x128xf32>
    %93 = vector.shape_cast %92 : vector<1x64x128xf32> to vector<64x128xf32>
    %cst_57 = arith.constant dense<0.000000e+00> : vector<1x128xf32>
    %94 = tpu.matmul %91, %93, %cst_57 {dimension_numbers = #tpu.dot_dimension_numbers<[1], [0], [0], [1], [0, 0, 1, 1], [], []>} : vector<1x64xf32>, vector<64x128xf32>, vector<1x128xf32> -> vector<1x128xf32>
    %95 = arith.addf %90, %94 : vector<1x128xf32>
    %96 = vector.extract_strided_slice %26 {offsets = [12, 0], sizes = [1, 64], strides = [1, 1]} : vector<24x64xf32> to vector<1x64xf32>
    %c12 = arith.constant 12 : index
    %c0_58 = arith.constant 0 : index
    %c0_59 = arith.constant 0 : index
    %97 = vector.load %arg6[%c12, %c0_58, %c0_59] : memref<24x64x128xf32, #tpu.memory_space<vmem>>, vector<1x64x128xf32>
    %98 = vector.shape_cast %97 : vector<1x64x128xf32> to vector<64x128xf32>
    %cst_60 = arith.constant dense<0.000000e+00> : vector<1x128xf32>
    %99 = tpu.matmul %96, %98, %cst_60 {dimension_numbers = #tpu.dot_dimension_numbers<[1], [0], [0], [1], [0, 0, 1, 1], [], []>} : vector<1x64xf32>, vector<64x128xf32>, vector<1x128xf32> -> vector<1x128xf32>
    %100 = arith.addf %95, %99 : vector<1x128xf32>
    %101 = vector.extract_strided_slice %26 {offsets = [13, 0], sizes = [1, 64], strides = [1, 1]} : vector<24x64xf32> to vector<1x64xf32>
    %c13 = arith.constant 13 : index
    %c0_61 = arith.constant 0 : index
    %c0_62 = arith.constant 0 : index
    %102 = vector.load %arg6[%c13, %c0_61, %c0_62] : memref<24x64x128xf32, #tpu.memory_space<vmem>>, vector<1x64x128xf32>
    %103 = vector.shape_cast %102 : vector<1x64x128xf32> to vector<64x128xf32>
    %cst_63 = arith.constant dense<0.000000e+00> : vector<1x128xf32>
    %104 = tpu.matmul %101, %103, %cst_63 {dimension_numbers = #tpu.dot_dimension_numbers<[1], [0], [0], [1], [0, 0, 1, 1], [], []>} : vector<1x64xf32>, vector<64x128xf32>, vector<1x128xf32> -> vector<1x128xf32>
    %105 = arith.addf %100, %104 : vector<1x128xf32>
    %106 = vector.extract_strided_slice %26 {offsets = [14, 0], sizes = [1, 64], strides = [1, 1]} : vector<24x64xf32> to vector<1x64xf32>
    %c14 = arith.constant 14 : index
    %c0_64 = arith.constant 0 : index
    %c0_65 = arith.constant 0 : index
    %107 = vector.load %arg6[%c14, %c0_64, %c0_65] : memref<24x64x128xf32, #tpu.memory_space<vmem>>, vector<1x64x128xf32>
    %108 = vector.shape_cast %107 : vector<1x64x128xf32> to vector<64x128xf32>
    %cst_66 = arith.constant dense<0.000000e+00> : vector<1x128xf32>
    %109 = tpu.matmul %106, %108, %cst_66 {dimension_numbers = #tpu.dot_dimension_numbers<[1], [0], [0], [1], [0, 0, 1, 1], [], []>} : vector<1x64xf32>, vector<64x128xf32>, vector<1x128xf32> -> vector<1x128xf32>
    %110 = arith.addf %105, %109 : vector<1x128xf32>
    %111 = vector.extract_strided_slice %26 {offsets = [15, 0], sizes = [1, 64], strides = [1, 1]} : vector<24x64xf32> to vector<1x64xf32>
    %c15 = arith.constant 15 : index
    %c0_67 = arith.constant 0 : index
    %c0_68 = arith.constant 0 : index
    %112 = vector.load %arg6[%c15, %c0_67, %c0_68] : memref<24x64x128xf32, #tpu.memory_space<vmem>>, vector<1x64x128xf32>
    %113 = vector.shape_cast %112 : vector<1x64x128xf32> to vector<64x128xf32>
    %cst_69 = arith.constant dense<0.000000e+00> : vector<1x128xf32>
    %114 = tpu.matmul %111, %113, %cst_69 {dimension_numbers = #tpu.dot_dimension_numbers<[1], [0], [0], [1], [0, 0, 1, 1], [], []>} : vector<1x64xf32>, vector<64x128xf32>, vector<1x128xf32> -> vector<1x128xf32>
    %115 = arith.addf %110, %114 : vector<1x128xf32>
    %116 = vector.extract_strided_slice %26 {offsets = [16, 0], sizes = [1, 64], strides = [1, 1]} : vector<24x64xf32> to vector<1x64xf32>
    %c16 = arith.constant 16 : index
    %c0_70 = arith.constant 0 : index
    %c0_71 = arith.constant 0 : index
    %117 = vector.load %arg6[%c16, %c0_70, %c0_71] : memref<24x64x128xf32, #tpu.memory_space<vmem>>, vector<1x64x128xf32>
    %118 = vector.shape_cast %117 : vector<1x64x128xf32> to vector<64x128xf32>
    %cst_72 = arith.constant dense<0.000000e+00> : vector<1x128xf32>
    %119 = tpu.matmul %116, %118, %cst_72 {dimension_numbers = #tpu.dot_dimension_numbers<[1], [0], [0], [1], [0, 0, 1, 1], [], []>} : vector<1x64xf32>, vector<64x128xf32>, vector<1x128xf32> -> vector<1x128xf32>
    %120 = arith.addf %115, %119 : vector<1x128xf32>
    %121 = vector.extract_strided_slice %26 {offsets = [17, 0], sizes = [1, 64], strides = [1, 1]} : vector<24x64xf32> to vector<1x64xf32>
    %c17 = arith.constant 17 : index
    %c0_73 = arith.constant 0 : index
    %c0_74 = arith.constant 0 : index
    %122 = vector.load %arg6[%c17, %c0_73, %c0_74] : memref<24x64x128xf32, #tpu.memory_space<vmem>>, vector<1x64x128xf32>
    %123 = vector.shape_cast %122 : vector<1x64x128xf32> to vector<64x128xf32>
    %cst_75 = arith.constant dense<0.000000e+00> : vector<1x128xf32>
    %124 = tpu.matmul %121, %123, %cst_75 {dimension_numbers = #tpu.dot_dimension_numbers<[1], [0], [0], [1], [0, 0, 1, 1], [], []>} : vector<1x64xf32>, vector<64x128xf32>, vector<1x128xf32> -> vector<1x128xf32>
    %125 = arith.addf %120, %124 : vector<1x128xf32>
    %126 = vector.extract_strided_slice %26 {offsets = [18, 0], sizes = [1, 64], strides = [1, 1]} : vector<24x64xf32> to vector<1x64xf32>
    %c18 = arith.constant 18 : index
    %c0_76 = arith.constant 0 : index
    %c0_77 = arith.constant 0 : index
    %127 = vector.load %arg6[%c18, %c0_76, %c0_77] : memref<24x64x128xf32, #tpu.memory_space<vmem>>, vector<1x64x128xf32>
    %128 = vector.shape_cast %127 : vector<1x64x128xf32> to vector<64x128xf32>
    %cst_78 = arith.constant dense<0.000000e+00> : vector<1x128xf32>
    %129 = tpu.matmul %126, %128, %cst_78 {dimension_numbers = #tpu.dot_dimension_numbers<[1], [0], [0], [1], [0, 0, 1, 1], [], []>} : vector<1x64xf32>, vector<64x128xf32>, vector<1x128xf32> -> vector<1x128xf32>
    %130 = arith.addf %125, %129 : vector<1x128xf32>
    %131 = vector.extract_strided_slice %26 {offsets = [19, 0], sizes = [1, 64], strides = [1, 1]} : vector<24x64xf32> to vector<1x64xf32>
    %c19 = arith.constant 19 : index
    %c0_79 = arith.constant 0 : index
    %c0_80 = arith.constant 0 : index
    %132 = vector.load %arg6[%c19, %c0_79, %c0_80] : memref<24x64x128xf32, #tpu.memory_space<vmem>>, vector<1x64x128xf32>
    %133 = vector.shape_cast %132 : vector<1x64x128xf32> to vector<64x128xf32>
    %cst_81 = arith.constant dense<0.000000e+00> : vector<1x128xf32>
    %134 = tpu.matmul %131, %133, %cst_81 {dimension_numbers = #tpu.dot_dimension_numbers<[1], [0], [0], [1], [0, 0, 1, 1], [], []>} : vector<1x64xf32>, vector<64x128xf32>, vector<1x128xf32> -> vector<1x128xf32>
    %135 = arith.addf %130, %134 : vector<1x128xf32>
    %136 = vector.extract_strided_slice %26 {offsets = [20, 0], sizes = [1, 64], strides = [1, 1]} : vector<24x64xf32> to vector<1x64xf32>
    %c20 = arith.constant 20 : index
    %c0_82 = arith.constant 0 : index
    %c0_83 = arith.constant 0 : index
    %137 = vector.load %arg6[%c20, %c0_82, %c0_83] : memref<24x64x128xf32, #tpu.memory_space<vmem>>, vector<1x64x128xf32>
    %138 = vector.shape_cast %137 : vector<1x64x128xf32> to vector<64x128xf32>
    %cst_84 = arith.constant dense<0.000000e+00> : vector<1x128xf32>
    %139 = tpu.matmul %136, %138, %cst_84 {dimension_numbers = #tpu.dot_dimension_numbers<[1], [0], [0], [1], [0, 0, 1, 1], [], []>} : vector<1x64xf32>, vector<64x128xf32>, vector<1x128xf32> -> vector<1x128xf32>
    %140 = arith.addf %135, %139 : vector<1x128xf32>
    %141 = vector.extract_strided_slice %26 {offsets = [21, 0], sizes = [1, 64], strides = [1, 1]} : vector<24x64xf32> to vector<1x64xf32>
    %c21 = arith.constant 21 : index
    %c0_85 = arith.constant 0 : index
    %c0_86 = arith.constant 0 : index
    %142 = vector.load %arg6[%c21, %c0_85, %c0_86] : memref<24x64x128xf32, #tpu.memory_space<vmem>>, vector<1x64x128xf32>
    %143 = vector.shape_cast %142 : vector<1x64x128xf32> to vector<64x128xf32>
    %cst_87 = arith.constant dense<0.000000e+00> : vector<1x128xf32>
    %144 = tpu.matmul %141, %143, %cst_87 {dimension_numbers = #tpu.dot_dimension_numbers<[1], [0], [0], [1], [0, 0, 1, 1], [], []>} : vector<1x64xf32>, vector<64x128xf32>, vector<1x128xf32> -> vector<1x128xf32>
    %145 = arith.addf %140, %144 : vector<1x128xf32>
    %146 = vector.extract_strided_slice %26 {offsets = [22, 0], sizes = [1, 64], strides = [1, 1]} : vector<24x64xf32> to vector<1x64xf32>
    %c22 = arith.constant 22 : index
    %c0_88 = arith.constant 0 : index
    %c0_89 = arith.constant 0 : index
    %147 = vector.load %arg6[%c22, %c0_88, %c0_89] : memref<24x64x128xf32, #tpu.memory_space<vmem>>, vector<1x64x128xf32>
    %148 = vector.shape_cast %147 : vector<1x64x128xf32> to vector<64x128xf32>
    %cst_90 = arith.constant dense<0.000000e+00> : vector<1x128xf32>
    %149 = tpu.matmul %146, %148, %cst_90 {dimension_numbers = #tpu.dot_dimension_numbers<[1], [0], [0], [1], [0, 0, 1, 1], [], []>} : vector<1x64xf32>, vector<64x128xf32>, vector<1x128xf32> -> vector<1x128xf32>
    %150 = arith.addf %145, %149 : vector<1x128xf32>
    %151 = vector.extract_strided_slice %26 {offsets = [23, 0], sizes = [1, 64], strides = [1, 1]} : vector<24x64xf32> to vector<1x64xf32>
    %c23 = arith.constant 23 : index
    %c0_91 = arith.constant 0 : index
    %c0_92 = arith.constant 0 : index
    %152 = vector.load %arg6[%c23, %c0_91, %c0_92] : memref<24x64x128xf32, #tpu.memory_space<vmem>>, vector<1x64x128xf32>
    %153 = vector.shape_cast %152 : vector<1x64x128xf32> to vector<64x128xf32>
    %cst_93 = arith.constant dense<0.000000e+00> : vector<1x128xf32>
    %154 = tpu.matmul %151, %153, %cst_93 {dimension_numbers = #tpu.dot_dimension_numbers<[1], [0], [0], [1], [0, 0, 1, 1], [], []>} : vector<1x64xf32>, vector<64x128xf32>, vector<1x128xf32> -> vector<1x128xf32>
    %155 = arith.addf %150, %154 : vector<1x128xf32>
    %c0_94 = arith.constant 0 : index
    %c0_95 = arith.constant 0 : index
    %c0_96 = arith.constant 0 : index
    %156 = vector.load %arg9[%c0_94, %c0_95, %c0_96] : memref<1x1x128xf32, #tpu.memory_space<vmem>>, vector<1x1x128xf32>
    %157 = vector.shape_cast %156 : vector<1x1x128xf32> to vector<1x128xf32>
    %158 = vector.shape_cast %155 : vector<1x128xf32> to vector<1x1x128xf32>
    tpu.vector_store %arg9[%c0_94, %c0_95, %c0_96], %158 {strides = array<i32>} : memref<1x1x128xf32, #tpu.memory_space<vmem>>, vector<1x1x128xf32>,
    return
  }
  func.func @transform_0(%arg0: i32) -> (i32, i32, i32) {
    %c0_i32 = arith.constant 0 : i32
    %c0_i32_0 = arith.constant 0 : i32
    %c0_i32_1 = arith.constant 0 : i32
    return %arg0, %c0_i32, %c0_i32_0 : i32, i32, i32
  }
  func.func @transform_1(%arg0: i32) -> (i32, i32) {
    %c0_i32 = arith.constant 0 : i32
    %c0_i32_0 = arith.constant 0 : i32
    %c0_i32_1 = arith.constant 0 : i32
    return %c0_i32, %c0_i32_0 : i32, i32
  }
  func.func @transform_2(%arg0: i32) -> (i32, i32) {
    %c0_i32 = arith.constant 0 : i32
    %c0_i32_0 = arith.constant 0 : i32
    %c0_i32_1 = arith.constant 0 : i32
    return %c0_i32, %c0_i32_0 : i32, i32
  }
  func.func @transform_3(%arg0: i32) -> (i32, i32) {
    %c0_i32 = arith.constant 0 : i32
    %c0_i32_0 = arith.constant 0 : i32
    %c0_i32_1 = arith.constant 0 : i32
    return %c0_i32, %c0_i32_0 : i32, i32
  }
  func.func @transform_4(%arg0: i32) -> (i32, i32) {
    %c0_i32 = arith.constant 0 : i32
    %c0_i32_0 = arith.constant 0 : i32
    %c0_i32_1 = arith.constant 0 : i32
    return %c0_i32, %c0_i32_0 : i32, i32
  }
  func.func @transform_5(%arg0: i32) -> (i32, i32, i32) {
    %c0_i32 = arith.constant 0 : i32
    %c0_i32_0 = arith.constant 0 : i32
    %c0_i32_1 = arith.constant 0 : i32
    %c0_i32_2 = arith.constant 0 : i32
    return %c0_i32, %c0_i32_0, %c0_i32_1 : i32, i32, i32
  }
  func.func @transform_6(%arg0: i32) -> (i32, i32) {
    %c0_i32 = arith.constant 0 : i32
    %c0_i32_0 = arith.constant 0 : i32
    %c0_i32_1 = arith.constant 0 : i32
    return %c0_i32, %c0_i32_0 : i32, i32
  }
  func.func @transform_7(%arg0: i32) -> (i32, i32, i32) {
    %c0_i32 = arith.constant 0 : i32
    %c0_i32_0 = arith.constant 0 : i32
    %c0_i32_1 = arith.constant 0 : i32
    return %arg0, %c0_i32, %c0_i32_0 : i32, i32, i32
  }
  func.func @transform_8(%arg0: i32) -> (i32, i32, i32) {
    %c0_i32 = arith.constant 0 : i32
    %c0_i32_0 = arith.constant 0 : i32
    %c0_i32_1 = arith.constant 0 : i32
    return %arg0, %c0_i32, %c0_i32_0 : i32, i32, i32
  }
}

</mosaic_0001>

<bundles_post_ra>
// kernel: model_forward.4
= control target key start
LH: loop header
LB: loop body
LE: loop exit
PB: predicated region body
PF: predicated region fallthrough
CT: control target
= control target key end

     0   :  { %s3554_s12 = smov 0   ;;  %s4193_s0 = inlined_call_operand.vmem [shape: bf16[2,17,17,12], index: 0, kind: input, shape index: {}]   ;;  %s4194_s1 = inlined_call_operand.vmem [shape: bf16[4,12,32], index: 1, kind: input, shape index: {}]   ;;  %s4195_s2 = inlined_call_operand.vmem [shape: f32[1,32], index: 2, kind: input, shape index: {}]   ;;  %s4196_s3 = inlined_call_operand.vmem [shape: bf16[2,256,32], index: 3, kind: output, shape index: {}]  }
   0x1 LB: > { %s2977_s13 = sadd.s32 4294967295, %s3531_s12   ;;  %p2981_p0 = scmp.ge.s32.totalorder %s3531_s12, 1  ;;  %s3531_s12 = sphi %s3554_s12, %s13_s12  }
   0x2   : > { %p137_p1 = scmp.lt.s32.totalorder %s3531_s12, 3 }
   0x4   : > { %p138_p2 = pnand %p2981_p0, %p137_p1 }
   0x5   : > { %p161_p3 = scmp.lt.s32.totalorder (!%p138_p2), %s2977_s13, 1 }
   0x6   : > { %141 = sbr.rel (%p138_p2) target bundleno = 376 (0x178), region = 32 }
   0xb   : > { %v3489_v0 = vld [vmem:[%s4194_s1] sm:$0x3f]   ;;  %vm405_vm0 = vcmask 1045504   ;;  %v3491_v2 = vld [vmem:[%s4194_s1 + $0x10] sm:$0x3f]   ;;  %s4200_s13 = smov (!%p161_p3, %s2977_s13), 1 }
   0xc   : > { %3475 = vmatprep.subr.msk.bf16.mxu0 %vm405_vm0, %v3489_v0  ;;  %v407_v1 = vsel %vm405_vm0, %v3489_v0, 0  ;;  %v3493_v3 = vld [vmem:[%s4194_s1 + $0x8] sm:$0x3f]   ;;  %s3479_s20 = smul.u32 204, %s4200_s13  ;;  %v3496_v5 = vld [vmem:[%s4194_s1 + $0x18] sm:$0x3f]  }
   0xd   : > { %3340 = vmatpush3.bf16.msra.mxu0 %v407_v1  ;;  %3476 = vmatprep.subr.msk.bf16.mxu1 %vm405_vm0, %v3493_v3  ;;  %v1206_v4 = vsel %vm405_vm0, %v3493_v3, 0  ;;  %vm356_vm1 = vcmask 97280   ;;  %vm714_vm2 = vsmask.f32 3328  ;;  %vm715_vm3 = vsmask.f32 7440 }
   0xe   : > { %3477 = vmatprep.subr.msk.bf16.mxu0 %vm405_vm0, %v3491_v2  ;;  %s3585_s25 = scalar_lea.vmem %s4193_s0, %s3479_s20  ;;  %3374 = vmatpush3.bf16.msra.mxu1 %v1206_v4  ;;  %v1635_v8 = vsel %vm405_vm0, %v3491_v2, 0  ;;  %v3595_v10 = vsel %vm405_vm0, %v3496_v5, 0  ;;  %vm3608_vm4 = vmor %vm714_vm2, %vm715_vm3  ;;  %vm172_vm5 = vcmask 261120   ;;  %s3238_s28 = sshll.u32 %s4200_s13, 7  ;;  %vm2889_vm6 = vcmask 257024  }
   0xf   : > { %v3490_v6 = vld [vmem:[%s3585_s25] sm:$0xff]   ;;  %3478 = vmatprep.subr.msk.bf16.mxu1 %vm405_vm0, %v3496_v5  ;;  %v3492_v7 = vld [vmem:[%s3585_s25 + $0xc] sm:$0xff]   ;;  %v3494_v9 = vld [vmem:[%s3585_s25 + $0x18] sm:$0xff]   ;;  %s4053_s4 = scalar_lea.vmem %s4196_s3, %s3238_s28 }
  0x10   : > { %3341 = vmatprep.mubr.msk.bf16.mxu0 %vm356_vm1, %v3490_v6  ;;  %v634_v11 = vld [vmem:[%s3585_s25] sm:$0xf]  ;;  %v635_v12 = vld [vmem:[%s3585_s25 + $0x4] sm:$0xf]  ;;  %v636_v13 = vld [vmem:[%s3585_s25 + $0x8] sm:$0x1] }
  0x11   : > { %3342 = vmatmul.mubr.msk.bf16.vlgmr.msra.gmra.mxu0 %vm356_vm1, %v3492_v7  ;;  %v3495_v14 = vld [vmem:[%s3585_s25 + $0x24] sm:$0xff]   ;;  %v718_v15 = vshrl.u32 %v634_v11, 16  ;;  %v721_v16 = vshll.u32 %v634_v11, 16  ;;  %v727_v17 = vshll.u32 %v635_v12, 16  ;;  %v731_v18 = vshrl.u32 %v635_v12, 16  ;;  %v3497_v36 = vld [vmem:[%s3585_s25 + $0x30] sm:$0xff]  }
  0x12   : > { %3408 = vmatpush3.bf16.msra.mxu0 %v1635_v8  ;;  %3345 = vmatprep.mubr.msk.bf16.mxu0 %vm356_vm1, %v3494_v9  ;;  %v637_v19 = vld [vmem:[%s3585_s25 + $0xc] sm:$0xf]  ;;  %v737_v20 = vshll.u32 %v636_v13, 16  ;;  %v638_v21 = vld [vmem:[%s3585_s25 + $0x10] sm:$0xf]  ;;  %v3498_v54 = vld [vmem:[%s3585_s25 + $0x3c] sm:$0xff]  }
  0x13   : > { %v639_v22 = vld [vmem:[%s3585_s25 + $0x14] sm:$0x1]  ;;  %v742_v23 = vshrl.u32 %v637_v19, 16  ;;  %v720_v24 = vrot.slane %v718_v15, 4  ;;  %v723_v25 = vrot.slane %v721_v16, 5  ;;  %v729_v26 = vrot.slane %v727_v17, 5 }
  0x14   : > { %v733_v27 = vrot.slane %v731_v18, 4  ;;  %v739_v28 = vrot.slane %v737_v20, 5  ;;  %v745_v30 = vshll.u32 %v637_v19, 16  ;;  %v751_v31 = vshll.u32 %v638_v21, 16  ;;  %v640_v40 = vld [vmem:[%s3585_s25 + $0x18] sm:$0xf] }
  0x15   : > { %v744_v29 = vrot.slane %v742_v23, 4  ;;  %v724_v32 = vor.u32 %v723_v25, %v720_v24  ;;  %v755_v34 = vshrl.u32 %v638_v21, 16  ;;  %v761_v35 = vshll.u32 %v639_v22, 16  ;;  %v641_v45 = vld [vmem:[%s3585_s25 + $0x1c] sm:$0xf]  ;;  %v3499_v63 = vld [vmem:[%s3585_s25 + $0x48] sm:$0xff]  }
  0x16   : > { %v734_v33 = vor.u32 %v733_v27, %v729_v26  ;;  %v747_v38 = vrot.slane %v745_v30, 5  ;;  %v753_v39 = vrot.slane %v751_v31, 5  ;;  %v642_v47 = vld [vmem:[%s3585_s25 + $0x20] sm:$0x1]  ;;  %v766_v48 = vshrl.u32 %v640_v40, 16 }
  0x17   : > { %v725_v41 = vrot.slane %v724_v32, 4  ;;  %v757_v43 = vrot.slane %v755_v34, 4  ;;  %v763_v44 = vrot.slane %v761_v35, 5  ;;  %v769_v49 = vshll.u32 %v640_v40, 16  ;;  %v643_v56 = vld [vmem:[%s3585_s25 + $0x24] sm:$0xf] }
  0x18   : > { %v735_v42 = vrot.slane %v734_v33, 4  ;;  %v748_v46 = vor.u32 %v747_v38, %v744_v29  ;;  %v775_v50 = vshll.u32 %v641_v45, 16  ;;  %v779_v55 = vshrl.u32 %v641_v45, 16  ;;  %v644_v57 = vld [vmem:[%s3585_s25 + $0x28] sm:$0xf] }
  0x19   : > { %3346 = vmatmul.mubr.msk.bf16.gmra.mxu0 %vm356_vm1, %v3495_v14  ;;  %v730_v51 = vsel %vm3608_vm4, %v725_v41, %v729_v26  ;;  %v758_v53 = vor.u32 %v757_v43, %v753_v39  ;;  %v768_v60 = vrot.slane %v766_v48, 4  ;;  %v771_v61 = vrot.slane %v769_v49, 5  ;;  %v645_v62 = vld [vmem:[%s3585_s25 + $0x2c] sm:$0x1]  ;;  %v646_v13 = vld [vmem:[%s3585_s25 + $0x30] sm:$0xf] }
  0x1a   : > { %3349 = vmatprep.mubr.msk.bf16.mxu0 %vm356_vm1, %v3497_v36  ;;  %v740_v52 = vsel %vm3608_vm4, %v735_v42, %v739_v28  ;;  %v749_v59 = vrot.slane %v748_v46, 4  ;;  %v777_v1 = vrot.slane %v775_v50, 5  ;;  %v781_v2 = vrot.slane %v779_v55, 4  ;;  %v647_v18 = vld [vmem:[%s3585_s25 + $0x34] sm:$0xf] }
  0x1b   : > { %v3020_v58 = vcombine.low %v730_v51, %v740_v52  ;;  %v759_v0 = vrot.slane %v758_v53, 4  ;;  %v785_v3 = vshll.u32 %v642_v47, 16  ;;  %v772_v5 = vor.u32 %v771_v61, %v768_v60  ;;  %v648_v25 = vld [vmem:[%s3585_s25 + $0x38] sm:$0x1]  ;;  %v649_v28 = vld [vmem:[%s3585_s25 + $0x3c] sm:$0xf] }
  0x1c   : > { %v754_v4 = vsel %vm3608_vm4, %v749_v59, %v753_v39  ;;  %v790_v6 = vshrl.u32 %v643_v56, 16  ;;  %v793_v7 = vshll.u32 %v643_v56, 16  ;;  %v782_v9 = vor.u32 %v781_v2, %v777_v1  ;;  %v650_v33 = vld [vmem:[%s3585_s25 + $0x40] sm:$0xf]  ;;  %v3500_v36 = vld [vmem:[%s3585_s25 + $0x54] sm:$0xff]  }
  0x1d   : > { %3375 = vmatprep.mubr.msk.bf16.mxu1 %vm356_vm1, %v3020_v58  ;;  %v764_v8 = vsel %vm3608_vm4, %v759_v0, %v763_v44  ;;  %v787_v11 = vrot.slane %v785_v3, 5  ;;  %v799_v12 = vshll.u32 %v644_v57, 16  ;;  %v773_v15 = vrot.slane %v772_v5, 4  ;;  %v651_v40 = vld [vmem:[%s3585_s25 + $0x44] sm:$0x1] }
  0x1e   : > { %v3021_v14 = vcombine.low %v754_v4, %v764_v8  ;;  %v792_v16 = vrot.slane %v790_v6, 4  ;;  %v795_v17 = vrot.slane %v793_v7, 5  ;;  %v783_v19 = vrot.slane %v782_v9, 4  ;;  %v654_v3 = vld [vmem:[%s3585_s25 + $0x50] sm:$0x1] }
  0x1f   : > { %v801_v20 = vrot.slane %v799_v12, 5  ;;  %v803_v21 = vshrl.u32 %v644_v57, 16  ;;  %v809_v22 = vshll.u32 %v645_v62, 16  ;;  %v778_v23 = vsel %vm3608_vm4, %v773_v15, %v777_v1  ;;  %v652_v57 = vld [vmem:[%s3585_s25 + $0x48] sm:$0xf] }
  0x20   : > { %3376 = vmatmul.mubr.msk.bf16.vlgmr.msra.gmra.mxu1 %vm356_vm1, %v3021_v14  ;;  %v796_v24 = vor.u32 %v795_v17, %v792_v16  ;;  %v814_v26 = vshrl.u32 %v646_v13, 16  ;;  %v817_v27 = vshll.u32 %v646_v13, 16  ;;  %v788_v29 = vsel %vm3608_vm4, %v783_v19, %v787_v11  ;;  %v653_v62 = vld [vmem:[%s3585_s25 + $0x4c] sm:$0xf]  ;;  %v655_v4 = vld [vmem:[%s3585_s25 + $0x54] sm:$0xf] }
  0x21   : > { %3350 = vmatmul.mubr.msk.bf16.gmra.mxu0 %vm356_vm1, %v3498_v54  ;;  %3442 = vmatpush3.bf16.msra.mxu1 %v3595_v10  ;;  %v805_v30 = vrot.slane %v803_v21, 4  ;;  %v811_v31 = vrot.slane %v809_v22, 5  ;;  %v823_v32 = vshll.u32 %v647_v18, 16  ;;  %v3022_v34 = vcombine.low %v778_v23, %v788_v29  ;;  %v3501_v10 = vld [vmem:[%s3585_s25 + $0x60] sm:$0xff]   ;;  %v656_v9 = vld [vmem:[%s3585_s25 + $0x58] sm:$0xf] }
  0x22   : > { %3353 = vmatprep.mubr.msk.bf16.mxu0 %vm356_vm1, %v3499_v63  ;;  %v797_v35 = vrot.slane %v796_v24, 4  ;;  %v816_v38 = vrot.slane %v814_v26, 4  ;;  %v819_v39 = vrot.slane %v817_v27, 5  ;;  %v827_v43 = vshrl.u32 %v647_v18, 16  ;;  %v3502_v16 = vld [vmem:[%s3585_s25 + $0x6c] sm:$0xff]   ;;  %v3503_v24 = vld [vmem:[%s3585_s25 + $0x78] sm:$0xff]  }
  0x23   : > { %v806_v41 = vor.u32 %v805_v30, %v801_v20  ;;  %v825_v42 = vrot.slane %v823_v32, 5  ;;  %v833_v44 = vshll.u32 %v648_v25, 16  ;;  %3379 = vmatprep.mubr.msk.bf16.mxu1 %vm356_vm1, %v3022_v34  ;;  %v838_v47 = vshrl.u32 %v649_v28, 16  ;;  %v658_v34 = vld [vmem:[%s3585_s25 + $0x60] sm:$0xf] }
  0x24   : > { %v802_v45 = vsel %vm3608_vm4, %v797_v35, %v801_v20  ;;  %v820_v46 = vor.u32 %v819_v39, %v816_v38  ;;  %v841_v48 = vshll.u32 %v649_v28, 16  ;;  %v829_v50 = vrot.slane %v827_v43, 4  ;;  %v657_v28 = vld [vmem:[%s3585_s25 + $0x5c] sm:$0x1] }
  0x25   : > { %v807_v49 = vrot.slane %v806_v41, 4  ;;  %v835_v51 = vrot.slane %v833_v44, 5  ;;  %v847_v52 = vshll.u32 %v650_v33, 16  ;;  %v840_v54 = vrot.slane %v838_v47, 4 }
  0x26   : > { %v821_v53 = vrot.slane %v820_v46, 4  ;;  %v843_v55 = vrot.slane %v841_v48, 5  ;;  %v851_v56 = vshrl.u32 %v650_v33, 16  ;;  %v830_v59 = vor.u32 %v829_v50, %v825_v42  ;;  %v662_v50 = vld [vmem:[%s3585_s25 + $0x70] sm:$0xf] }
  0x27   : > { %v812_v58 = vsel %vm3608_vm4, %v807_v49, %v811_v31  ;;  %v849_v60 = vrot.slane %v847_v52, 5  ;;  %v857_v61 = vshll.u32 %v651_v40, 16  ;;  %v862_v7 = vshrl.u32 %v652_v57, 16  ;;  %v659_v40 = vld [vmem:[%s3585_s25 + $0x64] sm:$0xf] }
  0x28   : > { %v3023_v63 = vcombine.low %v802_v45, %v812_v58  ;;  %v826_v0 = vsel %vm3608_vm4, %v821_v53, %v825_v42  ;;  %v844_v1 = vor.u32 %v843_v55, %v840_v54  ;;  %v853_v2 = vrot.slane %v851_v56, 4  ;;  %v661_v45 = vld [vmem:[%s3585_s25 + $0x6c] sm:$0xf]  ;;  %v3504_v56 = vld [vmem:[%s3585_s25 + $0x84] sm:$0xff]  }
  0x29   : > { %3354 = vmatmul.mubr.msk.bf16.gmra.mxu0 %vm356_vm1, %v3500_v36  ;;  %v831_v5 = vrot.slane %v830_v59, 4  ;;  %v859_v6 = vrot.slane %v857_v61, 5  ;;  %v865_v8 = vshll.u32 %v652_v57, 16  ;;  %v871_v13 = vshll.u32 %v653_v62, 16 }
  0x2a   : > { %3357 = vmatprep.mubr.msk.bf16.mxu0 %vm356_vm1, %v3501_v10  ;;  %3380 = vmatmul.mubr.msk.bf16.gmra.mxu1 %vm356_vm1, %v3023_v63  ;;  %v845_v11 = vrot.slane %v844_v1, 4  ;;  %v854_v12 = vor.u32 %v853_v2, %v849_v60  ;;  %v875_v14 = vshrl.u32 %v653_v62, 16  ;;  %v864_v17 = vrot.slane %v862_v7, 4  ;;  %v660_v10 = vld [vmem:[%s3585_s25 + $0x68] sm:$0x1] }
  0x2b   : > { %v836_v15 = vsel %vm3608_vm4, %v831_v5, %v835_v51  ;;  %v867_v18 = vrot.slane %v865_v8, 5  ;;  %v881_v19 = vshll.u32 %v654_v3, 16  ;;  %v873_v23 = vrot.slane %v871_v13, 5  ;;  %v663_v7 = vld [vmem:[%s3585_s25 + $0x74] sm:$0x1] }
  0x2c   : > { %v3024_v20 = vcombine.low %v826_v0, %v836_v15  ;;  %v850_v21 = vsel %vm3608_vm4, %v845_v11, %v849_v60  ;;  %v855_v22 = vrot.slane %v854_v12, 4  ;;  %v877_v26 = vrot.slane %v875_v14, 4  ;;  %v3505_v0 = vld [vmem:[%s3585_s25 + $0x90] sm:$0xff]   ;;  %v664_v11 = vld [vmem:[%s3585_s25 + $0x78] sm:$0xf] }
  0x2d   : > { %v868_v25 = vor.u32 %v867_v18, %v864_v17  ;;  %v883_v27 = vrot.slane %v881_v19, 5  ;;  %v886_v29 = vshrl.u32 %v655_v4, 16  ;;  %v889_v31 = vshll.u32 %v655_v4, 16 }
  0x2e   : > { %3383 = vmatprep.mubr.msk.bf16.mxu1 %vm356_vm1, %v3024_v20  ;;  %v860_v30 = vsel %vm3608_vm4, %v855_v22, %v859_v6  ;;  %v895_v32 = vshll.u32 %v656_v9, 16  ;;  %v899_v33 = vshrl.u32 %v656_v9, 16  ;;  %v878_v38 = vor.u32 %v877_v26, %v873_v23  ;;  %v667_v22 = vld [vmem:[%s3585_s25 + $0x84] sm:$0xf] }
  0x2f   : > { %v3025_v35 = vcombine.low %v850_v21, %v860_v30  ;;  %v869_v36 = vrot.slane %v868_v25, 4  ;;  %v888_v39 = vrot.slane %v886_v29, 4  ;;  %v891_v41 = vrot.slane %v889_v31, 5  ;;  %v666_v21 = vld [vmem:[%s3585_s25 + $0x80] sm:$0x1] }
  0x30   : > { %v897_v42 = vrot.slane %v895_v32, 5  ;;  %v901_v43 = vrot.slane %v899_v33, 4  ;;  %v905_v44 = vshll.u32 %v657_v28, 16  ;;  %v879_v47 = vrot.slane %v878_v38, 4  ;;  %v3506_v33 = vld [vmem:[%s3585_s25 + $0x9c] sm:$0xff]  }
  0x31   : > { %3358 = vmatmul.mubr.msk.bf16.gmra.mxu0 %vm356_vm1, %v3502_v16  ;;  %v874_v46 = vsel %vm3608_vm4, %v869_v36, %v873_v23  ;;  %v910_v48 = vshrl.u32 %v658_v34, 16  ;;  %v913_v49 = vshll.u32 %v658_v34, 16  ;;  %v892_v51 = vor.u32 %v891_v41, %v888_v39  ;;  %v665_v16 = vld [vmem:[%s3585_s25 + $0x7c] sm:$0xf]  ;;  %v668_v41 = vld [vmem:[%s3585_s25 + $0x88] sm:$0xf] }
  0x32   : > { %3361 = vmatprep.mubr.msk.bf16.mxu0 %vm356_vm1, %v3503_v24  ;;  %3384 = vmatmul.mubr.msk.bf16.gmra.mxu1 %vm356_vm1, %v3025_v35  ;;  %v902_v52 = vor.u32 %v901_v43, %v897_v42  ;;  %v907_v53 = vrot.slane %v905_v44, 5  ;;  %v919_v54 = vshll.u32 %v659_v40, 16  ;;  %v884_v55 = vsel %vm3608_vm4, %v879_v47, %v883_v27 }
  0x33   : > { %v912_v57 = vrot.slane %v910_v48, 4  ;;  %v915_v58 = vrot.slane %v913_v49, 5  ;;  %v923_v59 = vshrl.u32 %v659_v40, 16  ;;  %v3026_v60 = vcombine.low %v874_v46, %v884_v55  ;;  %v669_v49 = vld [vmem:[%s3585_s25 + $0x8c] sm:$0x1] }
  0x34   : > { %v893_v61 = vrot.slane %v892_v51, 4  ;;  %v903_v62 = vrot.slane %v902_v52, 4  ;;  %v921_v63 = vrot.slane %v919_v54, 5  ;;  %v929_v3 = vshll.u32 %v660_v10, 16  ;;  %v670_v51 = vld [vmem:[%s3585_s25 + $0x90] sm:$0xf] }
  0x35   : > { %v916_v1 = vor.u32 %v915_v58, %v912_v57  ;;  %v925_v2 = vrot.slane %v923_v59, 4  ;;  %v934_v4 = vshrl.u32 %v661_v45, 16  ;;  %3387 = vmatprep.mubr.msk.bf16.mxu1 %vm356_vm1, %v3026_v60  ;;  %v937_v8 = vshll.u32 %v661_v45, 16 }
  0x36   : > { %v898_v5 = vsel %vm3608_vm4, %v893_v61, %v897_v42  ;;  %v908_v6 = vsel %vm3608_vm4, %v903_v62, %v907_v53  ;;  %v943_v9 = vshll.u32 %v662_v50, 16  ;;  %v931_v15 = vrot.slane %v929_v3, 5  ;;  %v3507_v42 = vld [vmem:[%s3585_s25 + $0xa8] sm:$0xff]  }
  0x37   : > { %v3027_v12 = vcombine.low %v898_v5, %v908_v6  ;;  %v917_v13 = vrot.slane %v916_v1, 4  ;;  %v926_v14 = vor.u32 %v925_v2, %v921_v63  ;;  %v936_v17 = vrot.slane %v934_v4, 4  ;;  %v3508_v1 = vld [vmem:[%s3585_s25 + $0xb4] sm:$0xff]  }
  0x38   : > { %v939_v18 = vrot.slane %v937_v8, 5  ;;  %v945_v19 = vrot.slane %v943_v9, 5  ;;  %v947_v20 = vshrl.u32 %v662_v50, 16  ;;  %v953_v25 = vshll.u32 %v663_v7, 16  ;;  %v672_v5 = vld [vmem:[%s3585_s25 + $0x98] sm:$0x1] }
  0x39   : > { %3362 = vmatmul.mubr.msk.bf16.gmra.mxu0 %vm356_vm1, %v3504_v56  ;;  %v922_v23 = vsel %vm3608_vm4, %v917_v13, %v921_v63  ;;  %v927_v24 = vrot.slane %v926_v14, 4  ;;  %v958_v26 = vshrl.u32 %v664_v11, 16  ;;  %v961_v29 = vshll.u32 %v664_v11, 16  ;;  %v671_v56 = vld [vmem:[%s3585_s25 + $0x94] sm:$0xf]  ;;  %v3509_v14 = vld [vmem:[%s3585_s25 + $0xc] sm:$0xff]  }
  0x3a   : > { %3365 = vmatprep.mubr.msk.bf16.mxu0 %vm356_vm1, %v3505_v0  ;;  %3388 = vmatmul.mubr.msk.bf16.gmra.mxu1 %vm356_vm1, %v3027_v12  ;;  %v940_v27 = vor.u32 %v939_v18, %v936_v17  ;;  %v949_v28 = vrot.slane %v947_v20, 4  ;;  %v967_v30 = vshll.u32 %v665_v16, 16  ;;  %v955_v32 = vrot.slane %v953_v25, 5  ;;  %v673_v7 = vld [vmem:[%s3585_s25 + $0x9c] sm:$0xf] }
  0x3b   : > { %v932_v31 = vsel %vm3608_vm4, %v927_v24, %v931_v15  ;;  %v960_v34 = vrot.slane %v958_v26, 4  ;;  %v971_v35 = vshrl.u32 %v665_v16, 16  ;;  %v963_v40 = vrot.slane %v961_v29, 5  ;;  %v674_v13 = vld [vmem:[%s3585_s25 + $0xa0] sm:$0xf] }
  0x3c   : > { %v3028_v36 = vcombine.low %v922_v23, %v932_v31  ;;  %v941_v38 = vrot.slane %v940_v27, 4  ;;  %v950_v39 = vor.u32 %v949_v28, %v945_v19  ;;  %v969_v43 = vrot.slane %v967_v30, 5  ;;  %v675_v23 = vld [vmem:[%s3585_s25 + $0xa4] sm:$0x1]  ;;  %v676_v28 = vld [vmem:[%s3585_s25 + $0xa8] sm:$0xf] }
  0x3d   : > { %v973_v44 = vrot.slane %v971_v35, 4  ;;  %v977_v10 = vshll.u32 %v666_v21, 16  ;;  %v982_v45 = vshrl.u32 %v667_v22, 16  ;;  %v964_v48 = vor.u32 %v963_v40, %v960_v34 }
  0x3e   : > { %3391 = vmatprep.mubr.msk.bf16.mxu1 %vm356_vm1, %v3028_v36  ;;  %v946_v46 = vsel %vm3608_vm4, %v941_v38, %v945_v19  ;;  %v951_v47 = vrot.slane %v950_v39, 4  ;;  %v985_v50 = vshll.u32 %v667_v22, 16  ;;  %v991_v55 = vshll.u32 %v668_v41, 16 }
  0x3f   : > { %v974_v52 = vor.u32 %v973_v44, %v969_v43  ;;  %v979_v53 = vrot.slane %v977_v10, 5  ;;  %v984_v54 = vrot.slane %v982_v45, 4  ;;  %v965_v58 = vrot.slane %v964_v48, 4  ;;  %v678_v48 = vld [vmem:[%s3585_s25 + $0xb0] sm:$0x1] }
  0x40   : > { %v956_v57 = vsel %vm3608_vm4, %v951_v47, %v955_v32  ;;  %v987_v59 = vrot.slane %v985_v50, 5  ;;  %v995_v60 = vshrl.u32 %v668_v41, 16  ;;  %v993_v63 = vrot.slane %v991_v55, 5 }
  0x41   : > { %3366 = vmatmul.mubr.msk.bf16.gmra.mxu0 %vm356_vm1, %v3506_v33  ;;  %v3029_v61 = vcombine.low %v946_v46, %v956_v57  ;;  %v975_v62 = vrot.slane %v974_v52, 4  ;;  %v1001_v0 = vshll.u32 %v669_v49, 16  ;;  %v970_v2 = vsel %vm3608_vm4, %v965_v58, %v969_v43  ;;  %v677_v33 = vld [vmem:[%s3585_s25 + $0xac] sm:$0xf]  ;;  %v3511_v57 = vld [vmem:[%s3585_s25 + $0x24] sm:$0xff]  }
  0x42   : > { %3369 = vmatprep.mubr.msk.bf16.mxu0 %vm356_vm1, %v3507_v42  ;;  %v988_v3 = vor.u32 %v987_v59, %v984_v54  ;;  %v997_v4 = vrot.slane %v995_v60, 4  ;;  %v1006_v6 = vshrl.u32 %v670_v51, 16  ;;  %v1009_v11 = vshll.u32 %v670_v51, 16  ;;  %v3510_v51 = vld [vmem:[%s3585_s25 + $0x18] sm:$0xff]  }
  0x43   : > { %3392 = vmatmul.mubr.msk.bf16.gmra.mxu1 %vm356_vm1, %v3029_v61  ;;  %v980_v8 = vsel %vm3608_vm4, %v975_v62, %v979_v53  ;;  %v1003_v9 = vrot.slane %v1001_v0, 5  ;;  %v1015_v12 = vshll.u32 %v671_v56, 16  ;;  %v1019_v21 = vshrl.u32 %v671_v56, 16  ;;  %v679_v56 = vld [vmem:[%s3585_s25 + $0xb4] sm:$0xf] }
  0x44   : > { %v3030_v15 = vcombine.low %v970_v2, %v980_v8  ;;  %v989_v16 = vrot.slane %v988_v3, 4  ;;  %v998_v17 = vor.u32 %v997_v4, %v993_v63  ;;  %v1008_v18 = vrot.slane %v1006_v6, 4  ;;  %v680_v62 = vld [vmem:[%s3585_s25 + $0xb8] sm:$0xf]  ;;  %v681_v3 = vld [vmem:[%s3585_s25 + $0xbc] sm:$0x1] }
  0x45   : > { %v1011_v19 = vrot.slane %v1009_v11, 5  ;;  %v1017_v20 = vrot.slane %v1015_v12, 5  ;;  %v1025_v22 = vshll.u32 %v672_v5, 16  ;;  %v1030_v26 = vshrl.u32 %v673_v7, 16  ;;  %v3120_v4 = vld [vmem:[%s3585_s25 + $0xc] sm:$0xf] }
  0x46   : > { %3395 = vmatprep.mubr.msk.bf16.mxu1 %vm356_vm1, %v3030_v15  ;;  %v994_v24 = vsel %vm3608_vm4, %v989_v16, %v993_v63  ;;  %v999_v25 = vrot.slane %v998_v17, 4  ;;  %v1033_v27 = vshll.u32 %v673_v7, 16  ;;  %v1021_v30 = vrot.slane %v1019_v21, 4 }
  0x47   : > { %v1012_v29 = vor.u32 %v1011_v19, %v1008_v18  ;;  %v1027_v31 = vrot.slane %v1025_v22, 5  ;;  %v1039_v32 = vshll.u32 %v674_v13, 16  ;;  %v1032_v35 = vrot.slane %v1030_v26, 4 }
  0x48   : > { %v1004_v34 = vsel %vm3608_vm4, %v999_v25, %v1003_v9  ;;  %v1035_v36 = vrot.slane %v1033_v27, 5  ;;  %v1043_v38 = vshrl.u32 %v674_v13, 16  ;;  %v1022_v41 = vor.u32 %v1021_v30, %v1017_v20  ;;  %v3121_v9 = vld [vmem:[%s3585_s25 + $0x10] sm:$0xf] }
  0x49   : > { %3370 = vmatmul.mubr.msk.bf16.gmra.mxu0 %vm356_vm1, %v3508_v1  ;;  %v3031_v39 = vcombine.low %v994_v24, %v1004_v34  ;;  %v1013_v40 = vrot.slane %v1012_v29, 4  ;;  %v1041_v42 = vrot.slane %v1039_v32, 5  ;;  %v1049_v10 = vshll.u32 %v675_v23, 16  ;;  %v3512_v25 = vld [vmem:[%s3585_s25 + $0x30] sm:$0xff]   ;;  %v3123_v34 = vld [vmem:[%s3585_s25 + $0x18] sm:$0xf] }
  0x4a   : > { %3409 = vmatprep.mubr.msk.bf16.mxu0 %vm356_vm1, %v3509_v14  ;;  %v1036_v43 = vor.u32 %v1035_v36, %v1032_v35  ;;  %v1045_v44 = vrot.slane %v1043_v38, 4  ;;  %v1054_v45 = vshrl.u32 %v676_v28, 16  ;;  %v1023_v47 = vrot.slane %v1022_v41, 4  ;;  %v3122_v32 = vld [vmem:[%s3585_s25 + $0x14] sm:$0x1] }
  0x4b   : > { %3396 = vmatmul.mubr.msk.bf16.gmra.mxu1 %vm356_vm1, %v3031_v39  ;;  %v1018_v46 = vsel %vm3608_vm4, %v1013_v40, %v1017_v20  ;;  %v1057_v49 = vshll.u32 %v676_v28, 16  ;;  %v1063_v50 = vshll.u32 %v677_v33, 16  ;;  %v1051_v54 = vrot.slane %v1049_v10, 5  ;;  %v3513_v28 = vld [vmem:[%s3585_s25 + $0x3c] sm:$0xff]  }
  0x4c   : > { %v1037_v52 = vrot.slane %v1036_v43, 4  ;;  %v1046_v53 = vor.u32 %v1045_v44, %v1041_v42  ;;  %v1056_v55 = vrot.slane %v1054_v45, 4  ;;  %v1028_v58 = vsel %vm3608_vm4, %v1023_v47, %v1027_v31  ;;  %v3124_v40 = vld [vmem:[%s3585_s25 + $0x1c] sm:$0xf]  ;;  %v3125_v10 = vld [vmem:[%s3585_s25 + $0x20] sm:$0x1] }
  0x4d   : > { %v1059_v59 = vrot.slane %v1057_v49, 5  ;;  %v1065_v60 = vrot.slane %v1063_v50, 5  ;;  %v1067_v61 = vshrl.u32 %v677_v33, 16  ;;  %v3032_v63 = vcombine.low %v1018_v46, %v1028_v58  ;;  %v3126_v45 = vld [vmem:[%s3585_s25 + $0x24] sm:$0xf] }
  0x4e   : > { %v1042_v0 = vsel %vm3608_vm4, %v1037_v52, %v1041_v42  ;;  %v1047_v1 = vrot.slane %v1046_v53, 4  ;;  %v1073_v2 = vshll.u32 %v678_v48, 16  ;;  %v1078_v7 = vshrl.u32 %v679_v56, 16  ;;  %v3127_v50 = vld [vmem:[%s3585_s25 + $0x28] sm:$0xf] }
  0x4f   : > { %v1060_v5 = vor.u32 %v1059_v59, %v1056_v55  ;;  %v1069_v6 = vrot.slane %v1067_v61, 4  ;;  %v1081_v8 = vshll.u32 %v679_v56, 16  ;;  %3399 = vmatprep.mubr.msk.bf16.mxu1 %vm356_vm1, %v3032_v63  ;;  %v1087_v13 = vshll.u32 %v680_v62, 16 }
  0x50   : > { %v1052_v11 = vsel %vm3608_vm4, %v1047_v1, %v1051_v54  ;;  %v1075_v12 = vrot.slane %v1073_v2, 5  ;;  %v1091_v14 = vshrl.u32 %v680_v62, 16  ;;  %v1080_v18 = vrot.slane %v1078_v7, 4  ;;  %v3514_v2 = vld [vmem:[%s3585_s25 + $0x48] sm:$0xff]  }
  0x51   : > { %3410 = vmatmul.mubr.msk.bf16.vlgmr.msra.gmra.mxu0 %vm356_vm1, %v3510_v51  ;;  %v3033_v15 = vcombine.low %v1042_v0, %v1052_v11  ;;  %v1061_v16 = vrot.slane %v1060_v5, 4  ;;  %v1070_v17 = vor.u32 %v1069_v6, %v1065_v60  ;;  %v1083_v19 = vrot.slane %v1081_v8, 5  ;;  %v3515_v11 = vld [vmem:[%s3585_s25 + $0x54] sm:$0xff]  }
  0x52   : > { %3413 = vmatprep.mubr.msk.bf16.mxu0 %vm356_vm1, %v3511_v57  ;;  %v1089_v20 = vrot.slane %v1087_v13, 5  ;;  %v1093_v21 = vrot.slane %v1091_v14, 4  ;;  %v1097_v22 = vshll.u32 %v681_v3, 16  ;;  %v1943_v26 = vshrl.u32 %v3120_v4, 16  ;;  %v3128_v3 = vld [vmem:[%s3585_s25 + $0x2c] sm:$0x1] }
  0x53   : > { %3400 = vmatmul.mubr.msk.bf16.gmra.mxu1 %vm356_vm1, %v3033_v15  ;;  %v1066_v23 = vsel %vm3608_vm4, %v1061_v16, %v1065_v60  ;;  %v1071_v24 = vrot.slane %v1070_v17, 4  ;;  %v1946_v27 = vshll.u32 %v3120_v4, 16  ;;  %v1084_v29 = vor.u32 %v1083_v19, %v1080_v18 }
  0x54   : > { %v1094_v30 = vor.u32 %v1093_v21, %v1089_v20  ;;  %v1099_v31 = vrot.slane %v1097_v22, 5  ;;  %v1952_v33 = vshll.u32 %v3121_v9, 16  ;;  %v1945_v36 = vrot.slane %v1943_v26, 4  ;;  %v3131_v21 = vld [vmem:[%s3585_s25 + $0x38] sm:$0x1] }
  0x55   : > { %v1076_v35 = vsel %vm3608_vm4, %v1071_v24, %v1075_v12  ;;  %v1948_v38 = vrot.slane %v1946_v27, 5  ;;  %v1956_v39 = vshrl.u32 %v3121_v9, 16  ;;  %v1085_v42 = vrot.slane %v1084_v29, 4  ;;  %v3129_v9 = vld [vmem:[%s3585_s25 + $0x30] sm:$0xf] }
  0x56   : > { %v3034_v41 = vcombine.low %v1066_v23, %v1076_v35  ;;  %v1095_v43 = vrot.slane %v1094_v30, 4  ;;  %v1954_v44 = vrot.slane %v1952_v33, 5  ;;  %v1962_v48 = vshll.u32 %v3122_v32, 16  ;;  %v3132_v26 = vld [vmem:[%s3585_s25 + $0x3c] sm:$0xf] }
  0x57   : > { %v1949_v46 = vor.u32 %v1948_v38, %v1945_v36  ;;  %v1958_v47 = vrot.slane %v1956_v39, 4  ;;  %v1967_v49 = vshrl.u32 %v3123_v34, 16  ;;  %v1090_v51 = vsel %vm3608_vm4, %v1085_v42, %v1089_v20  ;;  %v3130_v20 = vld [vmem:[%s3585_s25 + $0x34] sm:$0xf] }
  0x58   : > { %3403 = vmatprep.mubr.msk.bf16.mxu1 %vm356_vm1, %v3034_v41  ;;  %v1100_v52 = vsel %vm3608_vm4, %v1095_v43, %v1099_v31  ;;  %v1970_v53 = vshll.u32 %v3123_v34, 16  ;;  %v1976_v54 = vshll.u32 %v3124_v40, 16  ;;  %v1964_v58 = vrot.slane %v1962_v48, 5  ;;  %v3134_v48 = vld [vmem:[%s3585_s25 + $0x44] sm:$0x1] }
  0x59   : > { %3414 = vmatmul.mubr.msk.bf16.gmra.mxu0 %vm356_vm1, %v3512_v25  ;;  %v3035_v55 = vcombine.low %v1090_v51, %v1100_v52  ;;  %v1950_v56 = vrot.slane %v1949_v46, 4  ;;  %v1959_v57 = vor.u32 %v1958_v47, %v1954_v44  ;;  %v1969_v59 = vrot.slane %v1967_v49, 4 }
  0x5a   : > { %3417 = vmatprep.mubr.msk.bf16.mxu0 %vm356_vm1, %v3513_v28  ;;  %v1972_v60 = vrot.slane %v1970_v53, 5  ;;  %v1978_v61 = vrot.slane %v1976_v54, 5  ;;  %v1980_v62 = vshrl.u32 %v3124_v40, 16  ;;  %v1986_v1 = vshll.u32 %v3125_v10, 16  ;;  %v3133_v40 = vld [vmem:[%s3585_s25 + $0x40] sm:$0xf] }
  0x5b   : > { %3404 = vmatmul.mubr.msk.bf16.gmra.mxu1 %vm356_vm1, %v3035_v55  ;;  %v1955_v63 = vsel %vm3608_vm4, %v1950_v56, %v1954_v44  ;;  %v1960_v0 = vrot.slane %v1959_v57, 4  ;;  %v1991_v4 = vshrl.u32 %v3126_v45, 16  ;;  %v1994_v7 = vshll.u32 %v3126_v45, 16  ;;  %v3516_v10 = vld [vmem:[%s3585_s25 + $0x60] sm:$0xff]   ;;  %v3135_v55 = vld [vmem:[%s3585_s25 + $0x48] sm:$0xf] }
  0x5c   : > { %v1973_v5 = vor.u32 %v1972_v60, %v1969_v59  ;;  %v1982_v6 = vrot.slane %v1980_v62, 4  ;;  %v2000_v8 = vshll.u32 %v3127_v50, 16  ;;  %v1988_v13 = vrot.slane %v1986_v1, 5  ;;  %v3136_v60 = vld [vmem:[%s3585_s25 + $0x4c] sm:$0xf] }
  0x5d   : > { %v1965_v12 = vsel %vm3608_vm4, %v1960_v0, %v1964_v58  ;;  %v1993_v14 = vrot.slane %v1991_v4, 4  ;;  %v2004_v15 = vshrl.u32 %v3127_v50, 16  ;;  %v1996_v19 = vrot.slane %v1994_v7, 5  ;;  %v3517_v50 = vld [vmem:[%s3585_s25 + $0x6c] sm:$0xff]  }
  0x5e   : > { %v3170_v16 = vcombine.low %v1955_v63, %v1965_v12  ;;  %v1974_v17 = vrot.slane %v1973_v5, 4  ;;  %v1983_v18 = vor.u32 %v1982_v6, %v1978_v61  ;;  %v2002_v22 = vrot.slane %v2000_v8, 5  ;;  %v3137_v1 = vld [vmem:[%s3585_s25 + $0x50] sm:$0x1] }
  0x5f   : > { %v2006_v23 = vrot.slane %v2004_v15, 4  ;;  %v2010_v24 = vshll.u32 %v3128_v3, 16  ;;  %v2015_v25 = vshrl.u32 %v3129_v9, 16  ;;  %v1997_v29 = vor.u32 %v1996_v19, %v1993_v14 }
  0x60   : > { %3443 = vmatprep.mubr.msk.bf16.mxu1 %vm356_vm1, %v3170_v16  ;;  %v1979_v27 = vsel %vm3608_vm4, %v1974_v17, %v1978_v61  ;;  %v1984_v28 = vrot.slane %v1983_v18, 4  ;;  %v2018_v30 = vshll.u32 %v3129_v9, 16  ;;  %v2024_v34 = vshll.u32 %v3130_v20, 16  ;;  %v3139_v16 = vld [vmem:[%s3585_s25 + $0x58] sm:$0xf] }
  0x61   : > { %3418 = vmatmul.mubr.msk.bf16.gmra.mxu0 %vm356_vm1, %v3514_v2  ;;  %v2007_v31 = vor.u32 %v2006_v23, %v2002_v22  ;;  %v2012_v32 = vrot.slane %v2010_v24, 5  ;;  %v2017_v33 = vrot.slane %v2015_v25, 4  ;;  %v1998_v36 = vrot.slane %v1997_v29, 4  ;;  %v3138_v2 = vld [vmem:[%s3585_s25 + $0x54] sm:$0xf] }
  0x62   : > { %3421 = vmatprep.mubr.msk.bf16.mxu0 %vm356_vm1, %v3515_v11  ;;  %v1989_v35 = vsel %vm3608_vm4, %v1984_v28, %v1988_v13  ;;  %v2020_v38 = vrot.slane %v2018_v30, 5  ;;  %v2028_v39 = vshrl.u32 %v3130_v20, 16  ;;  %v2026_v43 = vrot.slane %v2024_v34, 5  ;;  %v3140_v25 = vld [vmem:[%s3585_s25 + $0x5c] sm:$0x1] }
  0x63   : > { %v3171_v41 = vcombine.low %v1979_v27, %v1989_v35  ;;  %v2008_v42 = vrot.slane %v2007_v31, 4  ;;  %v2034_v44 = vshll.u32 %v3131_v21, 16  ;;  %v2003_v45 = vsel %vm3608_vm4, %v1998_v36, %v2002_v22  ;;  %v3518_v21 = vld [vmem:[%s3585_s25 + $0x78] sm:$0xff]   ;;  %v3519_v27 = vld [vmem:[%s3585_s25 + $0x84] sm:$0xff]  }
  0x64   : > { %v2021_v46 = vor.u32 %v2020_v38, %v2017_v33  ;;  %v2030_v47 = vrot.slane %v2028_v39, 4  ;;  %v2039_v49 = vshrl.u32 %v3132_v26, 16  ;;  %v2042_v53 = vshll.u32 %v3132_v26, 16  ;;  %v3142_v38 = vld [vmem:[%s3585_s25 + $0x64] sm:$0xf] }
  0x65   : > { %3444 = vmatmul.mubr.msk.bf16.vlgmr.msra.gmra.mxu1 %vm356_vm1, %v3171_v41  ;;  %v2013_v51 = vsel %vm3608_vm4, %v2008_v42, %v2012_v32  ;;  %v2036_v52 = vrot.slane %v2034_v44, 5  ;;  %v2048_v54 = vshll.u32 %v3133_v40, 16  ;;  %v2052_v63 = vshrl.u32 %v3133_v40, 16  ;;  %v3141_v32 = vld [vmem:[%s3585_s25 + $0x60] sm:$0xf] }
  0x66   : > { %v3172_v56 = vcombine.low %v2003_v45, %v2013_v51  ;;  %v2022_v57 = vrot.slane %v2021_v46, 4  ;;  %v2031_v58 = vor.u32 %v2030_v47, %v2026_v43  ;;  %v2041_v59 = vrot.slane %v2039_v49, 4 }
  0x67   : > { %v2044_v61 = vrot.slane %v2042_v53, 5  ;;  %v2050_v62 = vrot.slane %v2048_v54, 5  ;;  %v2058_v0 = vshll.u32 %v3134_v48, 16  ;;  %v2063_v5 = vshrl.u32 %v3135_v55, 16 }
  0x68   : > { %3447 = vmatprep.mubr.msk.bf16.mxu1 %vm356_vm1, %v3172_v56  ;;  %v2027_v3 = vsel %vm3608_vm4, %v2022_v57, %v2026_v43  ;;  %v2032_v4 = vrot.slane %v2031_v58, 4  ;;  %v2066_v6 = vshll.u32 %v3135_v55, 16  ;;  %v2054_v8 = vrot.slane %v2052_v63, 4  ;;  %v3143_v43 = vld [vmem:[%s3585_s25 + $0x68] sm:$0x1] }
  0x69   : > { %3422 = vmatmul.mubr.msk.bf16.gmra.mxu0 %vm356_vm1, %v3516_v10  ;;  %v2045_v7 = vor.u32 %v2044_v61, %v2041_v59  ;;  %v2060_v9 = vrot.slane %v2058_v0, 5  ;;  %v2072_v11 = vshll.u32 %v3136_v60, 16  ;;  %v2065_v13 = vrot.slane %v2063_v5, 4  ;;  %v3144_v55 = vld [vmem:[%s3585_s25 + $0x6c] sm:$0xf] }
  0x6a   : > { %3425 = vmatprep.mubr.msk.bf16.mxu0 %vm356_vm1, %v3517_v50  ;;  %v2037_v12 = vsel %vm3608_vm4, %v2032_v4, %v2036_v52  ;;  %v2068_v14 = vrot.slane %v2066_v6, 5  ;;  %v2076_v15 = vshrl.u32 %v3136_v60, 16  ;;  %v2055_v19 = vor.u32 %v2054_v8, %v2050_v62  ;;  %v3520_v60 = vld [vmem:[%s3585_s25 + $0x90] sm:$0xff]   ;;  %v3147_v8 = vld [vmem:[%s3585_s25 + $0x78] sm:$0xf] }
  0x6b   : > { %v3173_v17 = vcombine.low %v2027_v3, %v2037_v12  ;;  %v2046_v18 = vrot.slane %v2045_v7, 4  ;;  %v2074_v20 = vrot.slane %v2072_v11, 5  ;;  %v2082_v24 = vshll.u32 %v3137_v1, 16  ;;  %v3145_v61 = vld [vmem:[%s3585_s25 + $0x70] sm:$0xf] }
  0x6c   : > { %v2069_v22 = vor.u32 %v2068_v14, %v2065_v13  ;;  %v2078_v23 = vrot.slane %v2076_v15, 4  ;;  %v2087_v26 = vshrl.u32 %v3138_v2, 16  ;;  %v2056_v29 = vrot.slane %v2055_v19, 4  ;;  %v3146_v3 = vld [vmem:[%s3585_s25 + $0x74] sm:$0x1] }
  0x6d   : > { %3448 = vmatmul.mubr.msk.bf16.gmra.mxu1 %vm356_vm1, %v3173_v17  ;;  %v2051_v28 = vsel %vm3608_vm4, %v2046_v18, %v2050_v62  ;;  %v2090_v30 = vshll.u32 %v3138_v2, 16  ;;  %v2096_v31 = vshll.u32 %v3139_v16, 16  ;;  %v2084_v35 = vrot.slane %v2082_v24, 5  ;;  %v3521_v62 = vld [vmem:[%s3585_s25 + $0x9c] sm:$0xff]  }
  0x6e   : > { %v2070_v33 = vrot.slane %v2069_v22, 4  ;;  %v2079_v34 = vor.u32 %v2078_v23, %v2074_v20  ;;  %v2089_v36 = vrot.slane %v2087_v26, 4  ;;  %v2061_v39 = vsel %vm3608_vm4, %v2056_v29, %v2060_v9  ;;  %v3148_v14 = vld [vmem:[%s3585_s25 + $0x7c] sm:$0xf]  ;;  %v3149_v29 = vld [vmem:[%s3585_s25 + $0x80] sm:$0x1] }
  0x6f   : > { %v2092_v40 = vrot.slane %v2090_v30, 5  ;;  %v2098_v41 = vrot.slane %v2096_v31, 5  ;;  %v2100_v42 = vshrl.u32 %v3139_v16, 16  ;;  %v3174_v44 = vcombine.low %v2051_v28, %v2061_v39  ;;  %v3151_v39 = vld [vmem:[%s3585_s25 + $0x88] sm:$0xf] }
  0x70   : > { %v2075_v10 = vsel %vm3608_vm4, %v2070_v33, %v2074_v20  ;;  %v2080_v45 = vrot.slane %v2079_v34, 4  ;;  %v2106_v46 = vshll.u32 %v3140_v25, 16  ;;  %v2111_v49 = vshrl.u32 %v3141_v32, 16 }
  0x71   : > { %3426 = vmatmul.mubr.msk.bf16.gmra.mxu0 %vm356_vm1, %v3518_v21  ;;  %v2093_v47 = vor.u32 %v2092_v40, %v2089_v36  ;;  %v2102_v48 = vrot.slane %v2100_v42, 4  ;;  %v2114_v50 = vshll.u32 %v3141_v32, 16  ;;  %3451 = vmatprep.mubr.msk.bf16.mxu1 %vm356_vm1, %v3174_v44  ;;  %v2120_v53 = vshll.u32 %v3142_v38, 16  ;;  %v3150_v32 = vld [vmem:[%s3585_s25 + $0x84] sm:$0xf]  ;;  %v3523_v44 = vld [vmem:[%s3585_s25 + $0xb4] sm:$0xff]  }
  0x72   : > { %3429 = vmatprep.mubr.msk.bf16.mxu0 %vm356_vm1, %v3519_v27  ;;  %v2085_v51 = vsel %vm3608_vm4, %v2080_v45, %v2084_v35  ;;  %v2108_v52 = vrot.slane %v2106_v46, 5  ;;  %v2124_v54 = vshrl.u32 %v3142_v38, 16  ;;  %v2113_v59 = vrot.slane %v2111_v49, 4  ;;  %v3522_v38 = vld [vmem:[%s3585_s25 + $0xa8] sm:$0xff]  }
  0x73   : > { %v3175_v56 = vcombine.low %v2075_v10, %v2085_v51  ;;  %v2094_v57 = vrot.slane %v2093_v47, 4  ;;  %v2103_v58 = vor.u32 %v2102_v48, %v2098_v41  ;;  %v2116_v63 = vrot.slane %v2114_v50, 5  ;;  %v3152_v47 = vld [vmem:[%s3585_s25 + $0x8c] sm:$0x1] }
  0x74   : > { %v2122_v0 = vrot.slane %v2120_v53, 5  ;;  %v2126_v1 = vrot.slane %v2124_v54, 4  ;;  %v2130_v2 = vshll.u32 %v3143_v43, 16  ;;  %v2135_v6 = vshrl.u32 %v3144_v55, 16  ;;  %v3153_v53 = vld [vmem:[%s3585_s25 + $0x90] sm:$0xf] }
  0x75   : > { %3452 = vmatmul.mubr.msk.bf16.gmra.mxu1 %vm356_vm1, %v3175_v56  ;;  %v2099_v4 = vsel %vm3608_vm4, %v2094_v57, %v2098_v41  ;;  %v2104_v5 = vrot.slane %v2103_v58, 4  ;;  %v2138_v7 = vshll.u32 %v3144_v55, 16  ;;  %v2117_v9 = vor.u32 %v2116_v63, %v2113_v59 }
  0x76   : > { %v2127_v11 = vor.u32 %v2126_v1, %v2122_v0  ;;  %v2132_v12 = vrot.slane %v2130_v2, 5  ;;  %v2144_v13 = vshll.u32 %v3145_v61, 16  ;;  %v2137_v16 = vrot.slane %v2135_v6, 4  ;;  %v3155_v6 = vld [vmem:[%s3585_s25 + $0x98] sm:$0x1] }
  0x77   : > { %v2109_v15 = vsel %vm3608_vm4, %v2104_v5, %v2108_v52  ;;  %v2140_v17 = vrot.slane %v2138_v7, 5  ;;  %v2148_v18 = vshrl.u32 %v3145_v61, 16  ;;  %v2118_v20 = vrot.slane %v2117_v9, 4 }
  0x78   : > { %v3176_v19 = vcombine.low %v2099_v4, %v2109_v15  ;;  %v2128_v21 = vrot.slane %v2127_v11, 4  ;;  %v2146_v22 = vrot.slane %v2144_v13, 5  ;;  %v2154_v25 = vshll.u32 %v3146_v3, 16  ;;  %v3524_v13 = vld [vmem:[%s3585_s25 + $0xc0] sm:$0xff]  }
  0x79   : > { %3430 = vmatmul.mubr.msk.bf16.gmra.mxu0 %vm356_vm1, %v3520_v60  ;;  %v2141_v23 = vor.u32 %v2140_v17, %v2137_v16  ;;  %v2150_v24 = vrot.slane %v2148_v18, 4  ;;  %v2159_v26 = vshrl.u32 %v3147_v8, 16  ;;  %v2123_v27 = vsel %vm3608_vm4, %v2118_v20, %v2122_v0 }
  0x7a   : > { %3433 = vmatprep.mubr.msk.bf16.mxu0 %vm356_vm1, %v3521_v62  ;;  %3455 = vmatprep.mubr.msk.bf16.mxu1 %vm356_vm1, %v3176_v19  ;;  %v2133_v28 = vsel %vm3608_vm4, %v2128_v21, %v2132_v12  ;;  %v2162_v30 = vshll.u32 %v3147_v8, 16  ;;  %v2168_v31 = vshll.u32 %v3148_v14, 16  ;;  %v2156_v36 = vrot.slane %v2154_v25, 5  ;;  %v3154_v62 = vld [vmem:[%s3585_s25 + $0x94] sm:$0xf] }
  0x7b   : > { %v3177_v33 = vcombine.low %v2123_v27, %v2133_v28  ;;  %v2142_v34 = vrot.slane %v2141_v23, 4  ;;  %v2151_v35 = vor.u32 %v2150_v24, %v2146_v22  ;;  %v2161_v40 = vrot.slane %v2159_v26, 4  ;;  %v3157_v19 = vld [vmem:[%s3585_s25 + $0xa0] sm:$0xf]  ;;  %v3158_v27 = vld [vmem:[%s3585_s25 + $0xa4] sm:$0x1] }
  0x7c   : > { %v2164_v41 = vrot.slane %v2162_v30, 5  ;;  %v2170_v42 = vrot.slane %v2168_v31, 5  ;;  %v2172_v43 = vshrl.u32 %v3148_v14, 16  ;;  %v2178_v46 = vshll.u32 %v3149_v29, 16  ;;  %v3156_v14 = vld [vmem:[%s3585_s25 + $0x9c] sm:$0xf] }
  0x7d   : > { %3456 = vmatmul.mubr.msk.bf16.gmra.mxu1 %vm356_vm1, %v3177_v33  ;;  %v2147_v10 = vsel %vm3608_vm4, %v2142_v34, %v2146_v22  ;;  %v2152_v45 = vrot.slane %v2151_v35, 4  ;;  %v2183_v48 = vshrl.u32 %v3150_v32, 16  ;;  %v2186_v51 = vshll.u32 %v3150_v32, 16  ;;  %v3159_v33 = vld [vmem:[%s3585_s25 + $0xa8] sm:$0xf] }
  0x7e   : > { %v2165_v49 = vor.u32 %v2164_v41, %v2161_v40  ;;  %v2174_v50 = vrot.slane %v2172_v43, 4  ;;  %v2192_v52 = vshll.u32 %v3151_v39, 16  ;;  %v2180_v55 = vrot.slane %v2178_v46, 5 }
  0x7f   : > { %v2157_v54 = vsel %vm3608_vm4, %v2152_v45, %v2156_v36  ;;  %v2185_v56 = vrot.slane %v2183_v48, 4  ;;  %v2196_v57 = vshrl.u32 %v3151_v39, 16  ;;  %v2188_v61 = vrot.slane %v2186_v51, 5  ;;  %v3160_v39 = vld [vmem:[%s3585_s25 + $0xac] sm:$0xf] }
  0x80   : > { %v3178_v58 = vcombine.low %v2147_v10, %v2157_v54  ;;  %v2166_v59 = vrot.slane %v2165_v49, 4  ;;  %v2175_v60 = vor.u32 %v2174_v50, %v2170_v42  ;;  %v2194_v63 = vrot.slane %v2192_v52, 5  ;;  %v3161_v45 = vld [vmem:[%s3585_s25 + $0xb0] sm:$0x1]  ;;  %v3162_v52 = vld [vmem:[%s3585_s25 + $0xb4] sm:$0xf] }
  0x81   : > { %3434 = vmatmul.mubr.msk.bf16.gmra.mxu0 %vm356_vm1, %v3522_v38  ;;  %v2198_v0 = vrot.slane %v2196_v57, 4  ;;  %v2202_v1 = vshll.u32 %v3152_v47, 16  ;;  %v2207_v2 = vshrl.u32 %v3153_v53, 16  ;;  %v2189_v5 = vor.u32 %v2188_v61, %v2185_v56  ;;  %v3163_v57 = vld [vmem:[%s3585_s25 + $0xb8] sm:$0xf] }
  0x82   : > { %3437 = vmatprep.mubr.msk.bf16.mxu0 %vm356_vm1, %v3523_v44  ;;  %3459 = vmatprep.mubr.msk.bf16.mxu1 %vm356_vm1, %v3178_v58  ;;  %v2171_v3 = vsel %vm3608_vm4, %v2166_v59, %v2170_v42  ;;  %v2176_v4 = vrot.slane %v2175_v60, 4  ;;  %v2210_v7 = vshll.u32 %v3153_v53, 16  ;;  %v2216_v12 = vshll.u32 %v3154_v62, 16 }
  0x83   : > { %v2199_v8 = vor.u32 %v2198_v0, %v2194_v63  ;;  %v2204_v9 = vrot.slane %v2202_v1, 5  ;;  %v2209_v11 = vrot.slane %v2207_v2, 4  ;;  %v2190_v16 = vrot.slane %v2189_v5, 4 }
  0x84   : > { %v2181_v15 = vsel %vm3608_vm4, %v2176_v4, %v2180_v55  ;;  %v2212_v17 = vrot.slane %v2210_v7, 5  ;;  %v2220_v18 = vshrl.u32 %v3154_v62, 16  ;;  %v2218_v22 = vrot.slane %v2216_v12, 5  ;;  %v3164_v4 = vld [vmem:[%s3585_s25 + $0xbc] sm:$0x1] }
  0x85   : > { %v3179_v20 = vcombine.low %v2171_v3, %v2181_v15  ;;  %v2200_v21 = vrot.slane %v2199_v8, 4  ;;  %v2226_v23 = vshll.u32 %v3155_v6, 16  ;;  %v2195_v24 = vsel %vm3608_vm4, %v2190_v16, %v2194_v63  ;;  %v3165_v12 = vld [vmem:[%s3585_s25 + $0xc0] sm:$0xf] }
  0x86   : > { %v2213_v25 = vor.u32 %v2212_v17, %v2209_v11  ;;  %v2222_v26 = vrot.slane %v2220_v18, 4  ;;  %v2231_v28 = vshrl.u32 %v3156_v14, 16  ;;  %v2234_v31 = vshll.u32 %v3156_v14, 16  ;;  %v3166_v17 = vld [vmem:[%s3585_s25 + $0xc4] sm:$0xf] }
  0x87   : > { %3460 = vmatmul.mubr.msk.bf16.gmra.mxu1 %vm356_vm1, %v3179_v20  ;;  %v2205_v29 = vsel %vm3608_vm4, %v2200_v21, %v2204_v9  ;;  %v2228_v30 = vrot.slane %v2226_v23, 5  ;;  %v2240_v32 = vshll.u32 %v3157_v19, 16  ;;  %v2244_v42 = vshrl.u32 %v3157_v19, 16 }
  0x88   : > { %v3180_v34 = vcombine.low %v2195_v24, %v2205_v29  ;;  %v2214_v35 = vrot.slane %v2213_v25, 4  ;;  %v2223_v36 = vor.u32 %v2222_v26, %v2218_v22  ;;  %v2233_v38 = vrot.slane %v2231_v28, 4  ;;  %v3167_v24 = vld [vmem:[%s3585_s25 + $0xc8] sm:$0x1] }
  0x89   : > { %3438 = vmatmul.mubr.msk.bf16.gmra.mxu0 %vm356_vm1, %v3524_v13  ;;  %v2236_v40 = vrot.slane %v2234_v31, 5  ;;  %v2242_v41 = vrot.slane %v2240_v32, 5  ;;  %v2250_v43 = vshll.u32 %v3158_v27, 16  ;;  %v2255_v46 = vshrl.u32 %v3159_v33, 16 }
  0x8a   : > { %3463 = vmatprep.mubr.msk.bf16.mxu1 %vm356_vm1, %v3180_v34  ;;  %v2219_v44 = vsel %vm3608_vm4, %v2214_v35, %v2218_v22  ;;  %v2224_v10 = vrot.slane %v2223_v36, 4  ;;  %v2258_v47 = vshll.u32 %v3159_v33, 16  ;;  %v2246_v49 = vrot.slane %v2244_v42, 4 }
  0x8b   : > { %v2237_v48 = vor.u32 %v2236_v40, %v2233_v38  ;;  %v2252_v50 = vrot.slane %v2250_v43, 5  ;;  %v2264_v51 = vshll.u32 %v3160_v39, 16  ;;  %v2257_v54 = vrot.slane %v2255_v46, 4 }
  0x8c   : > { %v2229_v53 = vsel %vm3608_vm4, %v2224_v10, %v2228_v30  ;;  %v2260_v55 = vrot.slane %v2258_v47, 5  ;;  %v2268_v56 = vshrl.u32 %v3160_v39, 16  ;;  %v2247_v60 = vor.u32 %v2246_v49, %v2242_v41 }
  0x8d   : > { %v3181_v58 = vcombine.low %v2219_v44, %v2229_v53  ;;  %v2238_v59 = vrot.slane %v2237_v48, 4  ;;  %v2266_v61 = vrot.slane %v2264_v51, 5  ;;  %v2274_v0 = vshll.u32 %v3161_v45, 16 }
  0x8e   : > { %v2261_v62 = vor.u32 %v2260_v55, %v2257_v54  ;;  %v2270_v63 = vrot.slane %v2268_v56, 4  ;;  %v2279_v1 = vshrl.u32 %v3162_v52, 16  ;;  %v2248_v3 = vrot.slane %v2247_v60, 4 }
  0x8f   : > { %3464 = vmatmul.mubr.msk.bf16.gmra.mxu1 %vm356_vm1, %v3181_v58  ;;  %v2243_v2 = vsel %vm3608_vm4, %v2238_v59, %v2242_v41  ;;  %v2282_v5 = vshll.u32 %v3162_v52, 16  ;;  %v2288_v6 = vshll.u32 %v3163_v57, 16  ;;  %v2276_v9 = vrot.slane %v2274_v0, 5 }
  0x90   : > { %v2262_v7 = vrot.slane %v2261_v62, 4  ;;  %v2271_v8 = vor.u32 %v2270_v63, %v2266_v61  ;;  %v2281_v11 = vrot.slane %v2279_v1, 4  ;;  %v2253_v13 = vsel %vm3608_vm4, %v2248_v3, %v2252_v50 }
  0x91   : > { %v2284_v14 = vrot.slane %v2282_v5, 5  ;;  %v3901_v15 = vrot.slane %v2288_v6, 5  ;;  %v2292_v16 = vshrl.u32 %v3163_v57, 16  ;;  %v3182_v18 = vcombine.low %v2243_v2, %v2253_v13 }
  0x92   : > { %v2267_v19 = vsel %vm3608_vm4, %v2262_v7, %v2266_v61  ;;  %v2272_v20 = vrot.slane %v2271_v8, 4  ;;  %v2298_v21 = vshll.u32 %v3164_v4, 16  ;;  %v2303_v25 = vshrl.u32 %v3165_v12, 16 }
  0x93   : > { %v2285_v22 = vor.u32 %v2284_v14, %v2281_v11  ;;  %v2294_v23 = vrot.slane %v2292_v16, 4  ;;  %v2306_v26 = vshll.u32 %v3165_v12, 16  ;;  %3467 = vmatprep.mubr.msk.bf16.mxu1 %vm356_vm1, %v3182_v18  ;;  %v2312_v29 = vshll.u32 %v3166_v17, 16 }
  0x94   : > { %v2277_v27 = vsel %vm3608_vm4, %v2272_v20, %v2276_v9  ;;  %v2300_v28 = vrot.slane %v2298_v21, 5  ;;  %v2316_v30 = vshrl.u32 %v3166_v17, 16  ;;  %v2305_v34 = vrot.slane %v2303_v25, 4 }
  0x95   : > { %v3183_v31 = vcombine.low %v2267_v19, %v2277_v27  ;;  %v2286_v32 = vrot.slane %v2285_v22, 4  ;;  %v2295_v33 = vor.u32 %v2294_v23, %v3901_v15  ;;  %v2308_v35 = vrot.slane %v2306_v26, 5 }
  0x96   : > { %v2314_v36 = vrot.slane %v2312_v29, 5  ;;  %v2318_v38 = vrot.slane %v2316_v30, 4  ;;  %v2322_v39 = vshll.u32 %v3167_v24, 16  ;;  %v3533_v10 = vmov 0.0  }
  0x97   : > { %3468 = vmatmul.mubr.msk.bf16.gmra.mxu1 %vm356_vm1, %v3183_v31  ;;  %v2291_v40 = vsel %vm3608_vm4, %v2286_v32, %v3901_v15  ;;  %v2296_v41 = vrot.slane %v2295_v33, 4  ;;  %v2309_v42 = vor.u32 %v2308_v35, %v2305_v34  ;;  %175 = vst.msk [vmem:[#allocation2 + $0x10] sm:$0xff] %vm172_vm5, %v3533_v10  ;;  %173 = vst.msk [vmem:[#allocation2] sm:$0xff] %vm172_vm5, %v3533_v10 }
  0x98   : > { %v2319_v43 = vor.u32 %v2318_v38, %v2314_v36  ;;  %v2324_v44 = vrot.slane %v2322_v39, 5  ;;  %174 = vst.msk [vmem:[#allocation2 + $0x8] sm:$0xff] %vm172_vm5, %v3533_v10  ;;  %176 = vst.msk [vmem:[#allocation2 + $0x18] sm:$0xff] %vm172_vm5, %v3533_v10 }
  0x99   : > { %177 = vst.msk [vmem:[#allocation2 + $0x20] sm:$0xff] %vm172_vm5, %v3533_v10  ;;  %178 = vst.msk [vmem:[#allocation2 + $0x28] sm:$0xff] %vm172_vm5, %v3533_v10  ;;  %v2301_v45 = vsel %vm3608_vm4, %v2296_v41, %v2300_v28  ;;  %v2310_v47 = vrot.slane %v2309_v42, 4 }
  0x9a   : > { %179 = vst.msk [vmem:[#allocation2 + $0x30] sm:$0xff] %vm172_vm5, %v3533_v10  ;;  %180 = vst.msk [vmem:[#allocation2 + $0x38] sm:$0xff] %vm172_vm5, %v3533_v10  ;;  %v3184_v46 = vcombine.low %v2291_v40, %v2301_v45  ;;  %v2320_v48 = vrot.slane %v2319_v43, 4 }
  0x9b   : > { %181 = vst.msk [vmem:[#allocation2 + $0x40] sm:$0xff] %vm172_vm5, %v3533_v10  ;;  %182 = vst.msk [vmem:[#allocation2 + $0x48] sm:$0xff] %vm172_vm5, %v3533_v10  ;;  %v2315_v49 = vsel %vm3608_vm4, %v2310_v47, %v2314_v36 }
  0x9c   : > { %183 = vst.msk [vmem:[#allocation2 + $0x50] sm:$0xff] %vm172_vm5, %v3533_v10  ;;  %184 = vst.msk [vmem:[#allocation2 + $0x58] sm:$0xff] %vm172_vm5, %v3533_v10  ;;  %3471 = vmatprep.mubr.msk.bf16.mxu1 %vm356_vm1, %v3184_v46  ;;  %v2325_v50 = vsel %vm3608_vm4, %v2320_v48, %v2324_v44 }
  0x9d   : > { %185 = vst.msk [vmem:[#allocation2 + $0x60] sm:$0xff] %vm172_vm5, %v3533_v10  ;;  %186 = vst.msk [vmem:[#allocation2 + $0x68] sm:$0xff] %vm172_vm5, %v3533_v10  ;;  %v3185_v51 = vcombine.low %v2315_v49, %v2325_v50 }
  0x9e   : > { %187 = vst.msk [vmem:[#allocation2 + $0x70] sm:$0xff] %vm172_vm5, %v3533_v10  ;;  %188 = vst.msk [vmem:[#allocation2 + $0x78] sm:$0xff] %vm172_vm5, %v3533_v10  ;;  %v239_v52 = vld [vmem:[#allocation2 + $0x10] sm:$0xff]  ;;  %v237_v54 = vld [vmem:[#allocation2] sm:$0xff] }
  0x9f   : > { %189 = vst.msk [vmem:[#allocation2 + $0x80] sm:$0xff] %vm172_vm5, %v3533_v10  ;;  %190 = vst.msk [vmem:[#allocation2 + $0x88] sm:$0xff] %vm172_vm5, %v3533_v10  ;;  %3472 = vmatmul.mubr.msk.bf16.gmra.mxu1 %vm356_vm1, %v3185_v51  ;;  %v240_v57 = vld [vmem:[#allocation2 + $0x18] sm:$0xff]  ;;  %v238_v60 = vld [vmem:[#allocation2 + $0x8] sm:$0xff] }
  0xa0   : > { %191 = vst.msk [vmem:[#allocation2 + $0x90] sm:$0xff] %vm172_vm5, %v3533_v10  ;;  %192 = vst.msk [vmem:[#allocation2 + $0x98] sm:$0xff] %vm172_vm5, %v3533_v10  ;;  %v241_v1 = vld [vmem:[#allocation2 + $0x20] sm:$0xff]  ;;  %v242_v7 = vld [vmem:[#allocation2 + $0x28] sm:$0xff] }
  0xa1   : > { %193 = vst.msk [vmem:[#allocation2 + $0xa0] sm:$0xff] %vm172_vm5, %v3533_v10  ;;  %194 = vst.msk [vmem:[#allocation2 + $0xa8] sm:$0xff] %vm172_vm5, %v3533_v10  ;;  %v243_v37 = vld [vmem:[#allocation2 + $0x30] sm:$0xff]  ;;  %v244_v4 = vld [vmem:[#allocation2 + $0x38] sm:$0xff] }
  0xa2   : > { %195 = vst.msk [vmem:[#allocation2 + $0xb0] sm:$0xff] %vm172_vm5, %v3533_v10  ;;  %196 = vst.msk [vmem:[#allocation2 + $0xb8] sm:$0xff] %vm172_vm5, %v3533_v10  ;;  %v245_v15 = vld [vmem:[#allocation2 + $0x40] sm:$0xff]  ;;  %v246_v27 = vld [vmem:[#allocation2 + $0x48] sm:$0xff] }
  0xa3   : > { %197 = vst.msk [vmem:[#allocation2 + $0xc0] sm:$0xff] %vm172_vm5, %v3533_v10  ;;  %198 = vst.msk [vmem:[#allocation2 + $0xc8] sm:$0xff] %vm172_vm5, %v3533_v10  ;;  %v247_v11 = vld [vmem:[#allocation2 + $0x50] sm:$0xff]  ;;  %v248_v21 = vld [vmem:[#allocation2 + $0x58] sm:$0xff] }
  0xa4   : > { %199 = vst.msk [vmem:[#allocation2 + $0xd0] sm:$0xff] %vm172_vm5, %v3533_v10  ;;  %200 = vst.msk [vmem:[#allocation2 + $0xd8] sm:$0xff] %vm172_vm5, %v3533_v10  ;;  %v249_v39 = vld [vmem:[#allocation2 + $0x60] sm:$0xff]  ;;  %v250_v48 = vld [vmem:[#allocation2 + $0x68] sm:$0xff] }
  0xa5   : > { %201 = vst.msk [vmem:[#allocation2 + $0xe0] sm:$0xff] %vm172_vm5, %v3533_v10  ;;  %202 = vst.msk [vmem:[#allocation2 + $0xe8] sm:$0xff] %vm172_vm5, %v3533_v10  ;;  %v251_v33 = vld [vmem:[#allocation2 + $0x70] sm:$0xff]  ;;  %v252_v43 = vld [vmem:[#allocation2 + $0x78] sm:$0xff] }
  0xa6   : > { %203 = vst.msk [vmem:[#allocation2 + $0xf0] sm:$0xff] %vm172_vm5, %v3533_v10  ;;  %204 = vst.msk [vmem:[#allocation2 + $0xf8] sm:$0xff] %vm172_vm5, %v3533_v10 }
  0xd1   : > { %v3343_v53 = vpop.f32.mrf.mxu0 }
  0xd2   : > { %v572_v55 = vadd.f32 %v3343_v53, %v239_v52 }
  0xd3   : > { %v443_v56 = vpop.f32.mrf.mxu0 }
  0xd4   : > { %604 = vst.msk [vmem:[#allocation2 + $0x10] sm:$0xff] %vm172_vm5, %v572_v55  ;;  %v570_v58 = vadd.f32 %v443_v56, %v237_v54  ;;  %v255_v54 = vld [vmem:[#allocation2 + $0x90] sm:$0xff] }
  0xd5   : > { %v3344_v59 = vpop.f32.mrf.mxu0 }
  0xd6   : > { %602 = vst.msk [vmem:[#allocation2] sm:$0xff] %vm172_vm5, %v570_v58  ;;  %v573_v61 = vadd.f32 %v3344_v59, %v240_v57 }
  0xd7   : > { %v446_v62 = vpop.f32.mrf.mxu0 }
  0xd8   : > { %605 = vst.msk [vmem:[#allocation2 + $0x18] sm:$0xff] %vm172_vm5, %v573_v61  ;;  %v571_v63 = vadd.f32 %v446_v62, %v238_v60  ;;  %v253_v60 = vld [vmem:[#allocation2 + $0x80] sm:$0xff] }
  0xd9   : > { %v3347_v0 = vpop.f32.mrf.mxu0 }
  0xda   : > { %603 = vst.msk [vmem:[#allocation2 + $0x8] sm:$0xff] %vm172_vm5, %v571_v63  ;;  %v576_v2 = vadd.f32 %v3347_v0, %v243_v37 }
  0xdb   : > { %v459_v3 = vpop.f32.mrf.mxu0  ;;  %v684_v12 = vld [vmem:[#allocation2 + $0x10] sm:$0xff] }
  0xdc   : > { %608 = vst.msk [vmem:[#allocation2 + $0x30] sm:$0xff] %vm172_vm5, %v576_v2  ;;  %v574_v5 = vadd.f32 %v459_v3, %v241_v1  ;;  %v256_v1 = vld [vmem:[#allocation2 + $0x98] sm:$0xff] }
  0xdd   : > { %v3348_v6 = vpop.f32.mrf.mxu0  ;;  %v682_v17 = vld [vmem:[#allocation2] sm:$0xff] }
  0xde   : > { %606 = vst.msk [vmem:[#allocation2 + $0x20] sm:$0xff] %vm172_vm5, %v574_v5  ;;  %v577_v8 = vadd.f32 %v3348_v6, %v244_v4 }
  0xdf   : > { %v462_v9 = vpop.f32.mrf.mxu0  ;;  %v685_v23 = vld [vmem:[#allocation2 + $0x18] sm:$0xff] }
  0xe0   : > { %609 = vst.msk [vmem:[#allocation2 + $0x38] sm:$0xff] %vm172_vm5, %v577_v8  ;;  %v575_v13 = vadd.f32 %v462_v9, %v242_v7  ;;  %v3377_v16 = vpop.f32.mrf.mxu1  ;;  %v254_v7 = vld [vmem:[#allocation2 + $0x88] sm:$0xff] }
  0xe1   : > { %v3351_v14 = vpop.f32.mrf.mxu0  ;;  %v1371_v19 = vadd.f32 %v3377_v16, %v684_v12  ;;  %v683_v29 = vld [vmem:[#allocation2 + $0x8] sm:$0xff] }
  0xe2   : > { %607 = vst.msk [vmem:[#allocation2 + $0x28] sm:$0xff] %vm172_vm5, %v575_v13  ;;  %v580_v18 = vadd.f32 %v3351_v14, %v247_v11  ;;  %v1242_v22 = vpop.f32.mrf.mxu1  ;;  %v259_v14 = vld [vmem:[#allocation2 + $0xb0] sm:$0xff] }
  0xe3   : > { %v475_v20 = vpop.f32.mrf.mxu0  ;;  %1403 = vst.msk [vmem:[#allocation2 + $0x10] sm:$0xff] %vm172_vm5, %v1371_v19  ;;  %v1369_v25 = vadd.f32 %v1242_v22, %v682_v17  ;;  %v688_v40 = vld [vmem:[#allocation2 + $0x30] sm:$0xff] }
  0xe4   : > { %612 = vst.msk [vmem:[#allocation2 + $0x50] sm:$0xff] %vm172_vm5, %v580_v18  ;;  %v578_v24 = vadd.f32 %v475_v20, %v245_v15  ;;  %v3378_v28 = vpop.f32.mrf.mxu1  ;;  %v257_v20 = vld [vmem:[#allocation2 + $0xa0] sm:$0xff] }
  0xe5   : > { %v3352_v26 = vpop.f32.mrf.mxu0  ;;  %1401 = vst.msk [vmem:[#allocation2] sm:$0xff] %vm172_vm5, %v1369_v25  ;;  %v1372_v31 = vadd.f32 %v3378_v28, %v685_v23  ;;  %v686_v10 = vld [vmem:[#allocation2 + $0x20] sm:$0xff] }
  0xe6   : > { %610 = vst.msk [vmem:[#allocation2 + $0x40] sm:$0xff] %vm172_vm5, %v578_v24  ;;  %v581_v30 = vadd.f32 %v3352_v26, %v248_v21  ;;  %v1245_v34 = vpop.f32.mrf.mxu1  ;;  %v260_v26 = vld [vmem:[#allocation2 + $0xb8] sm:$0xff] }
  0xe7   : > { %v478_v32 = vpop.f32.mrf.mxu0  ;;  %1404 = vst.msk [vmem:[#allocation2 + $0x18] sm:$0xff] %vm172_vm5, %v1372_v31  ;;  %v1370_v36 = vadd.f32 %v1245_v34, %v683_v29  ;;  %v689_v50 = vld [vmem:[#allocation2 + $0x38] sm:$0xff] }
  0xe8   : > { %613 = vst.msk [vmem:[#allocation2 + $0x58] sm:$0xff] %vm172_vm5, %v581_v30  ;;  %v579_v35 = vadd.f32 %v478_v32, %v246_v27  ;;  %v258_v32 = vld [vmem:[#allocation2 + $0xa8] sm:$0xff] }
  0xe9   : > { %v3355_v38 = vpop.f32.mrf.mxu0  ;;  %1402 = vst.msk [vmem:[#allocation2 + $0x8] sm:$0xff] %vm172_vm5, %v1370_v36  ;;  %v687_v56 = vld [vmem:[#allocation2 + $0x28] sm:$0xff] }
  0xea   : > { %611 = vst.msk [vmem:[#allocation2 + $0x48] sm:$0xff] %vm172_vm5, %v579_v35  ;;  %v584_v41 = vadd.f32 %v3355_v38, %v251_v33  ;;  %v3381_v44 = vpop.f32.mrf.mxu1 }
  0xeb   : > { %v491_v42 = vpop.f32.mrf.mxu0  ;;  %v1375_v46 = vadd.f32 %v3381_v44, %v688_v40  ;;  %v692_v62 = vld [vmem:[#allocation2 + $0x50] sm:$0xff] }
  0xec   : > { %616 = vst.msk [vmem:[#allocation2 + $0x70] sm:$0xff] %vm172_vm5, %v584_v41  ;;  %v582_v45 = vadd.f32 %v491_v42, %v249_v39  ;;  %v1258_v49 = vpop.f32.mrf.mxu1  ;;  %v263_v39 = vld [vmem:[#allocation2 + $0xd0] sm:$0xff] }
  0xed   : > { %v3356_v47 = vpop.f32.mrf.mxu0  ;;  %1407 = vst.msk [vmem:[#allocation2 + $0x30] sm:$0xff] %vm172_vm5, %v1375_v46  ;;  %v1373_v52 = vadd.f32 %v1258_v49, %v686_v10  ;;  %v690_v3 = vld [vmem:[#allocation2 + $0x40] sm:$0xff] }
  0xee   : > { %614 = vst.msk [vmem:[#allocation2 + $0x60] sm:$0xff] %vm172_vm5, %v582_v45  ;;  %v585_v51 = vadd.f32 %v3356_v47, %v252_v43  ;;  %v3382_v55 = vpop.f32.mrf.mxu1  ;;  %v261_v10 = vld [vmem:[#allocation2 + $0xc0] sm:$0xff] }
  0xef   : > { %v494_v53 = vpop.f32.mrf.mxu0  ;;  %1405 = vst.msk [vmem:[#allocation2 + $0x20] sm:$0xff] %vm172_vm5, %v1373_v52  ;;  %v1376_v58 = vadd.f32 %v3382_v55, %v689_v50  ;;  %v693_v9 = vld [vmem:[#allocation2 + $0x58] sm:$0xff]  ;;  %v262_v55 = vld [vmem:[#allocation2 + $0xc8] sm:$0xff] }
  0xf0   : > { %617 = vst.msk [vmem:[#allocation2 + $0x78] sm:$0xff] %vm172_vm5, %v585_v51  ;;  %v583_v57 = vadd.f32 %v494_v53, %v250_v48  ;;  %v1261_v61 = vpop.f32.mrf.mxu1  ;;  %v264_v50 = vld [vmem:[#allocation2 + $0xd8] sm:$0xff] }
  0xf1   : > { %v3359_v59 = vpop.f32.mrf.mxu0  ;;  %1408 = vst.msk [vmem:[#allocation2 + $0x38] sm:$0xff] %vm172_vm5, %v1376_v58  ;;  %v1374_v63 = vadd.f32 %v1261_v61, %v687_v56  ;;  %v691_v16 = vld [vmem:[#allocation2 + $0x48] sm:$0xff]  ;;  %v267_v61 = vld [vmem:[#allocation2 + $0xf0] sm:$0xff] }
  0xf2   : > { %615 = vst.msk [vmem:[#allocation2 + $0x68] sm:$0xff] %vm172_vm5, %v583_v57  ;;  %v588_v37 = vadd.f32 %v3359_v59, %v255_v54  ;;  %v3385_v2 = vpop.f32.mrf.mxu1 }
  0xf3   : > { %v507_v0 = vpop.f32.mrf.mxu0  ;;  %1406 = vst.msk [vmem:[#allocation2 + $0x28] sm:$0xff] %vm172_vm5, %v1374_v63  ;;  %v1379_v5 = vadd.f32 %v3385_v2, %v692_v62  ;;  %v696_v22 = vld [vmem:[#allocation2 + $0x70] sm:$0xff]  ;;  %v265_v2 = vld [vmem:[#allocation2 + $0xe0] sm:$0xff] }
  0xf4   : > { %620 = vst.msk [vmem:[#allocation2 + $0x90] sm:$0xff] %vm172_vm5, %v588_v37  ;;  %v586_v4 = vadd.f32 %v507_v0, %v253_v60  ;;  %v1274_v8 = vpop.f32.mrf.mxu1 }
  0xf5   : > { %v3360_v6 = vpop.f32.mrf.mxu0  ;;  %1411 = vst.msk [vmem:[#allocation2 + $0x50] sm:$0xff] %vm172_vm5, %v1379_v5  ;;  %v1377_v12 = vadd.f32 %v1274_v8, %v690_v3  ;;  %v694_v28 = vld [vmem:[#allocation2 + $0x60] sm:$0xff]  ;;  %v268_v8 = vld [vmem:[#allocation2 + $0xf8] sm:$0xff] }
  0xf6   : > { %618 = vst.msk [vmem:[#allocation2 + $0x80] sm:$0xff] %vm172_vm5, %v586_v4  ;;  %v589_v11 = vadd.f32 %v3360_v6, %v256_v1  ;;  %v3386_v15 = vpop.f32.mrf.mxu1 }
  0xf7   : > { %v510_v13 = vpop.f32.mrf.mxu0  ;;  %1409 = vst.msk [vmem:[#allocation2 + $0x40] sm:$0xff] %vm172_vm5, %v1377_v12  ;;  %v1380_v18 = vadd.f32 %v3386_v15, %v693_v9  ;;  %v697_v34 = vld [vmem:[#allocation2 + $0x78] sm:$0xff]  ;;  %v266_v15 = vld [vmem:[#allocation2 + $0xe8] sm:$0xff] }
  0xf8   : > { %621 = vst.msk [vmem:[#allocation2 + $0x98] sm:$0xff] %vm172_vm5, %v589_v11  ;;  %v587_v17 = vadd.f32 %v510_v13, %v254_v7  ;;  %v1277_v21 = vpop.f32.mrf.mxu1 }
  0xf9   : > { %v3363_v19 = vpop.f32.mrf.mxu0  ;;  %1412 = vst.msk [vmem:[#allocation2 + $0x58] sm:$0xff] %vm172_vm5, %v1380_v18  ;;  %v1378_v24 = vadd.f32 %v1277_v21, %v691_v16  ;;  %v695_v41 = vld [vmem:[#allocation2 + $0x68] sm:$0xff] }
  0xfa   : > { %619 = vst.msk [vmem:[#allocation2 + $0x88] sm:$0xff] %vm172_vm5, %v587_v17  ;;  %v592_v23 = vadd.f32 %v3363_v19, %v259_v14  ;;  %v3389_v27 = vpop.f32.mrf.mxu1 }
  0xfb   : > { %v523_v25 = vpop.f32.mrf.mxu0  ;;  %1410 = vst.msk [vmem:[#allocation2 + $0x48] sm:$0xff] %vm172_vm5, %v1378_v24  ;;  %v1383_v30 = vadd.f32 %v3389_v27, %v696_v22  ;;  %v700_v48 = vld [vmem:[#allocation2 + $0x90] sm:$0xff] }
  0xfc   : > { %624 = vst.msk [vmem:[#allocation2 + $0xb0] sm:$0xff] %vm172_vm5, %v592_v23  ;;  %v590_v29 = vadd.f32 %v523_v25, %v257_v20  ;;  %v1290_v33 = vpop.f32.mrf.mxu1  ;;  %v1468_v25 = vld [vmem:[#allocation2 + $0x10] sm:$0xff] }
  0xfd   : > { %v3364_v31 = vpop.f32.mrf.mxu0  ;;  %1415 = vst.msk [vmem:[#allocation2 + $0x70] sm:$0xff] %vm172_vm5, %v1383_v30  ;;  %v1381_v36 = vadd.f32 %v1290_v33, %v694_v28  ;;  %v698_v53 = vld [vmem:[#allocation2 + $0x80] sm:$0xff] }
  0xfe   : > { %622 = vst.msk [vmem:[#allocation2 + $0xa0] sm:$0xff] %vm172_vm5, %v590_v29  ;;  %v593_v35 = vadd.f32 %v3364_v31, %v260_v26  ;;  %v3390_v40 = vpop.f32.mrf.mxu1  ;;  %v1466_v31 = vld [vmem:[#allocation2] sm:$0xff] }
  0xff   : > { %v526_v38 = vpop.f32.mrf.mxu0  ;;  %1413 = vst.msk [vmem:[#allocation2 + $0x60] sm:$0xff] %vm172_vm5, %v1381_v36  ;;  %v1384_v43 = vadd.f32 %v3390_v40, %v697_v34  ;;  %v701_v59 = vld [vmem:[#allocation2 + $0x98] sm:$0xff] }
 0x100   : > { %625 = vst.msk [vmem:[#allocation2 + $0xb8] sm:$0xff] %vm172_vm5, %v593_v35  ;;  %v591_v42 = vadd.f32 %v526_v38, %v258_v32  ;;  %v1293_v45 = vpop.f32.mrf.mxu1  ;;  %v1469_v38 = vld [vmem:[#allocation2 + $0x18] sm:$0xff] }
 0x101   : > { %v3367_v44 = vpop.f32.mrf.mxu0  ;;  %1416 = vst.msk [vmem:[#allocation2 + $0x78] sm:$0xff] %vm172_vm5, %v1384_v43  ;;  %v1382_v47 = vadd.f32 %v1293_v45, %v695_v41  ;;  %v699_v0 = vld [vmem:[#allocation2 + $0x88] sm:$0xff] }
 0x102   : > { %623 = vst.msk [vmem:[#allocation2 + $0xa8] sm:$0xff] %vm172_vm5, %v591_v42  ;;  %v596_v46 = vadd.f32 %v3367_v44, %v263_v39  ;;  %v1467_v44 = vld [vmem:[#allocation2 + $0x8] sm:$0xff] }
 0x103   : > { %v539_v49 = vpop.f32.mrf.mxu0  ;;  %1414 = vst.msk [vmem:[#allocation2 + $0x68] sm:$0xff] %vm172_vm5, %v1382_v47  ;;  %v3393_v52 = vpop.f32.mrf.mxu1  ;;  %v704_v6 = vld [vmem:[#allocation2 + $0xb0] sm:$0xff] }
 0x104   : > { %628 = vst.msk [vmem:[#allocation2 + $0xd0] sm:$0xff] %vm172_vm5, %v596_v46  ;;  %v594_v51 = vadd.f32 %v539_v49, %v261_v10  ;;  %v1387_v56 = vadd.f32 %v3393_v52, %v700_v48  ;;  %v1472_v49 = vld [vmem:[#allocation2 + $0x30] sm:$0xff] }
 0x105   : > { %v3368_v54 = vpop.f32.mrf.mxu0  ;;  %v1306_v58 = vpop.f32.mrf.mxu1  ;;  %v702_v13 = vld [vmem:[#allocation2 + $0xa0] sm:$0xff] }
 0x106   : > { %626 = vst.msk [vmem:[#allocation2 + $0xc0] sm:$0xff] %vm172_vm5, %v594_v51  ;;  %v597_v57 = vadd.f32 %v3368_v54, %v264_v50  ;;  %1419 = vst.msk [vmem:[#allocation2 + $0x90] sm:$0xff] %vm172_vm5, %v1387_v56  ;;  %v1385_v62 = vadd.f32 %v1306_v58, %v698_v53 }
 0x107   : > { %v542_v60 = vpop.f32.mrf.mxu0  ;;  %v3394_v63 = vpop.f32.mrf.mxu1  ;;  %v705_v19 = vld [vmem:[#allocation2 + $0xb8] sm:$0xff] }
 0x108   : > { %629 = vst.msk [vmem:[#allocation2 + $0xd8] sm:$0xff] %vm172_vm5, %v597_v57  ;;  %v595_v37 = vadd.f32 %v542_v60, %v262_v55  ;;  %1417 = vst.msk [vmem:[#allocation2 + $0x80] sm:$0xff] %vm172_vm5, %v1385_v62  ;;  %v1388_v3 = vadd.f32 %v3394_v63, %v701_v59  ;;  %v1470_v55 = vld [vmem:[#allocation2 + $0x20] sm:$0xff] }
 0x109   : > { %v3371_v1 = vpop.f32.mrf.mxu0  ;;  %v1309_v5 = vpop.f32.mrf.mxu1  ;;  %v703_v24 = vld [vmem:[#allocation2 + $0xa8] sm:$0xff] }
 0x10a   : > { %627 = vst.msk [vmem:[#allocation2 + $0xc8] sm:$0xff] %vm172_vm5, %v595_v37  ;;  %v600_v4 = vadd.f32 %v3371_v1, %v267_v61  ;;  %1420 = vst.msk [vmem:[#allocation2 + $0x98] sm:$0xff] %vm172_vm5, %v1388_v3  ;;  %v1386_v9 = vadd.f32 %v1309_v5, %v699_v0  ;;  %v1473_v61 = vld [vmem:[#allocation2 + $0x38] sm:$0xff] }
 0x10b   : > { %v555_v7 = vpop.f32.mrf.mxu0  ;;  %v3397_v12 = vpop.f32.mrf.mxu1  ;;  %v708_v30 = vld [vmem:[#allocation2 + $0xd0] sm:$0xff] }
 0x10c   : > { %632 = vst.msk [vmem:[#allocation2 + $0xf0] sm:$0xff] %vm172_vm5, %v600_v4  ;;  %v598_v11 = vadd.f32 %v555_v7, %v265_v2  ;;  %1418 = vst.msk [vmem:[#allocation2 + $0x88] sm:$0xff] %vm172_vm5, %v1386_v9  ;;  %v1391_v16 = vadd.f32 %v3397_v12, %v704_v6  ;;  %v1471_v2 = vld [vmem:[#allocation2 + $0x28] sm:$0xff] }
 0x10d   : > { %v3372_v14 = vpop.f32.mrf.mxu0  ;;  %v1322_v18 = vpop.f32.mrf.mxu1  ;;  %v706_v36 = vld [vmem:[#allocation2 + $0xc0] sm:$0xff] }
 0x10e   : > { %630 = vst.msk [vmem:[#allocation2 + $0xe0] sm:$0xff] %vm172_vm5, %v598_v11  ;;  %v601_v17 = vadd.f32 %v3372_v14, %v268_v8  ;;  %1423 = vst.msk [vmem:[#allocation2 + $0xb0] sm:$0xff] %vm172_vm5, %v1391_v16  ;;  %v1389_v21 = vadd.f32 %v1322_v18, %v702_v13  ;;  %v1476_v8 = vld [vmem:[#allocation2 + $0x50] sm:$0xff]  ;;  %v1474_v14 = vld [vmem:[#allocation2 + $0x40] sm:$0xff] }
 0x10f   : > { %v558_v20 = vpop.f32.mrf.mxu0  ;;  %v3398_v23 = vpop.f32.mrf.mxu1  ;;  %v709_v43 = vld [vmem:[#allocation2 + $0xd8] sm:$0xff] }
 0x110   : > { %633 = vst.msk [vmem:[#allocation2 + $0xf8] sm:$0xff] %vm172_vm5, %v601_v17  ;;  %v599_v22 = vadd.f32 %v558_v20, %v266_v15  ;;  %1421 = vst.msk [vmem:[#allocation2 + $0xa0] sm:$0xff] %vm172_vm5, %v1389_v21  ;;  %v1392_v27 = vadd.f32 %v3398_v23, %v705_v19  ;;  %v1477_v19 = vld [vmem:[#allocation2 + $0x58] sm:$0xff] }
 0x111   : > { %v3411_v26 = vpop.f32.mrf.mxu0  ;;  %v1325_v29 = vpop.f32.mrf.mxu1  ;;  %v707_v48 = vld [vmem:[#allocation2 + $0xc8] sm:$0xff] }
 0x112   : > { %631 = vst.msk [vmem:[#allocation2 + $0xe8] sm:$0xff] %vm172_vm5, %v599_v22  ;;  %v1800_v28 = vadd.f32 %v3411_v26, %v1468_v25  ;;  %1424 = vst.msk [vmem:[#allocation2 + $0xb8] sm:$0xff] %vm172_vm5, %v1392_v27  ;;  %v1390_v33 = vadd.f32 %v1325_v29, %v703_v24  ;;  %v1475_v24 = vld [vmem:[#allocation2 + $0x48] sm:$0xff] }
 0x113   : > { %v1671_v32 = vpop.f32.mrf.mxu0  ;;  %v3401_v35 = vpop.f32.mrf.mxu1  ;;  %v712_v54 = vld [vmem:[#allocation2 + $0xf0] sm:$0xff] }
 0x114   : > { %1832 = vst.msk [vmem:[#allocation2 + $0x10] sm:$0xff] %vm172_vm5, %v1800_v28  ;;  %v1798_v34 = vadd.f32 %v1671_v32, %v1466_v31  ;;  %1422 = vst.msk [vmem:[#allocation2 + $0xa8] sm:$0xff] %vm172_vm5, %v1390_v33  ;;  %v1395_v40 = vadd.f32 %v3401_v35, %v708_v30  ;;  %v1480_v30 = vld [vmem:[#allocation2 + $0x70] sm:$0xff] }
 0x115   : > { %v3412_v39 = vpop.f32.mrf.mxu0  ;;  %v1338_v42 = vpop.f32.mrf.mxu1  ;;  %v710_v60 = vld [vmem:[#allocation2 + $0xe0] sm:$0xff] }
 0x116   : > { %1830 = vst.msk [vmem:[#allocation2] sm:$0xff] %vm172_vm5, %v1798_v34  ;;  %v1801_v41 = vadd.f32 %v3412_v39, %v1469_v38  ;;  %1427 = vst.msk [vmem:[#allocation2 + $0xd0] sm:$0xff] %vm172_vm5, %v1395_v40  ;;  %v1393_v45 = vadd.f32 %v1338_v42, %v706_v36  ;;  %v1478_v36 = vld [vmem:[#allocation2 + $0x60] sm:$0xff] }
 0x117   : > { %v1674_v10 = vpop.f32.mrf.mxu0  ;;  %v3402_v47 = vpop.f32.mrf.mxu1  ;;  %v713_v1 = vld [vmem:[#allocation2 + $0xf8] sm:$0xff] }
 0x118   : > { %1833 = vst.msk [vmem:[#allocation2 + $0x18] sm:$0xff] %vm172_vm5, %v1801_v41  ;;  %v1799_v46 = vadd.f32 %v1674_v10, %v1467_v44  ;;  %1425 = vst.msk [vmem:[#allocation2 + $0xc0] sm:$0xff] %vm172_vm5, %v1393_v45  ;;  %v1396_v51 = vadd.f32 %v3402_v47, %v709_v43  ;;  %v1481_v43 = vld [vmem:[#allocation2 + $0x78] sm:$0xff] }
 0x119   : > { %v3415_v50 = vpop.f32.mrf.mxu0  ;;  %v1341_v53 = vpop.f32.mrf.mxu1  ;;  %v711_v7 = vld [vmem:[#allocation2 + $0xe8] sm:$0xff] }
 0x11a   : > { %1831 = vst.msk [vmem:[#allocation2 + $0x8] sm:$0xff] %vm172_vm5, %v1799_v46  ;;  %v1804_v52 = vadd.f32 %v3415_v50, %v1472_v49  ;;  %1428 = vst.msk [vmem:[#allocation2 + $0xd8] sm:$0xff] %vm172_vm5, %v1396_v51  ;;  %v1394_v57 = vadd.f32 %v1341_v53, %v707_v48  ;;  %v4039_v46 = vld [vmem:[%s4195_s2] ss:$0 sm:$0xff]  ;;  %v1479_v49 = vld [vmem:[#allocation2 + $0x68] sm:$0xff] }
 0x11b   : > { %v1687_v56 = vpop.f32.mrf.mxu0  ;;  %v3405_v59 = vpop.f32.mrf.mxu1  ;;  %v1912_v18 = vld [vmem:[#allocation2 + $0x10] sm:$0xff] }
 0x11c   : > { %1836 = vst.msk [vmem:[#allocation2 + $0x30] sm:$0xff] %vm172_vm5, %v1804_v52  ;;  %v1802_v58 = vadd.f32 %v1687_v56, %v1470_v55  ;;  %1426 = vst.msk [vmem:[#allocation2 + $0xc8] sm:$0xff] %vm172_vm5, %v1394_v57  ;;  %v1399_v37 = vadd.f32 %v3405_v59, %v712_v54  ;;  %v1484_v56 = vld [vmem:[#allocation2 + $0x90] sm:$0xff] }
 0x11d   : > { %v3416_v62 = vpop.f32.mrf.mxu0  ;;  %v1354_v0 = vpop.f32.mrf.mxu1  ;;  %v1910_v23 = vld [vmem:[#allocation2] sm:$0xff] }
 0x11e   : > { %1834 = vst.msk [vmem:[#allocation2 + $0x20] sm:$0xff] %vm172_vm5, %v1802_v58  ;;  %v1805_v63 = vadd.f32 %v3416_v62, %v1473_v61  ;;  %1431 = vst.msk [vmem:[#allocation2 + $0xf0] sm:$0xff] %vm172_vm5, %v1399_v37  ;;  %v1397_v4 = vadd.f32 %v1354_v0, %v710_v60 }
 0x11f   : > { %v1690_v3 = vpop.f32.mrf.mxu0  ;;  %v3406_v6 = vpop.f32.mrf.mxu1  ;;  %v1913_v29 = vld [vmem:[#allocation2 + $0x18] sm:$0xff] }
 0x120   : > { %1837 = vst.msk [vmem:[#allocation2 + $0x38] sm:$0xff] %vm172_vm5, %v1805_v63  ;;  %v1803_v5 = vadd.f32 %v1690_v3, %v1471_v2  ;;  %1429 = vst.msk [vmem:[#allocation2 + $0xe0] sm:$0xff] %vm172_vm5, %v1397_v4  ;;  %v1400_v11 = vadd.f32 %v3406_v6, %v713_v1  ;;  %v1482_v63 = vld [vmem:[#allocation2 + $0x80] sm:$0xff] }
 0x121   : > { %v3419_v9 = vpop.f32.mrf.mxu0  ;;  %v1357_v13 = vpop.f32.mrf.mxu1  ;;  %v1911_v35 = vld [vmem:[#allocation2 + $0x8] sm:$0xff] }
 0x122   : > { %1835 = vst.msk [vmem:[#allocation2 + $0x28] sm:$0xff] %vm172_vm5, %v1803_v5  ;;  %v1808_v12 = vadd.f32 %v3419_v9, %v1476_v8  ;;  %1432 = vst.msk [vmem:[#allocation2 + $0xf8] sm:$0xff] %vm172_vm5, %v1400_v11  ;;  %v1398_v16 = vadd.f32 %v1357_v13, %v711_v7 }
 0x123   : > { %v1703_v15 = vpop.f32.mrf.mxu0  ;;  %v1916_v42 = vld [vmem:[#allocation2 + $0x30] sm:$0xff] }
 0x124   : > { %1840 = vst.msk [vmem:[#allocation2 + $0x50] sm:$0xff] %vm172_vm5, %v1808_v12  ;;  %v1806_v17 = vadd.f32 %v1703_v15, %v1474_v14  ;;  %1430 = vst.msk [vmem:[#allocation2 + $0xe8] sm:$0xff] %vm172_vm5, %v1398_v16  ;;  %v1485_v14 = vld [vmem:[#allocation2 + $0x98] sm:$0xff] }
 0x125   : > { %v3420_v20 = vpop.f32.mrf.mxu0  ;;  %v3445_v22 = vpop.f32.mrf.mxu1  ;;  %v1914_v48 = vld [vmem:[#allocation2 + $0x20] sm:$0xff] }
 0x126   : > { %1838 = vst.msk [vmem:[#allocation2 + $0x40] sm:$0xff] %vm172_vm5, %v1806_v17  ;;  %v1809_v21 = vadd.f32 %v3420_v20, %v1477_v19  ;;  %v2596_v26 = vadd.f32 %v3445_v22, %v1912_v18 }
 0x127   : > { %v1706_v25 = vpop.f32.mrf.mxu0  ;;  %v2467_v28 = vpop.f32.mrf.mxu1  ;;  %v1917_v55 = vld [vmem:[#allocation2 + $0x38] sm:$0xff] }
 0x128   : > { %1841 = vst.msk [vmem:[#allocation2 + $0x58] sm:$0xff] %vm172_vm5, %v1809_v21  ;;  %v1807_v27 = vadd.f32 %v1706_v25, %v1475_v24  ;;  %2628 = vst.msk [vmem:[#allocation2 + $0x10] sm:$0xff] %vm172_vm5, %v2596_v26  ;;  %v2594_v32 = vadd.f32 %v2467_v28, %v1910_v23  ;;  %v1483_v24 = vld [vmem:[#allocation2 + $0x88] sm:$0xff] }
 0x129   : > { %v3423_v31 = vpop.f32.mrf.mxu0  ;;  %v3446_v34 = vpop.f32.mrf.mxu1  ;;  %v1915_v37 = vld [vmem:[#allocation2 + $0x28] sm:$0xff] }
 0x12a   : > { %1839 = vst.msk [vmem:[#allocation2 + $0x48] sm:$0xff] %vm172_vm5, %v1807_v27  ;;  %v1812_v33 = vadd.f32 %v3423_v31, %v1480_v30  ;;  %2626 = vst.msk [vmem:[#allocation2] sm:$0xff] %vm172_vm5, %v2594_v32  ;;  %v2597_v39 = vadd.f32 %v3446_v34, %v1913_v29  ;;  %v1488_v34 = vld [vmem:[#allocation2 + $0xb0] sm:$0xff] }
 0x12b   : > { %v1719_v38 = vpop.f32.mrf.mxu0  ;;  %v2470_v41 = vpop.f32.mrf.mxu1  ;;  %v1920_v7 = vld [vmem:[#allocation2 + $0x50] sm:$0xff] }
 0x12c   : > { %1844 = vst.msk [vmem:[#allocation2 + $0x70] sm:$0xff] %vm172_vm5, %v1812_v33  ;;  %v1810_v40 = vadd.f32 %v1719_v38, %v1478_v36  ;;  %2629 = vst.msk [vmem:[#allocation2 + $0x18] sm:$0xff] %vm172_vm5, %v2597_v39  ;;  %v2595_v10 = vadd.f32 %v2470_v41, %v1911_v35 }
 0x12d   : > { %v3424_v44 = vpop.f32.mrf.mxu0  ;;  %v3449_v47 = vpop.f32.mrf.mxu1  ;;  %v1918_v17 = vld [vmem:[#allocation2 + $0x40] sm:$0xff] }
 0x12e   : > { %1842 = vst.msk [vmem:[#allocation2 + $0x60] sm:$0xff] %vm172_vm5, %v1810_v40  ;;  %v1813_v45 = vadd.f32 %v3424_v44, %v1481_v43  ;;  %2627 = vst.msk [vmem:[#allocation2 + $0x8] sm:$0xff] %vm172_vm5, %v2595_v10  ;;  %v2600_v51 = vadd.f32 %v3449_v47, %v1916_v42  ;;  %v1486_v10 = vld [vmem:[#allocation2 + $0xa0] sm:$0xff] }
 0x12f   : > { %v1722_v50 = vpop.f32.mrf.mxu0  ;;  %v2660_v53 = vld [vmem:[#allocation2 + $0x10] sm:$0xff]  ;;  %v2483_v54 = vpop.f32.mrf.mxu1  ;;  %v1921_v27 = vld [vmem:[#allocation2 + $0x58] sm:$0xff] }
 0x130   : > { %1845 = vst.msk [vmem:[#allocation2 + $0x78] sm:$0xff] %vm172_vm5, %v1813_v45  ;;  %v1811_v52 = vadd.f32 %v1722_v50, %v1479_v49  ;;  %v2699_v58 = vadd.f32 %v4039_v46, %v2660_v53  ;;  %2632 = vst.msk [vmem:[#allocation2 + $0x30] sm:$0xff] %vm172_vm5, %v2600_v51  ;;  %v2598_v59 = vadd.f32 %v2483_v54, %v1914_v48 }
 0x131   : > { %v3427_v57 = vpop.f32.mrf.mxu0  ;;  %v2658_v61 = vld [vmem:[#allocation2] sm:$0xff]  ;;  %v3450_v62 = vpop.f32.mrf.mxu1  ;;  %v1919_v38 = vld [vmem:[#allocation2 + $0x48] sm:$0xff] }
 0x132   : > { %1843 = vst.msk [vmem:[#allocation2 + $0x68] sm:$0xff] %vm172_vm5, %v1811_v52  ;;  %v1816_v60 = vadd.f32 %v3427_v57, %v1484_v56  ;;  %v2731_v1 = vmax.f32 %v2699_v58, 0.0  ;;  %v2697_v2 = vadd.f32 %v4039_v46, %v2658_v61  ;;  %2630 = vst.msk [vmem:[#allocation2 + $0x20] sm:$0xff] %vm172_vm5, %v2598_v59  ;;  %v2601_v3 = vadd.f32 %v3450_v62, %v1917_v55  ;;  %v1489_v55 = vld [vmem:[#allocation2 + $0xb8] sm:$0xff] }
 0x133   : > { %v1735_v0 = vpop.f32.mrf.mxu0  ;;  %v2661_v5 = vld [vmem:[#allocation2 + $0x18] sm:$0xff]  ;;  %v2486_v6 = vpop.f32.mrf.mxu1  ;;  %v1924_v48 = vld [vmem:[#allocation2 + $0x70] sm:$0xff] }
 0x134   : > { %1848 = vst.msk [vmem:[#allocation2 + $0x90] sm:$0xff] %vm172_vm5, %v1816_v60  ;;  %v1814_v4 = vadd.f32 %v1735_v0, %v1482_v63  ;;  %v3241_v9 = vpack.c.bf16 %v2731_v1, %v2731_v1  ;;  %v2729_v11 = vmax.f32 %v2697_v2, 0.0  ;;  %v2700_v12 = vadd.f32 %v4039_v46, %v2661_v5  ;;  %2633 = vst.msk [vmem:[#allocation2 + $0x38] sm:$0xff] %vm172_vm5, %v2601_v3  ;;  %v1487_v0 = vld [vmem:[#allocation2 + $0xa8] sm:$0xff] }
 0x135   : > { %v3428_v8 = vpop.f32.mrf.mxu0  ;;  %v2599_v13 = vadd.f32 %v2486_v6, %v1915_v37  ;;  %v2659_v15 = vld [vmem:[#allocation2 + $0x8] sm:$0xff]  ;;  %v3453_v16 = vpop.f32.mrf.mxu1  ;;  %v1922_v58 = vld [vmem:[#allocation2 + $0x60] sm:$0xff] }
 0x136   : > { %1846 = vst.msk [vmem:[#allocation2 + $0x80] sm:$0xff] %vm172_vm5, %v1814_v4  ;;  %v1817_v18 = vadd.f32 %v3428_v8, %v1485_v14  ;;  %v3239_v20 = vpack.c.bf16 %v2729_v11, %v2729_v11  ;;  %v2732_v21 = vmax.f32 %v2700_v12, 0.0  ;;  %v2698_v22 = vadd.f32 %v4039_v46, %v2659_v15  ;;  %v1492_v11 = vld [vmem:[#allocation2 + $0xd0] sm:$0xff] }
 0x137   : > { %v1738_v19 = vpop.f32.mrf.mxu0  ;;  %2892 = vst.msk [vmem:[%s4053_s4 + $0x8] sm:$0xf] %vm2889_vm6, %v3241_v9  ;;  %v2604_v23 = vadd.f32 %v3453_v16, %v1920_v7  ;;  %v2664_v25 = vld [vmem:[#allocation2 + $0x30] sm:$0xff]  ;;  %v2499_v26 = vpop.f32.mrf.mxu1  ;;  %v1925_v3 = vld [vmem:[#allocation2 + $0x78] sm:$0xff] }
 0x138   : > { %2631 = vst.msk [vmem:[#allocation2 + $0x28] sm:$0xff] %vm172_vm5, %v2599_v13  ;;  %1849 = vst.msk [vmem:[#allocation2 + $0x98] sm:$0xff] %vm172_vm5, %v1817_v18  ;;  %v1815_v28 = vadd.f32 %v1738_v19, %v1483_v24  ;;  %v3242_v30 = vpack.c.bf16 %v2732_v21, %v2732_v21  ;;  %v2730_v31 = vmax.f32 %v2698_v22, 0.0  ;;  %v2703_v32 = vadd.f32 %v4039_v46, %v2664_v25  ;;  %v1490_v21 = vld [vmem:[#allocation2 + $0xc0] sm:$0xff] }
 0x139   : > { %v3431_v29 = vpop.f32.mrf.mxu0  ;;  %2890 = vst.msk [vmem:[%s4053_s4] sm:$0xf] %vm2889_vm6, %v3239_v20  ;;  %v2602_v33 = vadd.f32 %v2499_v26, %v1918_v17  ;;  %v2662_v35 = vld [vmem:[#allocation2 + $0x20] sm:$0xff]  ;;  %v3454_v36 = vpop.f32.mrf.mxu1  ;;  %v1923_v14 = vld [vmem:[#allocation2 + $0x68] sm:$0xff] }
 0x13a   : > { %2636 = vst.msk [vmem:[#allocation2 + $0x50] sm:$0xff] %vm172_vm5, %v2604_v23  ;;  %1847 = vst.msk [vmem:[#allocation2 + $0x88] sm:$0xff] %vm172_vm5, %v1815_v28  ;;  %v1820_v39 = vadd.f32 %v3431_v29, %v1488_v34  ;;  %v3240_v41 = vpack.c.bf16 %v2730_v31, %v2730_v31  ;;  %v2735_v42 = vmax.f32 %v2703_v32, 0.0  ;;  %v2701_v43 = vadd.f32 %v4039_v46, %v2662_v35  ;;  %v1491_v34 = vld [vmem:[#allocation2 + $0xc8] sm:$0xff] }
 0x13b   : > { %v1751_v40 = vpop.f32.mrf.mxu0  ;;  %2893 = vst.msk [vmem:[%s4053_s4 + $0xc] sm:$0xf] %vm2889_vm6, %v3242_v30  ;;  %v2605_v44 = vadd.f32 %v3454_v36, %v1921_v27  ;;  %v2665_v45 = vld [vmem:[#allocation2 + $0x38] sm:$0xff]  ;;  %v2502_v47 = vpop.f32.mrf.mxu1  ;;  %v1928_v32 = vld [vmem:[#allocation2 + $0x90] sm:$0xff] }
 0x13c   : > { %2634 = vst.msk [vmem:[#allocation2 + $0x40] sm:$0xff] %vm172_vm5, %v2602_v33  ;;  %1852 = vst.msk [vmem:[#allocation2 + $0xb0] sm:$0xff] %vm172_vm5, %v1820_v39  ;;  %v1818_v49 = vadd.f32 %v1751_v40, %v1486_v10  ;;  %v3245_v51 = vpack.c.bf16 %v2735_v42, %v2735_v42  ;;  %v2733_v52 = vmax.f32 %v2701_v43, 0.0  ;;  %v2704_v53 = vadd.f32 %v4039_v46, %v2665_v45  ;;  %v1493_v30 = vld [vmem:[#allocation2 + $0xd8] sm:$0xff] }
 0x13d   : > { %v3432_v50 = vpop.f32.mrf.mxu0  ;;  %2891 = vst.msk [vmem:[%s4053_s4 + $0x4] sm:$0xf] %vm2889_vm6, %v3240_v41  ;;  %v2603_v54 = vadd.f32 %v2502_v47, %v1919_v38  ;;  %v3457_v57 = vpop.f32.mrf.mxu1  ;;  %v1926_v43 = vld [vmem:[#allocation2 + $0x80] sm:$0xff] }
 0x13e   : > { %2637 = vst.msk [vmem:[#allocation2 + $0x58] sm:$0xff] %vm172_vm5, %v2605_v44  ;;  %1850 = vst.msk [vmem:[#allocation2 + $0xa0] sm:$0xff] %vm172_vm5, %v1818_v49  ;;  %v1821_v59 = vadd.f32 %v3432_v50, %v1489_v55  ;;  %v3243_v61 = vpack.c.bf16 %v2733_v52, %v2733_v52  ;;  %v2736_v62 = vmax.f32 %v2704_v53, 0.0  ;;  %v2608_v63 = vadd.f32 %v3457_v57, %v1924_v48  ;;  %v1496_v49 = vld [vmem:[#allocation2 + $0xf0] sm:$0xff] }
 0x13f   : > { %v2663_v56 = vld [vmem:[#allocation2 + $0x28] sm:$0xff]  ;;  %v1754_v60 = vpop.f32.mrf.mxu0  ;;  %2896 = vst.msk [vmem:[%s4053_s4 + $0x18] sm:$0xf] %vm2889_vm6, %v3245_v51  ;;  %v2515_v2 = vpop.f32.mrf.mxu1  ;;  %v1929_v52 = vld [vmem:[#allocation2 + $0x98] sm:$0xff] }
 0x140   : > { %v2702_v37 = vadd.f32 %v4039_v46, %v2663_v56  ;;  %2635 = vst.msk [vmem:[#allocation2 + $0x48] sm:$0xff] %vm172_vm5, %v2603_v54  ;;  %1853 = vst.msk [vmem:[#allocation2 + $0xb8] sm:$0xff] %vm172_vm5, %v1821_v59  ;;  %v1819_v4 = vadd.f32 %v1754_v60, %v1487_v0  ;;  %v3246_v6 = vpack.c.bf16 %v2736_v62, %v2736_v62  ;;  %v1494_v59 = vld [vmem:[#allocation2 + $0xe0] sm:$0xff] }
 0x141   : > { %v2668_v1 = vld [vmem:[#allocation2 + $0x50] sm:$0xff]  ;;  %v3435_v5 = vpop.f32.mrf.mxu0  ;;  %2894 = vst.msk [vmem:[%s4053_s4 + $0x10] sm:$0xf] %vm2889_vm6, %v3243_v61  ;;  %v2606_v9 = vadd.f32 %v2515_v2, %v1922_v58  ;;  %v3458_v13 = vpop.f32.mrf.mxu1  ;;  %v1927_v62 = vld [vmem:[#allocation2 + $0x88] sm:$0xff] }
 0x142   : > { %v2734_v7 = vmax.f32 %v2702_v37, 0.0  ;;  %v2707_v8 = vadd.f32 %v4039_v46, %v2668_v1  ;;  %2640 = vst.msk [vmem:[#allocation2 + $0x70] sm:$0xff] %vm172_vm5, %v2608_v63  ;;  %1851 = vst.msk [vmem:[#allocation2 + $0xa8] sm:$0xff] %vm172_vm5, %v1819_v4  ;;  %v1824_v15 = vadd.f32 %v3435_v5, %v1492_v11  ;;  %v2609_v20 = vadd.f32 %v3458_v13, %v1925_v3  ;;  %v1497_v4 = vld [vmem:[#allocation2 + $0xf8] sm:$0xff] }
 0x143   : > { %v2666_v12 = vld [vmem:[#allocation2 + $0x40] sm:$0xff]  ;;  %v1767_v16 = vpop.f32.mrf.mxu0  ;;  %2897 = vst.msk [vmem:[%s4053_s4 + $0x1c] sm:$0xf] %vm2889_vm6, %v3246_v6  ;;  %v2518_v23 = vpop.f32.mrf.mxu1 }
 0x144   : > { %v3244_v17 = vpack.c.bf16 %v2734_v7, %v2734_v7  ;;  %v2739_v18 = vmax.f32 %v2707_v8, 0.0  ;;  %v2705_v19 = vadd.f32 %v4039_v46, %v2666_v12  ;;  %2638 = vst.msk [vmem:[#allocation2 + $0x60] sm:$0xff] %vm172_vm5, %v2606_v9  ;;  %1856 = vst.msk [vmem:[#allocation2 + $0xd0] sm:$0xff] %vm172_vm5, %v1824_v15  ;;  %v1822_v24 = vadd.f32 %v1767_v16, %v1490_v21  ;;  %v1932_v7 = vld [vmem:[#allocation2 + $0xb0] sm:$0xff]  ;;  %v1495_v15 = vld [vmem:[#allocation2 + $0xe8] sm:$0xff] }
 0x145   : > { %v2669_v22 = vld [vmem:[#allocation2 + $0x58] sm:$0xff]  ;;  %v3436_v25 = vpop.f32.mrf.mxu0  ;;  %2641 = vst.msk [vmem:[#allocation2 + $0x78] sm:$0xff] %vm172_vm5, %v2609_v20  ;;  %v2607_v29 = vadd.f32 %v2518_v23, %v1923_v14 }
 0x146   : > { %2895 = vst.msk [vmem:[%s4053_s4 + $0x14] sm:$0xf] %vm2889_vm6, %v3244_v17  ;;  %v3249_v26 = vpack.c.bf16 %v2739_v18, %v2739_v18  ;;  %v2737_v27 = vmax.f32 %v2705_v19, 0.0  ;;  %v2708_v28 = vadd.f32 %v4039_v46, %v2669_v22  ;;  %v1825_v33 = vadd.f32 %v3436_v25, %v1493_v30  ;;  %v1930_v17 = vld [vmem:[#allocation2 + $0xa0] sm:$0xff] }
 0x147   : > { %v2667_v31 = vld [vmem:[#allocation2 + $0x48] sm:$0xff]  ;;  %1854 = vst.msk [vmem:[#allocation2 + $0xc0] sm:$0xff] %vm172_vm5, %v1822_v24  ;;  %v1770_v35 = vpop.f32.mrf.mxu0  ;;  %2639 = vst.msk [vmem:[#allocation2 + $0x68] sm:$0xff] %vm172_vm5, %v2607_v29  ;;  %v3461_v42 = vpop.f32.mrf.mxu1  ;;  %v1933_v24 = vld [vmem:[#allocation2 + $0xb8] sm:$0xff] }
 0x148   : > { %2900 = vst.msk [vmem:[%s4053_s4 + $0x28] sm:$0xf] %vm2889_vm6, %v3249_v26  ;;  %v3247_v36 = vpack.c.bf16 %v2737_v27, %v2737_v27  ;;  %v2740_v38 = vmax.f32 %v2708_v28, 0.0  ;;  %v2706_v39 = vadd.f32 %v4039_v46, %v2667_v31  ;;  %v1823_v40 = vadd.f32 %v1770_v35, %v1491_v34 }
 0x149   : > { %v2672_v41 = vld [vmem:[#allocation2 + $0x70] sm:$0xff]  ;;  %1857 = vst.msk [vmem:[#allocation2 + $0xd8] sm:$0xff] %vm172_vm5, %v1825_v33  ;;  %v3439_v44 = vpop.f32.mrf.mxu0  ;;  %v2612_v48 = vadd.f32 %v3461_v42, %v1928_v32  ;;  %v2531_v51 = vpop.f32.mrf.mxu1  ;;  %v1931_v30 = vld [vmem:[#allocation2 + $0xa8] sm:$0xff] }
 0x14a   : > { %2898 = vst.msk [vmem:[%s4053_s4 + $0x20] sm:$0xf] %vm2889_vm6, %v3247_v36  ;;  %v3250_v10 = vpack.c.bf16 %v2740_v38, %v2740_v38  ;;  %v2738_v45 = vmax.f32 %v2706_v39, 0.0  ;;  %v2711_v47 = vadd.f32 %v4039_v46, %v2672_v41  ;;  %v1828_v53 = vadd.f32 %v3439_v44, %v1496_v49 }
 0x14b   : > { %1855 = vst.msk [vmem:[#allocation2 + $0xc8] sm:$0xff] %vm172_vm5, %v1823_v40  ;;  %v2670_v50 = vld [vmem:[#allocation2 + $0x60] sm:$0xff]  ;;  %v1783_v54 = vpop.f32.mrf.mxu0  ;;  %2644 = vst.msk [vmem:[#allocation2 + $0x90] sm:$0xff] %vm172_vm5, %v2612_v48  ;;  %v2610_v58 = vadd.f32 %v2531_v51, %v1926_v43  ;;  %v3462_v61 = vpop.f32.mrf.mxu1  ;;  %v1936_v36 = vld [vmem:[#allocation2 + $0xd0] sm:$0xff] }
 0x14c   : > { %2901 = vst.msk [vmem:[%s4053_s4 + $0x2c] sm:$0xf] %vm2889_vm6, %v3250_v10  ;;  %v3248_v55 = vpack.c.bf16 %v2738_v45, %v2738_v45  ;;  %v2743_v56 = vmax.f32 %v2711_v47, 0.0  ;;  %v2709_v57 = vadd.f32 %v4039_v46, %v2670_v50  ;;  %v2673_v60 = vld [vmem:[#allocation2 + $0x78] sm:$0xff]  ;;  %v1826_v37 = vadd.f32 %v1783_v54, %v1494_v59 }
 0x14d   : > { %1860 = vst.msk [vmem:[#allocation2 + $0xf0] sm:$0xff] %vm172_vm5, %v1828_v53  ;;  %v3440_v63 = vpop.f32.mrf.mxu0  ;;  %v2712_v2 = vadd.f32 %v4039_v46, %v2673_v60  ;;  %2642 = vst.msk [vmem:[#allocation2 + $0x80] sm:$0xff] %vm172_vm5, %v2610_v58  ;;  %v2613_v3 = vadd.f32 %v3462_v61, %v1929_v52  ;;  %v2534_v6 = vpop.f32.mrf.mxu1 }
 0x14e   : > { %2899 = vst.msk [vmem:[%s4053_s4 + $0x24] sm:$0xf] %vm2889_vm6, %v3248_v55  ;;  %v3253_v0 = vpack.c.bf16 %v2743_v56, %v2743_v56  ;;  %v2741_v1 = vmax.f32 %v2709_v57, 0.0  ;;  %v2671_v5 = vld [vmem:[#allocation2 + $0x68] sm:$0xff]  ;;  %v1829_v8 = vadd.f32 %v3440_v63, %v1497_v4  ;;  %v2611_v14 = vadd.f32 %v2534_v6, %v1927_v62  ;;  %v1934_v44 = vld [vmem:[#allocation2 + $0xc0] sm:$0xff] }
 0x14f   : > { %1858 = vst.msk [vmem:[#allocation2 + $0xe0] sm:$0xff] %vm172_vm5, %v1826_v37  ;;  %v1786_v9 = vpop.f32.mrf.mxu0  ;;  %v2744_v12 = vmax.f32 %v2712_v2, 0.0  ;;  %v2710_v13 = vadd.f32 %v4039_v46, %v2671_v5  ;;  %2645 = vst.msk [vmem:[#allocation2 + $0x98] sm:$0xff] %vm172_vm5, %v2613_v3  ;;  %v3465_v16 = vpop.f32.mrf.mxu1 }
 0x150   : > { %2904 = vst.msk [vmem:[%s4053_s4 + $0x38] sm:$0xf] %vm2889_vm6, %v3253_v0  ;;  %v3251_v11 = vpack.c.bf16 %v2741_v1, %v2741_v1  ;;  %v1827_v18 = vadd.f32 %v1786_v9, %v1495_v15  ;;  %v2616_v21 = vadd.f32 %v3465_v16, %v1932_v7  ;;  %v1937_v51 = vld [vmem:[#allocation2 + $0xd8] sm:$0xff] }
 0x151   : > { %1861 = vst.msk [vmem:[#allocation2 + $0xf8] sm:$0xff] %vm172_vm5, %v1829_v8  ;;  %v3254_v19 = vpack.c.bf16 %v2744_v12, %v2744_v12  ;;  %v2742_v20 = vmax.f32 %v2710_v13, 0.0  ;;  %2643 = vst.msk [vmem:[#allocation2 + $0x88] sm:$0xff] %vm172_vm5, %v2611_v14  ;;  %v2547_v23 = vpop.f32.mrf.mxu1 }
 0x152   : > { %2902 = vst.msk [vmem:[%s4053_s4 + $0x30] sm:$0xf] %vm2889_vm6, %v3251_v11  ;;  %v2676_v22 = vld [vmem:[#allocation2 + $0x90] sm:$0xff]  ;;  %v2614_v27 = vadd.f32 %v2547_v23, %v1930_v17  ;;  %v1935_v58 = vld [vmem:[#allocation2 + $0xc8] sm:$0xff] }
 0x153   : > { %1859 = vst.msk [vmem:[#allocation2 + $0xe8] sm:$0xff] %vm172_vm5, %v1827_v18  ;;  %v3252_v25 = vpack.c.bf16 %v2742_v20, %v2742_v20  ;;  %v2715_v26 = vadd.f32 %v4039_v46, %v2676_v22  ;;  %2648 = vst.msk [vmem:[#allocation2 + $0xb0] sm:$0xff] %vm172_vm5, %v2616_v21  ;;  %v3466_v29 = vpop.f32.mrf.mxu1 }
 0x154   : > { %2905 = vst.msk [vmem:[%s4053_s4 + $0x3c] sm:$0xf] %vm2889_vm6, %v3254_v19  ;;  %v2674_v28 = vld [vmem:[#allocation2 + $0x80] sm:$0xff]  ;;  %v2617_v33 = vadd.f32 %v3466_v29, %v1933_v24  ;;  %v1940_v0 = vld [vmem:[#allocation2 + $0xf0] sm:$0xff] }
 0x155   : > { %2903 = vst.msk [vmem:[%s4053_s4 + $0x34] sm:$0xf] %vm2889_vm6, %v3252_v25  ;;  %v2747_v31 = vmax.f32 %v2715_v26, 0.0  ;;  %v2713_v32 = vadd.f32 %v4039_v46, %v2674_v28  ;;  %v2550_v35 = vpop.f32.mrf.mxu1 }
 0x156   : > { %2646 = vst.msk [vmem:[#allocation2 + $0xa0] sm:$0xff] %vm172_vm5, %v2614_v27  ;;  %v2677_v34 = vld [vmem:[#allocation2 + $0x98] sm:$0xff]  ;;  %2649 = vst.msk [vmem:[#allocation2 + $0xb8] sm:$0xff] %vm172_vm5, %v2617_v33  ;;  %v2615_v41 = vadd.f32 %v2550_v35, %v1931_v30  ;;  %v1938_v7 = vld [vmem:[#allocation2 + $0xe0] sm:$0xff] }
 0x157   : > { %v3257_v38 = vpack.c.bf16 %v2747_v31, %v2747_v31  ;;  %v2745_v39 = vmax.f32 %v2713_v32, 0.0  ;;  %v2716_v40 = vadd.f32 %v4039_v46, %v2677_v34  ;;  %v3469_v43 = vpop.f32.mrf.mxu1 }
 0x158   : > { %v2675_v42 = vld [vmem:[#allocation2 + $0x88] sm:$0xff]  ;;  %2647 = vst.msk [vmem:[#allocation2 + $0xa8] sm:$0xff] %vm172_vm5, %v2615_v41  ;;  %v2620_v48 = vadd.f32 %v3469_v43, %v1936_v36  ;;  %v1941_v15 = vld [vmem:[#allocation2 + $0xf8] sm:$0xff] }
 0x159   : > { %2908 = vst.msk [vmem:[%s4053_s4 + $0x48] sm:$0xf] %vm2889_vm6, %v3257_v38  ;;  %v3255_v10 = vpack.c.bf16 %v2745_v39, %v2745_v39  ;;  %v2748_v45 = vmax.f32 %v2716_v40, 0.0  ;;  %v2714_v47 = vadd.f32 %v4039_v46, %v2675_v42  ;;  %v2563_v50 = vpop.f32.mrf.mxu1 }
 0x15a   : > { %v2680_v49 = vld [vmem:[#allocation2 + $0xb0] sm:$0xff]  ;;  %2652 = vst.msk [vmem:[#allocation2 + $0xd0] sm:$0xff] %vm172_vm5, %v2620_v48  ;;  %v2618_v55 = vadd.f32 %v2563_v50, %v1934_v44  ;;  %v1939_v22 = vld [vmem:[#allocation2 + $0xe8] sm:$0xff] }
 0x15b   : > { %2906 = vst.msk [vmem:[%s4053_s4 + $0x40] sm:$0xf] %vm2889_vm6, %v3255_v10  ;;  %v3258_v52 = vpack.c.bf16 %v2748_v45, %v2748_v45  ;;  %v2746_v53 = vmax.f32 %v2714_v47, 0.0  ;;  %v2719_v54 = vadd.f32 %v4039_v46, %v2680_v49  ;;  %v3470_v57 = vpop.f32.mrf.mxu1 }
 0x15c   : > { %2650 = vst.msk [vmem:[#allocation2 + $0xc0] sm:$0xff] %vm172_vm5, %v2618_v55  ;;  %v2621_v62 = vadd.f32 %v3470_v57, %v1937_v51 }
 0x15d   : > { %v2678_v56 = vld [vmem:[#allocation2 + $0xa0] sm:$0xff]  ;;  %2909 = vst.msk [vmem:[%s4053_s4 + $0x4c] sm:$0xf] %vm2889_vm6, %v3258_v52  ;;  %v3256_v59 = vpack.c.bf16 %v2746_v53, %v2746_v53  ;;  %v2751_v60 = vmax.f32 %v2719_v54, 0.0  ;;  %v2681_v37 = vld [vmem:[#allocation2 + $0xb8] sm:$0xff]  ;;  %v2566_v63 = vpop.f32.mrf.mxu1 }
 0x15e   : > { %v2717_v61 = vadd.f32 %v4039_v46, %v2678_v56  ;;  %v2720_v3 = vadd.f32 %v4039_v46, %v2681_v37  ;;  %2653 = vst.msk [vmem:[#allocation2 + $0xd8] sm:$0xff] %vm172_vm5, %v2621_v62  ;;  %v2619_v4 = vadd.f32 %v2566_v63, %v1935_v58 }
 0x15f   : > { %2907 = vst.msk [vmem:[%s4053_s4 + $0x44] sm:$0xf] %vm2889_vm6, %v3256_v59  ;;  %v3261_v1 = vpack.c.bf16 %v2751_v60, %v2751_v60  ;;  %v2679_v5 = vld [vmem:[#allocation2 + $0xa8] sm:$0xff]  ;;  %v3473_v6 = vpop.f32.mrf.mxu1 }
 0x160   : > { %v2749_v2 = vmax.f32 %v2717_v61, 0.0  ;;  %v2752_v9 = vmax.f32 %v2720_v3, 0.0  ;;  %v2718_v11 = vadd.f32 %v4039_v46, %v2679_v5  ;;  %2651 = vst.msk [vmem:[#allocation2 + $0xc8] sm:$0xff] %vm172_vm5, %v2619_v4  ;;  %v2624_v12 = vadd.f32 %v3473_v6, %v1940_v0 }
 0x161   : > { %2912 = vst.msk [vmem:[%s4053_s4 + $0x58] sm:$0xf] %vm2889_vm6, %v3261_v1  ;;  %v2684_v13 = vld [vmem:[#allocation2 + $0xd0] sm:$0xff]  ;;  %v2579_v14 = vpop.f32.mrf.mxu1 }
 0x162   : > { %v3259_v8 = vpack.c.bf16 %v2749_v2, %v2749_v2  ;;  %v3262_v16 = vpack.c.bf16 %v2752_v9, %v2752_v9  ;;  %v2750_v17 = vmax.f32 %v2718_v11, 0.0  ;;  %v2723_v18 = vadd.f32 %v4039_v46, %v2684_v13  ;;  %2656 = vst.msk [vmem:[#allocation2 + $0xf0] sm:$0xff] %vm172_vm5, %v2624_v12 }
 0x163   : > { %v2622_v19 = vadd.f32 %v2579_v14, %v1938_v7  ;;  %v2682_v20 = vld [vmem:[#allocation2 + $0xc0] sm:$0xff]  ;;  %v3474_v21 = vpop.f32.mrf.mxu1 }
 0x164   : > { %2910 = vst.msk [vmem:[%s4053_s4 + $0x50] sm:$0xf] %vm2889_vm6, %v3259_v8  ;;  %2913 = vst.msk [vmem:[%s4053_s4 + $0x5c] sm:$0xf] %vm2889_vm6, %v3262_v16  ;;  %v3260_v23 = vpack.c.bf16 %v2750_v17, %v2750_v17  ;;  %v2755_v24 = vmax.f32 %v2723_v18, 0.0  ;;  %v2721_v25 = vadd.f32 %v4039_v46, %v2682_v20  ;;  %v2625_v26 = vadd.f32 %v3474_v21, %v1941_v15 }
 0x165   : > { %2654 = vst.msk [vmem:[#allocation2 + $0xe0] sm:$0xff] %vm172_vm5, %v2622_v19  ;;  %v2685_v27 = vld [vmem:[#allocation2 + $0xd8] sm:$0xff]  ;;  %v2582_v28 = vpop.f32.mrf.mxu1 }
 0x166   : > { %2911 = vst.msk [vmem:[%s4053_s4 + $0x54] sm:$0xf] %vm2889_vm6, %v3260_v23  ;;  %v3265_v29 = vpack.c.bf16 %v2755_v24, %v2755_v24  ;;  %v2753_v30 = vmax.f32 %v2721_v25, 0.0  ;;  %v2724_v31 = vadd.f32 %v4039_v46, %v2685_v27  ;;  %v2623_v32 = vadd.f32 %v2582_v28, %v1939_v22 }
 0x167   : > { %2657 = vst.msk [vmem:[#allocation2 + $0xf8] sm:$0xff] %vm172_vm5, %v2625_v26  ;;  %v2683_v33 = vld [vmem:[#allocation2 + $0xc8] sm:$0xff] }
 0x168   : > { %2916 = vst.msk [vmem:[%s4053_s4 + $0x68] sm:$0xf] %vm2889_vm6, %v3265_v29  ;;  %v3263_v34 = vpack.c.bf16 %v2753_v30, %v2753_v30  ;;  %v2756_v35 = vmax.f32 %v2724_v31, 0.0  ;;  %v2722_v36 = vadd.f32 %v4039_v46, %v2683_v33 }
 0x169   : > { %2655 = vst.msk [vmem:[#allocation2 + $0xe8] sm:$0xff] %vm172_vm5, %v2623_v32  ;;  %v2688_v38 = vld [vmem:[#allocation2 + $0xf0] sm:$0xff] }
 0x16a   : > { %2914 = vst.msk [vmem:[%s4053_s4 + $0x60] sm:$0xf] %vm2889_vm6, %v3263_v34  ;;  %v3266_v39 = vpack.c.bf16 %v2756_v35, %v2756_v35  ;;  %v2754_v40 = vmax.f32 %v2722_v36, 0.0  ;;  %v2727_v41 = vadd.f32 %v4039_v46, %v2688_v38 }
 0x16c   : > { %v2686_v42 = vld [vmem:[#allocation2 + $0xe0] sm:$0xff]  ;;  %2917 = vst.msk [vmem:[%s4053_s4 + $0x6c] sm:$0xf] %vm2889_vm6, %v3266_v39  ;;  %v3264_v43 = vpack.c.bf16 %v2754_v40, %v2754_v40  ;;  %v2759_v44 = vmax.f32 %v2727_v41, 0.0 }
 0x16d   : > { %v2725_v10 = vadd.f32 %v4039_v46, %v2686_v42 }
 0x16e   : > { %v2689_v45 = vld [vmem:[#allocation2 + $0xf8] sm:$0xff]  ;;  %2915 = vst.msk [vmem:[%s4053_s4 + $0x64] sm:$0xf] %vm2889_vm6, %v3264_v43  ;;  %v3269_v47 = vpack.c.bf16 %v2759_v44, %v2759_v44 }
 0x16f   : > { %v2757_v48 = vmax.f32 %v2725_v10, 0.0  ;;  %v2728_v49 = vadd.f32 %v4039_v46, %v2689_v45 }
 0x170   : > { %v2687_v50 = vld [vmem:[#allocation2 + $0xe8] sm:$0xff]  ;;  %2920 = vst.msk [vmem:[%s4053_s4 + $0x78] sm:$0xf] %vm2889_vm6, %v3269_v47 }
 0x171   : > { %v3267_v51 = vpack.c.bf16 %v2757_v48, %v2757_v48  ;;  %v2760_v52 = vmax.f32 %v2728_v49, 0.0  ;;  %v2726_v53 = vadd.f32 %v4039_v46, %v2687_v50 }
 0x173   : > { %2918 = vst.msk [vmem:[%s4053_s4 + $0x70] sm:$0xf] %vm2889_vm6, %v3267_v51  ;;  %v3270_v54 = vpack.c.bf16 %v2760_v52, %v2760_v52  ;;  %v2758_v55 = vmax.f32 %v2726_v53, 0.0 }
 0x175   : > { %2921 = vst.msk [vmem:[%s4053_s4 + $0x7c] sm:$0xf] %vm2889_vm6, %v3270_v54  ;;  %v3268_v56 = vpack.c.bf16 %v2758_v55, %v2758_v55 }
 0x177   : > { %2919 = vst.msk [vmem:[%s4053_s4 + $0x74] sm:$0xf] %vm2889_vm6, %v3268_v56 }
 0x178 PF: > { %s13_s12 = sadd.s32 1, %s3531_s12  }
 0x179   : > { %p10_p4 = scmp.ge.s32.totalorder %s13_s12, 4  }
 0x17b   :  { %12 = sbr.rel (!%p10_p4) target bundleno = 1 (0x1), region = 66 }

// kernel: model_forward.5
= control target key start
LH: loop header
LB: loop body
LE: loop exit
PB: predicated region body
PF: predicated region fallthrough
CT: control target
= control target key end

     0   :  { %s1650_s12 = smov 0   ;;  %s1914_s0 = inlined_call_operand.vmem [shape: bf16[2,9,9,128], index: 0, kind: input, shape index: {}]   ;;  %s1915_s1 = inlined_call_operand.vmem [shape: bf16[4,128,64], index: 1, kind: input, shape index: {}]   ;;  %s1916_s2 = inlined_call_operand.vmem [shape: f32[1,64], index: 2, kind: input, shape index: {}]   ;;  %s1917_s3 = inlined_call_operand.vmem [shape: bf16[2,64,64], index: 3, kind: output, shape index: {}]  }
   0x1 LB: > { %s1279_s13 = sadd.s32 4294967295, %s1627_s12   ;;  %p1283_p0 = scmp.ge.s32.totalorder %s1627_s12, 1  ;;  %s1627_s12 = sphi %s1650_s12, %s13_s12  }
   0x2   : > { %p137_p1 = scmp.lt.s32.totalorder %s1627_s12, 3 }
   0x4   : > { %p138_p2 = pnand %p1283_p0, %p137_p1 }
   0x5   : > { %p1667_p3 = scmp.lt.s32.totalorder (!%p138_p2), %s1279_s13, 1 }
   0x6   : > { %141 = sbr.rel (%p138_p2) target bundleno = 311 (0x137), region = 32 }
   0xb   : > { %v1581_v0 = vld [vmem:[%s1915_s1 + $0x38] sm:$0xff]   ;;  %v1582_v1 = vld [vmem:[%s1915_s1 + $0x30] sm:$0xff]   ;;  %vm172_vm0 = vcmask 523264   ;;  %v1584_v3 = vld [vmem:[%s1915_s1 + $0x28] sm:$0xff]   ;;  %v1629_v5 = vmov 0.0   ;;  %s1922_s13 = smov (!%p1667_p3, %s1279_s13), 1 }
   0xc   : > { %1475 = vmatprep.subr.bf16.mxu0 %v1581_v0  ;;  %v1583_v2 = vld [vmem:[%s1915_s1 + $0x78] sm:$0xff]   ;;  %v1585_v4 = vld [vmem:[%s1915_s1 + $0x70] sm:$0xff]   ;;  %175 = vst.msk [vmem:[#allocation2 + $0x10] sm:$0xff] %vm172_vm0, %v1629_v5  ;;  %173 = vst.msk [vmem:[#allocation2] sm:$0xff] %vm172_vm0, %v1629_v5  ;;  %s1571_s4 = smul.u32 72, %s1922_s13  ;;  %s1418_s8 = sshll.u32 %s1922_s13, 5 }
   0xd   : > { %1476 = vmatpush3.bf16.msra.mxu0 %v1581_v0  ;;  %1499 = vmatprep.subr.bf16.mxu1 %v1583_v2  ;;  %174 = vst.msk [vmem:[#allocation2 + $0x8] sm:$0xff] %vm172_vm0, %v1629_v5  ;;  %176 = vst.msk [vmem:[#allocation2 + $0x18] sm:$0xff] %vm172_vm0, %v1629_v5  ;;  %v1587_v6 = vld [vmem:[%s1915_s1 + $0x68] sm:$0xff]   ;;  %v1586_v7 = vld [vmem:[%s1915_s1 + $0x20] sm:$0xff]   ;;  %vm390_vm1 = vsmask.f32 3328  ;;  %s1891_s14 = scalar_lea.vmem %s1917_s3, %s1418_s8 }
   0xe   : > { %1477 = vmatprep.subr.bf16.mxu0 %v1582_v1  ;;  %177 = vst.msk [vmem:[#allocation2 + $0x20] sm:$0xff] %vm172_vm0, %v1629_v5  ;;  %178 = vst.msk [vmem:[#allocation2 + $0x28] sm:$0xff] %vm172_vm0, %v1629_v5  ;;  %1500 = vmatpush3.bf16.msra.mxu1 %v1583_v2  ;;  %v1589_v8 = vld [vmem:[%s1915_s1 + $0x60] sm:$0xff]   ;;  %v1588_v9 = vld [vmem:[%s1915_s1 + $0x18] sm:$0xff]   ;;  %s1708_s11 = scalar_lea.vmem %s1914_s0, %s1571_s4  ;;  %vm391_vm2 = vsmask.f32 7440 }
   0xf   : > { %179 = vst.msk [vmem:[#allocation2 + $0x30] sm:$0xff] %vm172_vm0, %v1629_v5  ;;  %180 = vst.msk [vmem:[#allocation2 + $0x38] sm:$0xff] %vm172_vm0, %v1629_v5  ;;  %1501 = vmatprep.subr.bf16.mxu1 %v1585_v4  ;;  %v1591_v10 = vld [vmem:[%s1915_s1 + $0x58] sm:$0xff]   ;;  %v1596_v11 = vld [vmem:[%s1708_s11] ss:$8 sps:$4 sm:$0xff]   ;;  %vm1215_vm4 = vcmask 519168  }
  0x10   : > { %v1590_v12 = vld [vmem:[%s1915_s1 + $0x10] sm:$0xff]   ;;  %1491 = vmatprep.mubr.bf16.mxu0 %v1596_v11  ;;  %v366_v14 = vld [vmem:[%s1708_s11] sm:$0xf]  ;;  %v367_v15 = vld [vmem:[%s1708_s11 + $0x4] sm:$0x1] }
  0x11   : > { %1478 = vmatpush3.bf16.msra.mxu0 %v1582_v1  ;;  %v1593_v13 = vld [vmem:[%s1915_s1 + $0x50] sm:$0xff]   ;;  %v368_v16 = vld [vmem:[%s1708_s11 + $0x8] sm:$0xf]  ;;  %v369_v19 = vld [vmem:[%s1708_s11 + $0xc] sm:$0x1]  ;;  %v394_v20 = vshrl.u32 %v366_v14, 16 }
  0x12   : > { %1479 = vmatprep.subr.bf16.mxu0 %v1584_v3  ;;  %1502 = vmatpush3.bf16.msra.mxu1 %v1585_v4  ;;  %v1592_v17 = vld [vmem:[%s1915_s1 + $0x8] sm:$0xff]   ;;  %v397_v21 = vshll.u32 %v366_v14, 16  ;;  %v403_v22 = vshll.u32 %v367_v15, 16  ;;  %v408_v23 = vshrl.u32 %v368_v16, 16  ;;  %v1594_v24 = vld [vmem:[%s1915_s1] sm:$0xff]   ;;  %v411_v25 = vshll.u32 %v368_v16, 16  ;;  %vm1739_vm3 = vmor %vm390_vm1, %vm391_vm2 }
  0x13   : > { %1503 = vmatprep.subr.bf16.mxu1 %v1587_v6  ;;  %v1595_v18 = vld [vmem:[%s1915_s1 + $0x48] sm:$0xff]   ;;  %v417_v26 = vshll.u32 %v369_v19, 16  ;;  %v396_v27 = vrot.slane %v394_v20, 4  ;;  %v370_v33 = vld [vmem:[%s1708_s11 + $0x10] sm:$0xf]  ;;  %v1598_v38 = vld [vmem:[%s1915_s1 + $0x40] sm:$0xff]  }
  0x14   : > { %v399_v28 = vrot.slane %v397_v21, 5  ;;  %v405_v29 = vrot.slane %v403_v22, 5  ;;  %v410_v30 = vrot.slane %v408_v23, 4  ;;  %v413_v31 = vrot.slane %v411_v25, 5  ;;  %v371_v35 = vld [vmem:[%s1708_s11 + $0x14] sm:$0x1] }
  0x15   : > { %1480 = vmatpush3.bf16.msra.mxu0 %v1584_v3  ;;  %v419_v32 = vrot.slane %v417_v26, 5  ;;  %v372_v36 = vld [vmem:[%s1708_s11 + $0x18] sm:$0xf]  ;;  %v373_v37 = vld [vmem:[%s1708_s11 + $0x1c] sm:$0x1]  ;;  %v422_v41 = vshrl.u32 %v370_v33, 16 }
  0x16   : > { %1481 = vmatprep.subr.bf16.mxu0 %v1586_v7  ;;  %1504 = vmatpush3.bf16.msra.mxu1 %v1587_v6  ;;  %v400_v34 = vor.u32 %v399_v28, %v396_v27  ;;  %v414_v40 = vor.u32 %v413_v31, %v410_v30  ;;  %v425_v42 = vshll.u32 %v370_v33, 16  ;;  %v431_v43 = vshll.u32 %v371_v35, 16  ;;  %v1599_v48 = vld [vmem:[%s1915_s1 + $0xb8] sm:$0xff]   ;;  %v1600_v63 = vld [vmem:[%s1915_s1 + $0xb0] sm:$0xff]   ;;  %v1606_v2 = vld [vmem:[%s1708_s11 + $0x20] ss:$8 sps:$4 sm:$0xff]  }
  0x17   : > { %1505 = vmatprep.subr.bf16.mxu1 %v1589_v8  ;;  %v436_v45 = vshrl.u32 %v372_v36, 16  ;;  %v439_v46 = vshll.u32 %v372_v36, 16  ;;  %v445_v47 = vshll.u32 %v373_v37, 16  ;;  %v424_v50 = vrot.slane %v422_v41, 4  ;;  %v1597_v52 = vld [vmem:[%s1708_s11 + $0x10] ss:$8 sps:$4 sm:$0xff]  }
  0x18   : > { %v401_v44 = vrot.slane %v400_v34, 4  ;;  %v415_v49 = vrot.slane %v414_v40, 4  ;;  %v427_v51 = vrot.slane %v425_v42, 5  ;;  %v1601_v57 = vld [vmem:[%s1915_s1 + $0xf8] sm:$0xff]   ;;  %v433_v59 = vrot.slane %v431_v43, 5  ;;  %v1602_v4 = vld [vmem:[%s1915_s1 + $0xa8] sm:$0xff]  }
  0x19   : > { %1482 = vmatpush3.bf16.msra.mxu0 %v1586_v7  ;;  %v438_v54 = vrot.slane %v436_v45, 4  ;;  %v441_v55 = vrot.slane %v439_v46, 5  ;;  %v447_v62 = vrot.slane %v445_v47, 5  ;;  %v1603_v7 = vld [vmem:[%s1915_s1 + $0xf0] sm:$0xff]   ;;  %v374_v11 = vld [vmem:[%s1708_s11 + $0x20] sm:$0xf] }
  0x1a   : > { %1483 = vmatprep.subr.bf16.mxu0 %v1588_v9  ;;  %1506 = vmatpush3.bf16.msra.mxu1 %v1589_v8  ;;  %v406_v53 = vsel %vm1739_vm3, %v401_v44, %v405_v29  ;;  %v420_v56 = vsel %vm1739_vm3, %v415_v49, %v419_v32  ;;  %v428_v58 = vor.u32 %v427_v51, %v424_v50  ;;  %v1607_v8 = vld [vmem:[%s1708_s11 + $0x30] ss:$8 sps:$4 sm:$0xff]   ;;  %v377_v14 = vld [vmem:[%s1708_s11 + $0x2c] sm:$0x1]  ;;  %v450_v15 = vshrl.u32 %v374_v11, 16 }
  0x1b   : > { %1507 = vmatprep.subr.bf16.mxu1 %v1591_v10  ;;  %v1315_v60 = vcombine.low %v406_v53, %v420_v56  ;;  %v442_v61 = vor.u32 %v441_v55, %v438_v54  ;;  %v453_v16 = vshll.u32 %v374_v11, 16  ;;  %v473_v20 = vshll.u32 %v377_v14, 16  ;;  %v378_v21 = vld [vmem:[%s1708_s11 + $0x30] sm:$0xf]  ;;  %v379_v22 = vld [vmem:[%s1708_s11 + $0x34] sm:$0x1] }
  0x1c   : > { %v429_v0 = vrot.slane %v428_v58, 4  ;;  %v452_v23 = vrot.slane %v450_v15, 4  ;;  %v380_v27 = vld [vmem:[%s1708_s11 + $0x38] sm:$0xf]  ;;  %v381_v30 = vld [vmem:[%s1708_s11 + $0x3c] sm:$0x1] }
  0x1d   : > { %1484 = vmatpush3.bf16.msra.mxu0 %v1588_v9  ;;  %1515 = vmatprep.mubr.bf16.mxu1 %v1315_v60  ;;  %v443_v1 = vrot.slane %v442_v61, 4  ;;  %v1604_v9 = vld [vmem:[%s1915_s1 + $0xa0] sm:$0xff]   ;;  %v475_v29 = vrot.slane %v473_v20, 5  ;;  %v478_v31 = vshrl.u32 %v378_v21, 16  ;;  %v481_v32 = vshll.u32 %v378_v21, 16  ;;  %v1608_v33 = vld [vmem:[%s1915_s1 + $0x98] sm:$0xff]  }
  0x1e   : > { %1485 = vmatprep.subr.bf16.mxu0 %v1590_v12  ;;  %1508 = vmatpush3.bf16.msra.mxu1 %v1591_v10  ;;  %v434_v3 = vsel %vm1739_vm3, %v429_v0, %v433_v59  ;;  %v1605_v10 = vld [vmem:[%s1915_s1 + $0xe8] sm:$0xff]   ;;  %v487_v35 = vshll.u32 %v379_v22, 16  ;;  %v492_v36 = vshrl.u32 %v380_v27, 16  ;;  %v495_v37 = vshll.u32 %v380_v27, 16  ;;  %v1610_v50 = vld [vmem:[%s1915_s1 + $0x90] sm:$0xff]   ;;  %v1611_v54 = vld [vmem:[%s1915_s1 + $0xd8] sm:$0xff]  }
  0x1f   : > { %1509 = vmatprep.subr.bf16.mxu1 %v1593_v13  ;;  %v448_v5 = vsel %vm1739_vm3, %v443_v1, %v447_v62  ;;  %v480_v41 = vrot.slane %v478_v31, 4  ;;  %v483_v42 = vrot.slane %v481_v32, 5  ;;  %v501_v43 = vshll.u32 %v381_v30, 16  ;;  %v1616_v59 = vld [vmem:[%s1708_s11 + $0x8] ss:$8 sps:$4 sm:$0xff]  }
  0x20   : > { %v1316_v6 = vcombine.low %v434_v3, %v448_v5  ;;  %v494_v45 = vrot.slane %v492_v36, 4  ;;  %v497_v46 = vrot.slane %v495_v37, 5  ;;  %v489_v49 = vrot.slane %v487_v35, 5  ;;  %v1612_v61 = vld [vmem:[%s1915_s1 + $0x88] sm:$0xff]   ;;  %v1613_v62 = vld [vmem:[%s1915_s1 + $0xd0] sm:$0xff]   ;;  %v1618_v37 = vld [vmem:[%s1915_s1 + $0xc0] sm:$0xff]  }
  0x21   : > { %1486 = vmatpush3.bf16.msra.mxu0 %v1590_v12  ;;  %v375_v12 = vld [vmem:[%s1708_s11 + $0x24] sm:$0x1]  ;;  %v503_v53 = vrot.slane %v501_v43, 5  ;;  %v1363_v0 = vld [vmem:[%s1708_s11 + $0x8] sm:$0xf]  ;;  %v195_v39 = vld [vmem:[#allocation2 + $0x30] sm:$0xff] }
  0x22   : > { %1487 = vmatprep.subr.bf16.mxu0 %v1592_v17  ;;  %1510 = vmatpush3.bf16.msra.mxu1 %v1593_v13  ;;  %v376_v13 = vld [vmem:[%s1708_s11 + $0x28] sm:$0xf]  ;;  %v1365_v3 = vld [vmem:[%s1708_s11 + $0x10] sm:$0xf]  ;;  %v879_v5 = vshrl.u32 %v1363_v0, 16 }
  0x23   : > { %1511 = vmatprep.subr.bf16.mxu1 %v1595_v18  ;;  %v467_v19 = vshll.u32 %v376_v13, 16  ;;  %v1615_v11 = vld [vmem:[%s1915_s1 + $0xc8] sm:$0xff]   ;;  %v1368_v14 = vld [vmem:[%s1708_s11 + $0x1c] sm:$0x1]  ;;  %v1369_v15 = vld [vmem:[%s1708_s11 + $0x20] sm:$0xf] }
  0x24   : > { %v1370_v20 = vld [vmem:[%s1708_s11 + $0x24] sm:$0x1]  ;;  %v921_v27 = vshrl.u32 %v1369_v15, 16  ;;  %v1617_v36 = vld [vmem:[%s1708_s11 + $0x18] ss:$8 sps:$4 sm:$0xff]  }
  0x25   : > { %1488 = vmatpush3.bf16.msra.mxu0 %v1592_v17  ;;  %v459_v17 = vshll.u32 %v375_v12, 16  ;;  %v469_v28 = vrot.slane %v467_v19, 5  ;;  %v896_v12 = vshll.u32 %v1365_v3, 16  ;;  %v930_v32 = vshll.u32 %v1370_v20, 16 }
  0x26   : > { %1489 = vmatprep.subr.bf16.mxu0 %v1594_v24  ;;  %1512 = vmatpush3.bf16.msra.mxu1 %v1595_v18  ;;  %v464_v18 = vshrl.u32 %v376_v13, 16 }
  0x27   : > { %1513 = vmatprep.subr.bf16.mxu1 %v1598_v38  ;;  %v461_v25 = vrot.slane %v459_v17, 5  ;;  %v898_v21 = vrot.slane %v896_v12, 5 }
  0x28   : > { %v466_v26 = vrot.slane %v464_v18, 4 }
  0x29   : > { %1490 = vmatpush3.bf16.msra.mxu0 %v1594_v24  ;;  %v455_v24 = vrot.slane %v453_v16, 5  ;;  %v881_v16 = vrot.slane %v879_v5, 4 }
  0x2a   : > { %1523 = vmatprep.subr.bf16.mxu0 %v1599_v48  ;;  %1514 = vmatpush3.bf16.msra.mxu1 %v1598_v38  ;;  %v1609_v38 = vld [vmem:[%s1915_s1 + $0xe0] sm:$0xff]   ;;  %v470_v40 = vor.u32 %v469_v28, %v466_v26  ;;  %v916_v26 = vshll.u32 %v1368_v14, 16  ;;  %v924_v28 = vshll.u32 %v1369_v15, 16 }
  0x2b   : > { %1547 = vmatprep.subr.bf16.mxu1 %v1601_v57  ;;  %v456_v34 = vor.u32 %v455_v24, %v452_v23 }
  0x2c   : > { %1492 = vmatmul.mubr.bf16.vlgmr.msra.gmra.mxu0 %v1597_v52  ;;  %v471_v47 = vrot.slane %v470_v40, 4  ;;  %v498_v52 = vor.u32 %v497_v46, %v494_v45  ;;  %v926_v35 = vrot.slane %v924_v28, 5  ;;  %v1619_v45 = vld [vmem:[%s1708_s11 + $0x28] ss:$8 sps:$4 sm:$0xff]  }
  0x2d   : > { %1524 = vmatpush3.bf16.msra.mxu0 %v1599_v48  ;;  %1495 = vmatprep.mubr.bf16.mxu0 %v1606_v2  ;;  %v457_v44 = vrot.slane %v456_v34, 4  ;;  %v484_v48 = vor.u32 %v483_v42, %v480_v41  ;;  %v1364_v2 = vld [vmem:[%s1708_s11 + $0xc] sm:$0x1]  ;;  %v923_v34 = vrot.slane %v921_v27, 4  ;;  %v918_v41 = vrot.slane %v916_v26, 5 }
  0x2e   : > { %1525 = vmatprep.subr.bf16.mxu0 %v1600_v63  ;;  %1516 = vmatmul.mubr.bf16.vlgmr.msra.gmra.mxu1 %v1316_v6  ;;  %v476_v55 = vsel %vm1739_vm3, %v471_v47, %v475_v29  ;;  %v499_v58 = vrot.slane %v498_v52, 4  ;;  %v882_v6 = vshll.u32 %v1363_v0, 16  ;;  %v932_v42 = vrot.slane %v930_v32, 5  ;;  %v1371_v46 = vld [vmem:[%s1708_s11 + $0x28] sm:$0xf] }
  0x2f   : > { %1548 = vmatpush3.bf16.msra.mxu1 %v1601_v57  ;;  %v462_v51 = vsel %vm1739_vm3, %v457_v44, %v461_v25  ;;  %v485_v56 = vrot.slane %v484_v48, 4  ;;  %v927_v44 = vor.u32 %v926_v35, %v923_v34  ;;  %v1372_v47 = vld [vmem:[%s1708_s11 + $0x2c] sm:$0x1]  ;;  %v1373_v48 = vld [vmem:[%s1708_s11 + $0x30] sm:$0xf]  ;;  %v935_v52 = vshrl.u32 %v1371_v46, 16 }
  0x30   : > { %1549 = vmatprep.subr.bf16.mxu1 %v1603_v7  ;;  %v1317_v57 = vcombine.low %v462_v51, %v476_v55  ;;  %v884_v17 = vrot.slane %v882_v6, 5  ;;  %v1374_v51 = vld [vmem:[%s1708_s11 + $0x34] sm:$0x1] }
  0x31   : > { %1526 = vmatpush3.bf16.msra.mxu0 %v1600_v63  ;;  %v490_v60 = vsel %vm1739_vm3, %v485_v56, %v489_v49  ;;  %v504_v63 = vsel %vm1739_vm3, %v499_v58, %v503_v53  ;;  %v938_v53 = vshll.u32 %v1371_v46, 16  ;;  %v928_v55 = vrot.slane %v927_v44, 4  ;;  %v1375_v58 = vld [vmem:[%s1708_s11 + $0x38] sm:$0xf]  ;;  %v190_v46 = vld [vmem:[#allocation2 + $0x8] sm:$0xff] }
  0x32   : > { %1527 = vmatprep.subr.bf16.mxu0 %v1602_v4  ;;  %v1318_v1 = vcombine.low %v490_v60, %v504_v63  ;;  %1519 = vmatprep.mubr.bf16.mxu1 %v1317_v57  ;;  %v885_v25 = vor.u32 %v884_v17, %v881_v16  ;;  %v944_v56 = vshll.u32 %v1372_v47, 16  ;;  %v949_v57 = vshrl.u32 %v1373_v48, 16  ;;  %v1376_v63 = vld [vmem:[%s1708_s11 + $0x3c] sm:$0x1] }
  0x33   : > { %1550 = vmatpush3.bf16.msra.mxu1 %v1603_v7  ;;  %v888_v7 = vshll.u32 %v1364_v2, 16  ;;  %v937_v60 = vrot.slane %v935_v52, 4  ;;  %v933_v0 = vsel %vm1739_vm3, %v928_v55, %v932_v42  ;;  %v972_v12 = vshll.u32 %v1376_v63, 16  ;;  %v192_v42 = vld [vmem:[#allocation2 + $0x18] sm:$0xff]  ;;  %v193_v52 = vld [vmem:[#allocation2 + $0x20] sm:$0xff] }
  0x34   : > { %1496 = vmatmul.mubr.bf16.gmra.mxu0 %v1607_v8  ;;  %1551 = vmatprep.subr.bf16.mxu1 %v1605_v10  ;;  %v893_v8 = vshrl.u32 %v1365_v3, 16  ;;  %v951_v2 = vrot.slane %v949_v57, 4  ;;  %v958_v3 = vshll.u32 %v1374_v51, 16 }
  0x35   : > { %1528 = vmatpush3.bf16.msra.mxu0 %v1602_v4  ;;  %v1366_v4 = vld [vmem:[%s1708_s11 + $0x14] sm:$0x1]  ;;  %1539 = vmatprep.mubr.bf16.mxu0 %v1616_v59  ;;  %v890_v18 = vrot.slane %v888_v7, 5  ;;  %v974_v26 = vrot.slane %v972_v12, 5 }
  0x36   : > { %1529 = vmatprep.subr.bf16.mxu0 %v1604_v9  ;;  %1520 = vmatmul.mubr.bf16.gmra.mxu1 %v1318_v1  ;;  %v902_v13 = vshll.u32 %v1366_v4, 16  ;;  %v895_v19 = vrot.slane %v893_v8, 4  ;;  %v946_v1 = vrot.slane %v944_v56, 5  ;;  %v1377_v4 = vld [vmem:[%s1708_s11 + $0x40] sm:$0xf]  ;;  %v196_v56 = vld [vmem:[#allocation2 + $0x38] sm:$0xff] }
  0x37   : > { %1552 = vmatpush3.bf16.msra.mxu1 %v1605_v10  ;;  %v1614_v10 = vld [vmem:[%s1915_s1 + $0x80] sm:$0xff]   ;;  %v980_v17 = vshll.u32 %v1377_v4, 16 }
  0x38   : > { %1553 = vmatprep.subr.bf16.mxu1 %v1609_v38  ;;  %v904_v22 = vrot.slane %v902_v13, 5  ;;  %v899_v29 = vor.u32 %v898_v21, %v895_v19  ;;  %v1378_v8 = vld [vmem:[%s1708_s11 + $0x44] sm:$0x1]  ;;  %v977_v13 = vshrl.u32 %v1377_v4, 16  ;;  %v1620_v21 = vld [vmem:[%s1708_s11 + $0x38] ss:$8 sps:$4 sm:$0xff]  }
  0x39   : > { %1530 = vmatpush3.bf16.msra.mxu0 %v1604_v9  ;;  %v1367_v9 = vld [vmem:[%s1708_s11 + $0x18] sm:$0xf]  ;;  %v986_v20 = vshll.u32 %v1378_v8, 16 }
  0x3a   : > { %1531 = vmatprep.subr.bf16.mxu0 %v1608_v33  ;;  %v907_v23 = vshrl.u32 %v1367_v9, 16  ;;  %v910_v24 = vshll.u32 %v1367_v9, 16  ;;  %v963_v9 = vshrl.u32 %v1375_v58, 16  ;;  %v979_v19 = vrot.slane %v977_v13, 4 }
  0x3b   : > { %1554 = vmatpush3.bf16.msra.mxu1 %v1609_v38  ;;  %v900_v38 = vrot.slane %v899_v29, 4  ;;  %v988_v29 = vrot.slane %v986_v20, 5 }
  0x3c   : > { %1555 = vmatprep.subr.bf16.mxu1 %v1611_v54  ;;  %v909_v30 = vrot.slane %v907_v23, 4  ;;  %v912_v31 = vrot.slane %v910_v24, 5  ;;  %v965_v16 = vrot.slane %v963_v9, 4  ;;  %v982_v24 = vrot.slane %v980_v17, 5 }
  0x3d   : > { %1532 = vmatpush3.bf16.msra.mxu0 %v1608_v33  ;;  %v886_v33 = vrot.slane %v885_v25, 4  ;;  %v905_v49 = vsel %vm1739_vm3, %v900_v38, %v904_v22  ;;  %v189_v38 = vld [vmem:[#allocation2] sm:$0xff] }
  0x3e   : > { %1533 = vmatprep.subr.bf16.mxu0 %v1610_v50  ;;  %v913_v40 = vor.u32 %v912_v31, %v909_v30  ;;  %v983_v28 = vor.u32 %v982_v24, %v979_v19 }
  0x3f   : > { %1556 = vmatpush3.bf16.msra.mxu1 %v1611_v54  ;;  %v891_v43 = vsel %vm1739_vm3, %v886_v33, %v890_v18 }
  0x40   : > { %1557 = vmatprep.subr.bf16.mxu1 %v1613_v62  ;;  %v1395_v54 = vcombine.low %v891_v43, %v905_v49  ;;  %v984_v32 = vrot.slane %v983_v28, 4 }
  0x41   : > { %1534 = vmatpush3.bf16.msra.mxu0 %v1610_v50  ;;  %v914_v50 = vrot.slane %v913_v40, 4 }
  0x42   : > { %1535 = vmatprep.subr.bf16.mxu0 %v1612_v61  ;;  %1563 = vmatprep.mubr.bf16.mxu1 %v1395_v54  ;;  %v989_v34 = vsel %vm1739_vm3, %v984_v32, %v988_v29 }
  0x43   : > { %1558 = vmatpush3.bf16.msra.mxu1 %v1613_v62  ;;  %v919_v59 = vsel %vm1739_vm3, %v914_v50, %v918_v41  ;;  %v952_v62 = vshll.u32 %v1373_v48, 16 }
  0x44   : > { %1559 = vmatprep.subr.bf16.mxu1 %v1615_v11  ;;  %v1396_v5 = vcombine.low %v919_v59, %v933_v0 }
  0x45   : > { %1536 = vmatpush3.bf16.msra.mxu0 %v1612_v61  ;;  %v940_v61 = vrot.slane %v938_v53, 5  ;;  %v954_v7 = vrot.slane %v952_v62, 5  ;;  %v194_v62 = vld [vmem:[#allocation2 + $0x28] sm:$0xff] }
  0x46   : > { %1537 = vmatprep.subr.bf16.mxu0 %v1614_v10 }
  0x47   : > { %1560 = vmatpush3.bf16.msra.mxu1 %v1615_v11  ;;  %v941_v6 = vor.u32 %v940_v61, %v937_v60  ;;  %v966_v11 = vshll.u32 %v1375_v58, 16  ;;  %v955_v15 = vor.u32 %v954_v7, %v951_v2 }
  0x48   : > { %1561 = vmatprep.subr.bf16.mxu1 %v1618_v37 }
  0x49   : > { %1538 = vmatpush3.bf16.msra.mxu0 %v1614_v10  ;;  %v960_v10 = vrot.slane %v958_v3, 5  ;;  %v942_v14 = vrot.slane %v941_v6, 4  ;;  %v968_v18 = vrot.slane %v966_v11, 5  ;;  %v956_v23 = vrot.slane %v955_v15, 4 }
  0x4b   : > { %1562 = vmatpush3.bf16.msra.mxu1 %v1618_v37  ;;  %v947_v22 = vsel %vm1739_vm3, %v942_v14, %v946_v1  ;;  %v969_v25 = vor.u32 %v968_v18, %v965_v16  ;;  %v961_v27 = vsel %vm1739_vm3, %v956_v23, %v960_v10 }
  0x4c   : > { %1540 = vmatmul.mubr.bf16.vlgmr.msra.gmra.mxu0 %v1617_v36  ;;  %v1397_v30 = vcombine.low %v947_v22, %v961_v27  ;;  %v191_v36 = vld [vmem:[#allocation2 + $0x10] sm:$0xff] }
  0x4d   : > { %1543 = vmatprep.mubr.bf16.mxu0 %v1619_v45  ;;  %v970_v31 = vrot.slane %v969_v25, 4 }
  0x4e   : > { %1564 = vmatmul.mubr.bf16.vlgmr.msra.gmra.mxu1 %v1396_v5 }
  0x4f   : > { %1567 = vmatprep.mubr.bf16.mxu1 %v1397_v30  ;;  %v975_v33 = vsel %vm1739_vm3, %v970_v31, %v974_v26 }
  0x50   : > { %v1398_v35 = vcombine.low %v975_v33, %v989_v34 }
  0x54   : > { %1544 = vmatmul.mubr.bf16.gmra.mxu0 %v1620_v21 }
  0x56   : > { %1568 = vmatmul.mubr.bf16.gmra.mxu1 %v1398_v35 }
  0xec   : > { %v1493_v37 = vpop.f32.mrf.mxu0 }
  0xed   : > { %v352_v40 = vadd.f32 %v1493_v37, %v191_v36 }
  0xee   : > { %v319_v41 = vpop.f32.mrf.mxu0  ;;  %v1517_v45 = vpop.f32.mrf.mxu1 }
  0xef   : > { %360 = vst.msk [vmem:[#allocation2 + $0x10] sm:$0xff] %vm172_vm0, %v352_v40  ;;  %v350_v43 = vadd.f32 %v319_v41, %v189_v38 }
  0xf0   : > { %v1494_v44 = vpop.f32.mrf.mxu0  ;;  %v620_v50 = vpop.f32.mrf.mxu1 }
  0xf1   : > { %358 = vst.msk [vmem:[#allocation2] sm:$0xff] %vm172_vm0, %v350_v43  ;;  %v353_v47 = vadd.f32 %v1494_v44, %v192_v42 }
  0xf2   : > { %v322_v48 = vpop.f32.mrf.mxu0  ;;  %v1518_v60 = vpop.f32.mrf.mxu1 }
  0xf3   : > { %361 = vst.msk [vmem:[#allocation2 + $0x18] sm:$0xff] %vm172_vm0, %v353_v47  ;;  %v351_v49 = vadd.f32 %v322_v48, %v190_v46 }
  0xf4   : > { %v1497_v51 = vpop.f32.mrf.mxu0  ;;  %v623_v6 = vpop.f32.mrf.mxu1 }
  0xf5   : > { %359 = vst.msk [vmem:[#allocation2 + $0x8] sm:$0xff] %vm172_vm0, %v351_v49  ;;  %v356_v53 = vadd.f32 %v1497_v51, %v195_v39 }
  0xf6   : > { %v384_v54 = vld [vmem:[#allocation2 + $0x10] sm:$0xff]  ;;  %v335_v55 = vpop.f32.mrf.mxu0  ;;  %v1521_v9 = vpop.f32.mrf.mxu1 }
  0xf7   : > { %v653_v57 = vadd.f32 %v1517_v45, %v384_v54  ;;  %364 = vst.msk [vmem:[#allocation2 + $0x30] sm:$0xff] %vm172_vm0, %v356_v53  ;;  %v354_v58 = vadd.f32 %v335_v55, %v193_v52 }
  0xf8   : > { %v382_v59 = vld [vmem:[#allocation2] sm:$0xff]  ;;  %v1498_v61 = vpop.f32.mrf.mxu0  ;;  %v636_v12 = vpop.f32.mrf.mxu1 }
  0xf9   : > { %661 = vst.msk [vmem:[#allocation2 + $0x10] sm:$0xff] %vm172_vm0, %v653_v57  ;;  %v651_v63 = vadd.f32 %v620_v50, %v382_v59  ;;  %362 = vst.msk [vmem:[#allocation2 + $0x20] sm:$0xff] %vm172_vm0, %v354_v58  ;;  %v357_v0 = vadd.f32 %v1498_v61, %v196_v56  ;;  %v1407_v58 = vld [vmem:[%s1916_s2] ss:$0 sm:$0xff] }
  0xfa   : > { %v385_v1 = vld [vmem:[#allocation2 + $0x18] sm:$0xff]  ;;  %v338_v2 = vpop.f32.mrf.mxu0  ;;  %v1522_v15 = vpop.f32.mrf.mxu1 }
  0xfb   : > { %659 = vst.msk [vmem:[#allocation2] sm:$0xff] %vm172_vm0, %v651_v63  ;;  %v654_v3 = vadd.f32 %v1518_v60, %v385_v1  ;;  %365 = vst.msk [vmem:[#allocation2 + $0x38] sm:$0xff] %vm172_vm0, %v357_v0  ;;  %v355_v4 = vadd.f32 %v338_v2, %v194_v62 }
  0xfc   : > { %v383_v5 = vld [vmem:[#allocation2 + $0x8] sm:$0xff]  ;;  %v639_v18 = vpop.f32.mrf.mxu1 }
  0xfd   : > { %662 = vst.msk [vmem:[#allocation2 + $0x18] sm:$0xff] %vm172_vm0, %v654_v3  ;;  %v652_v7 = vadd.f32 %v623_v6, %v383_v5  ;;  %363 = vst.msk [vmem:[#allocation2 + $0x28] sm:$0xff] %vm172_vm0, %v355_v4 }
  0xfe   : > { %v388_v8 = vld [vmem:[#allocation2 + $0x30] sm:$0xff] }
  0xff   : > { %660 = vst.msk [vmem:[#allocation2 + $0x8] sm:$0xff] %vm172_vm0, %v652_v7  ;;  %v657_v11 = vadd.f32 %v1521_v9, %v388_v8 }
 0x100   : > { %v386_v10 = vld [vmem:[#allocation2 + $0x20] sm:$0xff]  ;;  %v678_v20 = vld [vmem:[#allocation2 + $0x10] sm:$0xff] }
 0x101   : > { %665 = vst.msk [vmem:[#allocation2 + $0x30] sm:$0xff] %vm172_vm0, %v657_v11  ;;  %v655_v14 = vadd.f32 %v636_v12, %v386_v10 }
 0x102   : > { %v389_v13 = vld [vmem:[#allocation2 + $0x38] sm:$0xff]  ;;  %v676_v23 = vld [vmem:[#allocation2] sm:$0xff] }
 0x103   : > { %663 = vst.msk [vmem:[#allocation2 + $0x20] sm:$0xff] %vm172_vm0, %v655_v14  ;;  %v658_v17 = vadd.f32 %v1522_v15, %v389_v13 }
 0x104   : > { %v387_v16 = vld [vmem:[#allocation2 + $0x28] sm:$0xff]  ;;  %v679_v26 = vld [vmem:[#allocation2 + $0x18] sm:$0xff] }
 0x105   : > { %666 = vst.msk [vmem:[#allocation2 + $0x38] sm:$0xff] %vm172_vm0, %v658_v17  ;;  %v656_v19 = vadd.f32 %v639_v18, %v387_v16 }
 0x106   : > { %v677_v30 = vld [vmem:[#allocation2 + $0x8] sm:$0xff] }
 0x107   : > { %664 = vst.msk [vmem:[#allocation2 + $0x28] sm:$0xff] %vm172_vm0, %v656_v19 }
 0x108   : > { %v682_v33 = vld [vmem:[#allocation2 + $0x30] sm:$0xff] }
 0x10a   : > { %v680_v40 = vld [vmem:[#allocation2 + $0x20] sm:$0xff] }
 0x10c   : > { %v1541_v21 = vpop.f32.mrf.mxu0  ;;  %v683_v46 = vld [vmem:[#allocation2 + $0x38] sm:$0xff] }
 0x10d   : > { %v840_v22 = vadd.f32 %v1541_v21, %v678_v20 }
 0x10e   : > { %v807_v24 = vpop.f32.mrf.mxu0  ;;  %v1565_v28 = vpop.f32.mrf.mxu1  ;;  %v681_v51 = vld [vmem:[#allocation2 + $0x28] sm:$0xff] }
 0x10f   : > { %848 = vst.msk [vmem:[#allocation2 + $0x10] sm:$0xff] %vm172_vm0, %v840_v22  ;;  %v838_v25 = vadd.f32 %v807_v24, %v676_v23 }
 0x110   : > { %v1542_v27 = vpop.f32.mrf.mxu0  ;;  %v1105_v32 = vpop.f32.mrf.mxu1 }
 0x111   : > { %846 = vst.msk [vmem:[#allocation2] sm:$0xff] %vm172_vm0, %v838_v25  ;;  %v841_v29 = vadd.f32 %v1542_v27, %v679_v26 }
 0x112   : > { %v810_v31 = vpop.f32.mrf.mxu0  ;;  %v1566_v36 = vpop.f32.mrf.mxu1 }
 0x113   : > { %849 = vst.msk [vmem:[#allocation2 + $0x18] sm:$0xff] %vm172_vm0, %v841_v29  ;;  %v839_v34 = vadd.f32 %v810_v31, %v677_v30 }
 0x114   : > { %v1545_v35 = vpop.f32.mrf.mxu0  ;;  %v1108_v42 = vpop.f32.mrf.mxu1 }
 0x115   : > { %847 = vst.msk [vmem:[#allocation2 + $0x8] sm:$0xff] %vm172_vm0, %v839_v34  ;;  %v844_v37 = vadd.f32 %v1545_v35, %v682_v33 }
 0x116   : > { %v872_v38 = vld [vmem:[#allocation2 + $0x10] sm:$0xff]  ;;  %v823_v41 = vpop.f32.mrf.mxu0  ;;  %v1569_v49 = vpop.f32.mrf.mxu1 }
 0x117   : > { %v1138_v43 = vadd.f32 %v1565_v28, %v872_v38  ;;  %852 = vst.msk [vmem:[#allocation2 + $0x30] sm:$0xff] %vm172_vm0, %v844_v37  ;;  %v842_v44 = vadd.f32 %v823_v41, %v680_v40 }
 0x118   : > { %v870_v45 = vld [vmem:[#allocation2] sm:$0xff]  ;;  %v1546_v47 = vpop.f32.mrf.mxu0  ;;  %v1121_v56 = vpop.f32.mrf.mxu1 }
 0x119   : > { %1146 = vst.msk [vmem:[#allocation2 + $0x10] sm:$0xff] %vm172_vm0, %v1138_v43  ;;  %v1136_v48 = vadd.f32 %v1105_v32, %v870_v45  ;;  %850 = vst.msk [vmem:[#allocation2 + $0x20] sm:$0xff] %vm172_vm0, %v842_v44  ;;  %v845_v39 = vadd.f32 %v1546_v47, %v683_v46 }
 0x11a   : > { %v873_v50 = vld [vmem:[#allocation2 + $0x18] sm:$0xff]  ;;  %v826_v52 = vpop.f32.mrf.mxu0  ;;  %v1570_v63 = vpop.f32.mrf.mxu1 }
 0x11b   : > { %1144 = vst.msk [vmem:[#allocation2] sm:$0xff] %vm172_vm0, %v1136_v48  ;;  %v1139_v53 = vadd.f32 %v1566_v36, %v873_v50  ;;  %853 = vst.msk [vmem:[#allocation2 + $0x38] sm:$0xff] %vm172_vm0, %v845_v39  ;;  %v843_v54 = vadd.f32 %v826_v52, %v681_v51 }
 0x11c   : > { %v871_v55 = vld [vmem:[#allocation2 + $0x8] sm:$0xff]  ;;  %v1124_v9 = vpop.f32.mrf.mxu1 }
 0x11d   : > { %1147 = vst.msk [vmem:[#allocation2 + $0x18] sm:$0xff] %vm172_vm0, %v1139_v53  ;;  %v1137_v57 = vadd.f32 %v1108_v42, %v871_v55  ;;  %851 = vst.msk [vmem:[#allocation2 + $0x28] sm:$0xff] %vm172_vm0, %v843_v54 }
 0x11e   : > { %v876_v59 = vld [vmem:[#allocation2 + $0x30] sm:$0xff] }
 0x11f   : > { %1145 = vst.msk [vmem:[#allocation2 + $0x8] sm:$0xff] %vm172_vm0, %v1137_v57  ;;  %v1142_v60 = vadd.f32 %v1569_v49, %v876_v59 }
 0x120   : > { %v1154_v61 = vld [vmem:[#allocation2 + $0x10] sm:$0xff]  ;;  %v874_v62 = vld [vmem:[#allocation2 + $0x20] sm:$0xff] }
 0x121   : > { %v1169_v0 = vadd.f32 %v1407_v58, %v1154_v61  ;;  %1150 = vst.msk [vmem:[#allocation2 + $0x30] sm:$0xff] %vm172_vm0, %v1142_v60  ;;  %v1140_v1 = vadd.f32 %v1121_v56, %v874_v62 }
 0x122   : > { %v1152_v2 = vld [vmem:[#allocation2] sm:$0xff]  ;;  %v877_v3 = vld [vmem:[#allocation2 + $0x38] sm:$0xff] }
 0x123   : > { %v1177_v4 = vmax.f32 %v1169_v0, 0.0  ;;  %v1167_v5 = vadd.f32 %v1407_v58, %v1152_v2  ;;  %1148 = vst.msk [vmem:[#allocation2 + $0x20] sm:$0xff] %vm172_vm0, %v1140_v1  ;;  %v1143_v6 = vadd.f32 %v1570_v63, %v877_v3 }
 0x124   : > { %v1155_v7 = vld [vmem:[#allocation2 + $0x18] sm:$0xff]  ;;  %v875_v8 = vld [vmem:[#allocation2 + $0x28] sm:$0xff] }
 0x125   : > { %v1421_v10 = vpack.c.bf16 %v1177_v4, %v1177_v4  ;;  %v1175_v11 = vmax.f32 %v1167_v5, 0.0  ;;  %v1170_v12 = vadd.f32 %v1407_v58, %v1155_v7  ;;  %1151 = vst.msk [vmem:[#allocation2 + $0x38] sm:$0xff] %vm172_vm0, %v1143_v6  ;;  %v1141_v13 = vadd.f32 %v1124_v9, %v875_v8 }
 0x126   : > { %v1153_v14 = vld [vmem:[#allocation2 + $0x8] sm:$0xff] }
 0x127   : > { %1218 = vst.msk [vmem:[%s1891_s14 + $0x8] sm:$0xf] %vm1215_vm4, %v1421_v10  ;;  %v1419_v15 = vpack.c.bf16 %v1175_v11, %v1175_v11  ;;  %v1178_v16 = vmax.f32 %v1170_v12, 0.0  ;;  %v1168_v17 = vadd.f32 %v1407_v58, %v1153_v14 }
 0x128   : > { %1149 = vst.msk [vmem:[#allocation2 + $0x28] sm:$0xff] %vm172_vm0, %v1141_v13  ;;  %v1158_v18 = vld [vmem:[#allocation2 + $0x30] sm:$0xff] }
 0x129   : > { %1216 = vst.msk [vmem:[%s1891_s14] sm:$0xf] %vm1215_vm4, %v1419_v15  ;;  %v1422_v19 = vpack.c.bf16 %v1178_v16, %v1178_v16  ;;  %v1176_v20 = vmax.f32 %v1168_v17, 0.0  ;;  %v1173_v21 = vadd.f32 %v1407_v58, %v1158_v18 }
 0x12a   : > { %v1156_v22 = vld [vmem:[#allocation2 + $0x20] sm:$0xff] }
 0x12b   : > { %1219 = vst.msk [vmem:[%s1891_s14 + $0xc] sm:$0xf] %vm1215_vm4, %v1422_v19  ;;  %v1420_v23 = vpack.c.bf16 %v1176_v20, %v1176_v20  ;;  %v1181_v24 = vmax.f32 %v1173_v21, 0.0  ;;  %v1171_v25 = vadd.f32 %v1407_v58, %v1156_v22 }
 0x12c   : > { %v1159_v26 = vld [vmem:[#allocation2 + $0x38] sm:$0xff] }
 0x12d   : > { %1217 = vst.msk [vmem:[%s1891_s14 + $0x4] sm:$0xf] %vm1215_vm4, %v1420_v23  ;;  %v1425_v27 = vpack.c.bf16 %v1181_v24, %v1181_v24  ;;  %v1179_v28 = vmax.f32 %v1171_v25, 0.0  ;;  %v1174_v29 = vadd.f32 %v1407_v58, %v1159_v26 }
 0x12f   : > { %v1157_v30 = vld [vmem:[#allocation2 + $0x28] sm:$0xff]  ;;  %1222 = vst.msk [vmem:[%s1891_s14 + $0x18] sm:$0xf] %vm1215_vm4, %v1425_v27  ;;  %v1423_v31 = vpack.c.bf16 %v1179_v28, %v1179_v28  ;;  %v1182_v32 = vmax.f32 %v1174_v29, 0.0 }
 0x130   : > { %v1172_v33 = vadd.f32 %v1407_v58, %v1157_v30 }
 0x131   : > { %1220 = vst.msk [vmem:[%s1891_s14 + $0x10] sm:$0xf] %vm1215_vm4, %v1423_v31  ;;  %v1426_v34 = vpack.c.bf16 %v1182_v32, %v1182_v32 }
 0x132   : > { %v1180_v35 = vmax.f32 %v1172_v33, 0.0 }
 0x133   : > { %1223 = vst.msk [vmem:[%s1891_s14 + $0x1c] sm:$0xf] %vm1215_vm4, %v1426_v34 }
 0x134   : > { %v1424_v36 = vpack.c.bf16 %v1180_v35, %v1180_v35 }
 0x136   : > { %1221 = vst.msk [vmem:[%s1891_s14 + $0x14] sm:$0xf] %vm1215_vm4, %v1424_v36 }
 0x137 PF: > { %s13_s12 = sadd.s32 1, %s1627_s12  }
 0x138   : > { %p10_p4 = scmp.ge.s32.totalorder %s13_s12, 4  }
 0x13a   :  { %12 = sbr.rel (!%p10_p4) target bundleno = 1 (0x1), region = 66 }

// kernel: model_forward.6
= control target key start
LH: loop header
LB: loop body
LE: loop exit
PB: predicated region body
PF: predicated region fallthrough
CT: control target
= control target key end

     0   :  { %s2888_s12 = smov 0   ;;  %s3328_s0 = inlined_call_operand.vmem [shape: bf16[2,10,10,64], index: 0, kind: input, shape index: {}]   ;;  %s3329_s1 = inlined_call_operand.vmem [shape: bf16[9,64,128], index: 1, kind: input, shape index: {}]   ;;  %s3330_s2 = inlined_call_operand.vmem [shape: f32[1,128], index: 2, kind: input, shape index: {}]   ;;  %s3331_s3 = inlined_call_operand.vmem [shape: bf16[2,64,128], index: 3, kind: output, shape index: {}]  }
   0x1 LB: > { %s2252_s13 = sadd.s32 4294967295, %s2866_s12   ;;  %p2256_p0 = scmp.ge.s32.totalorder %s2866_s12, 1  ;;  %s2866_s12 = sphi %s2888_s12, %s13_s12  }
   0x2   : > { %p137_p1 = scmp.lt.s32.totalorder %s2866_s12, 3 }
   0x4   : > { %p138_p2 = pnand %p2256_p0, %p137_p1 }
   0x6   : > { %141 = sbr.rel (%p138_p2) target bundleno = 316 (0x13c), region = 32 }
   0xb   : > { %v2812_v0 = vld [vmem:[%s3329_s1 + $0x18] sm:$0xff]   ;;  %p161_p3 = scmp.lt.s32.totalorder %s2252_s13, 1  ;;  %v2814_v2 = vld [vmem:[%s3329_s1 + $0x10] sm:$0xff]   ;;  %v2816_v4 = vld [vmem:[%s3329_s1 + $0x8] sm:$0xff]   ;;  %vm248_vm0 = vcmask 523264   ;;  %vm659_vm4 = vcmask 1042432  }
   0xc   : > { %v2813_v1 = vld [vmem:[%s3329_s1 + $0x38] sm:$0xff]   ;;  %2651 = vmatprep.subr.bf16.mxu0 %v2812_v0  ;;  %v2815_v3 = vld [vmem:[%s3329_s1 + $0x30] sm:$0xff]   ;;  %v2817_v5 = vld [vmem:[%s3329_s1 + $0x28] sm:$0xff]   ;;  %vm366_vm1 = vsmask.f32 3328  ;;  %vm660_vm5 = vcmask 1046532  }
   0xd   : > { %s3345_s13 = smov (!%p161_p3, %s2252_s13), 1  ;;  %2667 = vmatprep.subr.bf16.mxu1 %v2813_v1  ;;  %2652 = vmatpush3.bf16.msra.mxu0 %v2812_v0  ;;  %v2818_v6 = vld [vmem:[%s3329_s1] sm:$0xff]   ;;  %vm367_vm2 = vsmask.f32 7440  ;;  %v2822_v20 = vld [vmem:[%s3329_s1 + $0x58] sm:$0xff]   ;;  %v2824_v38 = vld [vmem:[%s3329_s1 + $0x50] sm:$0xff]  }
   0xe   : > { %2668 = vmatpush3.bf16.msra.mxu1 %v2813_v1  ;;  %2653 = vmatprep.subr.bf16.mxu0 %v2814_v2  ;;  %s2803_s24 = smul.u32 80, %s3345_s13  ;;  %v2819_v8 = vld [vmem:[%s3329_s1 + $0x20] sm:$0xff]   ;;  %v2941_v21 = vld [vmem:[%s3329_s1 + $0x78] sm:$0xff]   ;;  %vm2949_vm3 = vmor %vm366_vm1, %vm367_vm2  ;;  %s2547_s18 = sshll.u32 %s3345_s13, 5 }
   0xf   : > { %2669 = vmatprep.subr.bf16.mxu1 %v2815_v3  ;;  %v2828_v60 = vld [vmem:[%s3329_s1 + $0x48] sm:$0xff]   ;;  %vm3006_vm6 = vmor %vm659_vm4, %vm660_vm5  ;;  %s170_s21 = scalar_lea.vmem %s3331_s3, %s2547_s18 }
  0x10   : > { %s2923_s4 = scalar_lea.vmem %s3328_s0, %s2803_s24 }
  0x11   : > { %2654 = vmatpush3.bf16.msra.mxu0 %v2814_v2  ;;  %v2820_v7 = vld [vmem:[%s2923_s4] ss:$8 sps:$4 sm:$0xff]   ;;  %v343_v10 = vld [vmem:[%s2923_s4 + $0x4] sm:$0x1]  ;;  %v345_v12 = vld [vmem:[%s2923_s4 + $0xc] sm:$0x1] }
  0x12   : > { %2670 = vmatpush3.bf16.msra.mxu1 %v2815_v3  ;;  %2655 = vmatprep.subr.bf16.mxu0 %v2816_v4  ;;  %v342_v9 = vld [vmem:[%s2923_s4] sm:$0xf]  ;;  %v344_v11 = vld [vmem:[%s2923_s4 + $0x8] sm:$0xf]  ;;  %v2821_v13 = vld [vmem:[%s2923_s4 + $0x10] ss:$8 sps:$4 sm:$0xff]  }
  0x13   : > { %2671 = vmatprep.subr.bf16.mxu1 %v2817_v5  ;;  %2659 = vmatprep.mubr.msk.bf16.mxu0 %vm248_vm0, %v2820_v7  ;;  %v370_v14 = vshrl.u32 %v342_v9, 16  ;;  %v373_v15 = vshll.u32 %v342_v9, 16  ;;  %v379_v16 = vshll.u32 %v343_v10, 16  ;;  %v384_v17 = vshrl.u32 %v344_v11, 16  ;;  %v346_v28 = vld [vmem:[%s2923_s4 + $0x10] sm:$0xf] }
  0x14   : > { %v387_v18 = vshll.u32 %v344_v11, 16  ;;  %v393_v19 = vshll.u32 %v345_v12, 16  ;;  %v347_v30 = vld [vmem:[%s2923_s4 + $0x14] sm:$0x1]  ;;  %v348_v31 = vld [vmem:[%s2923_s4 + $0x18] sm:$0xf] }
  0x15   : > { %2656 = vmatpush3.bf16.msra.mxu0 %v2816_v4  ;;  %v372_v22 = vrot.slane %v370_v14, 4  ;;  %v375_v23 = vrot.slane %v373_v15, 5  ;;  %v381_v24 = vrot.slane %v379_v16, 5  ;;  %v386_v25 = vrot.slane %v384_v17, 4  ;;  %v349_v32 = vld [vmem:[%s2923_s4 + $0x1c] sm:$0x1] }
  0x16   : > { %2672 = vmatpush3.bf16.msra.mxu1 %v2817_v5  ;;  %2657 = vmatprep.subr.bf16.mxu0 %v2818_v6  ;;  %v389_v26 = vrot.slane %v387_v18, 5  ;;  %v395_v27 = vrot.slane %v393_v19, 5  ;;  %v398_v35 = vshrl.u32 %v346_v28, 16  ;;  %v401_v36 = vshll.u32 %v346_v28, 16  ;;  %v2826_v53 = vld [vmem:[%s2923_s4 + $0x20] ss:$8 sps:$4 sm:$0xff]  }
  0x17   : > { %2673 = vmatprep.subr.bf16.mxu1 %v2819_v8  ;;  %v376_v29 = vor.u32 %v375_v23, %v372_v22  ;;  %v407_v37 = vshll.u32 %v347_v30, 16  ;;  %v412_v40 = vshrl.u32 %v348_v31, 16  ;;  %v415_v41 = vshll.u32 %v348_v31, 16  ;;  %v2827_v56 = vld [vmem:[%s2923_s4 + $0x30] ss:$8 sps:$4 sm:$0xff]   ;;  %v2830_v9 = vld [vmem:[%s3329_s1 + $0x40] sm:$0xff]  }
  0x18   : > { %v390_v34 = vor.u32 %v389_v26, %v386_v25  ;;  %v421_v42 = vshll.u32 %v349_v32, 16  ;;  %v400_v44 = vrot.slane %v398_v35, 4  ;;  %v403_v45 = vrot.slane %v401_v36, 5  ;;  %v350_v58 = vld [vmem:[%s2923_s4 + $0x20] sm:$0xf]  ;;  %v2825_v11 = vld [vmem:[%s3329_s1 + $0x70] sm:$0xff]  }
  0x19   : > { %2658 = vmatpush3.bf16.msra.mxu0 %v2818_v6  ;;  %v377_v39 = vrot.slane %v376_v29, 4  ;;  %v409_v46 = vrot.slane %v407_v37, 5  ;;  %v414_v48 = vrot.slane %v412_v40, 4  ;;  %v417_v49 = vrot.slane %v415_v41, 5  ;;  %v351_v59 = vld [vmem:[%s2923_s4 + $0x24] sm:$0x1] }
  0x1a   : > { %2674 = vmatpush3.bf16.msra.mxu1 %v2819_v8  ;;  %2683 = vmatprep.subr.bf16.mxu0 %v2822_v20  ;;  %v391_v43 = vrot.slane %v390_v34, 4  ;;  %v423_v50 = vrot.slane %v421_v42, 5  ;;  %v404_v52 = vor.u32 %v403_v45, %v400_v44  ;;  %v352_v62 = vld [vmem:[%s2923_s4 + $0x28] sm:$0xf]  ;;  %v353_v63 = vld [vmem:[%s2923_s4 + $0x2c] sm:$0x1] }
  0x1b   : > { %2699 = vmatprep.subr.bf16.mxu1 %v2941_v21  ;;  %v382_v47 = vsel %vm2949_vm3, %v377_v39, %v381_v24  ;;  %v418_v55 = vor.u32 %v417_v49, %v414_v48  ;;  %v426_v0 = vshrl.u32 %v350_v58, 16  ;;  %v429_v2 = vshll.u32 %v350_v58, 16  ;;  %v354_v17 = vld [vmem:[%s2923_s4 + $0x30] sm:$0xf]  ;;  %v2829_v19 = vld [vmem:[%s3329_s1 + $0x68] sm:$0xff]   ;;  %v2996_v28 = vld [vmem:[%s3329_s1 + $0x98] sm:$0xff]  }
  0x1c   : > { %2660 = vmatmul.mubr.msk.bf16.vlgmr.msra.gmra.mxu0 %vm248_vm0, %v2821_v13  ;;  %v396_v51 = vsel %vm2949_vm3, %v391_v43, %v395_v27  ;;  %v405_v57 = vrot.slane %v404_v52, 4  ;;  %v435_v3 = vshll.u32 %v351_v59, 16  ;;  %v440_v4 = vshrl.u32 %v352_v62, 16  ;;  %v356_v22 = vld [vmem:[%s2923_s4 + $0x38] sm:$0xf]  ;;  %v2831_v41 = vld [vmem:[%s3329_s1 + $0x60] sm:$0xff]  }
  0x1d   : > { %2684 = vmatpush3.bf16.msra.mxu0 %v2822_v20  ;;  %v2280_v54 = vcombine.low %v382_v47, %v396_v51  ;;  %2663 = vmatprep.mubr.msk.bf16.mxu0 %vm248_vm0, %v2826_v53  ;;  %v419_v61 = vrot.slane %v418_v55, 4  ;;  %v428_v6 = vrot.slane %v426_v0, 4  ;;  %v443_v7 = vshll.u32 %v352_v62, 16  ;;  %v355_v20 = vld [vmem:[%s2923_s4 + $0x34] sm:$0x1] }
  0x1e   : > { %2685 = vmatprep.subr.bf16.mxu0 %v2824_v38  ;;  %v410_v1 = vsel %vm2949_vm3, %v405_v57, %v409_v46  ;;  %v449_v8 = vshll.u32 %v353_v63, 16  ;;  %v431_v12 = vrot.slane %v429_v2, 5  ;;  %v437_v13 = vrot.slane %v435_v3, 5  ;;  %v357_v23 = vld [vmem:[%s2923_s4 + $0x3c] sm:$0x1] }
  0x1f   : > { %2675 = vmatprep.mubr.msk.bf16.mxu1 %vm248_vm0, %v2280_v54  ;;  %v424_v5 = vsel %vm2949_vm3, %v419_v61, %v423_v50  ;;  %v442_v14 = vrot.slane %v440_v4, 4  ;;  %v445_v15 = vrot.slane %v443_v7, 5  ;;  %v454_v25 = vshrl.u32 %v354_v17, 16  ;;  %v619_v45 = vld [vmem:[%s2923_s4] sm:$0xe]  ;;  %v2834_v4 = vld [vmem:[%s3329_s1 + $0xb8] sm:$0xff]  }
  0x20   : > { %v2281_v10 = vcombine.low %v410_v1, %v424_v5  ;;  %v451_v16 = vrot.slane %v449_v8, 5  ;;  %v432_v18 = vor.u32 %v431_v12, %v428_v6  ;;  %v457_v26 = vshll.u32 %v354_v17, 16  ;;  %v620_v46 = vld [vmem:[%s2923_s4 + $0x4] sm:$0x1]  ;;  %v621_v47 = vld [vmem:[%s2923_s4 + $0x8] sm:$0xe] }
  0x21   : > { %2686 = vmatpush3.bf16.msra.mxu0 %v2824_v38  ;;  %v446_v24 = vor.u32 %v445_v15, %v442_v14  ;;  %v463_v27 = vshll.u32 %v355_v20, 16  ;;  %v468_v30 = vshrl.u32 %v356_v22, 16  ;;  %v471_v31 = vshll.u32 %v356_v22, 16  ;;  %v622_v50 = vld [vmem:[%s2923_s4 + $0xc] sm:$0x1]  ;;  %v2836_v12 = vld [vmem:[%s3329_s1 + $0x90] sm:$0xff]  }
  0x22   : > { %2687 = vmatprep.subr.bf16.mxu0 %v2828_v60  ;;  %2676 = vmatmul.mubr.msk.bf16.vlgmr.msra.gmra.mxu1 %vm248_vm0, %v2281_v10  ;;  %v433_v29 = vrot.slane %v432_v18, 4  ;;  %v477_v32 = vshll.u32 %v357_v23, 16  ;;  %v459_v35 = vrot.slane %v457_v26, 5  ;;  %v2292_v51 = vrot.slane %v619_v45, 9  ;;  %v623_v53 = vld [vmem:[%s2923_s4 + $0x10] sm:$0xe] }
  0x23   : > { %2700 = vmatpush3.bf16.msra.mxu1 %v2941_v21  ;;  %v447_v34 = vrot.slane %v446_v24, 4  ;;  %v456_v21 = vrot.slane %v454_v25, 4  ;;  %v465_v36 = vrot.slane %v463_v27, 5  ;;  %v470_v38 = vrot.slane %v468_v30, 4  ;;  %v624_v57 = vld [vmem:[%s2923_s4 + $0x14] sm:$0x1] }
  0x24   : > { %2664 = vmatmul.mubr.msk.bf16.gmra.mxu0 %vm248_vm0, %v2827_v56  ;;  %2701 = vmatprep.subr.bf16.mxu1 %v2825_v11  ;;  %v438_v37 = vsel %vm2949_vm3, %v433_v29, %v437_v13  ;;  %v473_v39 = vrot.slane %v471_v31, 5  ;;  %v479_v40 = vrot.slane %v477_v32, 5  ;;  %v664_v52 = vrot.slane %v620_v46, 5  ;;  %v625_v61 = vld [vmem:[%s2923_s4 + $0x18] sm:$0xe]  ;;  %v2837_v24 = vld [vmem:[%s3329_s1 + $0xb0] sm:$0xff]  }
  0x25   : > { %2688 = vmatpush3.bf16.msra.mxu0 %v2828_v60  ;;  %v452_v43 = vsel %vm2949_vm3, %v447_v34, %v451_v16  ;;  %v460_v44 = vor.u32 %v459_v35, %v456_v21  ;;  %v2293_v55 = vrot.slane %v621_v47, 9  ;;  %v668_v56 = vrot.slane %v622_v50, 5  ;;  %v626_v62 = vld [vmem:[%s2923_s4 + $0x1c] sm:$0x1]  ;;  %v2832_v8 = vld [vmem:[%s2923_s4 + $0x8] ss:$8 sps:$4 sm:$0xff]  }
  0x26   : > { %2689 = vmatprep.subr.bf16.mxu0 %v2830_v9  ;;  %v2282_v48 = vcombine.low %v438_v37, %v452_v43  ;;  %v474_v49 = vor.u32 %v473_v39, %v470_v38  ;;  %v2294_v58 = vrot.slane %v623_v53, 9  ;;  %v665_v60 = vsel %vm3006_vm6, %v2292_v51, %v664_v52  ;;  %v627_v13 = vld [vmem:[%s2923_s4 + $0x20] sm:$0xe]  ;;  %v628_v15 = vld [vmem:[%s2923_s4 + $0x24] sm:$0x1]  ;;  %v2839_v37 = vld [vmem:[%s3329_s1 + $0x88] sm:$0xff]  }
  0x27   : > { %2702 = vmatpush3.bf16.msra.mxu1 %v2825_v11  ;;  %v461_v54 = vrot.slane %v460_v44, 4  ;;  %v672_v63 = vrot.slane %v624_v57, 5  ;;  %v669_v1 = vsel %vm3006_vm6, %v2293_v55, %v668_v56  ;;  %v2295_v2 = vrot.slane %v625_v61, 9  ;;  %v2835_v14 = vld [vmem:[%s2923_s4 + $0x18] ss:$8 sps:$4 sm:$0xff]  }
  0x28   : > { %2703 = vmatprep.subr.bf16.mxu1 %v2829_v19  ;;  %2679 = vmatprep.mubr.msk.bf16.mxu1 %vm248_vm0, %v2282_v48  ;;  %v475_v59 = vrot.slane %v474_v49, 4  ;;  %v676_v3 = vrot.slane %v626_v62, 5  ;;  %v2308_v6 = vcombine.low %v665_v60, %v669_v1  ;;  %v629_v16 = vld [vmem:[%s2923_s4 + $0x28] sm:$0xe]  ;;  %v630_v17 = vld [vmem:[%s2923_s4 + $0x2c] sm:$0x1] }
  0x29   : > { %2690 = vmatpush3.bf16.msra.mxu0 %v2830_v9  ;;  %v466_v0 = vsel %vm2949_vm3, %v461_v54, %v465_v36  ;;  %v673_v7 = vsel %vm3006_vm6, %v2294_v58, %v672_v63  ;;  %v2296_v18 = vrot.slane %v627_v13, 9  ;;  %v2297_v20 = vrot.slane %v629_v16, 9  ;;  %v631_v23 = vld [vmem:[%s2923_s4 + $0x30] sm:$0xe]  ;;  %v632_v25 = vld [vmem:[%s2923_s4 + $0x34] sm:$0x1] }
  0x2a   : > { %2715 = vmatprep.subr.bf16.mxu0 %v2996_v28  ;;  %v480_v5 = vsel %vm2949_vm3, %v475_v59, %v479_v40  ;;  %v677_v10 = vsel %vm3006_vm6, %v2295_v2, %v676_v3  ;;  %2691 = vmatprep.mubr.msk.bf16.mxu0 %vm248_vm0, %v2308_v6  ;;  %v684_v22 = vrot.slane %v630_v17, 5  ;;  %v633_v26 = vld [vmem:[%s2923_s4 + $0x38] sm:$0xe]  ;;  %v634_v27 = vld [vmem:[%s2923_s4 + $0x3c] sm:$0x1]  ;;  %v2298_v30 = vrot.slane %v631_v23, 9 }
  0x2b   : > { %2704 = vmatpush3.bf16.msra.mxu1 %v2829_v19  ;;  %v2283_v9 = vcombine.low %v466_v0, %v480_v5  ;;  %v2309_v11 = vcombine.low %v673_v7, %v677_v10  ;;  %v680_v19 = vrot.slane %v628_v15, 5  ;;  %v688_v31 = vrot.slane %v632_v25, 5  ;;  %v2838_v35 = vld [vmem:[%s2923_s4 + $0x28] ss:$8 sps:$4 sm:$0xff]   ;;  %v2841_v43 = vld [vmem:[%s2923_s4 + $0x38] ss:$8 sps:$4 sm:$0xff]  }
  0x2c   : > { %2705 = vmatprep.subr.bf16.mxu1 %v2831_v41  ;;  %v2299_v34 = vrot.slane %v633_v26, 9  ;;  %v692_v21 = vrot.slane %v634_v27, 5  ;;  %v2840_v40 = vld [vmem:[%s3329_s1 + $0xa8] sm:$0xff]   ;;  %v2843_v45 = vld [vmem:[%s3329_s1 + $0xa0] sm:$0xff]   ;;  %v2350_v47 = vld [vmem:[%s2923_s4 + $0x10] sm:$0xf] }
  0x2d   : > { %2680 = vmatmul.mubr.msk.bf16.gmra.mxu1 %vm248_vm0, %v2283_v9  ;;  %2692 = vmatmul.mubr.msk.bf16.vlgmr.msra.gmra.mxu0 %vm248_vm0, %v2309_v11  ;;  %v681_v29 = vsel %vm3006_vm6, %v2296_v18, %v680_v19  ;;  %v689_v36 = vsel %vm3006_vm6, %v2298_v30, %v688_v31  ;;  %v2348_v44 = vld [vmem:[%s2923_s4 + $0x8] sm:$0xf]  ;;  %v2349_v46 = vld [vmem:[%s2923_s4 + $0xc] sm:$0x1]  ;;  %v2351_v48 = vld [vmem:[%s2923_s4 + $0x14] sm:$0x1] }
  0x2e   : > { %2707 = vmatprep.mubr.msk.bf16.mxu1 %vm248_vm0, %v2832_v8  ;;  %2716 = vmatpush3.bf16.msra.mxu0 %v2996_v28  ;;  %v685_v28 = vsel %vm3006_vm6, %v2297_v20, %v684_v22  ;;  %v693_v38 = vsel %vm3006_vm6, %v2299_v34, %v692_v21  ;;  %v1020_v49 = vshrl.u32 %v2348_v44, 16  ;;  %v1023_v50 = vshll.u32 %v2348_v44, 16  ;;  %v2352_v53 = vld [vmem:[%s2923_s4 + $0x18] sm:$0xf]  ;;  %v2353_v56 = vld [vmem:[%s2923_s4 + $0x1c] sm:$0x1] }
  0x2f   : > { %2706 = vmatpush3.bf16.msra.mxu1 %v2831_v41  ;;  %2717 = vmatprep.subr.bf16.mxu0 %v2836_v12  ;;  %v2310_v32 = vcombine.low %v681_v29, %v685_v28  ;;  %v2311_v39 = vcombine.low %v689_v36, %v693_v38  ;;  %v2842_v41 = vld [vmem:[%s3329_s1 + $0x80] sm:$0xff]   ;;  %v1029_v51 = vshll.u32 %v2349_v46, 16  ;;  %v1034_v52 = vshrl.u32 %v2350_v47, 16  ;;  %v2384_v3 = vld [vmem:[%s2923_s4 + $0x8] sm:$0xe]  ;;  %v2844_v9 = vld [vmem:[%s3329_s1 + $0xd8] sm:$0xff]  }
  0x30   : > { %2731 = vmatprep.subr.bf16.mxu1 %v2834_v4  ;;  %v1037_v54 = vshll.u32 %v2350_v47, 16  ;;  %v1043_v55 = vshll.u32 %v2351_v48, 16  ;;  %v2354_v57 = vld [vmem:[%s2923_s4 + $0x20] sm:$0xf]  ;;  %v1022_v58 = vrot.slane %v1020_v49, 4  ;;  %v1025_v59 = vrot.slane %v1023_v50, 5 }
  0x31   : > { %2695 = vmatprep.mubr.msk.bf16.mxu0 %vm248_vm0, %v2310_v32  ;;  %v1031_v60 = vrot.slane %v1029_v51, 5  ;;  %v1036_v61 = vrot.slane %v1034_v52, 4  ;;  %v2355_v62 = vld [vmem:[%s2923_s4 + $0x24] sm:$0x1]  ;;  %v1048_v1 = vshrl.u32 %v2352_v53, 16  ;;  %v1051_v2 = vshll.u32 %v2352_v53, 16 }
  0x32   : > { %2718 = vmatpush3.bf16.msra.mxu0 %v2836_v12  ;;  %v1039_v63 = vrot.slane %v1037_v54, 5  ;;  %v1045_v0 = vrot.slane %v1043_v55, 5  ;;  %v1057_v5 = vshll.u32 %v2353_v56, 16  ;;  %v1062_v6 = vshrl.u32 %v2354_v57, 16  ;;  %v2385_v8 = vld [vmem:[%s2923_s4 + $0xc] sm:$0x1] }
  0x33   : > { %2719 = vmatprep.subr.bf16.mxu0 %v2839_v37  ;;  %v1065_v7 = vshll.u32 %v2354_v57, 16  ;;  %v1050_v11 = vrot.slane %v1048_v1, 4  ;;  %v1053_v12 = vrot.slane %v1051_v2, 5  ;;  %v1071_v13 = vshll.u32 %v2355_v62, 16  ;;  %v3101_v15 = vld [vmem:[%s3329_s1 + $0xf8] sm:$0xff]   ;;  %v2846_v49 = vld [vmem:[%s3329_s1 + $0xd0] sm:$0xff]  }
  0x34   : > { %v1040_v10 = vor.u32 %v1039_v63, %v1036_v61  ;;  %v1059_v17 = vrot.slane %v1057_v5, 5  ;;  %v1064_v18 = vrot.slane %v1062_v6, 4  ;;  %v2387_v20 = vld [vmem:[%s2923_s4 + $0x14] sm:$0x1]  ;;  %v2400_v25 = vrot.slane %v2384_v3, 9  ;;  %v2848_v1 = vld [vmem:[%s3329_s1 + $0xc8] sm:$0xff]  }
  0x35   : > { %2708 = vmatmul.mubr.msk.bf16.vlgmr.msra.gmra.mxu1 %vm248_vm0, %v2835_v14  ;;  %2696 = vmatmul.mubr.msk.bf16.gmra.mxu0 %vm248_vm0, %v2311_v39  ;;  %v2386_v14 = vld [vmem:[%s2923_s4 + $0x10] sm:$0xe]  ;;  %v1067_v19 = vrot.slane %v1065_v7, 5  ;;  %v1054_v23 = vor.u32 %v1053_v12, %v1050_v11  ;;  %v1311_v29 = vrot.slane %v2385_v8, 5  ;;  %v1315_v32 = vrot.slane %v2387_v20, 5 }
  0x36   : > { %2732 = vmatpush3.bf16.msra.mxu1 %v2834_v4  ;;  %2711 = vmatprep.mubr.msk.bf16.mxu1 %vm248_vm0, %v2838_v35  ;;  %v1026_v4 = vor.u32 %v1025_v59, %v1022_v58  ;;  %v1041_v22 = vrot.slane %v1040_v10, 4  ;;  %v2401_v28 = vrot.slane %v2386_v14, 9  ;;  %v2388_v34 = vld [vmem:[%s2923_s4 + $0x18] sm:$0xe]  ;;  %v2390_v38 = vld [vmem:[%s2923_s4 + $0x20] sm:$0xe] }
  0x37   : > { %2733 = vmatprep.subr.bf16.mxu1 %v2837_v24  ;;  %2720 = vmatpush3.bf16.msra.mxu0 %v2839_v37  ;;  %v1068_v27 = vor.u32 %v1067_v19, %v1064_v18  ;;  %v1055_v31 = vrot.slane %v1054_v23, 4  ;;  %v1312_v36 = vsel %vm3006_vm6, %v2400_v25, %v1311_v29  ;;  %v2389_v37 = vld [vmem:[%s2923_s4 + $0x1c] sm:$0x1]  ;;  %v2402_v39 = vrot.slane %v2388_v34, 9  ;;  %v2847_v52 = vld [vmem:[%s3329_s1 + $0xf0] sm:$0xff]  }
  0x38   : > { %2721 = vmatprep.subr.bf16.mxu0 %v2842_v41  ;;  %v1027_v16 = vrot.slane %v1026_v4, 4  ;;  %v1046_v30 = vsel %vm2949_vm3, %v1041_v22, %v1045_v0  ;;  %v1319_v44 = vrot.slane %v2389_v37, 5  ;;  %v2356_v53 = vld [vmem:[%s2923_s4 + $0x28] sm:$0xf]  ;;  %v2357_v54 = vld [vmem:[%s2923_s4 + $0x2c] sm:$0x1] }
  0x39   : > { %v1069_v35 = vrot.slane %v1068_v27, 4  ;;  %v2358_v56 = vld [vmem:[%s2923_s4 + $0x30] sm:$0xf]  ;;  %v2359_v57 = vld [vmem:[%s2923_s4 + $0x34] sm:$0x1]  ;;  %v1076_v58 = vshrl.u32 %v2356_v53, 16 }
  0x3a   : > { %2734 = vmatpush3.bf16.msra.mxu1 %v2837_v24  ;;  %v1073_v24 = vrot.slane %v1071_v13, 5  ;;  %v1032_v26 = vsel %vm2949_vm3, %v1027_v16, %v1031_v60  ;;  %v1320_v51 = vsel %vm3006_vm6, %v2402_v39, %v1319_v44  ;;  %v1079_v59 = vshll.u32 %v2356_v53, 16  ;;  %v2360_v0 = vld [vmem:[%s2923_s4 + $0x38] sm:$0xf]  ;;  %v2361_v5 = vld [vmem:[%s2923_s4 + $0x3c] sm:$0x1] }
  0x3b   : > { %2735 = vmatprep.subr.bf16.mxu1 %v2840_v40  ;;  %2722 = vmatpush3.bf16.msra.mxu0 %v2842_v41  ;;  %v2372_v21 = vcombine.low %v1032_v26, %v1046_v30  ;;  %v1316_v41 = vsel %vm3006_vm6, %v2401_v28, %v1315_v32  ;;  %v1085_v61 = vshll.u32 %v2357_v54, 16  ;;  %v1090_v62 = vshrl.u32 %v2358_v56, 16  ;;  %v2362_v11 = vld [vmem:[%s2923_s4 + $0x40] sm:$0xf]  ;;  %v2363_v14 = vld [vmem:[%s2923_s4 + $0x44] sm:$0x1] }
  0x3c   : > { %2747 = vmatprep.subr.bf16.mxu0 %v2844_v9  ;;  %v1074_v46 = vsel %vm2949_vm3, %v1069_v35, %v1073_v24  ;;  %v2416_v47 = vcombine.low %v1312_v36, %v1316_v41  ;;  %v1093_v63 = vshll.u32 %v2358_v56, 16  ;;  %v1078_v2 = vrot.slane %v1076_v58, 4  ;;  %v2392_v23 = vld [vmem:[%s2923_s4 + $0x28] sm:$0xe]  ;;  %v2393_v27 = vld [vmem:[%s2923_s4 + $0x2c] sm:$0x1] }
  0x3d   : > { %2712 = vmatmul.mubr.msk.bf16.gmra.mxu1 %vm248_vm0, %v2841_v43  ;;  %v2391_v43 = vld [vmem:[%s2923_s4 + $0x24] sm:$0x1]  ;;  %2723 = vmatprep.mubr.msk.bf16.mxu0 %vm248_vm0, %v2372_v21  ;;  %v1081_v3 = vrot.slane %v1079_v59, 5  ;;  %v1099_v4 = vshll.u32 %v2359_v57, 16  ;;  %v1104_v6 = vshrl.u32 %v2360_v0, 16  ;;  %v1087_v7 = vrot.slane %v1085_v61, 5 }
  0x3e   : > { %2736 = vmatpush3.bf16.msra.mxu1 %v2840_v40  ;;  %v1060_v40 = vsel %vm2949_vm3, %v1055_v31, %v1059_v17  ;;  %v1323_v48 = vrot.slane %v2391_v43, 5  ;;  %2739 = vmatprep.mubr.msk.bf16.mxu1 %vm248_vm0, %v2416_v47  ;;  %v1092_v8 = vrot.slane %v1090_v62, 4  ;;  %v1095_v10 = vrot.slane %v1093_v63, 5  ;;  %v2849_v24 = vld [vmem:[%s3329_s1 + $0xe8] sm:$0xff]   ;;  %v2394_v34 = vld [vmem:[%s2923_s4 + $0x30] sm:$0xe] }
  0x3f   : > { %2737 = vmatprep.subr.bf16.mxu1 %v2843_v45  ;;  %v2373_v50 = vcombine.low %v1060_v40, %v1074_v46  ;;  %v1107_v12 = vshll.u32 %v2360_v0, 16  ;;  %v1082_v13 = vor.u32 %v1081_v3, %v1078_v2  ;;  %v1106_v16 = vrot.slane %v1104_v6, 4  ;;  %v2850_v21 = vld [vmem:[%s3329_s1 + $0xc0] sm:$0xff]   ;;  %v2395_v37 = vld [vmem:[%s2923_s4 + $0x34] sm:$0x1]  ;;  %v3167_v46 = vld [vmem:[%s3329_s1 + $0x118] sm:$0xff]  }
  0x40   : > { %v1113_v17 = vshll.u32 %v2361_v5, 16  ;;  %v1096_v18 = vor.u32 %v1095_v10, %v1092_v8  ;;  %v1118_v20 = vshrl.u32 %v2362_v11, 16  ;;  %v1121_v22 = vshll.u32 %v2362_v11, 16  ;;  %v2851_v40 = vld [vmem:[%s3329_s1 + $0xe0] sm:$0xff]   ;;  %v2397_v53 = vld [vmem:[%s2923_s4 + $0x3c] sm:$0x1] }
  0x41   : > { %2724 = vmatmul.mubr.msk.bf16.vlgmr.msra.gmra.mxu0 %vm248_vm0, %v2373_v50  ;;  %v1109_v19 = vrot.slane %v1107_v12, 5  ;;  %v1127_v26 = vshll.u32 %v2363_v14, 16  ;;  %v2404_v29 = vrot.slane %v2392_v23, 9  ;;  %v2405_v39 = vrot.slane %v2394_v34, 9  ;;  %v2398_v54 = vld [vmem:[%s2923_s4 + $0x40] sm:$0xe] }
  0x42   : > { %2738 = vmatpush3.bf16.msra.mxu1 %v2843_v45  ;;  %v2403_v45 = vrot.slane %v2390_v38, 9  ;;  %2748 = vmatpush3.bf16.msra.mxu0 %v2844_v9  ;;  %v1101_v9 = vrot.slane %v1099_v4, 5  ;;  %v1115_v25 = vrot.slane %v1113_v17, 5  ;;  %v1097_v28 = vrot.slane %v1096_v18, 4  ;;  %v2399_v57 = vld [vmem:[%s2923_s4 + $0x44] sm:$0x1] }
  0x43   : > { %2763 = vmatprep.subr.bf16.mxu1 %v3101_v15  ;;  %2749 = vmatprep.subr.bf16.mxu0 %v2846_v49  ;;  %v1110_v30 = vor.u32 %v1109_v19, %v1106_v16  ;;  %v1120_v31 = vrot.slane %v1118_v20, 4  ;;  %v1123_v32 = vrot.slane %v1121_v22, 5  ;;  %v1129_v36 = vrot.slane %v1127_v26, 5  ;;  %v2456_v3 = vld [vmem:[%s2923_s4 + $0x10] sm:$0xf] }
  0x44   : > { %v1324_v55 = vsel %vm3006_vm6, %v2403_v45, %v1323_v48  ;;  %v1327_v38 = vrot.slane %v2393_v27, 5  ;;  %v1102_v41 = vsel %vm2949_vm3, %v1097_v28, %v1101_v9  ;;  %v1331_v45 = vrot.slane %v2395_v37, 5  ;;  %v2457_v4 = vld [vmem:[%s2923_s4 + $0x14] sm:$0x1]  ;;  %v2458_v5 = vld [vmem:[%s2923_s4 + $0x18] sm:$0xf] }
  0x45   : > { %v2417_v60 = vcombine.low %v1320_v51, %v1324_v55  ;;  %v1111_v43 = vrot.slane %v1110_v30, 4  ;;  %v1124_v44 = vor.u32 %v1123_v32, %v1120_v31  ;;  %v1335_v58 = vrot.slane %v2397_v53, 5  ;;  %v2459_v6 = vld [vmem:[%s2923_s4 + $0x1c] sm:$0x1]  ;;  %v2853_v10 = vld [vmem:[%s2923_s4 + $0x20] ss:$8 sps:$4 sm:$0xff]  }
  0x46   : > { %2750 = vmatpush3.bf16.msra.mxu0 %v2846_v49  ;;  %v1328_v48 = vsel %vm3006_vm6, %v2404_v29, %v1327_v38  ;;  %v2396_v49 = vld [vmem:[%s2923_s4 + $0x38] sm:$0xe]  ;;  %v2407_v59 = vrot.slane %v2398_v54, 9  ;;  %v1339_v61 = vrot.slane %v2399_v57, 5  ;;  %v1670_v8 = vshll.u32 %v2456_v3, 16  ;;  %v3205_v32 = vld [vmem:[%s3329_s1 + $0x110] sm:$0xff]  }
  0x47   : > { %2740 = vmatmul.mubr.msk.bf16.vlgmr.msra.gmra.mxu1 %vm248_vm0, %v2417_v60  ;;  %2751 = vmatprep.subr.bf16.mxu0 %v2848_v1  ;;  %v1116_v50 = vsel %vm2949_vm3, %v1111_v43, %v1115_v25  ;;  %v1125_v51 = vrot.slane %v1124_v44, 4  ;;  %v2406_v55 = vrot.slane %v2396_v49, 9  ;;  %v1676_v11 = vshll.u32 %v2457_v4, 16  ;;  %v2460_v17 = vld [vmem:[%s2923_s4 + $0x20] sm:$0xf] }
  0x48   : > { %2764 = vmatpush3.bf16.msra.mxu1 %v3101_v15  ;;  %v1083_v15 = vrot.slane %v1082_v13, 4  ;;  %v1340_v0 = vsel %vm3006_vm6, %v2407_v59, %v1339_v61  ;;  %v1681_v12 = vshrl.u32 %v2458_v5, 16  ;;  %v1684_v13 = vshll.u32 %v2458_v5, 16  ;;  %v2461_v23 = vld [vmem:[%s2923_s4 + $0x24] sm:$0x1] }
  0x49   : > { %2765 = vmatprep.subr.bf16.mxu1 %v2847_v52  ;;  %v1130_v60 = vsel %vm2949_vm3, %v1125_v51, %v1129_v36  ;;  %v1336_v63 = vsel %vm3006_vm6, %v2406_v55, %v1335_v58  ;;  %v1690_v9 = vshll.u32 %v2459_v6, 16  ;;  %v1672_v16 = vrot.slane %v1670_v8, 5  ;;  %v2463_v25 = vld [vmem:[%s2923_s4 + $0x2c] sm:$0x1]  ;;  %v2464_v53 = vld [vmem:[%s2923_s4 + $0x30] sm:$0xf] }
  0x4a   : > { %v1088_v35 = vsel %vm2949_vm3, %v1083_v15, %v1087_v7  ;;  %2752 = vmatpush3.bf16.msra.mxu0 %v2848_v1  ;;  %v2375_v62 = vcombine.low %v1116_v50, %v1130_v60  ;;  %v2852_v1 = vld [vmem:[%s2923_s4 + $0x10] ss:$8 sps:$4 sm:$0xff]   ;;  %v2419_v2 = vcombine.low %v1336_v63, %v1340_v0  ;;  %v1667_v7 = vshrl.u32 %v2456_v3, 16  ;;  %v2462_v15 = vld [vmem:[%s2923_s4 + $0x28] sm:$0xf]  ;;  %v3236_v3 = vld [vmem:[%s3329_s1 + $0x100] sm:$0xff]  }
  0x4b   : > { %v2374_v47 = vcombine.low %v1088_v35, %v1102_v41  ;;  %2753 = vmatprep.subr.bf16.mxu0 %v2850_v21  ;;  %v1678_v18 = vrot.slane %v1676_v11, 5  ;;  %v1683_v19 = vrot.slane %v1681_v12, 4  ;;  %v1686_v20 = vrot.slane %v1684_v13, 5  ;;  %v2857_v50 = vld [vmem:[%s2923_s4 + $0x40] ss:$8 sps:$4 sm:$0xff]  }
  0x4c   : > { %2766 = vmatpush3.bf16.msra.mxu1 %v2847_v52  ;;  %v1332_v52 = vsel %vm3006_vm6, %v2405_v39, %v1331_v45  ;;  %v1669_v14 = vrot.slane %v1667_v7, 4  ;;  %v1692_v22 = vrot.slane %v1690_v9, 5  ;;  %v1695_v26 = vshrl.u32 %v2460_v17, 16  ;;  %v2465_v54 = vld [vmem:[%s2923_s4 + $0x34] sm:$0x1] }
  0x4d   : > { %2767 = vmatprep.subr.bf16.mxu1 %v2849_v24  ;;  %2727 = vmatprep.mubr.msk.bf16.mxu0 %vm248_vm0, %v2374_v47  ;;  %v2418_v56 = vcombine.low %v1328_v48, %v1332_v52  ;;  %v1698_v27 = vshll.u32 %v2460_v17, 16  ;;  %v1687_v29 = vor.u32 %v1686_v20, %v1683_v19  ;;  %v1704_v28 = vshll.u32 %v2461_v23, 16  ;;  %v2856_v47 = vld [vmem:[%s2923_s4 + $0x30] ss:$8 sps:$4 sm:$0xff]   ;;  %v2467_v57 = vld [vmem:[%s2923_s4 + $0x3c] sm:$0x1] }
  0x4e   : > { %2754 = vmatpush3.bf16.msra.mxu0 %v2850_v21  ;;  %v1709_v30 = vshrl.u32 %v2462_v15, 16  ;;  %v1712_v31 = vshll.u32 %v2462_v15, 16  ;;  %v1697_v21 = vrot.slane %v1695_v26, 4  ;;  %v1718_v36 = vshll.u32 %v2463_v25, 16  ;;  %v2468_v8 = vld [vmem:[%s2923_s4 + $0x40] sm:$0xf] }
  0x4f   : > { %2743 = vmatprep.mubr.msk.bf16.mxu1 %vm248_vm0, %v2418_v56  ;;  %2779 = vmatprep.subr.bf16.mxu0 %v3167_v46  ;;  %v1700_v35 = vrot.slane %v1698_v27, 5  ;;  %v1688_v37 = vrot.slane %v1687_v29, 4  ;;  %v1706_v44 = vrot.slane %v1704_v28, 5  ;;  %v2466_v56 = vld [vmem:[%s2923_s4 + $0x38] sm:$0xf]  ;;  %v1723_v58 = vshrl.u32 %v2464_v53, 16 }
  0x50   : > { %2768 = vmatpush3.bf16.msra.mxu1 %v2849_v24  ;;  %2728 = vmatmul.mubr.msk.bf16.gmra.mxu0 %vm248_vm0, %v2375_v62  ;;  %v1673_v24 = vor.u32 %v1672_v16, %v1669_v14  ;;  %v1711_v38 = vrot.slane %v1709_v30, 4  ;;  %v1714_v39 = vrot.slane %v1712_v31, 5  ;;  %v1720_v45 = vrot.slane %v1718_v36, 5  ;;  %v2469_v12 = vld [vmem:[%s2923_s4 + $0x44] sm:$0x1] }
  0x51   : > { %2769 = vmatprep.subr.bf16.mxu1 %v2851_v40  ;;  %2755 = vmatprep.mubr.msk.bf16.mxu0 %vm248_vm0, %v2852_v1  ;;  %v1701_v43 = vor.u32 %v1700_v35, %v1697_v21  ;;  %v1693_v48 = vsel %vm2949_vm3, %v1688_v37, %v1692_v22  ;;  %v1726_v60 = vshll.u32 %v2464_v53, 16  ;;  %v1732_v61 = vshll.u32 %v2465_v54, 16  ;;  %v2470_v13 = vld [vmem:[%s2923_s4 + $0x48] sm:$0xf]  ;;  %v2471_v14 = vld [vmem:[%s2923_s4 + $0x4c] sm:$0x1] }
  0x52   : > { %2744 = vmatmul.mubr.msk.bf16.gmra.mxu1 %vm248_vm0, %v2419_v2  ;;  %v1674_v34 = vrot.slane %v1673_v24, 4  ;;  %v1715_v49 = vor.u32 %v1714_v39, %v1711_v38  ;;  %v1737_v62 = vshrl.u32 %v2466_v56, 16  ;;  %v1725_v0 = vrot.slane %v1723_v58, 4  ;;  %v2492_v30 = vld [vmem:[%s2923_s4 + $0x10] sm:$0xe] }
  0x53   : > { %v1702_v52 = vrot.slane %v1701_v43, 4  ;;  %v1740_v1 = vshll.u32 %v2466_v56, 16  ;;  %v1746_v2 = vshll.u32 %v2467_v57, 16  ;;  %v1728_v5 = vrot.slane %v1726_v60, 5  ;;  %v2493_v21 = vld [vmem:[%s2923_s4 + $0x14] sm:$0x1] }
  0x54   : > { %2770 = vmatpush3.bf16.msra.mxu1 %v2851_v40  ;;  %v3211_v40 = vld [vmem:[%s3329_s1 + $0x108] sm:$0xff]   ;;  %v1679_v41 = vsel %vm2949_vm3, %v1674_v34, %v1678_v18  ;;  %v1716_v55 = vrot.slane %v1715_v49, 4  ;;  %v1734_v6 = vrot.slane %v1732_v61, 5  ;;  %v1739_v7 = vrot.slane %v1737_v62, 4  ;;  %v2494_v35 = vld [vmem:[%s2923_s4 + $0x18] sm:$0xe] }
  0x55   : > { %2795 = vmatprep.subr.bf16.mxu1 %v3167_v46  ;;  %v2480_v51 = vcombine.low %v1679_v41, %v1693_v48  ;;  %v1707_v59 = vsel %vm2949_vm3, %v1702_v52, %v1706_v44  ;;  %v1748_v11 = vrot.slane %v1746_v2, 5  ;;  %v1729_v9 = vor.u32 %v1728_v5, %v1725_v0  ;;  %v2495_v36 = vld [vmem:[%s2923_s4 + $0x1c] sm:$0x1]  ;;  %v2496_v43 = vld [vmem:[%s2923_s4 + $0x20] sm:$0xe] }
  0x56   : > { %v1721_v63 = vsel %vm2949_vm3, %v1716_v55, %v1720_v45  ;;  %v1751_v16 = vshrl.u32 %v2468_v8, 16  ;;  %v1754_v17 = vshll.u32 %v2468_v8, 16  ;;  %v1760_v18 = vshll.u32 %v2469_v12, 16  ;;  %v2497_v44 = vld [vmem:[%s2923_s4 + $0x24] sm:$0x1] }
  0x57   : > { %2771 = vmatprep.mubr.msk.bf16.mxu1 %vm248_vm0, %v2480_v51  ;;  %v2481_v4 = vcombine.low %v1707_v59, %v1721_v63  ;;  %v1765_v20 = vshrl.u32 %v2470_v13, 16  ;;  %v1768_v22 = vshll.u32 %v2470_v13, 16  ;;  %v1774_v23 = vshll.u32 %v2471_v14, 16  ;;  %v2499_v52 = vld [vmem:[%s2923_s4 + $0x2c] sm:$0x1] }
  0x58   : > { %2756 = vmatmul.mubr.msk.bf16.vlgmr.msra.gmra.mxu0 %vm248_vm0, %v2853_v10  ;;  %v1742_v10 = vrot.slane %v1740_v1, 5  ;;  %v1730_v24 = vrot.slane %v1729_v9, 4  ;;  %v1753_v15 = vrot.slane %v1751_v16, 4  ;;  %v1756_v25 = vrot.slane %v1754_v17, 5  ;;  %v2500_v59 = vld [vmem:[%s2923_s4 + $0x30] sm:$0xe] }
  0x59   : > { %2780 = vmatpush3.bf16.msra.mxu0 %v3167_v46  ;;  %2759 = vmatprep.mubr.msk.bf16.mxu0 %vm248_vm0, %v2856_v47  ;;  %v1762_v26 = vrot.slane %v1760_v18, 5  ;;  %v1767_v29 = vrot.slane %v1765_v20, 4  ;;  %v1776_v28 = vrot.slane %v1774_v23, 5  ;;  %v2508_v39 = vrot.slane %v2492_v30, 9  ;;  %v2501_v60 = vld [vmem:[%s2923_s4 + $0x34] sm:$0x1] }
  0x5a   : > { %2781 = vmatprep.subr.bf16.mxu0 %v3205_v32  ;;  %2772 = vmatmul.mubr.msk.bf16.vlgmr.msra.gmra.mxu1 %vm248_vm0, %v2481_v4  ;;  %v1743_v19 = vor.u32 %v1742_v10, %v1739_v7  ;;  %v1735_v31 = vsel %vm2949_vm3, %v1730_v24, %v1734_v6  ;;  %v1757_v34 = vor.u32 %v1756_v25, %v1753_v15  ;;  %v1958_v41 = vrot.slane %v2493_v21, 5  ;;  %v2502_v0 = vld [vmem:[%s2923_s4 + $0x38] sm:$0xe]  ;;  %v2503_v1 = vld [vmem:[%s2923_s4 + $0x3c] sm:$0x1] }
  0x5b   : > { %2799 = vmatpush3.bf16.msra.mxu1 %v3167_v46  ;;  %v1770_v46 = vrot.slane %v1768_v22, 5  ;;  %v2509_v48 = vrot.slane %v2494_v35, 9  ;;  %v1962_v49 = vrot.slane %v2495_v36, 5  ;;  %v2510_v53 = vrot.slane %v2496_v43, 9  ;;  %v2504_v7 = vld [vmem:[%s2923_s4 + $0x40] sm:$0xe] }
  0x5c   : > { %2796 = vmatprep.subr.bf16.mxu1 %v3205_v32  ;;  %v1744_v27 = vrot.slane %v1743_v19, 4  ;;  %v1758_v47 = vrot.slane %v1757_v34, 4  ;;  %v1966_v54 = vrot.slane %v2497_v44, 5  ;;  %v1970_v58 = vrot.slane %v2499_v52, 5  ;;  %v2505_v8 = vld [vmem:[%s2923_s4 + $0x44] sm:$0x1] }
  0x5d   : > { %2782 = vmatpush3.bf16.msra.mxu0 %v3205_v32  ;;  %v1771_v38 = vor.u32 %v1770_v46, %v1767_v29  ;;  %v1963_v56 = vsel %vm3006_vm6, %v2509_v48, %v1962_v49  ;;  %v2512_v2 = vrot.slane %v2500_v59, 9  ;;  %v1974_v6 = vrot.slane %v2501_v60, 5  ;;  %v2507_v12 = vld [vmem:[%s2923_s4 + $0x4c] sm:$0x1] }
  0x5e   : > { %2783 = vmatprep.subr.bf16.mxu0 %v3211_v40  ;;  %v1749_v37 = vsel %vm2949_vm3, %v1744_v27, %v1748_v11  ;;  %v1763_v55 = vsel %vm2949_vm3, %v1758_v47, %v1762_v26  ;;  %v1967_v63 = vsel %vm3006_vm6, %v2510_v53, %v1966_v54  ;;  %v2513_v33 = vrot.slane %v2502_v0, 9  ;;  %v2506_v11 = vld [vmem:[%s2923_s4 + $0x48] sm:$0xe] }
  0x5f   : > { %2800 = vmatpush3.bf16.msra.mxu1 %v3205_v32  ;;  %v2482_v45 = vcombine.low %v1735_v31, %v1749_v37  ;;  %v1772_v51 = vrot.slane %v1771_v38, 4  ;;  %v1959_v32 = vsel %vm3006_vm6, %v2508_v39, %v1958_v41  ;;  %v1978_v10 = vrot.slane %v2503_v1, 5 }
  0x60   : > { %2760 = vmatmul.mubr.msk.bf16.gmra.mxu0 %vm248_vm0, %v2857_v50  ;;  %2797 = vmatprep.subr.bf16.mxu1 %v3211_v40  ;;  %v2498_v50 = vld [vmem:[%s2923_s4 + $0x28] sm:$0xe]  ;;  %v2524_v62 = vcombine.low %v1959_v32, %v1963_v56  ;;  %v2514_v13 = vrot.slane %v2504_v7, 9  ;;  %v1975_v9 = vsel %vm3006_vm6, %v2512_v2, %v1974_v6  ;;  %v1982_v14 = vrot.slane %v2505_v8, 5 }
  0x61   : > { %2784 = vmatpush3.bf16.msra.mxu0 %v3211_v40  ;;  %2775 = vmatprep.mubr.msk.bf16.mxu1 %vm248_vm0, %v2482_v45  ;;  %v2511_v57 = vrot.slane %v2498_v50, 9  ;;  %v1777_v61 = vsel %vm2949_vm3, %v1772_v51, %v1776_v28  ;;  %v2515_v16 = vrot.slane %v2506_v11, 9  ;;  %v1986_v17 = vrot.slane %v2507_v12, 5 }
  0x62   : > { %2785 = vmatprep.subr.bf16.mxu0 %v3236_v3  ;;  %v2483_v4 = vcombine.low %v1763_v55, %v1777_v61  ;;  %2787 = vmatprep.mubr.msk.bf16.mxu0 %vm248_vm0, %v2524_v62  ;;  %v1979_v18 = vsel %vm3006_vm6, %v2513_v33, %v1978_v10  ;;  %v1983_v20 = vsel %vm3006_vm6, %v2514_v13, %v1982_v14 }
  0x63   : > { %2801 = vmatpush3.bf16.msra.mxu1 %v3211_v40  ;;  %v1971_v5 = vsel %vm3006_vm6, %v2511_v57, %v1970_v58  ;;  %v2526_v19 = vcombine.low %v1975_v9, %v1979_v18  ;;  %v1987_v22 = vsel %vm3006_vm6, %v2515_v16, %v1986_v17 }
  0x64   : > { %2798 = vmatprep.subr.bf16.mxu1 %v3236_v3  ;;  %v2525_v40 = vcombine.low %v1967_v63, %v1971_v5  ;;  %2776 = vmatmul.mubr.msk.bf16.gmra.mxu1 %vm248_vm0, %v2483_v4  ;;  %v2527_v23 = vcombine.low %v1983_v20, %v1987_v22 }
  0x65   : > { %2786 = vmatpush3.bf16.msra.mxu0 %v3236_v3  ;;  %2791 = vmatprep.mubr.msk.bf16.mxu1 %vm248_vm0, %v2526_v19 }
  0x67   : > { %2802 = vmatpush3.bf16.msra.mxu1 %v3236_v3 }
  0x68   : > { %2788 = vmatmul.mubr.msk.bf16.vlgmr.msra.gmra.mxu0 %vm248_vm0, %v2525_v40 }
  0x6c   : > { %2792 = vmatmul.mubr.msk.bf16.vlgmr.msra.gmra.mxu1 %vm248_vm0, %v2527_v23 }
  0xdc   : > { %v2661_v24 = vpop.f32.mrf.mxu0 }
  0xde   : > { %v295_v15 = vpop.f32.mrf.mxu0 }
  0xe0   : > { %v2662_v3 = vpop.f32.mrf.mxu0 }
  0xe2   : > { %v298_v25 = vpop.f32.mrf.mxu0  ;;  %v2677_v27 = vpop.f32.mrf.mxu1 }
  0xe3   : > { %v605_v8 = vadd.f32 %v2677_v27, %v2661_v24 }
  0xe4   : > { %v2665_v26 = vpop.f32.mrf.mxu0  ;;  %v572_v29 = vpop.f32.mrf.mxu1 }
  0xe5   : > { %v603_v10 = vadd.f32 %v572_v29, %v295_v15 }
  0xe6   : > { %v311_v46 = vpop.f32.mrf.mxu0  ;;  %v2678_v28 = vpop.f32.mrf.mxu1 }
  0xe7   : > { %v606_v9 = vadd.f32 %v2678_v28, %v2662_v3 }
  0xe8   : > { %v3300_v30 = vpop.f32.mrf.mxu0  ;;  %v575_v31 = vpop.f32.mrf.mxu1 }
  0xe9   : > { %v604_v17 = vadd.f32 %v575_v31, %v298_v25 }
  0xea   : > { %v3302_v34 = vpop.f32.mrf.mxu0 }
  0xeb   : > { %3336 = vst [vmem:[#allocation3_spill] sm:$0xff] %v3302_v34 }
  0xed   : > { %v2681_v42 = vpop.f32.mrf.mxu1  ;;  %v2693_v21 = vpop.f32.mrf.mxu0 }
  0xee   : > { %v818_v11 = vadd.f32 %v2693_v21, %v605_v8  ;;  %v609_v22 = vadd.f32 %v2681_v42, %v2665_v26 }
  0xef   : > { %v588_v35 = vpop.f32.mrf.mxu1  ;;  %v785_v36 = vpop.f32.mrf.mxu0 }
  0xf0   : > { %v816_v14 = vadd.f32 %v785_v36, %v603_v10  ;;  %v607_v24 = vadd.f32 %v588_v35, %v311_v46 }
  0xf1   : > { %v2682_v37 = vpop.f32.mrf.mxu1  ;;  %v2694_v38 = vpop.f32.mrf.mxu0 }
  0xf2   : > { %v819_v19 = vadd.f32 %v2694_v38, %v606_v9  ;;  %v610_v8 = vadd.f32 %v2682_v37, %v3300_v30  ;;  %v3340_v38 = vld [vmem:[#allocation3_spill] sm:$0xff] }
  0xf3   : > { %v591_v39 = vpop.f32.mrf.mxu1  ;;  %v788_v43 = vpop.f32.mrf.mxu0 }
  0xf5   : > { %v2709_v41 = vpop.f32.mrf.mxu1  ;;  %v2697_v47 = vpop.f32.mrf.mxu0 }
  0xf6   : > { %v981_v18 = vadd.f32 %v2709_v41, %v818_v11  ;;  %v822_v27 = vadd.f32 %v2697_v47, %v609_v22  ;;  %v608_v41 = vadd.f32 %v591_v39, %v3340_v38 }
  0xf7   : > { %v948_v44 = vpop.f32.mrf.mxu1  ;;  %v801_v50 = vpop.f32.mrf.mxu0 }
  0xf8   : > { %v820_v3 = vadd.f32 %v801_v50, %v607_v24 }
  0xf9   : > { %v2710_v45 = vpop.f32.mrf.mxu1  ;;  %v2698_v32 = vpop.f32.mrf.mxu0 }
  0xfa   : > { %v982_v15 = vadd.f32 %v2710_v45, %v819_v19  ;;  %v823_v42 = vadd.f32 %v2698_v32, %v610_v8 }
  0xfb   : > { %v951_v48 = vpop.f32.mrf.mxu1  ;;  %v804_v53 = vpop.f32.mrf.mxu0 }
  0xfc   : > { %v821_v35 = vadd.f32 %v804_v53, %v608_v41 }
  0xfd   : > { %v2713_v49 = vpop.f32.mrf.mxu1 }
  0xfe   : > { %v985_v26 = vadd.f32 %v2713_v49, %v822_v27 }
  0xff   : > { %v964_v51 = vpop.f32.mrf.mxu1 }
 0x100   : > { %v983_v46 = vadd.f32 %v964_v51, %v820_v3 }
 0x101   : > { %v3304_v52 = vpop.f32.mrf.mxu1  ;;  %v2725_v55 = vpop.f32.mrf.mxu0 }
 0x102   : > { %3337 = vst [vmem:[#allocation4_spill] sm:$0xff] %v3304_v52  ;;  %v817_v52 = vadd.f32 %v788_v43, %v604_v17 }
 0x103   : > { %v3306_v54 = vpop.f32.mrf.mxu1  ;;  %v1222_v57 = vpop.f32.mrf.mxu0 }
 0x104   : > { %3338 = vst [vmem:[#allocation5_spill] sm:$0xff] %v3306_v54  ;;  %v979_v54 = vadd.f32 %v948_v44, %v816_v14  ;;  %v980_v36 = vadd.f32 %v951_v48, %v817_v52 }
 0x105   : > { %v2726_v59 = vpop.f32.mrf.mxu0 }
 0x106   : > { %v1253_v29 = vadd.f32 %v1222_v57, %v979_v54  ;;  %v1256_v31 = vadd.f32 %v2726_v59, %v982_v15 }
 0x107   : > { %v2741_v56 = vpop.f32.mrf.mxu1  ;;  %v1225_v61 = vpop.f32.mrf.mxu0 }
 0x108   : > { %v1254_v43 = vadd.f32 %v1225_v61, %v980_v36 }
 0x109   : > { %v1432_v58 = vpop.f32.mrf.mxu1  ;;  %v3341_v30 = vld [vmem:[#allocation4_spill] sm:$0xff] }
 0x10a   : > { %v1463_v44 = vadd.f32 %v1432_v58, %v1253_v29  ;;  %v986_v37 = vadd.f32 %v3341_v30, %v823_v42 }
 0x10b   : > { %v2742_v60 = vpop.f32.mrf.mxu1  ;;  %v3342_v39 = vld [vmem:[#allocation5_spill] sm:$0xff] }
 0x10c   : > { %v1466_v54 = vadd.f32 %v2742_v60, %v1256_v31  ;;  %v984_v49 = vadd.f32 %v3342_v39, %v821_v35 }
 0x10d   : > { %v1435_v62 = vpop.f32.mrf.mxu1 }
 0x10e   : > { %v1464_v48 = vadd.f32 %v1435_v62, %v1254_v43 }
 0x110   : > { %v2729_v63 = vpop.f32.mrf.mxu0 }
 0x111   : > { %v1259_v45 = vadd.f32 %v2729_v63, %v985_v26 }
 0x112   : > { %v2745_v0 = vpop.f32.mrf.mxu1  ;;  %v1238_v1 = vpop.f32.mrf.mxu0 }
 0x113   : > { %v1257_v50 = vadd.f32 %v1238_v1, %v983_v46  ;;  %v1469_v32 = vadd.f32 %v2745_v0, %v1259_v45  ;;  %v2536_v1 = vld [vmem:[%s3330_s2] ss:$0 sm:$0xff] }
 0x114   : > { %v2730_v2 = vpop.f32.mrf.mxu0  ;;  %v1448_v4 = vpop.f32.mrf.mxu1 }
 0x115   : > { %v1260_v58 = vadd.f32 %v2730_v2, %v986_v37  ;;  %v1467_v63 = vadd.f32 %v1448_v4, %v1257_v50 }
 0x116   : > { %v1241_v5 = vpop.f32.mrf.mxu0  ;;  %v3308_v33 = vpop.f32.mrf.mxu1 }
 0x117   : > { %3339 = vst [vmem:[#allocation6_spill] sm:$0xff] %v3308_v33  ;;  %v1255_v33 = vadd.f32 %v2725_v55, %v981_v18  ;;  %v1258_v11 = vadd.f32 %v1241_v5, %v984_v49 }
 0x118   : > { %v2757_v6 = vpop.f32.mrf.mxu0  ;;  %v3310_v12 = vpop.f32.mrf.mxu1 }
 0x119   : > { %v1465_v25 = vadd.f32 %v2741_v56, %v1255_v33  ;;  %v1468_v4 = vadd.f32 %v3310_v12, %v1258_v11 }
 0x11a   : > { %v1595_v7 = vpop.f32.mrf.mxu0  ;;  %v2773_v20 = vpop.f32.mrf.mxu1 }
 0x11b   : > { %v1628_v55 = vadd.f32 %v2757_v6, %v1465_v25  ;;  %v1626_v57 = vadd.f32 %v1595_v7, %v1463_v44 }
 0x11c   : > { %v2758_v40 = vpop.f32.mrf.mxu0  ;;  %v1869_v34 = vpop.f32.mrf.mxu1 }
 0x11d   : > { %v1902_v52 = vadd.f32 %v2773_v20, %v1628_v55  ;;  %v1629_v56 = vadd.f32 %v2758_v40, %v1466_v54  ;;  %v1900_v6 = vadd.f32 %v1869_v34, %v1626_v57 }
 0x11e   : > { %v1598_v13 = vpop.f32.mrf.mxu0  ;;  %v2774_v21 = vpop.f32.mrf.mxu1  ;;  %v3343_v14 = vld [vmem:[#allocation6_spill] sm:$0xff] }
 0x11f   : > { %v1627_v33 = vadd.f32 %v1598_v13, %v1464_v48  ;;  %v1903_v7 = vadd.f32 %v2774_v21, %v1629_v56  ;;  %v1470_v0 = vadd.f32 %v3343_v14, %v1260_v58 }
 0x120   : > { %v2761_v16 = vpop.f32.mrf.mxu0  ;;  %v1872_v10 = vpop.f32.mrf.mxu1 }
 0x121   : > { %v1632_v60 = vadd.f32 %v2761_v16, %v1469_v32  ;;  %v1901_v34 = vadd.f32 %v1872_v10, %v1627_v33 }
 0x122   : > { %v1611_v23 = vpop.f32.mrf.mxu0 }
 0x123   : > { %v1630_v2 = vadd.f32 %v1611_v23, %v1467_v63 }
 0x124   : > { %v2762_v28 = vpop.f32.mrf.mxu0  ;;  %v2777_v59 = vpop.f32.mrf.mxu1 }
 0x125   : > { %v1906_v5 = vadd.f32 %v2777_v59, %v1632_v60  ;;  %v1633_v16 = vadd.f32 %v2762_v28, %v1470_v0 }
 0x126   : > { %v1614_v47 = vpop.f32.mrf.mxu0  ;;  %v1885_v51 = vpop.f32.mrf.mxu1 }
 0x127   : > { %v1904_v29 = vadd.f32 %v1885_v51, %v1630_v2  ;;  %v1631_v21 = vadd.f32 %v1614_v47, %v1468_v4 }
 0x128   : > { %v2789_v61 = vpop.f32.mrf.mxu0  ;;  %v2778_v40 = vpop.f32.mrf.mxu1 }
 0x129   : > { %v2112_v53 = vadd.f32 %v2789_v61, %v1902_v52  ;;  %v1907_v31 = vadd.f32 %v2778_v40, %v1633_v16 }
 0x12a   : > { %v2079_v62 = vpop.f32.mrf.mxu0  ;;  %v1888_v13 = vpop.f32.mrf.mxu1 }
 0x12b   : > { %v2110_v9 = vadd.f32 %v2079_v62, %v1900_v6  ;;  %v2143_v18 = vadd.f32 %v2536_v1, %v2112_v53  ;;  %v1905_v42 = vadd.f32 %v1888_v13, %v1631_v21 }
 0x12c   : > { %v2790_v17 = vpop.f32.mrf.mxu0  ;;  %v2793_v22 = vpop.f32.mrf.mxu1 }
 0x12d   : > { %v2113_v19 = vadd.f32 %v2790_v17, %v1903_v7  ;;  %v2141_v24 = vadd.f32 %v2536_v1, %v2110_v9  ;;  %v2116_v8 = vadd.f32 %v2793_v22, %v1906_v5  ;;  %v2151_v3 = vmax.f32 %v2143_v18, 0.0 }
 0x12e   : > { %v2082_v20 = vpop.f32.mrf.mxu0  ;;  %v2095_v23 = vpop.f32.mrf.mxu1 }
 0x12f   : > { %v2144_v27 = vadd.f32 %v2536_v1, %v2113_v19  ;;  %v2111_v15 = vadd.f32 %v2082_v20, %v1901_v34  ;;  %v2114_v38 = vadd.f32 %v2095_v23, %v1904_v29  ;;  %v2149_v12 = vmax.f32 %v2141_v24, 0.0 }
 0x130   : > { %v2794_v41 = vpop.f32.mrf.mxu1  ;;  %v2147_v44 = vadd.f32 %v2536_v1, %v2116_v8 }
 0x131   : > { %v2152_v36 = vmax.f32 %v2144_v27, 0.0  ;;  %v2142_v25 = vadd.f32 %v2536_v1, %v2111_v15  ;;  %v2117_v43 = vadd.f32 %v2794_v41, %v1907_v31  ;;  %v2145_v46 = vadd.f32 %v2536_v1, %v2114_v38 }
 0x132   : > { %v2098_v10 = vpop.f32.mrf.mxu1  ;;  %v2155_v47 = vmax.f32 %v2147_v44, 0.0 }
 0x133   : > { %v2564_v28 = vpack.c.bf16 %v2152_v36, %v2151_v3  ;;  %v2150_v26 = vmax.f32 %v2142_v25, 0.0  ;;  %v2148_v35 = vadd.f32 %v2536_v1, %v2117_v43  ;;  %v2115_v45 = vadd.f32 %v2098_v10, %v1905_v42 }
 0x134   : > { %v2153_v30 = vmax.f32 %v2145_v46, 0.0 }
 0x135   : > { %2576 = vst [vmem:[%s170_s21 + $0x8] sm:$0xff] %v2564_v28   ;;  %v2559_v55 = vpack.c.bf16 %v2150_v26, %v2149_v12  ;;  %v2156_v54 = vmax.f32 %v2148_v35, 0.0  ;;  %v2146_v57 = vadd.f32 %v2536_v1, %v2115_v45 }
 0x137   : > { %2560 = vst [vmem:[%s170_s21] sm:$0xff] %v2559_v55   ;;  %v2574_v37 = vpack.c.bf16 %v2156_v54, %v2155_v47  ;;  %v2154_v50 = vmax.f32 %v2146_v57, 0.0 }
 0x139   : > { %2578 = vst [vmem:[%s170_s21 + $0x18] sm:$0xff] %v2574_v37   ;;  %v2569_v48 = vpack.c.bf16 %v2154_v50, %v2153_v30 }
 0x13b   : > { %2577 = vst [vmem:[%s170_s21 + $0x10] sm:$0xff] %v2569_v48  }
 0x13c PF: > { %s13_s12 = sadd.s32 1, %s2866_s12  }
 0x13d   : > { %p10_p4 = scmp.ge.s32.totalorder %s13_s12, 4  }
 0x13f   :  { %12 = sbr.rel (!%p10_p4) target bundleno = 1 (0x1), region = 72 }

// kernel: model_forward.7
= control target key start
LH: loop header
LB: loop body
LE: loop exit
PB: predicated region body
PF: predicated region fallthrough
CT: control target
= control target key end

     0   :  { %s3983_s27 = smov 0   ;;  %s5028_s0 = inlined_call_operand.vmem [shape: bf16[2,128,128], index: 0, kind: input, shape index: {}]   ;;  %s5029_s1 = inlined_call_operand.vmem [shape: bf16[88,128], index: 1, kind: input, shape index: {}]   ;;  %s5030_s2 = inlined_call_operand.vmem [shape: f32[88,1], index: 2, kind: input, shape index: {}]   ;;  %s5031_s3 = inlined_call_operand.vmem [shape: f32[64,128], index: 3, kind: input, shape index: {}]   ;;  %s5032_s4 = inlined_call_operand.vmem [shape: f32[1,128], index: 4, kind: input, shape index: {}]   ;;  %s5033_s5 = inlined_call_operand.vmem [shape: f32[24,64,128], index: 5, kind: input, shape index: {}]   ;;  %s5034_s6 = inlined_call_operand.vmem [shape: f32[1,128], index: 6, kind: input, shape index: {}]   ;;  %s5035_s7 = inlined_call_operand.vmem [shape: f32[2,24,128], index: 7, kind: output, shape index: {0}]   ;;  %s5036_s8 = inlined_call_operand.vmem [shape: f32[2,1,128], index: 8, kind: output, shape index: {1}]  }
   0x1 LB: > { %s2864_s28 = sadd.s32 4294967295, %s3933_s27   ;;  %p2868_p0 = scmp.ge.s32.totalorder %s3933_s27, 1  ;;  %s3933_s27 = sphi %s3983_s27, %s19_s27  }
   0x2   : > { %p265_p1 = scmp.lt.s32.totalorder %s3933_s27, 3 }
   0x4   : > { %p266_p2 = pnand %p2868_p0, %p265_p1 }
   0x5   : > { %p302_p3 = scmp.lt.s32.totalorder (!%p266_p2), %s2864_s28, 1 }
   0x6   : > { %269 = sbr.rel (%p266_p2) target bundleno = 1228 (0x4cc), region = 48 }
   0xb   : > { %v3909_v0 = vld [vmem:[%s5029_s1] sm:$0xff]   ;;  %s5038_s28 = smov (!%p302_p3, %s2864_s28), 1  ;;  %v3935_v1 = vmov 0   ;;  %v353_v6 = vld [vmem:[%s5030_s2 + $0x50] sm:$0xff]  ;;  %v352_v7 = vld [vmem:[%s5030_s2 + $0x48] sm:$0xff]  ;;  %v579_v25 = vlaneseq  ;;  %v3936_v42 = vmov 0.0  }
   0xc   : > { %3369 = vmatprep.mubr.bf16.mxu0 %v3909_v0  ;;  %3899 = vset.pattern.permute.xlu0 %v3935_v1  ;;  %s3100_s9 = sshll.u32 %s5038_s28, 6  ;;  %v351_v2 = vld [vmem:[%s5030_s2 + $0x40] sm:$0xff]  ;;  %v3910_v13 = vld [vmem:[%s5029_s1 + $0x8] sm:$0xff]   ;;  %v3911_v14 = vld [vmem:[%s5029_s1 + $0x10] sm:$0xff]   ;;  %vm3937_vm1 = vmmov 0   ;;  %vm707_vm2 = vcmask 523264   ;;  %s314_s15 = scalar_lea.vmem %s5036_s8, %s5038_s28 }
   0xd   : > { %3900 = vset.pattern.permute.xlu1 %v3935_v1  ;;  %s306_s12 = scalar_lea.vmem %s5028_s0, %s3100_s9  ;;  %396 = vperm.xlu0 %3899, %v351_v2   ;;  %v3912_v15 = vld [vmem:[%s5029_s1 + $0x18] sm:$0xff]   ;;  %v3913_v16 = vld [vmem:[%s5029_s1 + $0x20] sm:$0xff]   ;;  %v3914_v17 = vld [vmem:[%s5029_s1 + $0x28] ss:$0 sps:$4 sm:$0xff]   ;;  %v580_v29 = vand.u32 127, %v579_v25  ;;  %s3887_s29 = smul.u32 24, %s5038_s28 }
   0xe   : > { %v3901_v3 = vld [vmem:[%s306_s12 + $0x38] sm:$0xff]   ;;  %v3902_v4 = vld [vmem:[%s306_s12 + $0x30] sm:$0xff]   ;;  %v3903_v5 = vld [vmem:[%s306_s12 + $0x28] sm:$0xff]   ;;  %406 = vperm.xlu1 %3900, %v353_v6   ;;  %3381 = vmatprep.subr.mxu1 %v3936_v42 }
   0xf   : > { %3353 = vmatprep.subr.bf16.mxu0 %v3901_v3  ;;  %v3904_v8 = vld [vmem:[%s306_s12 + $0x20] sm:$0xff]   ;;  %v3905_v9 = vld [vmem:[%s306_s12 + $0x18] sm:$0xff]   ;;  %v3906_v10 = vld [vmem:[%s306_s12 + $0x10] sm:$0xff]   ;;  %vm581_vm0 = vcmp.lt.s32.totalorder %v580_v29, 64  ;;  %3397 = vmatprep.mubr.msk.f32.mxu1 %vm3937_vm1, %v3936_v42  ;;  %s4931_s16 = scalar_lea.vmem %s5035_s7, %s3887_s29 }
  0x10   : > { %3354 = vmatpush3.bf16.xpose.msra.mxu0 %v3901_v3  ;;  %v3907_v11 = vld [vmem:[%s306_s12 + $0x8] sm:$0xff]   ;;  %v3908_v12 = vld [vmem:[%s306_s12] sm:$0xff]   ;;  %v350_v41 = vld [vmem:[%s5030_s2 + $0x38] sm:$0xff] }
  0x11   : > { %3355 = vmatprep.subr.bf16.mxu0 %v3902_v4  ;;  %401 = vperm.xlu0 %3899, %v352_v7   ;;  %v348_v43 = vld [vmem:[%s5030_s2 + $0x28] sm:$0xff]  ;;  %v347_v44 = vld [vmem:[%s5030_s2 + $0x20] sm:$0xff]  ;;  %v346_v45 = vld [vmem:[%s5030_s2 + $0x18] sm:$0xff] }
  0x12   : > { %v349_v46 = vld [vmem:[%s5030_s2 + $0x30] sm:$0xff] }
  0x13   : > { %v345_v47 = vld [vmem:[%s5030_s2 + $0x10] sm:$0xff] }
  0x18   : > { %3356 = vmatpush3.bf16.xpose.msra.mxu0 %v3902_v4 }
  0x19   : > { %3357 = vmatprep.subr.bf16.mxu0 %v3903_v5 }
  0x20   : > { %3358 = vmatpush3.bf16.xpose.msra.mxu0 %v3903_v5 }
  0x21   : > { %3359 = vmatprep.subr.bf16.mxu0 %v3904_v8 }
  0x28   : > { %3360 = vmatpush3.bf16.xpose.msra.mxu0 %v3904_v8 }
  0x29   : > { %3361 = vmatprep.subr.bf16.mxu0 %v3905_v9 }
  0x30   : > { %3362 = vmatpush3.bf16.xpose.msra.mxu0 %v3905_v9 }
  0x31   : > { %3363 = vmatprep.subr.bf16.mxu0 %v3906_v10 }
  0x38   : > { %3364 = vmatpush3.bf16.xpose.msra.mxu0 %v3906_v10 }
  0x39   : > { %3365 = vmatprep.subr.bf16.mxu0 %v3907_v11 }
  0x40   : > { %3366 = vmatpush3.bf16.xpose.msra.mxu0 %v3907_v11 }
  0x41   : > { %3367 = vmatprep.subr.bf16.mxu0 %v3908_v12 }
  0x48   : > { %3368 = vmatpush3.bf16.xpose.msra.mxu0 %v3908_v12 }
  0x49   : > { %3469 = vmatprep.subr.mxu0 %v3936_v42 }
  0x4f   : > { %3370 = vmatmul.mubr.bf16.vlgmr.msra.gmra.mxu0 %v3910_v13 }
  0x50   : > { %3373 = vmatprep.mubr.bf16.mxu0 %v3911_v14  ;;  %v344_v14 = vld [vmem:[%s5030_s2 + $0x8] sm:$0xff] }
  0x57   : > { %3374 = vmatmul.mubr.bf16.gmra.mxu0 %v3912_v15  ;;  %v343_v15 = vld [vmem:[%s5030_s2] sm:$0xff] }
  0x58   : > { %3377 = vmatprep.mubr.bf16.mxu0 %v3913_v16  ;;  %v2907_v16 = vld [vmem:[%s5033_s5 + $0xb8] sm:$0xff] }
  0x59   : > { %3470 = vmatpush3.msra.mxu0 %v2907_v16  ;;  %v2940_v16 = vld [vmem:[%s5033_s5 + $0x1a0] sm:$0xff] }
  0x5a   : > { %3471 = vmatprep.subr.mxu0 %v3936_v42 }
  0x5f   : > { %3378 = vmatmul.mubr.bf16.gmra.mxu0 %v3914_v17  ;;  %v2906_v17 = vld [vmem:[%s5033_s5 + $0xb0] sm:$0xff] }
  0x60   : > { %3485 = vmatprep.mubr.msk.f32.mxu0 %vm3937_vm1, %v3936_v42  ;;  %3472 = vmatpush3.msra.mxu0 %v2906_v17  ;;  %v2893_v17 = vld [vmem:[%s5033_s5 + $0x50] sm:$0xff] }
  0x61   : > { %3473 = vmatprep.subr.mxu0 %v3936_v42 }
  0x88   : > { %v397_v27 = vpop.permute.xlu0 %396 }
  0x89   : > { %v407_v33 = vpop.permute.xlu1 %406 }
  0x8c   : > { %v402_v35 = vpop.permute.xlu0 %401 }
 0x10f   : > { %v4024_v18 = vpop.f32.mrf.mxu0 }
 0x111   : > { %v4026_v19 = vpop.f32.mrf.mxu0 }
 0x113   : > { %v4028_v20 = vpop.f32.mrf.mxu0 }
 0x115   : > { %v4030_v21 = vpop.f32.mrf.mxu0 }
 0x117   : > { %v3375_v22 = vpop.f32.mrf.mxu0 }
 0x119   : > { %v4032_v23 = vpop.f32.mrf.mxu0 }
 0x11b   : > { %v3376_v24 = vpop.f32.mrf.mxu0 }
 0x11d   : > { %v544_v26 = vpop.f32.mrf.mxu0 }
 0x11f   : > { %v3379_v28 = vpop.f32.mrf.mxu0 }
 0x120   : > { %v566_v38 = vadd.f32 %v3379_v28, %v407_v33 }
 0x121   : > { %v557_v30 = vpop.f32.mrf.mxu0 }
 0x122   : > { %v558_v31 = vadd.f32 %v557_v30, %v397_v27  ;;  %v584_v40 = vsel %vm581_vm0, %v566_v38, -1e+30  ;;  %v697_v38 = vld [vmem:[%s5031_s3 + $0x28] sm:$0xff] }
 0x123   : > { %v3380_v32 = vpop.f32.mrf.mxu0 }
 0x124   : > { %v582_v34 = vsel %vm581_vm0, %v558_v31, -1e+30 }
 0x125   : > { %v560_v36 = vpop.f32.mrf.mxu0  ;;  %585 = vmax.xlane.f32.xlu1 %v582_v34 }
 0x126   : > { %v561_v37 = vadd.f32 %v560_v36, %v402_v35  ;;  %v698_v36 = vld [vmem:[%s5031_s3 + $0x30] sm:$0xff] }
 0x128   : > { %v583_v39 = vsel %vm581_vm0, %v561_v37, -1e+30 }
 0x129   : > { %587 = vmax.xlane.f32.xlu0 %v583_v39 }
 0x12d   : > { %589 = vmax.xlane.f32.xlu0 %v584_v40 }
 0x136   : > { %391 = vperm.xlu1 %3900, %v350_v41  }
 0x13a   : > { %381 = vperm.xlu1 %3900, %v348_v43   ;;  %v695_v43 = vld [vmem:[%s5031_s3 + $0x18] sm:$0xff] }
 0x13e   : > { %376 = vperm.xlu1 %3900, %v347_v44   ;;  %v694_v44 = vld [vmem:[%s5031_s3 + $0x10] sm:$0xff] }
 0x142   : > { %371 = vperm.xlu1 %3900, %v346_v45   ;;  %v693_v45 = vld [vmem:[%s5031_s3 + $0x8] sm:$0xff] }
 0x143   : > { %386 = vperm.xlu0 %3899, %v349_v46   ;;  %v692_v46 = vld [vmem:[%s5031_s3] sm:$0xff] }
 0x146   : > { %366 = vperm.xlu1 %3900, %v345_v47   ;;  %v2900_v47 = vld [vmem:[%s5033_s5 + $0x80] sm:$0xff] }
 0x1ae   : > { %v586_v48 = vpop.xlane.xlu1 %585 }
 0x1af   : > { %v591_v49 = vsub.f32 %v582_v34, %v586_v48  ;;  %v808_v48 = vld [vmem:[%s5033_s5 + $0x38] sm:$0xff] }
 0x1b1   : > { %v594_v50 = vmul.f32 1.442695, %v591_v49 }
 0x1b2   : > { %v588_v51 = vpop.xlane.xlu0 %587  ;;  %v392_v52 = vpop.permute.xlu1 %391 }
 0x1b3   : > { %3915 = vpow2.f32 %v594_v50  ;;  %v553_v53 = vadd.f32 %v3376_v24, %v392_v52  ;;  %v592_v56 = vsub.f32 %v583_v39, %v588_v51  ;;  %v2901_v24 = vld [vmem:[%s5033_s5 + $0x88] sm:$0xff]  ;;  %v807_v50 = vld [vmem:[%s5033_s5 + $0x30] sm:$0xff]  ;;  %v2925_v52 = vld [vmem:[%s5033_s5 + $0x138] sm:$0xff] }
 0x1b5   : > { %v578_v54 = vmax.f32 %v553_v53, 0.0  ;;  %v596_v60 = vmul.f32 1.442695, %v592_v56 }
 0x1b6   : > { %v590_v55 = vpop.xlane.xlu0 %589  ;;  %v382_v58 = vpop.permute.xlu1 %381 }
 0x1b7   : > { %v593_v57 = vsub.f32 %v584_v40, %v590_v55  ;;  %3382 = vmatpush3.xpose.msra.mxu1 %v578_v54  ;;  %v545_v1 = vadd.f32 %v544_v26, %v382_v58  ;;  %v696_v40 = vld [vmem:[%s5031_s3 + $0x20] sm:$0xff]  ;;  %v806_v54 = vld [vmem:[%s5033_s5 + $0x28] sm:$0xff]  ;;  %v2924_v55 = vld [vmem:[%s5033_s5 + $0x130] sm:$0xff] }
 0x1b8   : > { %3383 = vmatprep.subr.mxu1 %v3936_v42  ;;  %v2923_v58 = vld [vmem:[%s5033_s5 + $0x128] sm:$0xff] }
 0x1b9   : > { %v598_v59 = vmul.f32 1.442695, %v593_v57  ;;  %v576_v4 = vmax.f32 %v545_v1, 0.0  ;;  %v805_v57 = vld [vmem:[%s5033_s5 + $0x20] sm:$0xff]  ;;  %v2921_v1 = vld [vmem:[%s5033_s5 + $0x118] sm:$0xff] }
 0x1ba   : > { %v377_v61 = vpop.permute.xlu1 %376 }
 0x1bb   : > { %3917 = vpow2.f32 %v598_v59  ;;  %v542_v5 = vadd.f32 %v4032_v23, %v377_v61  ;;  %v2902_v23 = vld [vmem:[%s5033_s5 + $0x90] sm:$0xff]  ;;  %v2922_v61 = vld [vmem:[%s5033_s5 + $0x120] sm:$0xff] }
 0x1bc   : > { %3919 = vpow2.f32 %v596_v60  ;;  %v804_v60 = vld [vmem:[%s5033_s5 + $0x18] sm:$0xff] }
 0x1bd   : > { %v575_v7 = vmax.f32 %v542_v5, 0.0  ;;  %v2919_v5 = vld [vmem:[%s5033_s5 + $0x108] sm:$0xff] }
 0x1be   : > { %v387_v62 = vpop.permute.xlu0 %386  ;;  %v372_v3 = vpop.permute.xlu1 %371 }
 0x1bf   : > { %v550_v63 = vadd.f32 %v3375_v22, %v387_v62  ;;  %v537_v8 = vadd.f32 %v4028_v20, %v372_v3  ;;  %v2904_v20 = vld [vmem:[%s5033_s5 + $0xa0] sm:$0xff]  ;;  %v2903_v22 = vld [vmem:[%s5033_s5 + $0x98] sm:$0xff]  ;;  %v2920_v3 = vld [vmem:[%s5033_s5 + $0x110] sm:$0xff] }
 0x1c0   : > { %v4055_v0 = vpop.eup %3915 }
 0x1c1   : > { %v577_v2 = vmax.f32 %v550_v63, 0.0  ;;  %600 = vadd.xlane.f32.xlu0 %v4055_v0  ;;  %v574_v11 = vmax.f32 %v537_v8, 0.0  ;;  %v803_v63 = vld [vmem:[%s5033_s5 + $0x10] sm:$0xff] }
 0x1c2   : > { %v367_v9 = vpop.permute.xlu1 %366 }
 0x1c3   : > { %3384 = vmatpush3.xpose.msra.mxu1 %v577_v2  ;;  %v534_v12 = vadd.f32 %v4024_v18, %v367_v9  ;;  %v2905_v18 = vld [vmem:[%s5033_s5 + $0xa8] sm:$0xff]  ;;  %v2897_v9 = vld [vmem:[%s5033_s5 + $0x70] sm:$0xff] }
 0x1c4   : > { %3385 = vmatprep.subr.mxu1 %v3936_v42  ;;  %3474 = vmatpush3.msra.mxu0 %v2905_v18  ;;  %v802_v2 = vld [vmem:[%s5033_s5 + $0x8] sm:$0xff]  ;;  %v2939_v18 = vld [vmem:[%s5033_s5 + $0x198] sm:$0xff] }
 0x1c5   : > { %v573_v13 = vmax.f32 %v534_v12, 0.0  ;;  %3475 = vmatprep.subr.mxu0 %v3936_v42  ;;  %v2942_v12 = vld [vmem:[%s5033_s5 + $0x1b0] sm:$0xff] }
 0x1c6   : > { %3476 = vmatpush3.msra.mxu0 %v2904_v20  ;;  %v2892_v20 = vld [vmem:[%s5033_s5 + $0x48] sm:$0xff] }
 0x1c7   : > { %3386 = vmatpush3.xpose.msra.mxu1 %v576_v4  ;;  %3477 = vmatprep.subr.mxu0 %v3936_v42  ;;  %v801_v4 = vld [vmem:[%s5033_s5] sm:$0xff] }
 0x1c8   : > { %v4060_v6 = vpop.eup %3917  ;;  %3387 = vmatprep.subr.mxu1 %v3936_v42  ;;  %3478 = vmatpush3.msra.mxu0 %v2903_v22  ;;  %v2938_v22 = vld [vmem:[%s5033_s5 + $0x190] sm:$0xff] }
 0x1c9   : > { %604 = vadd.xlane.f32.xlu1 %v4060_v6  ;;  %v4065_v10 = vpop.eup %3919  ;;  %3479 = vmatprep.subr.mxu0 %v3936_v42 }
 0x1ca   : > { %3480 = vmatpush3.msra.mxu0 %v2902_v23  ;;  %v2891_v23 = vld [vmem:[%s5033_s5 + $0x40] sm:$0xff] }
 0x1cb   : > { %3388 = vmatpush3.xpose.msra.mxu1 %v575_v7  ;;  %3481 = vmatprep.subr.mxu0 %v3936_v42  ;;  %v2918_v7 = vld [vmem:[%s5033_s5 + $0x100] sm:$0xff] }
 0x1cc   : > { %3389 = vmatprep.subr.mxu1 %v3936_v42  ;;  %3482 = vmatpush3.msra.mxu0 %v2901_v24  ;;  %v2937_v24 = vld [vmem:[%s5033_s5 + $0x188] sm:$0xff] }
 0x1cd   : > { %602 = vadd.xlane.f32.xlu1 %v4065_v10  ;;  %3483 = vmatprep.subr.mxu0 %v3936_v42 }
 0x1ce   : > { %3484 = vmatpush3.msra.mxu0 %v2900_v47  ;;  %v2932_v47 = vld [vmem:[%s5033_s5 + $0x168] sm:$0xff] }
 0x1cf   : > { %3390 = vmatpush3.xpose.msra.mxu1 %v574_v11  ;;  %3507 = vmatprep.subr.mxu0 %v3936_v42  ;;  %v2896_v11 = vld [vmem:[%s5033_s5 + $0x68] sm:$0xff] }
 0x1d0   : > { %3391 = vmatprep.subr.mxu1 %v3936_v42 }
 0x1d3   : > { %3392 = vmatpush3.xpose.msra.mxu1 %v573_v13  ;;  %v2895_v13 = vld [vmem:[%s5033_s5 + $0x60] sm:$0xff] }
 0x1d4   : > { %3393 = vmatprep.subr.mxu1 %v3936_v42 }
 0x1d7   : > { %361 = vperm.xlu0 %3899, %v344_v14   ;;  %v2941_v14 = vld [vmem:[%s5033_s5 + $0x1a8] sm:$0xff] }
 0x1de   : > { %356 = vperm.xlu1 %3900, %v343_v15   ;;  %v2894_v15 = vld [vmem:[%s5033_s5 + $0x58] sm:$0xff] }
 0x24a   : > { %v601_v25 = vpop.xlane.xlu0 %600 }
 0x24b   : > { %3921 = vrcp.f32 %v601_v25 }
 0x252   : > { %v362_v26 = vpop.permute.xlu0 %361  ;;  %v605_v27 = vpop.xlane.xlu1 %604 }
 0x253   : > { %v529_v28 = vadd.f32 %v4030_v21, %v362_v26  ;;  %v699_v21 = vld [vmem:[%s5031_s3 + $0x38] sm:$0xff] }
 0x254   : > { %v2916_v26 = vld [vmem:[%s5033_s5 + $0xf8] sm:$0xff] }
 0x255   : > { %v572_v29 = vmax.f32 %v529_v28, 0.0 }
 0x256   : > { %v603_v30 = vpop.xlane.xlu1 %602 }
 0x257   : > { %3923 = vrcp.f32 %v603_v30  ;;  %3394 = vmatpush3.xpose.msra.mxu1 %v572_v29  ;;  %v2915_v29 = vld [vmem:[%s5033_s5 + $0xf0] sm:$0xff]  ;;  %v2961_v30 = vld [vmem:[%s5033_s5 + $0x238] sm:$0xff] }
 0x258   : > { %3395 = vmatprep.subr.mxu1 %v3936_v42  ;;  %3925 = vrcp.f32 %v605_v27  ;;  %v3922_v33 = vpop.eup %3921  ;;  %v2936_v27 = vld [vmem:[%s5033_s5 + $0x180] sm:$0xff] }
 0x259   : > { %v609_v35 = vmul.f32 %v3922_v33, %v4055_v0  ;;  %v2913_v33 = vld [vmem:[%s5033_s5 + $0xe0] sm:$0xff] }
 0x25a   : > { %v357_v31 = vpop.permute.xlu1 %356 }
 0x25b   : > { %v526_v32 = vadd.f32 %v4026_v19, %v357_v31  ;;  %v2914_v31 = vld [vmem:[%s5033_s5 + $0xe8] sm:$0xff] }
 0x25d   : > { %v571_v34 = vmax.f32 %v526_v32, 0.0  ;;  %v2960_v32 = vld [vmem:[%s5033_s5 + $0x230] sm:$0xff] }
 0x25f   : > { %3396 = vmatpush3.xpose.msra.mxu1 %v571_v34  ;;  %v2959_v34 = vld [vmem:[%s5033_s5 + $0x228] sm:$0xff] }
 0x260   : > { %3406 = vmatprep.subr.mxu1 %v3936_v42 }
 0x262   : > { %3398 = vmatmul.mubr.f32.vlgmr.msra.gmra.mxu1 %v609_v35  ;;  %v2912_v35 = vld [vmem:[%s5033_s5 + $0xd8] sm:$0xff] }
 0x263   : > { %3400 = vmatprep.mubr.msk.f32.mxu1 %vm3937_vm1, %v3936_v42  ;;  %3407 = vmatpush3.msra.mxu1 %v699_v21  ;;  %v2958_v21 = vld [vmem:[%s5033_s5 + $0x220] sm:$0xff] }
 0x264   : > { %v3924_v19 = vpop.eup %3923  ;;  %3408 = vmatprep.subr.mxu1 %v3936_v42 }
 0x265   : > { %v610_v37 = vmul.f32 %v3924_v19, %v4065_v10  ;;  %3409 = vmatpush3.msra.mxu1 %v698_v36  ;;  %v3926_v39 = vpop.eup %3925  ;;  %v2943_v10 = vld [vmem:[%s5033_s5 + $0x1b8] sm:$0xff]  ;;  %v2911_v36 = vld [vmem:[%s5033_s5 + $0xd0] sm:$0xff] }
 0x266   : > { %3410 = vmatprep.subr.mxu1 %v3936_v42  ;;  %v611_v41 = vmul.f32 %v3926_v39, %v4060_v6  ;;  %v2898_v6 = vld [vmem:[%s5033_s5 + $0x78] sm:$0xff]  ;;  %v2909_v39 = vld [vmem:[%s5033_s5 + $0xc0] sm:$0xff] }
 0x267   : > { %3401 = vmatmul.mubr.f32.gmra.mxu1 %v610_v37  ;;  %v2957_v19 = vld [vmem:[%s5033_s5 + $0x218] sm:$0xff]  ;;  %v2910_v37 = vld [vmem:[%s5033_s5 + $0xc8] sm:$0xff] }
 0x268   : > { %3403 = vmatprep.mubr.msk.f32.mxu1 %vm3937_vm1, %v3936_v42  ;;  %3411 = vmatpush3.msra.mxu1 %v697_v38  ;;  %v2956_v38 = vld [vmem:[%s5033_s5 + $0x210] sm:$0xff] }
 0x269   : > { %3412 = vmatprep.subr.mxu1 %v3936_v42 }
 0x26a   : > { %3413 = vmatpush3.msra.mxu1 %v696_v40  ;;  %v2955_v40 = vld [vmem:[%s5033_s5 + $0x208] sm:$0xff] }
 0x26b   : > { %3404 = vmatmul.mubr.f32.gmra.mxu1 %v611_v41  ;;  %3414 = vmatprep.subr.mxu1 %v3936_v42 }
 0x26c   : > { %3415 = vmatpush3.msra.mxu1 %v695_v43  ;;  %3422 = vmatprep.mubr.msk.f32.mxu1 %vm3937_vm1, %v3936_v42  ;;  %v2934_v43 = vld [vmem:[%s5033_s5 + $0x178] sm:$0xff] }
 0x26d   : > { %3416 = vmatprep.subr.mxu1 %v3936_v42 }
 0x26e   : > { %3417 = vmatpush3.msra.mxu1 %v694_v44  ;;  %v2954_v44 = vld [vmem:[%s5033_s5 + $0x200] sm:$0xff] }
 0x26f   : > { %3418 = vmatprep.subr.mxu1 %v3936_v42 }
 0x270   : > { %3419 = vmatpush3.msra.mxu1 %v693_v45  ;;  %v2933_v45 = vld [vmem:[%s5033_s5 + $0x170] sm:$0xff] }
 0x271   : > { %3420 = vmatprep.subr.mxu1 %v3936_v42 }
 0x272   : > { %3421 = vmatpush3.msra.mxu1 %v692_v46  ;;  %v2979_v46 = vld [vmem:[%s5033_s5 + $0x2b8] sm:$0xff] }
 0x273   : > { %3431 = vmatprep.subr.mxu1 %v3936_v42 }
 0x322   : > { %v4162_v49 = vpop.f32.mrf.mxu1 }
 0x323   : > { %3423 = vmatmul.mubr.msk.f32.vlgmr.msra.gmra.mxu1 %vm707_vm2, %v4162_v49  ;;  %v972_v51 = vrot.slane %v4162_v49, 2  ;;  %v1138_v8 = vrot.slane %v4162_v49, 4  ;;  %v889_v25 = vrot.slane %v4162_v49, 1  ;;  %v1304_v28 = vrot.slane %v4162_v49, 6 }
 0x324   : > { %3432 = vmatpush3.msra.mxu1 %v808_v48  ;;  %v3399_v53 = vpop.f32.mrf.mxu1  ;;  %3425 = vmatprep.mubr.msk.f32.mxu1 %vm3937_vm1, %v3936_v42  ;;  %v1055_v41 = vrot.slane %v4162_v49, 3  ;;  %v2978_v48 = vld [vmem:[%s5033_s5 + $0x2b0] sm:$0xff] }
 0x325   : > { %3433 = vmatprep.subr.mxu1 %v3936_v42  ;;  %3486 = vmatmul.mubr.msk.f32.vlgmr.msra.gmra.mxu0 %vm707_vm2, %v972_v51  ;;  %v2977_v51 = vld [vmem:[%s5033_s5 + $0x2a8] sm:$0xff]  ;;  %v2976_v53 = vld [vmem:[%s5033_s5 + $0x2a0] sm:$0xff] }
 0x326   : > { %3434 = vmatpush3.msra.mxu1 %v807_v50  ;;  %3508 = vmatpush3.msra.mxu0 %v2925_v52  ;;  %v2931_v50 = vld [vmem:[%s5033_s5 + $0x160] sm:$0xff]  ;;  %v2930_v52 = vld [vmem:[%s5033_s5 + $0x158] sm:$0xff] }
 0x327   : > { %3435 = vmatprep.subr.mxu1 %v3936_v42  ;;  %3509 = vmatprep.subr.mxu0 %v3936_v42  ;;  %v4185_v56 = vpop.f32.mrf.mxu1 }
 0x328   : > { %3436 = vmatpush3.msra.mxu1 %v806_v54  ;;  %3510 = vmatpush3.msra.mxu0 %v2924_v55  ;;  %v2929_v54 = vld [vmem:[%s5033_s5 + $0x150] sm:$0xff]  ;;  %v2975_v55 = vld [vmem:[%s5033_s5 + $0x298] sm:$0xff] }
 0x329   : > { %3426 = vmatmul.mubr.msk.f32.gmra.mxu1 %vm707_vm2, %v4185_v56  ;;  %3437 = vmatprep.subr.mxu1 %v3936_v42  ;;  %v3402_v59 = vpop.f32.mrf.mxu1 }
 0x32a   : > { %3511 = vmatprep.subr.mxu0 %v3936_v42  ;;  %3438 = vmatpush3.msra.mxu1 %v805_v57  ;;  %v2928_v57 = vld [vmem:[%s5033_s5 + $0x148] sm:$0xff]  ;;  %v2927_v59 = vld [vmem:[%s5033_s5 + $0x140] sm:$0xff] }
 0x32b   : > { %3512 = vmatpush3.msra.mxu0 %v2923_v58  ;;  %3439 = vmatprep.subr.mxu1 %v3936_v42  ;;  %v4204_v62 = vpop.f32.mrf.mxu1  ;;  %v2974_v58 = vld [vmem:[%s5033_s5 + $0x290] sm:$0xff] }
 0x32c   : > { %3513 = vmatprep.subr.mxu0 %v3936_v42  ;;  %3428 = vmatprep.mubr.msk.f32.mxu1 %vm3937_vm1, %v3936_v42 }
 0x32d   : > { %3440 = vmatpush3.msra.mxu1 %v804_v60  ;;  %3514 = vmatpush3.msra.mxu0 %v2922_v61  ;;  %v3405_v0 = vpop.f32.mrf.mxu1  ;;  %v2973_v60 = vld [vmem:[%s5033_s5 + $0x288] sm:$0xff]  ;;  %v1221_v61 = vrot.slane %v4162_v49, 5 }
 0x32e   : > { %3429 = vmatmul.mubr.msk.f32.gmra.mxu1 %vm707_vm2, %v4204_v62  ;;  %3441 = vmatprep.subr.mxu1 %v3936_v42  ;;  %v2972_v0 = vld [vmem:[%s5033_s5 + $0x280] sm:$0xff] }
 0x32f   : > { %3515 = vmatprep.subr.mxu0 %v3936_v42  ;;  %3442 = vmatpush3.msra.mxu1 %v803_v63  ;;  %v2952_v63 = vld [vmem:[%s5033_s5 + $0x1f8] sm:$0xff] }
 0x330   : > { %3516 = vmatpush3.msra.mxu0 %v2921_v1  ;;  %3443 = vmatprep.subr.mxu1 %v3936_v42  ;;  %v1633_v1 = vrot.slane %v4185_v56, 2 }
 0x331   : > { %3517 = vmatprep.subr.mxu0 %v3936_v42  ;;  %3444 = vmatpush3.msra.mxu1 %v802_v2  ;;  %v2951_v2 = vld [vmem:[%s5033_s5 + $0x1f0] sm:$0xff] }
 0x332   : > { %3518 = vmatpush3.msra.mxu0 %v2920_v3  ;;  %3445 = vmatprep.subr.mxu1 %v3936_v42  ;;  %v2997_v3 = vld [vmem:[%s5033_s5 + $0x338] sm:$0xff] }
 0x333   : > { %3519 = vmatprep.subr.mxu0 %v3936_v42  ;;  %3446 = vmatpush3.msra.mxu1 %v801_v4  ;;  %v2950_v4 = vld [vmem:[%s5033_s5 + $0x1e8] sm:$0xff] }
 0x334   : > { %3447 = vmatprep.mubr.msk.f32.mxu1 %vm3937_vm1, %v3936_v42  ;;  %3520 = vmatpush3.msra.mxu0 %v2919_v5  ;;  %v2996_v5 = vld [vmem:[%s5033_s5 + $0x330] sm:$0xff] }
 0x335   : > { %3448 = vmatmul.mubr.msk.f32.vlgmr.msra.gmra.mxu1 %vm707_vm2, %v4162_v49  ;;  %3450 = vmatprep.subr.mxu1 %v3936_v42 }
 0x336   : > { %3521 = vmatprep.subr.mxu0 %v3936_v42  ;;  %3451 = vmatpush3.msra.mxu1 %v2898_v6  ;;  %v2949_v6 = vld [vmem:[%s5033_s5 + $0x1e0] sm:$0xff] }
 0x337   : > { %3522 = vmatpush3.msra.mxu0 %v2918_v7  ;;  %3523 = vmatprep.mubr.msk.f32.mxu0 %vm3937_vm1, %v3936_v42  ;;  %v2995_v7 = vld [vmem:[%s5033_s5 + $0x328] sm:$0xff] }
 0x338   : > { %3452 = vmatprep.subr.mxu1 %v3936_v42  ;;  %3524 = vmatmul.mubr.msk.f32.vlgmr.msra.gmra.mxu0 %vm707_vm2, %v1138_v8  ;;  %v2948_v8 = vld [vmem:[%s5033_s5 + $0x1d8] sm:$0xff] }
 0x339   : > { %3545 = vmatprep.subr.mxu0 %v3936_v42  ;;  %3453 = vmatpush3.msra.mxu1 %v2897_v9  ;;  %v2994_v9 = vld [vmem:[%s5033_s5 + $0x320] sm:$0xff] }
 0x33a   : > { %3546 = vmatpush3.msra.mxu0 %v2943_v10  ;;  %3454 = vmatprep.subr.mxu1 %v3936_v42  ;;  %v2947_v10 = vld [vmem:[%s5033_s5 + $0x1d0] sm:$0xff] }
 0x33b   : > { %3547 = vmatprep.subr.mxu0 %v3936_v42  ;;  %3455 = vmatpush3.msra.mxu1 %v2896_v11  ;;  %v2993_v11 = vld [vmem:[%s5033_s5 + $0x318] sm:$0xff] }
 0x33c   : > { %3548 = vmatpush3.msra.mxu0 %v2942_v12  ;;  %3456 = vmatprep.subr.mxu1 %v3936_v42  ;;  %v2946_v12 = vld [vmem:[%s5033_s5 + $0x1c8] sm:$0xff] }
 0x33d   : > { %3549 = vmatprep.subr.mxu0 %v3936_v42  ;;  %3457 = vmatpush3.msra.mxu1 %v2895_v13  ;;  %v2992_v13 = vld [vmem:[%s5033_s5 + $0x310] sm:$0xff] }
 0x33e   : > { %3550 = vmatpush3.msra.mxu0 %v2941_v14  ;;  %3458 = vmatprep.subr.mxu1 %v3936_v42  ;;  %v2945_v14 = vld [vmem:[%s5033_s5 + $0x1c0] sm:$0xff] }
 0x33f   : > { %3551 = vmatprep.subr.mxu0 %v3936_v42  ;;  %3459 = vmatpush3.msra.mxu1 %v2894_v15  ;;  %v2991_v15 = vld [vmem:[%s5033_s5 + $0x308] sm:$0xff] }
 0x340   : > { %3552 = vmatpush3.msra.mxu0 %v2940_v16  ;;  %3460 = vmatprep.subr.mxu1 %v3936_v42  ;;  %v1387_v16 = vrot.slane %v4162_v49, 7  ;;  %v1799_v49 = vrot.slane %v4185_v56, 4 }
 0x341   : > { %3553 = vmatprep.subr.mxu0 %v3936_v42  ;;  %3461 = vmatpush3.msra.mxu1 %v2893_v17  ;;  %v2970_v17 = vld [vmem:[%s5033_s5 + $0x278] sm:$0xff] }
 0x342   : > { %3554 = vmatpush3.msra.mxu0 %v2939_v18  ;;  %3462 = vmatprep.subr.mxu1 %v3936_v42  ;;  %v2990_v18 = vld [vmem:[%s5033_s5 + $0x300] sm:$0xff] }
 0x343   : > { %3555 = vmatprep.subr.mxu0 %v3936_v42  ;;  %3463 = vmatpush3.msra.mxu1 %v2892_v20  ;;  %v2969_v20 = vld [vmem:[%s5033_s5 + $0x270] sm:$0xff] }
 0x344   : > { %3556 = vmatpush3.msra.mxu0 %v2938_v22  ;;  %3464 = vmatprep.subr.mxu1 %v3936_v42  ;;  %v3015_v22 = vld [vmem:[%s5033_s5 + $0x3b8] sm:$0xff] }
 0x345   : > { %3557 = vmatprep.subr.mxu0 %v3936_v42  ;;  %3465 = vmatpush3.msra.mxu1 %v2891_v23  ;;  %v2968_v23 = vld [vmem:[%s5033_s5 + $0x268] sm:$0xff] }
 0x346   : > { %3466 = vmatprep.mubr.msk.f32.mxu1 %vm3937_vm1, %v3936_v42  ;;  %3558 = vmatpush3.msra.mxu0 %v2937_v24  ;;  %v3014_v24 = vld [vmem:[%s5033_s5 + $0x3b0] sm:$0xff] }
 0x347   : > { %3467 = vmatmul.mubr.msk.f32.vlgmr.msra.gmra.mxu1 %vm707_vm2, %v889_v25  ;;  %3488 = vmatprep.subr.mxu1 %v3936_v42  ;;  %v2967_v25 = vld [vmem:[%s5033_s5 + $0x260] sm:$0xff] }
 0x348   : > { %3559 = vmatprep.subr.mxu0 %v3936_v42  ;;  %3489 = vmatpush3.msra.mxu1 %v2916_v26  ;;  %v3013_v26 = vld [vmem:[%s5033_s5 + $0x3a8] sm:$0xff] }
 0x349   : > { %3560 = vmatpush3.msra.mxu0 %v2936_v27  ;;  %3561 = vmatprep.mubr.msk.f32.mxu0 %vm3937_vm1, %v3936_v42  ;;  %v2966_v27 = vld [vmem:[%s5033_s5 + $0x258] sm:$0xff] }
 0x34a   : > { %3490 = vmatprep.subr.mxu1 %v3936_v42  ;;  %3562 = vmatmul.mubr.msk.f32.vlgmr.msra.gmra.mxu0 %vm707_vm2, %v1304_v28  ;;  %v3012_v28 = vld [vmem:[%s5033_s5 + $0x3a0] sm:$0xff] }
 0x34b   : > { %3583 = vmatprep.subr.mxu0 %v3936_v42  ;;  %3491 = vmatpush3.msra.mxu1 %v2915_v29  ;;  %v2965_v29 = vld [vmem:[%s5033_s5 + $0x250] sm:$0xff] }
 0x34c   : > { %3584 = vmatpush3.msra.mxu0 %v2961_v30  ;;  %3492 = vmatprep.subr.mxu1 %v3936_v42  ;;  %v3011_v30 = vld [vmem:[%s5033_s5 + $0x398] sm:$0xff] }
 0x34d   : > { %3585 = vmatprep.subr.mxu0 %v3936_v42  ;;  %3493 = vmatpush3.msra.mxu1 %v2914_v31  ;;  %v2964_v31 = vld [vmem:[%s5033_s5 + $0x248] sm:$0xff] }
 0x34e   : > { %3586 = vmatpush3.msra.mxu0 %v2960_v32  ;;  %3494 = vmatprep.subr.mxu1 %v3936_v42  ;;  %v3010_v32 = vld [vmem:[%s5033_s5 + $0x390] sm:$0xff] }
 0x34f   : > { %3587 = vmatprep.subr.mxu0 %v3936_v42  ;;  %3495 = vmatpush3.msra.mxu1 %v2913_v33  ;;  %v2963_v33 = vld [vmem:[%s5033_s5 + $0x240] sm:$0xff] }
 0x350   : > { %3588 = vmatpush3.msra.mxu0 %v2959_v34  ;;  %3496 = vmatprep.subr.mxu1 %v3936_v42  ;;  %v3009_v34 = vld [vmem:[%s5033_s5 + $0x388] sm:$0xff] }
 0x351   : > { %3589 = vmatprep.subr.mxu0 %v3936_v42  ;;  %3497 = vmatpush3.msra.mxu1 %v2912_v35  ;;  %v1550_v35 = vrot.slane %v4185_v56, 1 }
 0x352   : > { %3590 = vmatpush3.msra.mxu0 %v2958_v21  ;;  %3498 = vmatprep.subr.mxu1 %v3936_v42  ;;  %v2988_v21 = vld [vmem:[%s5033_s5 + $0x2f8] sm:$0xff] }
 0x353   : > { %3591 = vmatprep.subr.mxu0 %v3936_v42  ;;  %3499 = vmatpush3.msra.mxu1 %v2911_v36  ;;  %v3008_v36 = vld [vmem:[%s5033_s5 + $0x380] sm:$0xff] }
 0x354   : > { %3592 = vmatpush3.msra.mxu0 %v2957_v19  ;;  %3500 = vmatprep.subr.mxu1 %v3936_v42  ;;  %v1965_v19 = vrot.slane %v4185_v56, 6 }
 0x355   : > { %3593 = vmatprep.subr.mxu0 %v3936_v42  ;;  %3501 = vmatpush3.msra.mxu1 %v2910_v37  ;;  %v2987_v37 = vld [vmem:[%s5033_s5 + $0x2f0] sm:$0xff] }
 0x356   : > { %3594 = vmatpush3.msra.mxu0 %v2956_v38  ;;  %3502 = vmatprep.subr.mxu1 %v3936_v42  ;;  %v3033_v38 = vld [vmem:[%s5033_s5 + $0x438] sm:$0xff] }
 0x357   : > { %3595 = vmatprep.subr.mxu0 %v3936_v42  ;;  %3503 = vmatpush3.msra.mxu1 %v2909_v39  ;;  %v2986_v39 = vld [vmem:[%s5033_s5 + $0x2e8] sm:$0xff] }
 0x358   : > { %3504 = vmatprep.mubr.msk.f32.mxu1 %vm3937_vm1, %v3936_v42  ;;  %3596 = vmatpush3.msra.mxu0 %v2955_v40  ;;  %v3032_v40 = vld [vmem:[%s5033_s5 + $0x430] sm:$0xff] }
 0x359   : > { %3505 = vmatmul.mubr.msk.f32.vlgmr.msra.gmra.mxu1 %vm707_vm2, %v1055_v41  ;;  %3526 = vmatprep.subr.mxu1 %v3936_v42  ;;  %v2985_v41 = vld [vmem:[%s5033_s5 + $0x2e0] sm:$0xff] }
 0x35a   : > { %3597 = vmatprep.subr.mxu0 %v3936_v42  ;;  %3527 = vmatpush3.msra.mxu1 %v2934_v43  ;;  %v3031_v43 = vld [vmem:[%s5033_s5 + $0x428] sm:$0xff] }
 0x35b   : > { %3598 = vmatpush3.msra.mxu0 %v2954_v44  ;;  %3599 = vmatprep.mubr.msk.f32.mxu0 %vm3937_vm1, %v3936_v42  ;;  %v2984_v44 = vld [vmem:[%s5033_s5 + $0x2d8] sm:$0xff] }
 0x35c   : > { %3528 = vmatprep.subr.mxu1 %v3936_v42  ;;  %3600 = vmatmul.mubr.msk.f32.vlgmr.msra.gmra.mxu0 %vm707_vm2, %v4185_v56 }
 0x35d   : > { %3621 = vmatprep.subr.mxu0 %v3936_v42  ;;  %3529 = vmatpush3.msra.mxu1 %v2933_v45  ;;  %v3030_v45 = vld [vmem:[%s5033_s5 + $0x420] sm:$0xff] }
 0x35e   : > { %3622 = vmatpush3.msra.mxu0 %v2979_v46  ;;  %3530 = vmatprep.subr.mxu1 %v3936_v42  ;;  %v2983_v46 = vld [vmem:[%s5033_s5 + $0x2d0] sm:$0xff] }
 0x35f   : > { %3623 = vmatprep.subr.mxu0 %v3936_v42  ;;  %3531 = vmatpush3.msra.mxu1 %v2932_v47  ;;  %v3029_v47 = vld [vmem:[%s5033_s5 + $0x418] sm:$0xff] }
 0x360   : > { %3624 = vmatpush3.msra.mxu0 %v2978_v48  ;;  %3532 = vmatprep.subr.mxu1 %v3936_v42  ;;  %v2982_v48 = vld [vmem:[%s5033_s5 + $0x2c8] sm:$0xff] }
 0x361   : > { %3625 = vmatprep.subr.mxu0 %v3936_v42  ;;  %3533 = vmatpush3.msra.mxu1 %v2931_v50  ;;  %v3028_v50 = vld [vmem:[%s5033_s5 + $0x410] sm:$0xff] }
 0x362   : > { %3626 = vmatpush3.msra.mxu0 %v2977_v51  ;;  %3534 = vmatprep.subr.mxu1 %v3936_v42  ;;  %v2981_v51 = vld [vmem:[%s5033_s5 + $0x2c0] sm:$0xff] }
 0x363   : > { %3627 = vmatprep.subr.mxu0 %v3936_v42  ;;  %3535 = vmatpush3.msra.mxu1 %v2930_v52  ;;  %v3027_v52 = vld [vmem:[%s5033_s5 + $0x408] sm:$0xff] }
 0x364   : > { %3628 = vmatpush3.msra.mxu0 %v2976_v53  ;;  %3536 = vmatprep.subr.mxu1 %v3936_v42  ;;  %v1716_v53 = vrot.slane %v4185_v56, 3 }
 0x365   : > { %3629 = vmatprep.subr.mxu0 %v3936_v42  ;;  %3537 = vmatpush3.msra.mxu1 %v2929_v54  ;;  %v3006_v54 = vld [vmem:[%s5033_s5 + $0x378] sm:$0xff] }
 0x366   : > { %3630 = vmatpush3.msra.mxu0 %v2975_v55  ;;  %3538 = vmatprep.subr.mxu1 %v3936_v42  ;;  %v3026_v55 = vld [vmem:[%s5033_s5 + $0x400] sm:$0xff] }
 0x367   : > { %3631 = vmatprep.subr.mxu0 %v3936_v42  ;;  %3539 = vmatpush3.msra.mxu1 %v2928_v57  ;;  %v3005_v57 = vld [vmem:[%s5033_s5 + $0x370] sm:$0xff] }
 0x368   : > { %3632 = vmatpush3.msra.mxu0 %v2974_v58  ;;  %3540 = vmatprep.subr.mxu1 %v3936_v42  ;;  %v3051_v58 = vld [vmem:[%s5033_s5 + $0x4b8] sm:$0xff] }
 0x369   : > { %3633 = vmatprep.subr.mxu0 %v3936_v42  ;;  %3541 = vmatpush3.msra.mxu1 %v2927_v59  ;;  %v3004_v59 = vld [vmem:[%s5033_s5 + $0x368] sm:$0xff] }
 0x36a   : > { %3542 = vmatprep.mubr.msk.f32.mxu1 %vm3937_vm1, %v3936_v42  ;;  %3634 = vmatpush3.msra.mxu0 %v2973_v60  ;;  %v3050_v60 = vld [vmem:[%s5033_s5 + $0x4b0] sm:$0xff] }
 0x36b   : > { %3543 = vmatmul.mubr.msk.f32.vlgmr.msra.gmra.mxu1 %vm707_vm2, %v1221_v61  ;;  %3564 = vmatprep.subr.mxu1 %v3936_v42  ;;  %v3003_v61 = vld [vmem:[%s5033_s5 + $0x360] sm:$0xff] }
 0x36c   : > { %3635 = vmatprep.subr.mxu0 %v3936_v42  ;;  %3565 = vmatpush3.msra.mxu1 %v2952_v63  ;;  %v3049_v63 = vld [vmem:[%s5033_s5 + $0x4a8] sm:$0xff] }
 0x36d   : > { %3636 = vmatpush3.msra.mxu0 %v2972_v0  ;;  %3637 = vmatprep.mubr.msk.f32.mxu0 %vm3937_vm1, %v3936_v42  ;;  %v3002_v0 = vld [vmem:[%s5033_s5 + $0x358] sm:$0xff] }
 0x36e   : > { %3566 = vmatprep.subr.mxu1 %v3936_v42  ;;  %3638 = vmatmul.mubr.msk.f32.vlgmr.msra.gmra.mxu0 %vm707_vm2, %v1633_v1  ;;  %v3048_v1 = vld [vmem:[%s5033_s5 + $0x4a0] sm:$0xff] }
 0x36f   : > { %3659 = vmatprep.subr.mxu0 %v3936_v42  ;;  %3567 = vmatpush3.msra.mxu1 %v2951_v2  ;;  %v3001_v2 = vld [vmem:[%s5033_s5 + $0x350] sm:$0xff] }
 0x370   : > { %3660 = vmatpush3.msra.mxu0 %v2997_v3  ;;  %3568 = vmatprep.subr.mxu1 %v3936_v42  ;;  %v3047_v3 = vld [vmem:[%s5033_s5 + $0x498] sm:$0xff] }
 0x371   : > { %3661 = vmatprep.subr.mxu0 %v3936_v42  ;;  %3569 = vmatpush3.msra.mxu1 %v2950_v4  ;;  %v3000_v4 = vld [vmem:[%s5033_s5 + $0x348] sm:$0xff] }
 0x372   : > { %3662 = vmatpush3.msra.mxu0 %v2996_v5  ;;  %3570 = vmatprep.subr.mxu1 %v3936_v42  ;;  %v3046_v5 = vld [vmem:[%s5033_s5 + $0x490] sm:$0xff] }
 0x373   : > { %3663 = vmatprep.subr.mxu0 %v3936_v42  ;;  %3571 = vmatpush3.msra.mxu1 %v2949_v6  ;;  %v2999_v6 = vld [vmem:[%s5033_s5 + $0x340] sm:$0xff] }
 0x374   : > { %3664 = vmatpush3.msra.mxu0 %v2995_v7  ;;  %3572 = vmatprep.subr.mxu1 %v3936_v42  ;;  %v3045_v7 = vld [vmem:[%s5033_s5 + $0x488] sm:$0xff] }
 0x375   : > { %3665 = vmatprep.subr.mxu0 %v3936_v42  ;;  %3573 = vmatpush3.msra.mxu1 %v2948_v8  ;;  %v1882_v8 = vrot.slane %v4185_v56, 5 }
 0x376   : > { %3666 = vmatpush3.msra.mxu0 %v2994_v9  ;;  %3574 = vmatprep.subr.mxu1 %v3936_v42  ;;  %v3024_v9 = vld [vmem:[%s5033_s5 + $0x3f8] sm:$0xff] }
 0x377   : > { %3667 = vmatprep.subr.mxu0 %v3936_v42  ;;  %3575 = vmatpush3.msra.mxu1 %v2947_v10  ;;  %v3044_v10 = vld [vmem:[%s5033_s5 + $0x480] sm:$0xff] }
 0x378   : > { %3668 = vmatpush3.msra.mxu0 %v2993_v11  ;;  %3576 = vmatprep.subr.mxu1 %v3936_v42  ;;  %v2294_v11 = vrot.slane %v4204_v62, 2 }
 0x379   : > { %3669 = vmatprep.subr.mxu0 %v3936_v42  ;;  %3577 = vmatpush3.msra.mxu1 %v2946_v12  ;;  %v3023_v12 = vld [vmem:[%s5033_s5 + $0x3f0] sm:$0xff] }
 0x37a   : > { %3670 = vmatpush3.msra.mxu0 %v2992_v13  ;;  %3578 = vmatprep.subr.mxu1 %v3936_v42  ;;  %v3069_v13 = vld [vmem:[%s5033_s5 + $0x538] sm:$0xff] }
 0x37b   : > { %3671 = vmatprep.subr.mxu0 %v3936_v42  ;;  %3579 = vmatpush3.msra.mxu1 %v2945_v14  ;;  %v3022_v14 = vld [vmem:[%s5033_s5 + $0x3e8] sm:$0xff] }
 0x37c   : > { %3580 = vmatprep.mubr.msk.f32.mxu1 %vm3937_vm1, %v3936_v42  ;;  %3672 = vmatpush3.msra.mxu0 %v2991_v15  ;;  %v3068_v15 = vld [vmem:[%s5033_s5 + $0x530] sm:$0xff] }
 0x37d   : > { %3581 = vmatmul.mubr.msk.f32.vlgmr.msra.gmra.mxu1 %vm707_vm2, %v1387_v16  ;;  %3602 = vmatprep.subr.mxu1 %v3936_v42  ;;  %v3021_v16 = vld [vmem:[%s5033_s5 + $0x3e0] sm:$0xff] }
 0x37e   : > { %3673 = vmatprep.subr.mxu0 %v3936_v42  ;;  %3603 = vmatpush3.msra.mxu1 %v2970_v17  ;;  %v3067_v17 = vld [vmem:[%s5033_s5 + $0x528] sm:$0xff] }
 0x37f   : > { %3674 = vmatpush3.msra.mxu0 %v2990_v18  ;;  %3675 = vmatprep.mubr.msk.f32.mxu0 %vm3937_vm1, %v3936_v42  ;;  %v3020_v18 = vld [vmem:[%s5033_s5 + $0x3d8] sm:$0xff] }
 0x380   : > { %3604 = vmatprep.subr.mxu1 %v3936_v42  ;;  %3676 = vmatmul.mubr.msk.f32.vlgmr.msra.gmra.mxu0 %vm707_vm2, %v1799_v49  ;;  %v3066_v49 = vld [vmem:[%s5033_s5 + $0x520] sm:$0xff] }
 0x381   : > { %3697 = vmatprep.subr.mxu0 %v3936_v42  ;;  %3605 = vmatpush3.msra.mxu1 %v2969_v20  ;;  %v3019_v20 = vld [vmem:[%s5033_s5 + $0x3d0] sm:$0xff] }
 0x382   : > { %3698 = vmatpush3.msra.mxu0 %v3015_v22  ;;  %3606 = vmatprep.subr.mxu1 %v3936_v42  ;;  %v3065_v22 = vld [vmem:[%s5033_s5 + $0x518] sm:$0xff] }
 0x383   : > { %3699 = vmatprep.subr.mxu0 %v3936_v42  ;;  %3607 = vmatpush3.msra.mxu1 %v2968_v23  ;;  %v3018_v23 = vld [vmem:[%s5033_s5 + $0x3c8] sm:$0xff] }
 0x384   : > { %3700 = vmatpush3.msra.mxu0 %v3014_v24  ;;  %3608 = vmatprep.subr.mxu1 %v3936_v42  ;;  %v3064_v24 = vld [vmem:[%s5033_s5 + $0x510] sm:$0xff] }
 0x385   : > { %3701 = vmatprep.subr.mxu0 %v3936_v42  ;;  %3609 = vmatpush3.msra.mxu1 %v2967_v25  ;;  %v3017_v25 = vld [vmem:[%s5033_s5 + $0x3c0] sm:$0xff] }
 0x386   : > { %3702 = vmatpush3.msra.mxu0 %v3013_v26  ;;  %3610 = vmatprep.subr.mxu1 %v3936_v42  ;;  %v3063_v26 = vld [vmem:[%s5033_s5 + $0x508] sm:$0xff] }
 0x387   : > { %3703 = vmatprep.subr.mxu0 %v3936_v42  ;;  %3611 = vmatpush3.msra.mxu1 %v2966_v27  ;;  %v2048_v27 = vrot.slane %v4185_v56, 7  ;;  %v2460_v56 = vrot.slane %v4204_v62, 4 }
 0x388   : > { %3704 = vmatpush3.msra.mxu0 %v3012_v28  ;;  %3612 = vmatprep.subr.mxu1 %v3936_v42  ;;  %v3042_v28 = vld [vmem:[%s5033_s5 + $0x478] sm:$0xff] }
 0x389   : > { %3705 = vmatprep.subr.mxu0 %v3936_v42  ;;  %3613 = vmatpush3.msra.mxu1 %v2965_v29  ;;  %v3062_v29 = vld [vmem:[%s5033_s5 + $0x500] sm:$0xff] }
 0x38a   : > { %3706 = vmatpush3.msra.mxu0 %v3011_v30  ;;  %3614 = vmatprep.subr.mxu1 %v3936_v42  ;;  %v3041_v30 = vld [vmem:[%s5033_s5 + $0x470] sm:$0xff] }
 0x38b   : > { %3707 = vmatprep.subr.mxu0 %v3936_v42  ;;  %3615 = vmatpush3.msra.mxu1 %v2964_v31  ;;  %v3087_v31 = vld [vmem:[%s5033_s5 + $0x5b8] sm:$0xff] }
 0x38c   : > { %3708 = vmatpush3.msra.mxu0 %v3010_v32  ;;  %3616 = vmatprep.subr.mxu1 %v3936_v42  ;;  %v3040_v32 = vld [vmem:[%s5033_s5 + $0x468] sm:$0xff] }
 0x38d   : > { %3709 = vmatprep.subr.mxu0 %v3936_v42  ;;  %3617 = vmatpush3.msra.mxu1 %v2963_v33  ;;  %v3086_v33 = vld [vmem:[%s5033_s5 + $0x5b0] sm:$0xff] }
 0x38e   : > { %3618 = vmatprep.mubr.msk.f32.mxu1 %vm3937_vm1, %v3936_v42  ;;  %3710 = vmatpush3.msra.mxu0 %v3009_v34  ;;  %v3039_v34 = vld [vmem:[%s5033_s5 + $0x460] sm:$0xff] }
 0x38f   : > { %3619 = vmatmul.mubr.msk.f32.vlgmr.msra.gmra.mxu1 %vm707_vm2, %v1550_v35  ;;  %3640 = vmatprep.subr.mxu1 %v3936_v42  ;;  %v3085_v35 = vld [vmem:[%s5033_s5 + $0x5a8] sm:$0xff] }
 0x390   : > { %3711 = vmatprep.subr.mxu0 %v3936_v42  ;;  %3641 = vmatpush3.msra.mxu1 %v2988_v21  ;;  %v3038_v21 = vld [vmem:[%s5033_s5 + $0x458] sm:$0xff] }
 0x391   : > { %3712 = vmatpush3.msra.mxu0 %v3008_v36  ;;  %3713 = vmatprep.mubr.msk.f32.mxu0 %vm3937_vm1, %v3936_v42  ;;  %v3084_v36 = vld [vmem:[%s5033_s5 + $0x5a0] sm:$0xff] }
 0x392   : > { %3642 = vmatprep.subr.mxu1 %v3936_v42  ;;  %3714 = vmatmul.mubr.msk.f32.vlgmr.msra.gmra.mxu0 %vm707_vm2, %v1965_v19  ;;  %v3037_v19 = vld [vmem:[%s5033_s5 + $0x450] sm:$0xff] }
 0x393   : > { %3735 = vmatprep.subr.mxu0 %v3936_v42  ;;  %3643 = vmatpush3.msra.mxu1 %v2987_v37  ;;  %v3083_v37 = vld [vmem:[%s5033_s5 + $0x598] sm:$0xff] }
 0x394   : > { %3736 = vmatpush3.msra.mxu0 %v3033_v38  ;;  %3644 = vmatprep.subr.mxu1 %v3936_v42  ;;  %v3036_v38 = vld [vmem:[%s5033_s5 + $0x448] sm:$0xff] }
 0x395   : > { %3737 = vmatprep.subr.mxu0 %v3936_v42  ;;  %3645 = vmatpush3.msra.mxu1 %v2986_v39  ;;  %v3082_v39 = vld [vmem:[%s5033_s5 + $0x590] sm:$0xff] }
 0x396   : > { %3738 = vmatpush3.msra.mxu0 %v3032_v40  ;;  %3646 = vmatprep.subr.mxu1 %v3936_v42  ;;  %v3035_v40 = vld [vmem:[%s5033_s5 + $0x440] sm:$0xff] }
 0x397   : > { %3739 = vmatprep.subr.mxu0 %v3936_v42  ;;  %3647 = vmatpush3.msra.mxu1 %v2985_v41  ;;  %v3081_v41 = vld [vmem:[%s5033_s5 + $0x588] sm:$0xff] }
 0x398   : > { %3740 = vmatpush3.msra.mxu0 %v3031_v43  ;;  %3648 = vmatprep.subr.mxu1 %v3936_v42  ;;  %v2211_v43 = vrot.slane %v4204_v62, 1 }
 0x399   : > { %3741 = vmatprep.subr.mxu0 %v3936_v42  ;;  %3649 = vmatpush3.msra.mxu1 %v2984_v44  ;;  %v3060_v44 = vld [vmem:[%s5033_s5 + $0x4f8] sm:$0xff] }
 0x39a   : > { %3742 = vmatpush3.msra.mxu0 %v3030_v45  ;;  %3650 = vmatprep.subr.mxu1 %v3936_v42  ;;  %v3080_v45 = vld [vmem:[%s5033_s5 + $0x580] sm:$0xff] }
 0x39b   : > { %3743 = vmatprep.subr.mxu0 %v3936_v42  ;;  %3651 = vmatpush3.msra.mxu1 %v2983_v46  ;;  %v2626_v46 = vrot.slane %v4204_v62, 6 }
 0x39c   : > { %3744 = vmatpush3.msra.mxu0 %v3029_v47  ;;  %3652 = vmatprep.subr.mxu1 %v3936_v42  ;;  %v3059_v47 = vld [vmem:[%s5033_s5 + $0x4f0] sm:$0xff] }
 0x39d   : > { %3745 = vmatprep.subr.mxu0 %v3936_v42  ;;  %3653 = vmatpush3.msra.mxu1 %v2982_v48  ;;  %v3058_v48 = vld [vmem:[%s5033_s5 + $0x4e8] sm:$0xff] }
 0x39e   : > { %3746 = vmatpush3.msra.mxu0 %v3028_v50  ;;  %3654 = vmatprep.subr.mxu1 %v3936_v42  ;;  %v3057_v50 = vld [vmem:[%s5033_s5 + $0x4e0] sm:$0xff] }
 0x39f   : > { %3747 = vmatprep.subr.mxu0 %v3936_v42  ;;  %3655 = vmatpush3.msra.mxu1 %v2981_v51  ;;  %v3056_v51 = vld [vmem:[%s5033_s5 + $0x4d8] sm:$0xff] }
 0x3a0   : > { %3656 = vmatprep.mubr.msk.f32.mxu1 %vm3937_vm1, %v3936_v42  ;;  %3748 = vmatpush3.msra.mxu0 %v3027_v52  ;;  %v3055_v52 = vld [vmem:[%s5033_s5 + $0x4d0] sm:$0xff] }
 0x3a1   : > { %3657 = vmatmul.mubr.msk.f32.vlgmr.msra.gmra.mxu1 %vm707_vm2, %v1716_v53  ;;  %3678 = vmatprep.subr.mxu1 %v3936_v42  ;;  %v2886_v53 = vld [vmem:[%s5032_s4] ss:$0 sm:$0xff] }
 0x3a2   : > { %3749 = vmatprep.subr.mxu0 %v3936_v42  ;;  %3679 = vmatpush3.msra.mxu1 %v3006_v54  ;;  %v3054_v54 = vld [vmem:[%s5033_s5 + $0x4c8] sm:$0xff] }
 0x3a3   : > { %3750 = vmatpush3.msra.mxu0 %v3026_v55  ;;  %3751 = vmatprep.mubr.msk.f32.mxu0 %vm3937_vm1, %v3936_v42 }
 0x3a4   : > { %3680 = vmatprep.subr.mxu1 %v3936_v42  ;;  %3752 = vmatmul.mubr.msk.f32.vlgmr.msra.gmra.mxu0 %vm707_vm2, %v4204_v62 }
 0x3a5   : > { %3773 = vmatprep.subr.mxu0 %v3936_v42  ;;  %3681 = vmatpush3.msra.mxu1 %v3005_v57  ;;  %v3053_v57 = vld [vmem:[%s5033_s5 + $0x4c0] sm:$0xff] }
 0x3a6   : > { %3774 = vmatpush3.msra.mxu0 %v3051_v58  ;;  %3682 = vmatprep.subr.mxu1 %v3936_v42 }
 0x3a7   : > { %3775 = vmatprep.subr.mxu0 %v3936_v42  ;;  %3683 = vmatpush3.msra.mxu1 %v3004_v59 }
 0x3a8   : > { %3776 = vmatpush3.msra.mxu0 %v3050_v60  ;;  %3684 = vmatprep.subr.mxu1 %v3936_v42 }
 0x3a9   : > { %3777 = vmatprep.subr.mxu0 %v3936_v42  ;;  %3685 = vmatpush3.msra.mxu1 %v3003_v61  ;;  %v2377_v61 = vrot.slane %v4204_v62, 3 }
 0x3aa   : > { %3778 = vmatpush3.msra.mxu0 %v3049_v63  ;;  %3686 = vmatprep.subr.mxu1 %v3936_v42  ;;  %v3078_v63 = vld [vmem:[%s5033_s5 + $0x578] sm:$0xff] }
 0x3ab   : > { %3779 = vmatprep.subr.mxu0 %v3936_v42  ;;  %3687 = vmatpush3.msra.mxu1 %v3002_v0 }
 0x3ac   : > { %3780 = vmatpush3.msra.mxu0 %v3048_v1  ;;  %3688 = vmatprep.subr.mxu1 %v3936_v42  ;;  %v3077_v1 = vld [vmem:[%s5033_s5 + $0x570] sm:$0xff] }
 0x3ad   : > { %3781 = vmatprep.subr.mxu0 %v3936_v42  ;;  %3689 = vmatpush3.msra.mxu1 %v3001_v2 }
 0x3ae   : > { %3782 = vmatpush3.msra.mxu0 %v3047_v3  ;;  %3690 = vmatprep.subr.mxu1 %v3936_v42  ;;  %v3076_v3 = vld [vmem:[%s5033_s5 + $0x568] sm:$0xff] }
 0x3af   : > { %3783 = vmatprep.subr.mxu0 %v3936_v42  ;;  %3691 = vmatpush3.msra.mxu1 %v3000_v4 }
 0x3b0   : > { %3784 = vmatpush3.msra.mxu0 %v3046_v5  ;;  %3692 = vmatprep.subr.mxu1 %v3936_v42 }
 0x3b1   : > { %3785 = vmatprep.subr.mxu0 %v3936_v42  ;;  %3693 = vmatpush3.msra.mxu1 %v2999_v6  ;;  %v3075_v6 = vld [vmem:[%s5033_s5 + $0x560] sm:$0xff] }
 0x3b2   : > { %3694 = vmatprep.mubr.msk.f32.mxu1 %vm3937_vm1, %v3936_v42  ;;  %3786 = vmatpush3.msra.mxu0 %v3045_v7  ;;  %v3074_v7 = vld [vmem:[%s5033_s5 + $0x558] sm:$0xff] }
 0x3b3   : > { %3695 = vmatmul.mubr.msk.f32.vlgmr.msra.gmra.mxu1 %vm707_vm2, %v1882_v8  ;;  %3716 = vmatprep.subr.mxu1 %v3936_v42 }
 0x3b4   : > { %3787 = vmatprep.subr.mxu0 %v3936_v42  ;;  %3717 = vmatpush3.msra.mxu1 %v3024_v9 }
 0x3b5   : > { %3788 = vmatpush3.msra.mxu0 %v3044_v10  ;;  %3789 = vmatprep.mubr.msk.f32.mxu0 %vm3937_vm1, %v3936_v42  ;;  %v3073_v10 = vld [vmem:[%s5033_s5 + $0x550] sm:$0xff] }
 0x3b6   : > { %3718 = vmatprep.subr.mxu1 %v3936_v42  ;;  %3790 = vmatmul.mubr.msk.f32.vlgmr.msra.gmra.mxu0 %vm707_vm2, %v2294_v11 }
 0x3b7   : > { %3811 = vmatprep.subr.mxu0 %v3936_v42  ;;  %3719 = vmatpush3.msra.mxu1 %v3023_v12  ;;  %v3072_v12 = vld [vmem:[%s5033_s5 + $0x548] sm:$0xff] }
 0x3b8   : > { %3812 = vmatpush3.msra.mxu0 %v3069_v13  ;;  %3720 = vmatprep.subr.mxu1 %v3936_v42  ;;  %v3071_v13 = vld [vmem:[%s5033_s5 + $0x540] sm:$0xff] }
 0x3b9   : > { %3813 = vmatprep.subr.mxu0 %v3936_v42  ;;  %3721 = vmatpush3.msra.mxu1 %v3022_v14 }
 0x3ba   : > { %3814 = vmatpush3.msra.mxu0 %v3068_v15  ;;  %3722 = vmatprep.subr.mxu1 %v3936_v42  ;;  %v2543_v15 = vrot.slane %v4204_v62, 5 }
 0x3bb   : > { %3815 = vmatprep.subr.mxu0 %v3936_v42  ;;  %3723 = vmatpush3.msra.mxu1 %v3021_v16  ;;  %v3096_v16 = vld [vmem:[%s5033_s5 + $0x5f8] sm:$0xff] }
 0x3bc   : > { %3816 = vmatpush3.msra.mxu0 %v3067_v17  ;;  %3724 = vmatprep.subr.mxu1 %v3936_v42 }
 0x3bd   : > { %3817 = vmatprep.subr.mxu0 %v3936_v42  ;;  %3725 = vmatpush3.msra.mxu1 %v3020_v18  ;;  %v3095_v18 = vld [vmem:[%s5033_s5 + $0x5f0] sm:$0xff] }
 0x3be   : > { %3818 = vmatpush3.msra.mxu0 %v3066_v49  ;;  %3726 = vmatprep.subr.mxu1 %v3936_v42 }
 0x3bf   : > { %3819 = vmatprep.subr.mxu0 %v3936_v42  ;;  %3727 = vmatpush3.msra.mxu1 %v3019_v20  ;;  %v3094_v20 = vld [vmem:[%s5033_s5 + $0x5e8] sm:$0xff] }
 0x3c0   : > { %3820 = vmatpush3.msra.mxu0 %v3065_v22  ;;  %3728 = vmatprep.subr.mxu1 %v3936_v42 }
 0x3c1   : > { %3821 = vmatprep.subr.mxu0 %v3936_v42  ;;  %3729 = vmatpush3.msra.mxu1 %v3018_v23  ;;  %v3093_v23 = vld [vmem:[%s5033_s5 + $0x5e0] sm:$0xff] }
 0x3c2   : > { %3822 = vmatpush3.msra.mxu0 %v3064_v24  ;;  %3730 = vmatprep.subr.mxu1 %v3936_v42  ;;  %v3092_v24 = vld [vmem:[%s5033_s5 + $0x5d8] sm:$0xff] }
 0x3c3   : > { %3823 = vmatprep.subr.mxu0 %v3936_v42  ;;  %3731 = vmatpush3.msra.mxu1 %v3017_v25  ;;  %v3091_v25 = vld [vmem:[%s5033_s5 + $0x5d0] sm:$0xff] }
 0x3c4   : > { %3732 = vmatprep.mubr.msk.f32.mxu1 %vm3937_vm1, %v3936_v42  ;;  %3824 = vmatpush3.msra.mxu0 %v3063_v26  ;;  %v3090_v26 = vld [vmem:[%s5033_s5 + $0x5c8] sm:$0xff] }
 0x3c5   : > { %3733 = vmatmul.mubr.msk.f32.vlgmr.msra.gmra.mxu1 %vm707_vm2, %v2048_v27  ;;  %3754 = vmatprep.subr.mxu1 %v3936_v42  ;;  %v800_v27 = vld [vmem:[%s5034_s6] sm:$0x1] }
 0x3c6   : > { %3825 = vmatprep.subr.mxu0 %v3936_v42  ;;  %3755 = vmatpush3.msra.mxu1 %v3042_v28  ;;  %v3089_v28 = vld [vmem:[%s5033_s5 + $0x5c0] sm:$0xff] }
 0x3c7   : > { %3826 = vmatpush3.msra.mxu0 %v3062_v29  ;;  %3827 = vmatprep.mubr.msk.f32.mxu0 %vm3937_vm1, %v3936_v42 }
 0x3c8   : > { %3756 = vmatprep.subr.mxu1 %v3936_v42  ;;  %3828 = vmatmul.mubr.msk.f32.vlgmr.msra.gmra.mxu0 %vm707_vm2, %v2460_v56  ;;  %v2709_v56 = vrot.slane %v4204_v62, 7 }
 0x3c9   : > { %3849 = vmatprep.subr.mxu0 %v3936_v42  ;;  %3757 = vmatpush3.msra.mxu1 %v3041_v30 }
 0x3ca   : > { %3850 = vmatpush3.msra.mxu0 %v3087_v31  ;;  %3758 = vmatprep.subr.mxu1 %v3936_v42 }
 0x3cb   : > { %3851 = vmatprep.subr.mxu0 %v3936_v42  ;;  %3759 = vmatpush3.msra.mxu1 %v3040_v32 }
 0x3cc   : > { %3852 = vmatpush3.msra.mxu0 %v3086_v33  ;;  %3760 = vmatprep.subr.mxu1 %v3936_v42 }
 0x3cd   : > { %3853 = vmatprep.subr.mxu0 %v3936_v42  ;;  %3761 = vmatpush3.msra.mxu1 %v3039_v34 }
 0x3ce   : > { %3854 = vmatpush3.msra.mxu0 %v3085_v35  ;;  %3762 = vmatprep.subr.mxu1 %v3936_v42 }
 0x3cf   : > { %3855 = vmatprep.subr.mxu0 %v3936_v42  ;;  %3763 = vmatpush3.msra.mxu1 %v3038_v21 }
 0x3d0   : > { %3856 = vmatpush3.msra.mxu0 %v3084_v36  ;;  %3764 = vmatprep.subr.mxu1 %v3936_v42 }
 0x3d1   : > { %3857 = vmatprep.subr.mxu0 %v3936_v42  ;;  %3765 = vmatpush3.msra.mxu1 %v3037_v19 }
 0x3d2   : > { %3858 = vmatpush3.msra.mxu0 %v3083_v37  ;;  %3766 = vmatprep.subr.mxu1 %v3936_v42 }
 0x3d3   : > { %3859 = vmatprep.subr.mxu0 %v3936_v42  ;;  %3767 = vmatpush3.msra.mxu1 %v3036_v38 }
 0x3d4   : > { %3860 = vmatpush3.msra.mxu0 %v3082_v39  ;;  %3768 = vmatprep.subr.mxu1 %v3936_v42 }
 0x3d5   : > { %3861 = vmatprep.subr.mxu0 %v3936_v42  ;;  %3769 = vmatpush3.msra.mxu1 %v3035_v40 }
 0x3d6   : > { %3770 = vmatprep.mubr.msk.f32.mxu1 %vm3937_vm1, %v3936_v42  ;;  %3862 = vmatpush3.msra.mxu0 %v3081_v41 }
 0x3d7   : > { %3771 = vmatmul.mubr.msk.f32.vlgmr.msra.gmra.mxu1 %vm707_vm2, %v2211_v43  ;;  %3792 = vmatprep.subr.mxu1 %v3936_v42 }
 0x3d8   : > { %3863 = vmatprep.subr.mxu0 %v3936_v42  ;;  %3793 = vmatpush3.msra.mxu1 %v3060_v44 }
 0x3d9   : > { %3864 = vmatpush3.msra.mxu0 %v3080_v45  ;;  %3865 = vmatprep.mubr.msk.f32.mxu0 %vm3937_vm1, %v3936_v42 }
 0x3da   : > { %3794 = vmatprep.subr.mxu1 %v3936_v42  ;;  %3866 = vmatmul.mubr.msk.f32.vlgmr.msra.gmra.mxu0 %vm707_vm2, %v2626_v46 }
 0x3db   : > { %3795 = vmatpush3.msra.mxu1 %v3059_v47  ;;  %3808 = vmatprep.mubr.msk.f32.mxu1 %vm3937_vm1, %v3936_v42 }
 0x3dc   : > { %3796 = vmatprep.subr.mxu1 %v3936_v42 }
 0x3dd   : > { %3797 = vmatpush3.msra.mxu1 %v3058_v48 }
 0x3de   : > { %3798 = vmatprep.subr.mxu1 %v3936_v42 }
 0x3df   : > { %3799 = vmatpush3.msra.mxu1 %v3057_v50 }
 0x3e0   : > { %3800 = vmatprep.subr.mxu1 %v3936_v42 }
 0x3e1   : > { %3801 = vmatpush3.msra.mxu1 %v3056_v51 }
 0x3e2   : > { %3802 = vmatprep.subr.mxu1 %v3936_v42 }
 0x3e3   : > { %3803 = vmatpush3.msra.mxu1 %v3055_v52  ;;  %v783_v55 = vpop.f32.mrf.mxu1 }
 0x3e4   : > { %3804 = vmatprep.subr.mxu1 %v3936_v42  ;;  %v784_v58 = vadd.f32 %v2886_v53, %v783_v55 }
 0x3e5   : > { %3805 = vmatpush3.msra.mxu1 %v3054_v54  ;;  %v3424_v59 = vpop.f32.mrf.mxu1  ;;  %v4937_v60 = vpop.f32.mrf.mxu0 }
 0x3e6   : > { %3806 = vmatprep.subr.mxu1 %v3936_v42  ;;  %797 = vst [vmem:[%s4931_s16] sm:$0xff] %v784_v58 }
 0x3e7   : > { %3807 = vmatpush3.msra.mxu1 %v3053_v57  ;;  %v3487_v0 = vpop.f32.mrf.mxu0 }
 0x3e8   : > { %3809 = vmatmul.mubr.msk.f32.vlgmr.msra.gmra.mxu1 %vm707_vm2, %v2377_v61  ;;  %3830 = vmatprep.subr.mxu1 %v3936_v42 }
 0x3e9   : > { %3831 = vmatpush3.msra.mxu1 %v3078_v63  ;;  %3846 = vmatprep.mubr.msk.f32.mxu1 %vm3937_vm1, %v3936_v42  ;;  %v788_v2 = vpop.f32.mrf.mxu1 }
 0x3ea   : > { %3832 = vmatprep.subr.mxu1 %v3936_v42  ;;  %v789_v4 = vadd.f32 %v2886_v53, %v788_v2 }
 0x3eb   : > { %3833 = vmatpush3.msra.mxu1 %v3077_v1  ;;  %v3427_v5 = vpop.f32.mrf.mxu1 }
 0x3ec   : > { %3834 = vmatprep.subr.mxu1 %v3936_v42  ;;  %798 = vst [vmem:[%s4931_s16 + $0x8] sm:$0xff] %v789_v4 }
 0x3ed   : > { %3835 = vmatpush3.msra.mxu1 %v3076_v3 }
 0x3ee   : > { %3836 = vmatprep.subr.mxu1 %v3936_v42  ;;  %v793_v8 = vpop.f32.mrf.mxu1 }
 0x3ef   : > { %3837 = vmatpush3.msra.mxu1 %v3075_v6  ;;  %v794_v9 = vadd.f32 %v2886_v53, %v793_v8 }
 0x3f0   : > { %3838 = vmatprep.subr.mxu1 %v3936_v42  ;;  %v3430_v11 = vpop.f32.mrf.mxu1 }
 0x3f1   : > { %3839 = vmatpush3.msra.mxu1 %v3074_v7  ;;  %799 = vst [vmem:[%s4931_s16 + $0x10] sm:$0xff] %v794_v9 }
 0x3f2   : > { %3840 = vmatprep.subr.mxu1 %v3936_v42 }
 0x3f3   : > { %3841 = vmatpush3.msra.mxu1 %v3073_v10 }
 0x3f4   : > { %3842 = vmatprep.subr.mxu1 %v3936_v42 }
 0x3f5   : > { %3843 = vmatpush3.msra.mxu1 %v3072_v12  ;;  %v875_v14 = vpop.f32.mrf.mxu1 }
 0x3f6   : > { %3844 = vmatprep.subr.mxu1 %v3936_v42  ;;  %v879_v29 = vadd.f32 %v875_v14, %v800_v27 }
 0x3f7   : > { %3845 = vmatpush3.msra.mxu1 %v3071_v13  ;;  %v3449_v17 = vpop.f32.mrf.mxu1 }
 0x3f8   : > { %3847 = vmatmul.mubr.msk.f32.vlgmr.msra.gmra.mxu1 %vm707_vm2, %v2543_v15  ;;  %3868 = vmatprep.subr.mxu1 %v3936_v42  ;;  %v1207_v49 = vpop.f32.mrf.mxu0 }
 0x3f9   : > { %3869 = vmatpush3.msra.mxu1 %v3096_v16  ;;  %3884 = vmatprep.mubr.msk.f32.mxu1 %vm3937_vm1, %v3936_v42 }
 0x3fa   : > { %3870 = vmatprep.subr.mxu1 %v3936_v42  ;;  %v3525_v22 = vpop.f32.mrf.mxu0 }
 0x3fb   : > { %3871 = vmatpush3.msra.mxu1 %v3095_v18 }
 0x3fc   : > { %3872 = vmatprep.subr.mxu1 %v3936_v42 }
 0x3fd   : > { %3873 = vmatpush3.msra.mxu1 %v3094_v20 }
 0x3fe   : > { %3874 = vmatprep.subr.mxu1 %v3936_v42 }
 0x3ff   : > { %3875 = vmatpush3.msra.mxu1 %v3093_v23 }
 0x400   : > { %3876 = vmatprep.subr.mxu1 %v3936_v42 }
 0x401   : > { %3877 = vmatpush3.msra.mxu1 %v3092_v24 }
 0x402   : > { %3878 = vmatprep.subr.mxu1 %v3936_v42 }
 0x403   : > { %3879 = vmatpush3.msra.mxu1 %v3091_v25 }
 0x404   : > { %3880 = vmatprep.subr.mxu1 %v3936_v42 }
 0x405   : > { %3881 = vmatpush3.msra.mxu1 %v3090_v26 }
 0x406   : > { %3882 = vmatprep.subr.mxu1 %v3936_v42 }
 0x407   : > { %3883 = vmatpush3.msra.mxu1 %v3089_v28  ;;  %v958_v30 = vpop.f32.mrf.mxu1 }
 0x408   : > { %3885 = vmatmul.mubr.msk.f32.vlgmr.msra.gmra.mxu1 %vm707_vm2, %v2709_v56  ;;  %v962_v31 = vadd.f32 %v958_v30, %v879_v29 }
 0x409   : > { %v3468_v32 = vpop.f32.mrf.mxu1 }
 0x40a   : > { %v1373_v33 = vpop.f32.mrf.mxu0  ;;  %v1045_v34 = vadd.f32 %v4937_v60, %v962_v31 }
 0x40c   : > { %v3563_v35 = vpop.f32.mrf.mxu0 }
 0x419   : > { %v1124_v21 = vpop.f32.mrf.mxu1 }
 0x41a   : > { %v1128_v36 = vadd.f32 %v1124_v21, %v1045_v34 }
 0x41b   : > { %v3506_v19 = vpop.f32.mrf.mxu1 }
 0x41c   : > { %v1536_v37 = vpop.f32.mrf.mxu0  ;;  %v1211_v38 = vadd.f32 %v1207_v49, %v1128_v36 }
 0x41e   : > { %v3601_v39 = vpop.f32.mrf.mxu0 }
 0x42b   : > { %v1290_v42 = vpop.f32.mrf.mxu1 }
 0x42c   : > { %v1294_v40 = vadd.f32 %v1290_v42, %v1211_v38 }
 0x42d   : > { %v3544_v41 = vpop.f32.mrf.mxu1 }
 0x42e   : > { %v1702_v62 = vpop.f32.mrf.mxu0  ;;  %v1377_v43 = vadd.f32 %v1373_v33, %v1294_v40 }
 0x430   : > { %v3639_v44 = vpop.f32.mrf.mxu0 }
 0x43d   : > { %v1456_v45 = vpop.f32.mrf.mxu1 }
 0x43e   : > { %v1460_v46 = vadd.f32 %v1456_v45, %v1377_v43 }
 0x43f   : > { %v3582_v47 = vpop.f32.mrf.mxu1 }
 0x440   : > { %v1868_v48 = vpop.f32.mrf.mxu0  ;;  %v1540_v50 = vadd.f32 %v1536_v37, %v1460_v46 }
 0x442   : > { %v3677_v51 = vpop.f32.mrf.mxu0 }
 0x44f   : > { %v1619_v52 = vpop.f32.mrf.mxu1 }
 0x450   : > { %v1623_v53 = vadd.f32 %v1619_v52, %v1540_v50 }
 0x451   : > { %v3620_v54 = vpop.f32.mrf.mxu1 }
 0x452   : > { %v2034_v55 = vpop.f32.mrf.mxu0  ;;  %v1706_v57 = vadd.f32 %v1702_v62, %v1623_v53 }
 0x454   : > { %v3715_v58 = vpop.f32.mrf.mxu0 }
 0x461   : > { %v1785_v59 = vpop.f32.mrf.mxu1 }
 0x462   : > { %v1789_v60 = vadd.f32 %v1785_v59, %v1706_v57 }
 0x463   : > { %v3658_v61 = vpop.f32.mrf.mxu1 }
 0x464   : > { %v2197_v63 = vpop.f32.mrf.mxu0  ;;  %v1872_v0 = vadd.f32 %v1868_v48, %v1789_v60 }
 0x466   : > { %v3753_v1 = vpop.f32.mrf.mxu0 }
 0x473   : > { %v1951_v2 = vpop.f32.mrf.mxu1 }
 0x474   : > { %v1955_v3 = vadd.f32 %v1951_v2, %v1872_v0 }
 0x475   : > { %v3696_v4 = vpop.f32.mrf.mxu1 }
 0x476   : > { %v2363_v5 = vpop.f32.mrf.mxu0  ;;  %v2038_v6 = vadd.f32 %v2034_v55, %v1955_v3 }
 0x478   : > { %v3791_v7 = vpop.f32.mrf.mxu0 }
 0x485   : > { %v2117_v8 = vpop.f32.mrf.mxu1 }
 0x486   : > { %v2121_v9 = vadd.f32 %v2117_v8, %v2038_v6 }
 0x487   : > { %v3734_v10 = vpop.f32.mrf.mxu1 }
 0x488   : > { %v2529_v11 = vpop.f32.mrf.mxu0  ;;  %v2201_v12 = vadd.f32 %v2197_v63, %v2121_v9 }
 0x48a   : > { %v3829_v13 = vpop.f32.mrf.mxu0 }
 0x497   : > { %v2280_v14 = vpop.f32.mrf.mxu1 }
 0x498   : > { %v2284_v15 = vadd.f32 %v2280_v14, %v2201_v12 }
 0x499   : > { %v3772_v16 = vpop.f32.mrf.mxu1 }
 0x49a   : > { %v2695_v17 = vpop.f32.mrf.mxu0  ;;  %v2367_v18 = vadd.f32 %v2363_v5, %v2284_v15 }
 0x49c   : > { %v3867_v49 = vpop.f32.mrf.mxu0 }
 0x4a8   : > { %v2446_v20 = vpop.f32.mrf.mxu1 }
 0x4a9   : > { %v2450_v25 = vadd.f32 %v2446_v20, %v2367_v18 }
 0x4aa   : > { %v3810_v22 = vpop.f32.mrf.mxu1 }
 0x4ab   : > { %v2533_v26 = vadd.f32 %v2529_v11, %v2450_v25 }
 0x4b8   : > { %v2612_v23 = vpop.f32.mrf.mxu1 }
 0x4b9   : > { %v2616_v27 = vadd.f32 %v2612_v23, %v2533_v26 }
 0x4ba   : > { %v3848_v24 = vpop.f32.mrf.mxu1 }
 0x4bb   : > { %v2699_v28 = vadd.f32 %v2695_v17, %v2616_v27 }
 0x4c8   : > { %v2778_v29 = vpop.f32.mrf.mxu1 }
 0x4c9   : > { %v2782_v56 = vadd.f32 %v2778_v29, %v2699_v28 }
 0x4ca   : > { %v3886_v30 = vpop.f32.mrf.mxu1 }
 0x4cb   : > { %2783 = vst [vmem:[%s314_s15] sm:$0x1] %v2782_v56 }
 0x4cc PF: > { %s19_s27 = sadd.s32 1, %s3933_s27  }
 0x4cd   : > { %p16_p4 = scmp.ge.s32.totalorder %s19_s27, 4  }
 0x4cf   :  { %18 = sbr.rel (!%p16_p4) target bundleno = 1 (0x1), region = 113 }

</bundles_post_ra>
